<compile_context>
chip_gen: v5e
topology: v5e:2x2
jax: 0.10.0
libtpu: 0.0.40
codegen_flags: <defaults>
</compile_context>

<pallas_src>
import functools

import jax
import jax.numpy as jnp
from jax import lax
from jax.experimental import pallas as pl
from jax.experimental.pallas import tpu as pltpu


# ----------------------------------------------------------------------------
# Fused 2-layer GRU kernel.  Grid = (num_time_chunks,), iterated sequentially.
# ----------------------------------------------------------------------------
def _gru2_kernel(x_ref, wi0_ref, b0_ref, wh0_ref, bh0n_ref, w1_ref, b1_ref,
                 out_ref, h0n_ref, h01_scr, gi0_scr, *, t_valid, masked):
    c = pl.program_id(0)
    tc = out_ref.shape[0]              # timesteps per chunk
    bp = h01_scr.shape[0]              # padded batch
    hp = h01_scr.shape[1] // 2         # padded hidden width (multiple of 128)
    hp2 = 2 * hp
    wdt = wh0_ref.dtype                # weight/MXU operand dtype (f32 or bf16)

    @pl.when(c == 0)
    def _init():
        h01_scr[...] = jnp.zeros_like(h01_scr)   # [h0 | h1] carry starts at 0

    # ---- Per-chunk layer-0 input projection (off the recurrent critical path).
    # gi0 already includes b_ih0 (all gates) + b_hh0[r|z] (folded in wrapper).
    gi0_scr[...] = (
        jnp.dot(x_ref[...].astype(wdt), wi0_ref[...],
                preferred_element_type=jnp.float32)
        + b0_ref[...])

    bh0n = bh0n_ref[...]               # (1, Hp)  f32 : b_hh0 n-slice
    b1 = b1_ref[...]                   # (1, 4Hp) f32 : fused layer-1 biases

    def cell0(gi0, h0):
        # Weights indexed at the dot site so Mosaic streams tiles from VMEM.
        gh0 = jnp.dot(h0.astype(wdt), wh0_ref[...],
                      preferred_element_type=jnp.float32)
        rz = jax.nn.sigmoid(gi0[:, :hp2] + gh0[:, :hp2])       # fused r,z
        r, z = rz[:, :hp], rz[:, hp:]
        n = jnp.tanh(gi0[:, hp2:] + r * (gh0[:, hp2:] + bh0n))
        return n + z * (h0 - n)                                 # (1-z)*n + z*h

    def cell1(h01):
        # One fused (Bp, 2Hp) x (2Hp, 4Hp) dot; columns = [rz | gi_n | gh_n].
        h1 = h01[:, hp:]
        g1 = jnp.dot(h01.astype(wdt), w1_ref[...],
                     preferred_element_type=jnp.float32) + b1
        rz = jax.nn.sigmoid(g1[:, :hp2])
        r, z = rz[:, :hp], rz[:, hp:]
        n = jnp.tanh(g1[:, hp2:3 * hp] + r * g1[:, 3 * hp:])
        return n + z * (h1 - n)

    t_base = c * tc

    # ---- Prologue: layer-0 for local step 0 (always a valid timestep).
    h01_in = h01_scr[...]
    h0_first = cell0(gi0_scr[:bp, :], h01_in[:, :hp])
    h01 = jnp.concatenate([h0_first, h01_in[:, hp:]], axis=-1)

    # ---- Wavefront: layer-0(step i) and layer-1(step i-1) run concurrently.
    def step(i, h01):
        row = pl.multiple_of(i * bp, bp)
        h0_prev = h01[:, :hp]
        h0_new = cell0(gi0_scr[pl.ds(row, bp), :], h0_prev)     # layer 0 @ i
        h1_new = cell1(h01)                                     # layer 1 @ i-1
        if masked:   # only traced when T % tc != 0 (padded tail)
            h0_new = jnp.where(t_base + i < t_valid, h0_new, h0_prev)
            h1_new = jnp.where(t_base + (i - 1) < t_valid, h1_new, h01[:, hp:])
        out_ref[i - 1] = h1_new
        return jnp.concatenate([h0_new, h1_new], axis=-1)

    h01 = lax.fori_loop(1, tc, step, h01, unroll=True if tc <= 16 else 4)

    # ---- Epilogue: layer-1 for the chunk's last timestep.
    h1_last = cell1(h01)
    if masked:
        h1_last = jnp.where(t_base + (tc - 1) < t_valid, h1_last, h01[:, hp:])
    out_ref[tc - 1] = h1_last

    h0_last = h01[:, :hp]
    h01_scr[...] = jnp.concatenate([h0_last, h1_last], axis=-1)  # carry chunks
    h0n_ref[...] = h0_last                                       # layer-0 final


def _round_up(x, m):
    return ((x + m - 1) // m) * m


def _fuse_gates(w, h, hp, in_pad=None):
    """PyTorch (3H, in) gate weights -> fused/padded (in_p, 3*hp), cols [r|z|n]."""
    in_size = w.shape[1]
    w3 = w.reshape(3, h, in_size)              # (3, out, in)
    w3 = jnp.transpose(w3, (0, 2, 1))          # (3, in, out)
    w3 = jnp.pad(w3, ((0, 0), (0, 0), (0, hp - h)))
    if in_pad is not None and in_pad > in_size:
        w3 = jnp.pad(w3, ((0, 0), (0, in_pad - in_size), (0, 0)))
    w3 = jnp.transpose(w3, (1, 0, 2))          # (in_p, 3, hp)
    return w3.reshape(w3.shape[0], 3 * hp)


def _fuse_bias(b, h, hp):
    b3 = jnp.pad(b.reshape(3, h), ((0, 0), (0, hp - h)))
    return b3.reshape(1, 3 * hp)


# ----------------------------------------------------------------------------
# ContextEncoder: parameter init + forward
# ----------------------------------------------------------------------------
def init_context_encoder_params(key, input_size, hidden_size, num_layers):
    """Deterministic init matching nn.GRU parameter shapes (uniform +-1/sqrt(H))."""
    params = []
    bound = 1.0 / jnp.sqrt(hidden_size)
    for layer in range(num_layers):
        in_size = input_size if layer == 0 else hidden_size
        key, k1, k2, k3, k4 = jax.random.split(key, 5)
        w_ih = jax.random.uniform(k1, (3 * hidden_size, in_size),
                                  minval=-bound, maxval=bound, dtype=jnp.float32)
        w_hh = jax.random.uniform(k2, (3 * hidden_size, hidden_size),
                                  minval=-bound, maxval=bound, dtype=jnp.float32)
        b_ih = jax.random.uniform(k3, (3 * hidden_size,),
                                  minval=-bound, maxval=bound, dtype=jnp.float32)
        b_hh = jax.random.uniform(k4, (3 * hidden_size,),
                                  minval=-bound, maxval=bound, dtype=jnp.float32)
        params.append((w_ih, w_hh, b_ih, b_hh))
    return params


@functools.partial(jax.jit,
                   static_argnames=("hidden_size", "weight_dtype", "time_chunk"))
def context_encoder_forward(X, params, hidden_size,
                            weight_dtype=jnp.float32, time_chunk=32):
    """Equivalent of ContextEncoder.forward: returns (output, h_n)."""
    assert len(params) == 2, "fused kernel implements the module's num_layers=2"
    H = hidden_size
    Hp = _round_up(H, 128)              # lane-dense hidden width
    T, B, I = X.shape
    Bp = _round_up(B, 8)                # sublane-dense batch
    Ip = _round_up(I, 8)
    tc = min(time_chunk, T)
    num_chunks = pl.cdiv(T, tc)
    Tp = num_chunks * tc
    masked = (Tp != T)

    f32 = jnp.float32
    (wih0, whh0, bih0, bhh0), (wih1, whh1, bih1, bhh1) = params

    # ---- Layer 0: fused gate weights + bias folding (b_hh r|z into gi bias).
    wi0 = _fuse_gates(wih0, H, Hp, in_pad=Ip)            # (Ip, 3Hp)
    wh0 = _fuse_gates(whh0, H, Hp, in_pad=Hp)            # (Hp, 3Hp)
    bih0_f = _fuse_bias(bih0, H, Hp)
    bhh0_f = _fuse_bias(bhh0, H, Hp)
    b0 = bih0_f.at[:, :2 * Hp].add(bhh0_f[:, :2 * Hp])   # (1, 3Hp)
    bh0n = bhh0_f[:, 2 * Hp:]                            # (1, Hp)

    # ---- Layer 1: single fused (2Hp, 4Hp) weight, columns [rz | gi_n | gh_n].
    wi1f = _fuse_gates(wih1, H, Hp, in_pad=Hp)           # (Hp, 3Hp)
    wh1f = _fuse_gates(whh1, H, Hp, in_pad=Hp)           # (Hp, 3Hp)
    zblk = jnp.zeros((Hp, Hp), f32)
    w1 = jnp.concatenate([
        jnp.concatenate([wi1f[:, :2 * Hp], wi1f[:, 2 * Hp:], zblk], axis=1),
        jnp.concatenate([wh1f[:, :2 * Hp], zblk, wh1f[:, 2 * Hp:]], axis=1),
    ], axis=0)                                           # (2Hp, 4Hp)
    bih1_f = _fuse_bias(bih1, H, Hp)
    bhh1_f = _fuse_bias(bhh1, H, Hp)
    b1 = jnp.concatenate([bih1_f[:, :2 * Hp] + bhh1_f[:, :2 * Hp],
                          bih1_f[:, 2 * Hp:], bhh1_f[:, 2 * Hp:]], axis=1)

    # MXU operands only (hidden state / biases / accumulation stay f32).
    wi0 = wi0.astype(weight_dtype)
    wh0 = wh0.astype(weight_dtype)
    w1 = w1.astype(weight_dtype)

    # ---- Pad input: time -> Tp (masked in kernel), batch -> Bp, features -> Ip.
    x = X.astype(f32)
    x = jnp.pad(x, ((0, Tp - T), (0, Bp - B), (0, Ip - I)))
    x2 = x.reshape(Tp * Bp, Ip).astype(weight_dtype)     # lane/sublane-dense slab

    grid_spec = pltpu.PrefetchScalarGridSpec(
        num_scalar_prefetch=0,
        grid=(num_chunks,),
        in_specs=[
            pl.BlockSpec((tc * Bp, Ip), lambda c: (c, 0)),      # X chunk
            pl.BlockSpec((Ip, 3 * Hp), lambda c: (0, 0)),       # Wi0  (resident)
            pl.BlockSpec((1, 3 * Hp), lambda c: (0, 0)),        # b0
            pl.BlockSpec((Hp, 3 * Hp), lambda c: (0, 0)),       # Wh0  (resident)
            pl.BlockSpec((1, Hp), lambda c: (0, 0)),            # b_hh0[n]
            pl.BlockSpec((2 * Hp, 4 * Hp), lambda c: (0, 0)),   # W1 fused
            pl.BlockSpec((1, 4 * Hp), lambda c: (0, 0)),        # b1 fused
        ],
        out_specs=[
            pl.BlockSpec((tc, Bp, Hp), lambda c: (c, 0, 0)),    # layer-1 output
            pl.BlockSpec((Bp, Hp), lambda c: (0, 0)),           # layer-0 final h
        ],
        scratch_shapes=[
            pltpu.VMEM((Bp, 2 * Hp), jnp.float32),              # [h0|h1] carry
            pltpu.VMEM((tc * Bp, 3 * Hp), jnp.float32),         # per-chunk Gi0
        ],
    )

    out_p, h0n_p = pl.pallas_call(
        functools.partial(_gru2_kernel, t_valid=T, masked=masked),
        out_shape=(
            jax.ShapeDtypeStruct((Tp, Bp, Hp), jnp.float32),
            jax.ShapeDtypeStruct((Bp, Hp), jnp.float32),
        ),
        grid_spec=grid_spec,
        compiler_params=pltpu.CompilerParams(
            dimension_semantics=("arbitrary",)),   # time recurrence is sequential
    )(x2, wi0, b0, wh0, bh0n, w1, b1)

    out = out_p[:T, :B, :H]                                   # (T, B, H)
    h_n = jnp.stack([h0n_p[:B, :H], out_p[T - 1, :B, :H]], axis=0)
    return out, h_n


# ----------------------------------------------------------------------------
# Pure-JAX reference (lax.scan) for validation
# ----------------------------------------------------------------------------
def _ref_gru(X, params, hidden_size):
    x = X.astype(jnp.float32)
    h_lasts = []
    for (w_ih, w_hh, b_ih, b_hh) in params:
        H = hidden_size

        def step(h, x_t):
            gi = x_t @ w_ih.T + b_ih
            gh = h @ w_hh.T + b_hh
            r = jax.nn.sigmoid(gi[:, :H] + gh[:, :H])
            z = jax.nn.sigmoid(gi[:, H:2 * H] + gh[:, H:2 * H])
            n = jnp.tanh(gi[:, 2 * H:] + r * gh[:, 2 * H:])
            h_new = (1.0 - z) * n + z * h
            return h_new, h_new

        h0 = jnp.zeros((x.shape[1], H), jnp.float32)
        h_last, outs = lax.scan(step, h0, x)
        x = outs
        h_lasts.append(h_last)
    return x, jnp.stack(h_lasts, axis=0)


# ----------------------------------------------------------------------------
if __name__ == "__main__":
    key = jax.random.PRNGKey(0)
    HIDDEN, NUM_LAYERS = 32, 2

    # Case 1: canonical small shapes — seq=8, batch=2, features=4, hidden=32.
    T, B, I = 8, 2, 4
    key, kx, kp = jax.random.split(key, 3)
    X = jax.random.normal(kx, (T, B, I), dtype=jnp.float32)
    params = init_context_encoder_params(kp, I, HIDDEN, NUM_LAYERS)

    out, h_n = context_encoder_forward(X, params, HIDDEN)
    out = jax.block_until_ready(out)
    h_n = jax.block_until_ready(h_n)
    assert out.shape == (T, B, HIDDEN), out.shape
    assert h_n.shape == (NUM_LAYERS, B, HIDDEN), h_n.shape

    ref_out, ref_hn = _ref_gru(X, params, HIDDEN)
    assert jnp.allclose(out, ref_out, atol=1e-4, rtol=1e-4)
    assert jnp.allclose(h_n, ref_hn, atol=1e-4, rtol=1e-4)

    # Case 2: ragged time chunking (masked tail) + batch/feature padding.
    T2, B2, I2 = 13, 3, 5
    key, kx2, kp2 = jax.random.split(key, 3)
    X2 = jax.random.normal(kx2, (T2, B2, I2), dtype=jnp.float32)
    params2 = init_context_encoder_params(kp2, I2, HIDDEN, NUM_LAYERS)
    out2, hn2 = context_encoder_forward(X2, params2, HIDDEN, time_chunk=5)
    out2 = jax.block_until_ready(out2)
    r_out2, r_hn2 = _ref_gru(X2, params2, HIDDEN)
    assert jnp.allclose(out2, r_out2, atol=1e-4, rtol=1e-4)
    assert jnp.allclose(hn2, r_hn2, atol=1e-4, rtol=1e-4)

    # Case 3: bf16 MXU operands (v6e/v7x fast path); recurrence stays f32.
    out_bf, hn_bf = context_encoder_forward(X, params, HIDDEN,
                                            weight_dtype=jnp.bfloat16)
    out_bf = jax.block_until_ready(out_bf)
    assert float(jnp.max(jnp.abs(out_bf - ref_out))) < 5e-2
    assert float(jnp.max(jnp.abs(hn_bf - ref_hn))) < 5e-2

    print("KERNEL_OK")
</pallas_src>

<mosaic_0001>
module attributes {stable_mosaic.version = 11 : i64} {
  func.func @_gru2_kernel(%arg0: i32, %arg1: memref<64x8xf32, #tpu.memory_space<vmem>>, %arg2: memref<8x384xf32, #tpu.memory_space<vmem>>, %arg3: memref<1x384xf32, #tpu.memory_space<vmem>>, %arg4: memref<128x384xf32, #tpu.memory_space<vmem>>, %arg5: memref<1x128xf32, #tpu.memory_space<vmem>>, %arg6: memref<256x512xf32, #tpu.memory_space<vmem>>, %arg7: memref<1x512xf32, #tpu.memory_space<vmem>>, %arg8: memref<8x8x128xf32, #tpu.memory_space<vmem>>, %arg9: memref<8x128xf32, #tpu.memory_space<vmem>>, %arg10: memref<8x256xf32, #tpu.memory_space<vmem>>, %arg11: memref<64x384xf32, #tpu.memory_space<vmem>>) attributes {dimension_semantics = [#tpu.dimension_semantics<arbitrary>], iteration_bounds = array<i64: 1>, scalar_prefetch = 0 : i64, scratch_operands = 2 : i64, tpu.core_type = #tpu.core_type<tc>, window_params = [{transform_indices = @transform_0, window_bounds = array<i64: 64, 8>}, {pipeline_mode = #tpu.pipeline_mode<synchronous>, transform_indices = @transform_1, window_bounds = array<i64: 8, 384>}, {pipeline_mode = #tpu.pipeline_mode<synchronous>, transform_indices = @transform_2, window_bounds = array<i64: 1, 384>}, {pipeline_mode = #tpu.pipeline_mode<synchronous>, transform_indices = @transform_3, window_bounds = array<i64: 128, 384>}, {pipeline_mode = #tpu.pipeline_mode<synchronous>, transform_indices = @transform_4, window_bounds = array<i64: 1, 128>}, {pipeline_mode = #tpu.pipeline_mode<synchronous>, transform_indices = @transform_5, window_bounds = array<i64: 256, 512>}, {pipeline_mode = #tpu.pipeline_mode<synchronous>, transform_indices = @transform_6, window_bounds = array<i64: 1, 512>}, {transform_indices = @transform_7, window_bounds = array<i64: 8, 8, 128>}, {pipeline_mode = #tpu.pipeline_mode<synchronous>, transform_indices = @transform_8, window_bounds = array<i64: 8, 128>}]} {
    %c0_i32 = arith.constant 0 : i32
    %0 = arith.cmpi eq, %arg0, %c0_i32 : i32
    %1 = arith.extui %0 : i1 to i32
    %c0_i32_0 = arith.constant 0 : i32
    %2 = arith.cmpi ne, %1, %c0_i32_0 : i32
    scf.if %2 {
      %cst_121 = arith.constant 0.000000e+00 : f32
      %445 = vector.broadcast %cst_121 : f32 to vector<8x256xf32>
      %c0_122 = arith.constant 0 : index
      %c0_123 = arith.constant 0 : index
      %446 = vector.load %arg10[%c0_122, %c0_123] : memref<8x256xf32, #tpu.memory_space<vmem>>, vector<8x256xf32>
      tpu.vector_store %arg10[%c0_122, %c0_123], %445 {strides = array<i32>} : memref<8x256xf32, #tpu.memory_space<vmem>>, vector<8x256xf32>,
    } else {
    }
    %c0 = arith.constant 0 : index
    %c0_1 = arith.constant 0 : index
    %3 = vector.load %arg1[%c0, %c0_1] : memref<64x8xf32, #tpu.memory_space<vmem>>, vector<64x8xf32>
    %c0_2 = arith.constant 0 : index
    %c0_3 = arith.constant 0 : index
    %4 = vector.load %arg2[%c0_2, %c0_3] : memref<8x384xf32, #tpu.memory_space<vmem>>, vector<8x384xf32>
    %cst = arith.constant dense<0.000000e+00> : vector<64x384xf32>
    %5 = tpu.matmul %3, %4, %cst {dimension_numbers = #tpu.dot_dimension_numbers<[1], [0], [0], [1], [0, 0, 1, 1], [], []>} : vector<64x8xf32>, vector<8x384xf32>, vector<64x384xf32> -> vector<64x384xf32>
    %c0_4 = arith.constant 0 : index
    %c0_5 = arith.constant 0 : index
    %6 = vector.load %arg3[%c0_4, %c0_5] : memref<1x384xf32, #tpu.memory_space<vmem>>, vector<1x384xf32>
    %7 = vector.broadcast %6 : vector<1x384xf32> to vector<64x384xf32>
    %8 = arith.addf %5, %7 : vector<64x384xf32>
    %c0_6 = arith.constant 0 : index
    %c0_7 = arith.constant 0 : index
    %9 = vector.load %arg11[%c0_6, %c0_7] : memref<64x384xf32, #tpu.memory_space<vmem>>, vector<64x384xf32>
    tpu.vector_store %arg11[%c0_6, %c0_7], %8 {strides = array<i32>} : memref<64x384xf32, #tpu.memory_space<vmem>>, vector<64x384xf32>,
    %c0_8 = arith.constant 0 : index
    %c0_9 = arith.constant 0 : index
    %10 = vector.load %arg5[%c0_8, %c0_9] : memref<1x128xf32, #tpu.memory_space<vmem>>, vector<1x128xf32>
    %c0_10 = arith.constant 0 : index
    %c0_11 = arith.constant 0 : index
    %11 = vector.load %arg7[%c0_10, %c0_11] : memref<1x512xf32, #tpu.memory_space<vmem>>, vector<1x512xf32>
    %c0_12 = arith.constant 0 : index
    %c0_13 = arith.constant 0 : index
    %12 = vector.load %arg10[%c0_12, %c0_13] : memref<8x256xf32, #tpu.memory_space<vmem>>, vector<8x256xf32>
    %c0_14 = arith.constant 0 : index
    %c0_15 = arith.constant 0 : index
    %13 = vector.load %arg11[%c0_14, %c0_15] : memref<64x384xf32, #tpu.memory_space<vmem>>, vector<8x384xf32>
    %14 = vector.extract_strided_slice %12 {offsets = [0, 0], sizes = [8, 128], strides = [1, 1]} : vector<8x256xf32> to vector<8x128xf32>
    %c0_16 = arith.constant 0 : index
    %c0_17 = arith.constant 0 : index
    %15 = vector.load %arg4[%c0_16, %c0_17] : memref<128x384xf32, #tpu.memory_space<vmem>>, vector<128x384xf32>
    %cst_18 = arith.constant dense<0.000000e+00> : vector<8x384xf32>
    %16 = tpu.matmul %14, %15, %cst_18 {dimension_numbers = #tpu.dot_dimension_numbers<[1], [0], [0], [1], [0, 0, 1, 1], [], []>} : vector<8x128xf32>, vector<128x384xf32>, vector<8x384xf32> -> vector<8x384xf32>
    %17 = vector.extract_strided_slice %13 {offsets = [0, 0], sizes = [8, 256], strides = [1, 1]} : vector<8x384xf32> to vector<8x256xf32>
    %18 = vector.extract_strided_slice %16 {offsets = [0, 0], sizes = [8, 256], strides = [1, 1]} : vector<8x384xf32> to vector<8x256xf32>
    %19 = arith.addf %17, %18 : vector<8x256xf32>
    %20 = arith.negf %19 : vector<8x256xf32>
    %21 = math.exp %20 : vector<8x256xf32>
    %cst_19 = arith.constant 1.000000e+00 : f32
    %22 = vector.broadcast %cst_19 : f32 to vector<8x256xf32>
    %23 = arith.addf %22, %21 : vector<8x256xf32>
    %24 = arith.divf %22, %23 : vector<8x256xf32>
    %25 = vector.extract_strided_slice %24 {offsets = [0, 0], sizes = [8, 128], strides = [1, 1]} : vector<8x256xf32> to vector<8x128xf32>
    %26 = vector.extract_strided_slice %24 {offsets = [0, 128], sizes = [8, 128], strides = [1, 1]} : vector<8x256xf32> to vector<8x128xf32>
    %27 = vector.extract_strided_slice %13 {offsets = [0, 256], sizes = [8, 128], strides = [1, 1]} : vector<8x384xf32> to vector<8x128xf32>
    %28 = vector.extract_strided_slice %16 {offsets = [0, 256], sizes = [8, 128], strides = [1, 1]} : vector<8x384xf32> to vector<8x128xf32>
    %29 = vector.broadcast %10 : vector<1x128xf32> to vector<8x128xf32>
    %30 = arith.addf %28, %29 : vector<8x128xf32>
    %31 = arith.mulf %25, %30 : vector<8x128xf32>
    %32 = arith.addf %27, %31 : vector<8x128xf32>
    %33 = math.tanh %32 : vector<8x128xf32>
    %34 = arith.subf %14, %33 : vector<8x128xf32>
    %35 = arith.mulf %26, %34 : vector<8x128xf32>
    %36 = arith.addf %33, %35 : vector<8x128xf32>
    %37 = vector.extract_strided_slice %12 {offsets = [0, 128], sizes = [8, 128], strides = [1, 1]} : vector<8x256xf32> to vector<8x128xf32>
    %38 = tpu.concatenate %36, %37 in 1 : vector<8x128xf32>, vector<8x128xf32> -> vector<8x256xf32>
    %c1_i32 = arith.constant 1 : i32
    %c8_i32 = arith.constant 8 : i32
    %39 = arith.muli %c1_i32, %c8_i32 : i32
    %40 = tpu.assume_multiple %39, 8 : i32
    %41 = vector.extract_strided_slice %38 {offsets = [0, 0], sizes = [8, 128], strides = [1, 1]} : vector<8x256xf32> to vector<8x128xf32>
    %42 = arith.index_cast %40 : i32 to index
    %c0_20 = arith.constant 0 : index
    %43 = vector.load %arg11[%42, %c0_20] : memref<64x384xf32, #tpu.memory_space<vmem>>, vector<8x384xf32>
    %c0_21 = arith.constant 0 : index
    %c0_22 = arith.constant 0 : index
    %44 = vector.load %arg4[%c0_21, %c0_22] : memref<128x384xf32, #tpu.memory_space<vmem>>, vector<128x384xf32>
    %cst_23 = arith.constant dense<0.000000e+00> : vector<8x384xf32>
    %45 = tpu.matmul %41, %44, %cst_23 {dimension_numbers = #tpu.dot_dimension_numbers<[1], [0], [0], [1], [0, 0, 1, 1], [], []>} : vector<8x128xf32>, vector<128x384xf32>, vector<8x384xf32> -> vector<8x384xf32>
    %46 = vector.extract_strided_slice %43 {offsets = [0, 0], sizes = [8, 256], strides = [1, 1]} : vector<8x384xf32> to vector<8x256xf32>
    %47 = vector.extract_strided_slice %45 {offsets = [0, 0], sizes = [8, 256], strides = [1, 1]} : vector<8x384xf32> to vector<8x256xf32>
    %48 = arith.addf %46, %47 : vector<8x256xf32>
    %49 = arith.negf %48 : vector<8x256xf32>
    %50 = math.exp %49 : vector<8x256xf32>
    %cst_24 = arith.constant 1.000000e+00 : f32
    %51 = vector.broadcast %cst_24 : f32 to vector<8x256xf32>
    %52 = arith.addf %51, %50 : vector<8x256xf32>
    %53 = arith.divf %51, %52 : vector<8x256xf32>
    %54 = vector.extract_strided_slice %53 {offsets = [0, 0], sizes = [8, 128], strides = [1, 1]} : vector<8x256xf32> to vector<8x128xf32>
    %55 = vector.extract_strided_slice %53 {offsets = [0, 128], sizes = [8, 128], strides = [1, 1]} : vector<8x256xf32> to vector<8x128xf32>
    %56 = vector.extract_strided_slice %43 {offsets = [0, 256], sizes = [8, 128], strides = [1, 1]} : vector<8x384xf32> to vector<8x128xf32>
    %57 = vector.extract_strided_slice %45 {offsets = [0, 256], sizes = [8, 128], strides = [1, 1]} : vector<8x384xf32> to vector<8x128xf32>
    %58 = vector.broadcast %10 : vector<1x128xf32> to vector<8x128xf32>
    %59 = arith.addf %57, %58 : vector<8x128xf32>
    %60 = arith.mulf %54, %59 : vector<8x128xf32>
    %61 = arith.addf %56, %60 : vector<8x128xf32>
    %62 = math.tanh %61 : vector<8x128xf32>
    %63 = arith.subf %41, %62 : vector<8x128xf32>
    %64 = arith.mulf %55, %63 : vector<8x128xf32>
    %65 = arith.addf %62, %64 : vector<8x128xf32>
    %66 = vector.extract_strided_slice %38 {offsets = [0, 128], sizes = [8, 128], strides = [1, 1]} : vector<8x256xf32> to vector<8x128xf32>
    %c0_25 = arith.constant 0 : index
    %c0_26 = arith.constant 0 : index
    %67 = vector.load %arg6[%c0_25, %c0_26] : memref<256x512xf32, #tpu.memory_space<vmem>>, vector<256x512xf32>
    %cst_27 = arith.constant dense<0.000000e+00> : vector<8x512xf32>
    %68 = tpu.matmul %38, %67, %cst_27 {dimension_numbers = #tpu.dot_dimension_numbers<[1], [0], [0], [1], [0, 0, 1, 1], [], []>} : vector<8x256xf32>, vector<256x512xf32>, vector<8x512xf32> -> vector<8x512xf32>
    %69 = vector.broadcast %11 : vector<1x512xf32> to vector<8x512xf32>
    %70 = arith.addf %68, %69 : vector<8x512xf32>
    %71 = vector.extract_strided_slice %70 {offsets = [0, 0], sizes = [8, 256], strides = [1, 1]} : vector<8x512xf32> to vector<8x256xf32>
    %72 = arith.negf %71 : vector<8x256xf32>
    %73 = math.exp %72 : vector<8x256xf32>
    %cst_28 = arith.constant 1.000000e+00 : f32
    %74 = vector.broadcast %cst_28 : f32 to vector<8x256xf32>
    %75 = arith.addf %74, %73 : vector<8x256xf32>
    %76 = arith.divf %74, %75 : vector<8x256xf32>
    %77 = vector.extract_strided_slice %76 {offsets = [0, 0], sizes = [8, 128], strides = [1, 1]} : vector<8x256xf32> to vector<8x128xf32>
    %78 = vector.extract_strided_slice %76 {offsets = [0, 128], sizes = [8, 128], strides = [1, 1]} : vector<8x256xf32> to vector<8x128xf32>
    %79 = vector.extract_strided_slice %70 {offsets = [0, 256], sizes = [8, 128], strides = [1, 1]} : vector<8x512xf32> to vector<8x128xf32>
    %80 = vector.extract_strided_slice %70 {offsets = [0, 384], sizes = [8, 128], strides = [1, 1]} : vector<8x512xf32> to vector<8x128xf32>
    %81 = arith.mulf %77, %80 : vector<8x128xf32>
    %82 = arith.addf %79, %81 : vector<8x128xf32>
    %83 = math.tanh %82 : vector<8x128xf32>
    %84 = arith.subf %66, %83 : vector<8x128xf32>
    %85 = arith.mulf %78, %84 : vector<8x128xf32>
    %86 = arith.addf %83, %85 : vector<8x128xf32>
    %c1_i32_29 = arith.constant 1 : i32
    %87 = arith.subi %c1_i32, %c1_i32_29 : i32
    %88 = arith.index_cast %87 : i32 to index
    %c0_30 = arith.constant 0 : index
    %c0_31 = arith.constant 0 : index
    %89 = vector.load %arg8[%88, %c0_30, %c0_31] : memref<8x8x128xf32, #tpu.memory_space<vmem>>, vector<1x8x128xf32>
    %90 = vector.shape_cast %89 : vector<1x8x128xf32> to vector<8x128xf32>
    %91 = vector.shape_cast %86 : vector<8x128xf32> to vector<1x8x128xf32>
    tpu.vector_store %arg8[%88, %c0_30, %c0_31], %91 {strides = array<i32>} : memref<8x8x128xf32, #tpu.memory_space<vmem>>, vector<1x8x128xf32>,
    %92 = tpu.concatenate %65, %86 in 1 : vector<8x128xf32>, vector<8x128xf32> -> vector<8x256xf32>
    %c2_i32 = arith.constant 2 : i32
    %c8_i32_32 = arith.constant 8 : i32
    %93 = arith.muli %c2_i32, %c8_i32_32 : i32
    %94 = tpu.assume_multiple %93, 8 : i32
    %95 = vector.extract_strided_slice %92 {offsets = [0, 0], sizes = [8, 128], strides = [1, 1]} : vector<8x256xf32> to vector<8x128xf32>
    %96 = arith.index_cast %94 : i32 to index
    %c0_33 = arith.constant 0 : index
    %97 = vector.load %arg11[%96, %c0_33] : memref<64x384xf32, #tpu.memory_space<vmem>>, vector<8x384xf32>
    %c0_34 = arith.constant 0 : index
    %c0_35 = arith.constant 0 : index
    %98 = vector.load %arg4[%c0_34, %c0_35] : memref<128x384xf32, #tpu.memory_space<vmem>>, vector<128x384xf32>
    %cst_36 = arith.constant dense<0.000000e+00> : vector<8x384xf32>
    %99 = tpu.matmul %95, %98, %cst_36 {dimension_numbers = #tpu.dot_dimension_numbers<[1], [0], [0], [1], [0, 0, 1, 1], [], []>} : vector<8x128xf32>, vector<128x384xf32>, vector<8x384xf32> -> vector<8x384xf32>
    %100 = vector.extract_strided_slice %97 {offsets = [0, 0], sizes = [8, 256], strides = [1, 1]} : vector<8x384xf32> to vector<8x256xf32>
    %101 = vector.extract_strided_slice %99 {offsets = [0, 0], sizes = [8, 256], strides = [1, 1]} : vector<8x384xf32> to vector<8x256xf32>
    %102 = arith.addf %100, %101 : vector<8x256xf32>
    %103 = arith.negf %102 : vector<8x256xf32>
    %104 = math.exp %103 : vector<8x256xf32>
    %cst_37 = arith.constant 1.000000e+00 : f32
    %105 = vector.broadcast %cst_37 : f32 to vector<8x256xf32>
    %106 = arith.addf %105, %104 : vector<8x256xf32>
    %107 = arith.divf %105, %106 : vector<8x256xf32>
    %108 = vector.extract_strided_slice %107 {offsets = [0, 0], sizes = [8, 128], strides = [1, 1]} : vector<8x256xf32> to vector<8x128xf32>
    %109 = vector.extract_strided_slice %107 {offsets = [0, 128], sizes = [8, 128], strides = [1, 1]} : vector<8x256xf32> to vector<8x128xf32>
    %110 = vector.extract_strided_slice %97 {offsets = [0, 256], sizes = [8, 128], strides = [1, 1]} : vector<8x384xf32> to vector<8x128xf32>
    %111 = vector.extract_strided_slice %99 {offsets = [0, 256], sizes = [8, 128], strides = [1, 1]} : vector<8x384xf32> to vector<8x128xf32>
    %112 = vector.broadcast %10 : vector<1x128xf32> to vector<8x128xf32>
    %113 = arith.addf %111, %112 : vector<8x128xf32>
    %114 = arith.mulf %108, %113 : vector<8x128xf32>
    %115 = arith.addf %110, %114 : vector<8x128xf32>
    %116 = math.tanh %115 : vector<8x128xf32>
    %117 = arith.subf %95, %116 : vector<8x128xf32>
    %118 = arith.mulf %109, %117 : vector<8x128xf32>
    %119 = arith.addf %116, %118 : vector<8x128xf32>
    %120 = vector.extract_strided_slice %92 {offsets = [0, 128], sizes = [8, 128], strides = [1, 1]} : vector<8x256xf32> to vector<8x128xf32>
    %c0_38 = arith.constant 0 : index
    %c0_39 = arith.constant 0 : index
    %121 = vector.load %arg6[%c0_38, %c0_39] : memref<256x512xf32, #tpu.memory_space<vmem>>, vector<256x512xf32>
    %cst_40 = arith.constant dense<0.000000e+00> : vector<8x512xf32>
    %122 = tpu.matmul %92, %121, %cst_40 {dimension_numbers = #tpu.dot_dimension_numbers<[1], [0], [0], [1], [0, 0, 1, 1], [], []>} : vector<8x256xf32>, vector<256x512xf32>, vector<8x512xf32> -> vector<8x512xf32>
    %123 = vector.broadcast %11 : vector<1x512xf32> to vector<8x512xf32>
    %124 = arith.addf %122, %123 : vector<8x512xf32>
    %125 = vector.extract_strided_slice %124 {offsets = [0, 0], sizes = [8, 256], strides = [1, 1]} : vector<8x512xf32> to vector<8x256xf32>
    %126 = arith.negf %125 : vector<8x256xf32>
    %127 = math.exp %126 : vector<8x256xf32>
    %cst_41 = arith.constant 1.000000e+00 : f32
    %128 = vector.broadcast %cst_41 : f32 to vector<8x256xf32>
    %129 = arith.addf %128, %127 : vector<8x256xf32>
    %130 = arith.divf %128, %129 : vector<8x256xf32>
    %131 = vector.extract_strided_slice %130 {offsets = [0, 0], sizes = [8, 128], strides = [1, 1]} : vector<8x256xf32> to vector<8x128xf32>
    %132 = vector.extract_strided_slice %130 {offsets = [0, 128], sizes = [8, 128], strides = [1, 1]} : vector<8x256xf32> to vector<8x128xf32>
    %133 = vector.extract_strided_slice %124 {offsets = [0, 256], sizes = [8, 128], strides = [1, 1]} : vector<8x512xf32> to vector<8x128xf32>
    %134 = vector.extract_strided_slice %124 {offsets = [0, 384], sizes = [8, 128], strides = [1, 1]} : vector<8x512xf32> to vector<8x128xf32>
    %135 = arith.mulf %131, %134 : vector<8x128xf32>
    %136 = arith.addf %133, %135 : vector<8x128xf32>
    %137 = math.tanh %136 : vector<8x128xf32>
    %138 = arith.subf %120, %137 : vector<8x128xf32>
    %139 = arith.mulf %132, %138 : vector<8x128xf32>
    %140 = arith.addf %137, %139 : vector<8x128xf32>
    %c1_i32_42 = arith.constant 1 : i32
    %141 = arith.subi %c2_i32, %c1_i32_42 : i32
    %142 = arith.index_cast %141 : i32 to index
    %c0_43 = arith.constant 0 : index
    %c0_44 = arith.constant 0 : index
    %143 = vector.load %arg8[%142, %c0_43, %c0_44] : memref<8x8x128xf32, #tpu.memory_space<vmem>>, vector<1x8x128xf32>
    %144 = vector.shape_cast %143 : vector<1x8x128xf32> to vector<8x128xf32>
    %145 = vector.shape_cast %140 : vector<8x128xf32> to vector<1x8x128xf32>
    tpu.vector_store %arg8[%142, %c0_43, %c0_44], %145 {strides = array<i32>} : memref<8x8x128xf32, #tpu.memory_space<vmem>>, vector<1x8x128xf32>,
    %146 = tpu.concatenate %119, %140 in 1 : vector<8x128xf32>, vector<8x128xf32> -> vector<8x256xf32>
    %c3_i32 = arith.constant 3 : i32
    %c8_i32_45 = arith.constant 8 : i32
    %147 = arith.muli %c3_i32, %c8_i32_45 : i32
    %148 = tpu.assume_multiple %147, 8 : i32
    %149 = vector.extract_strided_slice %146 {offsets = [0, 0], sizes = [8, 128], strides = [1, 1]} : vector<8x256xf32> to vector<8x128xf32>
    %150 = arith.index_cast %148 : i32 to index
    %c0_46 = arith.constant 0 : index
    %151 = vector.load %arg11[%150, %c0_46] : memref<64x384xf32, #tpu.memory_space<vmem>>, vector<8x384xf32>
    %c0_47 = arith.constant 0 : index
    %c0_48 = arith.constant 0 : index
    %152 = vector.load %arg4[%c0_47, %c0_48] : memref<128x384xf32, #tpu.memory_space<vmem>>, vector<128x384xf32>
    %cst_49 = arith.constant dense<0.000000e+00> : vector<8x384xf32>
    %153 = tpu.matmul %149, %152, %cst_49 {dimension_numbers = #tpu.dot_dimension_numbers<[1], [0], [0], [1], [0, 0, 1, 1], [], []>} : vector<8x128xf32>, vector<128x384xf32>, vector<8x384xf32> -> vector<8x384xf32>
    %154 = vector.extract_strided_slice %151 {offsets = [0, 0], sizes = [8, 256], strides = [1, 1]} : vector<8x384xf32> to vector<8x256xf32>
    %155 = vector.extract_strided_slice %153 {offsets = [0, 0], sizes = [8, 256], strides = [1, 1]} : vector<8x384xf32> to vector<8x256xf32>
    %156 = arith.addf %154, %155 : vector<8x256xf32>
    %157 = arith.negf %156 : vector<8x256xf32>
    %158 = math.exp %157 : vector<8x256xf32>
    %cst_50 = arith.constant 1.000000e+00 : f32
    %159 = vector.broadcast %cst_50 : f32 to vector<8x256xf32>
    %160 = arith.addf %159, %158 : vector<8x256xf32>
    %161 = arith.divf %159, %160 : vector<8x256xf32>
    %162 = vector.extract_strided_slice %161 {offsets = [0, 0], sizes = [8, 128], strides = [1, 1]} : vector<8x256xf32> to vector<8x128xf32>
    %163 = vector.extract_strided_slice %161 {offsets = [0, 128], sizes = [8, 128], strides = [1, 1]} : vector<8x256xf32> to vector<8x128xf32>
    %164 = vector.extract_strided_slice %151 {offsets = [0, 256], sizes = [8, 128], strides = [1, 1]} : vector<8x384xf32> to vector<8x128xf32>
    %165 = vector.extract_strided_slice %153 {offsets = [0, 256], sizes = [8, 128], strides = [1, 1]} : vector<8x384xf32> to vector<8x128xf32>
    %166 = vector.broadcast %10 : vector<1x128xf32> to vector<8x128xf32>
    %167 = arith.addf %165, %166 : vector<8x128xf32>
    %168 = arith.mulf %162, %167 : vector<8x128xf32>
    %169 = arith.addf %164, %168 : vector<8x128xf32>
    %170 = math.tanh %169 : vector<8x128xf32>
    %171 = arith.subf %149, %170 : vector<8x128xf32>
    %172 = arith.mulf %163, %171 : vector<8x128xf32>
    %173 = arith.addf %170, %172 : vector<8x128xf32>
    %174 = vector.extract_strided_slice %146 {offsets = [0, 128], sizes = [8, 128], strides = [1, 1]} : vector<8x256xf32> to vector<8x128xf32>
    %c0_51 = arith.constant 0 : index
    %c0_52 = arith.constant 0 : index
    %175 = vector.load %arg6[%c0_51, %c0_52] : memref<256x512xf32, #tpu.memory_space<vmem>>, vector<256x512xf32>
    %cst_53 = arith.constant dense<0.000000e+00> : vector<8x512xf32>
    %176 = tpu.matmul %146, %175, %cst_53 {dimension_numbers = #tpu.dot_dimension_numbers<[1], [0], [0], [1], [0, 0, 1, 1], [], []>} : vector<8x256xf32>, vector<256x512xf32>, vector<8x512xf32> -> vector<8x512xf32>
    %177 = vector.broadcast %11 : vector<1x512xf32> to vector<8x512xf32>
    %178 = arith.addf %176, %177 : vector<8x512xf32>
    %179 = vector.extract_strided_slice %178 {offsets = [0, 0], sizes = [8, 256], strides = [1, 1]} : vector<8x512xf32> to vector<8x256xf32>
    %180 = arith.negf %179 : vector<8x256xf32>
    %181 = math.exp %180 : vector<8x256xf32>
    %cst_54 = arith.constant 1.000000e+00 : f32
    %182 = vector.broadcast %cst_54 : f32 to vector<8x256xf32>
    %183 = arith.addf %182, %181 : vector<8x256xf32>
    %184 = arith.divf %182, %183 : vector<8x256xf32>
    %185 = vector.extract_strided_slice %184 {offsets = [0, 0], sizes = [8, 128], strides = [1, 1]} : vector<8x256xf32> to vector<8x128xf32>
    %186 = vector.extract_strided_slice %184 {offsets = [0, 128], sizes = [8, 128], strides = [1, 1]} : vector<8x256xf32> to vector<8x128xf32>
    %187 = vector.extract_strided_slice %178 {offsets = [0, 256], sizes = [8, 128], strides = [1, 1]} : vector<8x512xf32> to vector<8x128xf32>
    %188 = vector.extract_strided_slice %178 {offsets = [0, 384], sizes = [8, 128], strides = [1, 1]} : vector<8x512xf32> to vector<8x128xf32>
    %189 = arith.mulf %185, %188 : vector<8x128xf32>
    %190 = arith.addf %187, %189 : vector<8x128xf32>
    %191 = math.tanh %190 : vector<8x128xf32>
    %192 = arith.subf %174, %191 : vector<8x128xf32>
    %193 = arith.mulf %186, %192 : vector<8x128xf32>
    %194 = arith.addf %191, %193 : vector<8x128xf32>
    %c1_i32_55 = arith.constant 1 : i32
    %195 = arith.subi %c3_i32, %c1_i32_55 : i32
    %196 = arith.index_cast %195 : i32 to index
    %c0_56 = arith.constant 0 : index
    %c0_57 = arith.constant 0 : index
    %197 = vector.load %arg8[%196, %c0_56, %c0_57] : memref<8x8x128xf32, #tpu.memory_space<vmem>>, vector<1x8x128xf32>
    %198 = vector.shape_cast %197 : vector<1x8x128xf32> to vector<8x128xf32>
    %199 = vector.shape_cast %194 : vector<8x128xf32> to vector<1x8x128xf32>
    tpu.vector_store %arg8[%196, %c0_56, %c0_57], %199 {strides = array<i32>} : memref<8x8x128xf32, #tpu.memory_space<vmem>>, vector<1x8x128xf32>,
    %200 = tpu.concatenate %173, %194 in 1 : vector<8x128xf32>, vector<8x128xf32> -> vector<8x256xf32>
    %c4_i32 = arith.constant 4 : i32
    %c8_i32_58 = arith.constant 8 : i32
    %201 = arith.muli %c4_i32, %c8_i32_58 : i32
    %202 = tpu.assume_multiple %201, 8 : i32
    %203 = vector.extract_strided_slice %200 {offsets = [0, 0], sizes = [8, 128], strides = [1, 1]} : vector<8x256xf32> to vector<8x128xf32>
    %204 = arith.index_cast %202 : i32 to index
    %c0_59 = arith.constant 0 : index
    %205 = vector.load %arg11[%204, %c0_59] : memref<64x384xf32, #tpu.memory_space<vmem>>, vector<8x384xf32>
    %c0_60 = arith.constant 0 : index
    %c0_61 = arith.constant 0 : index
    %206 = vector.load %arg4[%c0_60, %c0_61] : memref<128x384xf32, #tpu.memory_space<vmem>>, vector<128x384xf32>
    %cst_62 = arith.constant dense<0.000000e+00> : vector<8x384xf32>
    %207 = tpu.matmul %203, %206, %cst_62 {dimension_numbers = #tpu.dot_dimension_numbers<[1], [0], [0], [1], [0, 0, 1, 1], [], []>} : vector<8x128xf32>, vector<128x384xf32>, vector<8x384xf32> -> vector<8x384xf32>
    %208 = vector.extract_strided_slice %205 {offsets = [0, 0], sizes = [8, 256], strides = [1, 1]} : vector<8x384xf32> to vector<8x256xf32>
    %209 = vector.extract_strided_slice %207 {offsets = [0, 0], sizes = [8, 256], strides = [1, 1]} : vector<8x384xf32> to vector<8x256xf32>
    %210 = arith.addf %208, %209 : vector<8x256xf32>
    %211 = arith.negf %210 : vector<8x256xf32>
    %212 = math.exp %211 : vector<8x256xf32>
    %cst_63 = arith.constant 1.000000e+00 : f32
    %213 = vector.broadcast %cst_63 : f32 to vector<8x256xf32>
    %214 = arith.addf %213, %212 : vector<8x256xf32>
    %215 = arith.divf %213, %214 : vector<8x256xf32>
    %216 = vector.extract_strided_slice %215 {offsets = [0, 0], sizes = [8, 128], strides = [1, 1]} : vector<8x256xf32> to vector<8x128xf32>
    %217 = vector.extract_strided_slice %215 {offsets = [0, 128], sizes = [8, 128], strides = [1, 1]} : vector<8x256xf32> to vector<8x128xf32>
    %218 = vector.extract_strided_slice %205 {offsets = [0, 256], sizes = [8, 128], strides = [1, 1]} : vector<8x384xf32> to vector<8x128xf32>
    %219 = vector.extract_strided_slice %207 {offsets = [0, 256], sizes = [8, 128], strides = [1, 1]} : vector<8x384xf32> to vector<8x128xf32>
    %220 = vector.broadcast %10 : vector<1x128xf32> to vector<8x128xf32>
    %221 = arith.addf %219, %220 : vector<8x128xf32>
    %222 = arith.mulf %216, %221 : vector<8x128xf32>
    %223 = arith.addf %218, %222 : vector<8x128xf32>
    %224 = math.tanh %223 : vector<8x128xf32>
    %225 = arith.subf %203, %224 : vector<8x128xf32>
    %226 = arith.mulf %217, %225 : vector<8x128xf32>
    %227 = arith.addf %224, %226 : vector<8x128xf32>
    %228 = vector.extract_strided_slice %200 {offsets = [0, 128], sizes = [8, 128], strides = [1, 1]} : vector<8x256xf32> to vector<8x128xf32>
    %c0_64 = arith.constant 0 : index
    %c0_65 = arith.constant 0 : index
    %229 = vector.load %arg6[%c0_64, %c0_65] : memref<256x512xf32, #tpu.memory_space<vmem>>, vector<256x512xf32>
    %cst_66 = arith.constant dense<0.000000e+00> : vector<8x512xf32>
    %230 = tpu.matmul %200, %229, %cst_66 {dimension_numbers = #tpu.dot_dimension_numbers<[1], [0], [0], [1], [0, 0, 1, 1], [], []>} : vector<8x256xf32>, vector<256x512xf32>, vector<8x512xf32> -> vector<8x512xf32>
    %231 = vector.broadcast %11 : vector<1x512xf32> to vector<8x512xf32>
    %232 = arith.addf %230, %231 : vector<8x512xf32>
    %233 = vector.extract_strided_slice %232 {offsets = [0, 0], sizes = [8, 256], strides = [1, 1]} : vector<8x512xf32> to vector<8x256xf32>
    %234 = arith.negf %233 : vector<8x256xf32>
    %235 = math.exp %234 : vector<8x256xf32>
    %cst_67 = arith.constant 1.000000e+00 : f32
    %236 = vector.broadcast %cst_67 : f32 to vector<8x256xf32>
    %237 = arith.addf %236, %235 : vector<8x256xf32>
    %238 = arith.divf %236, %237 : vector<8x256xf32>
    %239 = vector.extract_strided_slice %238 {offsets = [0, 0], sizes = [8, 128], strides = [1, 1]} : vector<8x256xf32> to vector<8x128xf32>
    %240 = vector.extract_strided_slice %238 {offsets = [0, 128], sizes = [8, 128], strides = [1, 1]} : vector<8x256xf32> to vector<8x128xf32>
    %241 = vector.extract_strided_slice %232 {offsets = [0, 256], sizes = [8, 128], strides = [1, 1]} : vector<8x512xf32> to vector<8x128xf32>
    %242 = vector.extract_strided_slice %232 {offsets = [0, 384], sizes = [8, 128], strides = [1, 1]} : vector<8x512xf32> to vector<8x128xf32>
    %243 = arith.mulf %239, %242 : vector<8x128xf32>
    %244 = arith.addf %241, %243 : vector<8x128xf32>
    %245 = math.tanh %244 : vector<8x128xf32>
    %246 = arith.subf %228, %245 : vector<8x128xf32>
    %247 = arith.mulf %240, %246 : vector<8x128xf32>
    %248 = arith.addf %245, %247 : vector<8x128xf32>
    %c1_i32_68 = arith.constant 1 : i32
    %249 = arith.subi %c4_i32, %c1_i32_68 : i32
    %250 = arith.index_cast %249 : i32 to index
    %c0_69 = arith.constant 0 : index
    %c0_70 = arith.constant 0 : index
    %251 = vector.load %arg8[%250, %c0_69, %c0_70] : memref<8x8x128xf32, #tpu.memory_space<vmem>>, vector<1x8x128xf32>
    %252 = vector.shape_cast %251 : vector<1x8x128xf32> to vector<8x128xf32>
    %253 = vector.shape_cast %248 : vector<8x128xf32> to vector<1x8x128xf32>
    tpu.vector_store %arg8[%250, %c0_69, %c0_70], %253 {strides = array<i32>} : memref<8x8x128xf32, #tpu.memory_space<vmem>>, vector<1x8x128xf32>,
    %254 = tpu.concatenate %227, %248 in 1 : vector<8x128xf32>, vector<8x128xf32> -> vector<8x256xf32>
    %c5_i32 = arith.constant 5 : i32
    %c8_i32_71 = arith.constant 8 : i32
    %255 = arith.muli %c5_i32, %c8_i32_71 : i32
    %256 = tpu.assume_multiple %255, 8 : i32
    %257 = vector.extract_strided_slice %254 {offsets = [0, 0], sizes = [8, 128], strides = [1, 1]} : vector<8x256xf32> to vector<8x128xf32>
    %258 = arith.index_cast %256 : i32 to index
    %c0_72 = arith.constant 0 : index
    %259 = vector.load %arg11[%258, %c0_72] : memref<64x384xf32, #tpu.memory_space<vmem>>, vector<8x384xf32>
    %c0_73 = arith.constant 0 : index
    %c0_74 = arith.constant 0 : index
    %260 = vector.load %arg4[%c0_73, %c0_74] : memref<128x384xf32, #tpu.memory_space<vmem>>, vector<128x384xf32>
    %cst_75 = arith.constant dense<0.000000e+00> : vector<8x384xf32>
    %261 = tpu.matmul %257, %260, %cst_75 {dimension_numbers = #tpu.dot_dimension_numbers<[1], [0], [0], [1], [0, 0, 1, 1], [], []>} : vector<8x128xf32>, vector<128x384xf32>, vector<8x384xf32> -> vector<8x384xf32>
    %262 = vector.extract_strided_slice %259 {offsets = [0, 0], sizes = [8, 256], strides = [1, 1]} : vector<8x384xf32> to vector<8x256xf32>
    %263 = vector.extract_strided_slice %261 {offsets = [0, 0], sizes = [8, 256], strides = [1, 1]} : vector<8x384xf32> to vector<8x256xf32>
    %264 = arith.addf %262, %263 : vector<8x256xf32>
    %265 = arith.negf %264 : vector<8x256xf32>
    %266 = math.exp %265 : vector<8x256xf32>
    %cst_76 = arith.constant 1.000000e+00 : f32
    %267 = vector.broadcast %cst_76 : f32 to vector<8x256xf32>
    %268 = arith.addf %267, %266 : vector<8x256xf32>
    %269 = arith.divf %267, %268 : vector<8x256xf32>
    %270 = vector.extract_strided_slice %269 {offsets = [0, 0], sizes = [8, 128], strides = [1, 1]} : vector<8x256xf32> to vector<8x128xf32>
    %271 = vector.extract_strided_slice %269 {offsets = [0, 128], sizes = [8, 128], strides = [1, 1]} : vector<8x256xf32> to vector<8x128xf32>
    %272 = vector.extract_strided_slice %259 {offsets = [0, 256], sizes = [8, 128], strides = [1, 1]} : vector<8x384xf32> to vector<8x128xf32>
    %273 = vector.extract_strided_slice %261 {offsets = [0, 256], sizes = [8, 128], strides = [1, 1]} : vector<8x384xf32> to vector<8x128xf32>
    %274 = vector.broadcast %10 : vector<1x128xf32> to vector<8x128xf32>
    %275 = arith.addf %273, %274 : vector<8x128xf32>
    %276 = arith.mulf %270, %275 : vector<8x128xf32>
    %277 = arith.addf %272, %276 : vector<8x128xf32>
    %278 = math.tanh %277 : vector<8x128xf32>
    %279 = arith.subf %257, %278 : vector<8x128xf32>
    %280 = arith.mulf %271, %279 : vector<8x128xf32>
    %281 = arith.addf %278, %280 : vector<8x128xf32>
    %282 = vector.extract_strided_slice %254 {offsets = [0, 128], sizes = [8, 128], strides = [1, 1]} : vector<8x256xf32> to vector<8x128xf32>
    %c0_77 = arith.constant 0 : index
    %c0_78 = arith.constant 0 : index
    %283 = vector.load %arg6[%c0_77, %c0_78] : memref<256x512xf32, #tpu.memory_space<vmem>>, vector<256x512xf32>
    %cst_79 = arith.constant dense<0.000000e+00> : vector<8x512xf32>
    %284 = tpu.matmul %254, %283, %cst_79 {dimension_numbers = #tpu.dot_dimension_numbers<[1], [0], [0], [1], [0, 0, 1, 1], [], []>} : vector<8x256xf32>, vector<256x512xf32>, vector<8x512xf32> -> vector<8x512xf32>
    %285 = vector.broadcast %11 : vector<1x512xf32> to vector<8x512xf32>
    %286 = arith.addf %284, %285 : vector<8x512xf32>
    %287 = vector.extract_strided_slice %286 {offsets = [0, 0], sizes = [8, 256], strides = [1, 1]} : vector<8x512xf32> to vector<8x256xf32>
    %288 = arith.negf %287 : vector<8x256xf32>
    %289 = math.exp %288 : vector<8x256xf32>
    %cst_80 = arith.constant 1.000000e+00 : f32
    %290 = vector.broadcast %cst_80 : f32 to vector<8x256xf32>
    %291 = arith.addf %290, %289 : vector<8x256xf32>
    %292 = arith.divf %290, %291 : vector<8x256xf32>
    %293 = vector.extract_strided_slice %292 {offsets = [0, 0], sizes = [8, 128], strides = [1, 1]} : vector<8x256xf32> to vector<8x128xf32>
    %294 = vector.extract_strided_slice %292 {offsets = [0, 128], sizes = [8, 128], strides = [1, 1]} : vector<8x256xf32> to vector<8x128xf32>
    %295 = vector.extract_strided_slice %286 {offsets = [0, 256], sizes = [8, 128], strides = [1, 1]} : vector<8x512xf32> to vector<8x128xf32>
    %296 = vector.extract_strided_slice %286 {offsets = [0, 384], sizes = [8, 128], strides = [1, 1]} : vector<8x512xf32> to vector<8x128xf32>
    %297 = arith.mulf %293, %296 : vector<8x128xf32>
    %298 = arith.addf %295, %297 : vector<8x128xf32>
    %299 = math.tanh %298 : vector<8x128xf32>
    %300 = arith.subf %282, %299 : vector<8x128xf32>
    %301 = arith.mulf %294, %300 : vector<8x128xf32>
    %302 = arith.addf %299, %301 : vector<8x128xf32>
    %c1_i32_81 = arith.constant 1 : i32
    %303 = arith.subi %c5_i32, %c1_i32_81 : i32
    %304 = arith.index_cast %303 : i32 to index
    %c0_82 = arith.constant 0 : index
    %c0_83 = arith.constant 0 : index
    %305 = vector.load %arg8[%304, %c0_82, %c0_83] : memref<8x8x128xf32, #tpu.memory_space<vmem>>, vector<1x8x128xf32>
    %306 = vector.shape_cast %305 : vector<1x8x128xf32> to vector<8x128xf32>
    %307 = vector.shape_cast %302 : vector<8x128xf32> to vector<1x8x128xf32>
    tpu.vector_store %arg8[%304, %c0_82, %c0_83], %307 {strides = array<i32>} : memref<8x8x128xf32, #tpu.memory_space<vmem>>, vector<1x8x128xf32>,
    %308 = tpu.concatenate %281, %302 in 1 : vector<8x128xf32>, vector<8x128xf32> -> vector<8x256xf32>
    %c6_i32 = arith.constant 6 : i32
    %c8_i32_84 = arith.constant 8 : i32
    %309 = arith.muli %c6_i32, %c8_i32_84 : i32
    %310 = tpu.assume_multiple %309, 8 : i32
    %311 = vector.extract_strided_slice %308 {offsets = [0, 0], sizes = [8, 128], strides = [1, 1]} : vector<8x256xf32> to vector<8x128xf32>
    %312 = arith.index_cast %310 : i32 to index
    %c0_85 = arith.constant 0 : index
    %313 = vector.load %arg11[%312, %c0_85] : memref<64x384xf32, #tpu.memory_space<vmem>>, vector<8x384xf32>
    %c0_86 = arith.constant 0 : index
    %c0_87 = arith.constant 0 : index
    %314 = vector.load %arg4[%c0_86, %c0_87] : memref<128x384xf32, #tpu.memory_space<vmem>>, vector<128x384xf32>
    %cst_88 = arith.constant dense<0.000000e+00> : vector<8x384xf32>
    %315 = tpu.matmul %311, %314, %cst_88 {dimension_numbers = #tpu.dot_dimension_numbers<[1], [0], [0], [1], [0, 0, 1, 1], [], []>} : vector<8x128xf32>, vector<128x384xf32>, vector<8x384xf32> -> vector<8x384xf32>
    %316 = vector.extract_strided_slice %313 {offsets = [0, 0], sizes = [8, 256], strides = [1, 1]} : vector<8x384xf32> to vector<8x256xf32>
    %317 = vector.extract_strided_slice %315 {offsets = [0, 0], sizes = [8, 256], strides = [1, 1]} : vector<8x384xf32> to vector<8x256xf32>
    %318 = arith.addf %316, %317 : vector<8x256xf32>
    %319 = arith.negf %318 : vector<8x256xf32>
    %320 = math.exp %319 : vector<8x256xf32>
    %cst_89 = arith.constant 1.000000e+00 : f32
    %321 = vector.broadcast %cst_89 : f32 to vector<8x256xf32>
    %322 = arith.addf %321, %320 : vector<8x256xf32>
    %323 = arith.divf %321, %322 : vector<8x256xf32>
    %324 = vector.extract_strided_slice %323 {offsets = [0, 0], sizes = [8, 128], strides = [1, 1]} : vector<8x256xf32> to vector<8x128xf32>
    %325 = vector.extract_strided_slice %323 {offsets = [0, 128], sizes = [8, 128], strides = [1, 1]} : vector<8x256xf32> to vector<8x128xf32>
    %326 = vector.extract_strided_slice %313 {offsets = [0, 256], sizes = [8, 128], strides = [1, 1]} : vector<8x384xf32> to vector<8x128xf32>
    %327 = vector.extract_strided_slice %315 {offsets = [0, 256], sizes = [8, 128], strides = [1, 1]} : vector<8x384xf32> to vector<8x128xf32>
    %328 = vector.broadcast %10 : vector<1x128xf32> to vector<8x128xf32>
    %329 = arith.addf %327, %328 : vector<8x128xf32>
    %330 = arith.mulf %324, %329 : vector<8x128xf32>
    %331 = arith.addf %326, %330 : vector<8x128xf32>
    %332 = math.tanh %331 : vector<8x128xf32>
    %333 = arith.subf %311, %332 : vector<8x128xf32>
    %334 = arith.mulf %325, %333 : vector<8x128xf32>
    %335 = arith.addf %332, %334 : vector<8x128xf32>
    %336 = vector.extract_strided_slice %308 {offsets = [0, 128], sizes = [8, 128], strides = [1, 1]} : vector<8x256xf32> to vector<8x128xf32>
    %c0_90 = arith.constant 0 : index
    %c0_91 = arith.constant 0 : index
    %337 = vector.load %arg6[%c0_90, %c0_91] : memref<256x512xf32, #tpu.memory_space<vmem>>, vector<256x512xf32>
    %cst_92 = arith.constant dense<0.000000e+00> : vector<8x512xf32>
    %338 = tpu.matmul %308, %337, %cst_92 {dimension_numbers = #tpu.dot_dimension_numbers<[1], [0], [0], [1], [0, 0, 1, 1], [], []>} : vector<8x256xf32>, vector<256x512xf32>, vector<8x512xf32> -> vector<8x512xf32>
    %339 = vector.broadcast %11 : vector<1x512xf32> to vector<8x512xf32>
    %340 = arith.addf %338, %339 : vector<8x512xf32>
    %341 = vector.extract_strided_slice %340 {offsets = [0, 0], sizes = [8, 256], strides = [1, 1]} : vector<8x512xf32> to vector<8x256xf32>
    %342 = arith.negf %341 : vector<8x256xf32>
    %343 = math.exp %342 : vector<8x256xf32>
    %cst_93 = arith.constant 1.000000e+00 : f32
    %344 = vector.broadcast %cst_93 : f32 to vector<8x256xf32>
    %345 = arith.addf %344, %343 : vector<8x256xf32>
    %346 = arith.divf %344, %345 : vector<8x256xf32>
    %347 = vector.extract_strided_slice %346 {offsets = [0, 0], sizes = [8, 128], strides = [1, 1]} : vector<8x256xf32> to vector<8x128xf32>
    %348 = vector.extract_strided_slice %346 {offsets = [0, 128], sizes = [8, 128], strides = [1, 1]} : vector<8x256xf32> to vector<8x128xf32>
    %349 = vector.extract_strided_slice %340 {offsets = [0, 256], sizes = [8, 128], strides = [1, 1]} : vector<8x512xf32> to vector<8x128xf32>
    %350 = vector.extract_strided_slice %340 {offsets = [0, 384], sizes = [8, 128], strides = [1, 1]} : vector<8x512xf32> to vector<8x128xf32>
    %351 = arith.mulf %347, %350 : vector<8x128xf32>
    %352 = arith.addf %349, %351 : vector<8x128xf32>
    %353 = math.tanh %352 : vector<8x128xf32>
    %354 = arith.subf %336, %353 : vector<8x128xf32>
    %355 = arith.mulf %348, %354 : vector<8x128xf32>
    %356 = arith.addf %353, %355 : vector<8x128xf32>
    %c1_i32_94 = arith.constant 1 : i32
    %357 = arith.subi %c6_i32, %c1_i32_94 : i32
    %358 = arith.index_cast %357 : i32 to index
    %c0_95 = arith.constant 0 : index
    %c0_96 = arith.constant 0 : index
    %359 = vector.load %arg8[%358, %c0_95, %c0_96] : memref<8x8x128xf32, #tpu.memory_space<vmem>>, vector<1x8x128xf32>
    %360 = vector.shape_cast %359 : vector<1x8x128xf32> to vector<8x128xf32>
    %361 = vector.shape_cast %356 : vector<8x128xf32> to vector<1x8x128xf32>
    tpu.vector_store %arg8[%358, %c0_95, %c0_96], %361 {strides = array<i32>} : memref<8x8x128xf32, #tpu.memory_space<vmem>>, vector<1x8x128xf32>,
    %362 = tpu.concatenate %335, %356 in 1 : vector<8x128xf32>, vector<8x128xf32> -> vector<8x256xf32>
    %c7_i32 = arith.constant 7 : i32
    %c8_i32_97 = arith.constant 8 : i32
    %363 = arith.muli %c7_i32, %c8_i32_97 : i32
    %364 = tpu.assume_multiple %363, 8 : i32
    %365 = vector.extract_strided_slice %362 {offsets = [0, 0], sizes = [8, 128], strides = [1, 1]} : vector<8x256xf32> to vector<8x128xf32>
    %366 = arith.index_cast %364 : i32 to index
    %c0_98 = arith.constant 0 : index
    %367 = vector.load %arg11[%366, %c0_98] : memref<64x384xf32, #tpu.memory_space<vmem>>, vector<8x384xf32>
    %c0_99 = arith.constant 0 : index
    %c0_100 = arith.constant 0 : index
    %368 = vector.load %arg4[%c0_99, %c0_100] : memref<128x384xf32, #tpu.memory_space<vmem>>, vector<128x384xf32>
    %cst_101 = arith.constant dense<0.000000e+00> : vector<8x384xf32>
    %369 = tpu.matmul %365, %368, %cst_101 {dimension_numbers = #tpu.dot_dimension_numbers<[1], [0], [0], [1], [0, 0, 1, 1], [], []>} : vector<8x128xf32>, vector<128x384xf32>, vector<8x384xf32> -> vector<8x384xf32>
    %370 = vector.extract_strided_slice %367 {offsets = [0, 0], sizes = [8, 256], strides = [1, 1]} : vector<8x384xf32> to vector<8x256xf32>
    %371 = vector.extract_strided_slice %369 {offsets = [0, 0], sizes = [8, 256], strides = [1, 1]} : vector<8x384xf32> to vector<8x256xf32>
    %372 = arith.addf %370, %371 : vector<8x256xf32>
    %373 = arith.negf %372 : vector<8x256xf32>
    %374 = math.exp %373 : vector<8x256xf32>
    %cst_102 = arith.constant 1.000000e+00 : f32
    %375 = vector.broadcast %cst_102 : f32 to vector<8x256xf32>
    %376 = arith.addf %375, %374 : vector<8x256xf32>
    %377 = arith.divf %375, %376 : vector<8x256xf32>
    %378 = vector.extract_strided_slice %377 {offsets = [0, 0], sizes = [8, 128], strides = [1, 1]} : vector<8x256xf32> to vector<8x128xf32>
    %379 = vector.extract_strided_slice %377 {offsets = [0, 128], sizes = [8, 128], strides = [1, 1]} : vector<8x256xf32> to vector<8x128xf32>
    %380 = vector.extract_strided_slice %367 {offsets = [0, 256], sizes = [8, 128], strides = [1, 1]} : vector<8x384xf32> to vector<8x128xf32>
    %381 = vector.extract_strided_slice %369 {offsets = [0, 256], sizes = [8, 128], strides = [1, 1]} : vector<8x384xf32> to vector<8x128xf32>
    %382 = vector.broadcast %10 : vector<1x128xf32> to vector<8x128xf32>
    %383 = arith.addf %381, %382 : vector<8x128xf32>
    %384 = arith.mulf %378, %383 : vector<8x128xf32>
    %385 = arith.addf %380, %384 : vector<8x128xf32>
    %386 = math.tanh %385 : vector<8x128xf32>
    %387 = arith.subf %365, %386 : vector<8x128xf32>
    %388 = arith.mulf %379, %387 : vector<8x128xf32>
    %389 = arith.addf %386, %388 : vector<8x128xf32>
    %390 = vector.extract_strided_slice %362 {offsets = [0, 128], sizes = [8, 128], strides = [1, 1]} : vector<8x256xf32> to vector<8x128xf32>
    %c0_103 = arith.constant 0 : index
    %c0_104 = arith.constant 0 : index
    %391 = vector.load %arg6[%c0_103, %c0_104] : memref<256x512xf32, #tpu.memory_space<vmem>>, vector<256x512xf32>
    %cst_105 = arith.constant dense<0.000000e+00> : vector<8x512xf32>
    %392 = tpu.matmul %362, %391, %cst_105 {dimension_numbers = #tpu.dot_dimension_numbers<[1], [0], [0], [1], [0, 0, 1, 1], [], []>} : vector<8x256xf32>, vector<256x512xf32>, vector<8x512xf32> -> vector<8x512xf32>
    %393 = vector.broadcast %11 : vector<1x512xf32> to vector<8x512xf32>
    %394 = arith.addf %392, %393 : vector<8x512xf32>
    %395 = vector.extract_strided_slice %394 {offsets = [0, 0], sizes = [8, 256], strides = [1, 1]} : vector<8x512xf32> to vector<8x256xf32>
    %396 = arith.negf %395 : vector<8x256xf32>
    %397 = math.exp %396 : vector<8x256xf32>
    %cst_106 = arith.constant 1.000000e+00 : f32
    %398 = vector.broadcast %cst_106 : f32 to vector<8x256xf32>
    %399 = arith.addf %398, %397 : vector<8x256xf32>
    %400 = arith.divf %398, %399 : vector<8x256xf32>
    %401 = vector.extract_strided_slice %400 {offsets = [0, 0], sizes = [8, 128], strides = [1, 1]} : vector<8x256xf32> to vector<8x128xf32>
    %402 = vector.extract_strided_slice %400 {offsets = [0, 128], sizes = [8, 128], strides = [1, 1]} : vector<8x256xf32> to vector<8x128xf32>
    %403 = vector.extract_strided_slice %394 {offsets = [0, 256], sizes = [8, 128], strides = [1, 1]} : vector<8x512xf32> to vector<8x128xf32>
    %404 = vector.extract_strided_slice %394 {offsets = [0, 384], sizes = [8, 128], strides = [1, 1]} : vector<8x512xf32> to vector<8x128xf32>
    %405 = arith.mulf %401, %404 : vector<8x128xf32>
    %406 = arith.addf %403, %405 : vector<8x128xf32>
    %407 = math.tanh %406 : vector<8x128xf32>
    %408 = arith.subf %390, %407 : vector<8x128xf32>
    %409 = arith.mulf %402, %408 : vector<8x128xf32>
    %410 = arith.addf %407, %409 : vector<8x128xf32>
    %c1_i32_107 = arith.constant 1 : i32
    %411 = arith.subi %c7_i32, %c1_i32_107 : i32
    %412 = arith.index_cast %411 : i32 to index
    %c0_108 = arith.constant 0 : index
    %c0_109 = arith.constant 0 : index
    %413 = vector.load %arg8[%412, %c0_108, %c0_109] : memref<8x8x128xf32, #tpu.memory_space<vmem>>, vector<1x8x128xf32>
    %414 = vector.shape_cast %413 : vector<1x8x128xf32> to vector<8x128xf32>
    %415 = vector.shape_cast %410 : vector<8x128xf32> to vector<1x8x128xf32>
    tpu.vector_store %arg8[%412, %c0_108, %c0_109], %415 {strides = array<i32>} : memref<8x8x128xf32, #tpu.memory_space<vmem>>, vector<1x8x128xf32>,
    %416 = tpu.concatenate %389, %410 in 1 : vector<8x128xf32>, vector<8x128xf32> -> vector<8x256xf32>
    %c7_i32_110 = arith.constant 7 : i32
    %417 = vector.extract_strided_slice %416 {offsets = [0, 128], sizes = [8, 128], strides = [1, 1]} : vector<8x256xf32> to vector<8x128xf32>
    %c0_111 = arith.constant 0 : index
    %c0_112 = arith.constant 0 : index
    %418 = vector.load %arg6[%c0_111, %c0_112] : memref<256x512xf32, #tpu.memory_space<vmem>>, vector<256x512xf32>
    %cst_113 = arith.constant dense<0.000000e+00> : vector<8x512xf32>
    %419 = tpu.matmul %416, %418, %cst_113 {dimension_numbers = #tpu.dot_dimension_numbers<[1], [0], [0], [1], [0, 0, 1, 1], [], []>} : vector<8x256xf32>, vector<256x512xf32>, vector<8x512xf32> -> vector<8x512xf32>
    %420 = vector.broadcast %11 : vector<1x512xf32> to vector<8x512xf32>
    %421 = arith.addf %419, %420 : vector<8x512xf32>
    %422 = vector.extract_strided_slice %421 {offsets = [0, 0], sizes = [8, 256], strides = [1, 1]} : vector<8x512xf32> to vector<8x256xf32>
    %423 = arith.negf %422 : vector<8x256xf32>
    %424 = math.exp %423 : vector<8x256xf32>
    %cst_114 = arith.constant 1.000000e+00 : f32
    %425 = vector.broadcast %cst_114 : f32 to vector<8x256xf32>
    %426 = arith.addf %425, %424 : vector<8x256xf32>
    %427 = arith.divf %425, %426 : vector<8x256xf32>
    %428 = vector.extract_strided_slice %427 {offsets = [0, 0], sizes = [8, 128], strides = [1, 1]} : vector<8x256xf32> to vector<8x128xf32>
    %429 = vector.extract_strided_slice %427 {offsets = [0, 128], sizes = [8, 128], strides = [1, 1]} : vector<8x256xf32> to vector<8x128xf32>
    %430 = vector.extract_strided_slice %421 {offsets = [0, 256], sizes = [8, 128], strides = [1, 1]} : vector<8x512xf32> to vector<8x128xf32>
    %431 = vector.extract_strided_slice %421 {offsets = [0, 384], sizes = [8, 128], strides = [1, 1]} : vector<8x512xf32> to vector<8x128xf32>
    %432 = arith.mulf %428, %431 : vector<8x128xf32>
    %433 = arith.addf %430, %432 : vector<8x128xf32>
    %434 = math.tanh %433 : vector<8x128xf32>
    %435 = arith.subf %417, %434 : vector<8x128xf32>
    %436 = arith.mulf %429, %435 : vector<8x128xf32>
    %437 = arith.addf %434, %436 : vector<8x128xf32>
    %c7 = arith.constant 7 : index
    %c0_115 = arith.constant 0 : index
    %c0_116 = arith.constant 0 : index
    %438 = vector.load %arg8[%c7, %c0_115, %c0_116] : memref<8x8x128xf32, #tpu.memory_space<vmem>>, vector<1x8x128xf32>
    %439 = vector.shape_cast %438 : vector<1x8x128xf32> to vector<8x128xf32>
    %440 = vector.shape_cast %437 : vector<8x128xf32> to vector<1x8x128xf32>
    tpu.vector_store %arg8[%c7, %c0_115, %c0_116], %440 {strides = array<i32>} : memref<8x8x128xf32, #tpu.memory_space<vmem>>, vector<1x8x128xf32>,
    %441 = vector.extract_strided_slice %416 {offsets = [0, 0], sizes = [8, 128], strides = [1, 1]} : vector<8x256xf32> to vector<8x128xf32>
    %442 = tpu.concatenate %441, %437 in 1 : vector<8x128xf32>, vector<8x128xf32> -> vector<8x256xf32>
    %c0_117 = arith.constant 0 : index
    %c0_118 = arith.constant 0 : index
    %443 = vector.load %arg10[%c0_117, %c0_118] : memref<8x256xf32, #tpu.memory_space<vmem>>, vector<8x256xf32>
    tpu.vector_store %arg10[%c0_117, %c0_118], %442 {strides = array<i32>} : memref<8x256xf32, #tpu.memory_space<vmem>>, vector<8x256xf32>,
    %c0_119 = arith.constant 0 : index
    %c0_120 = arith.constant 0 : index
    %444 = vector.load %arg9[%c0_119, %c0_120] : memref<8x128xf32, #tpu.memory_space<vmem>>, vector<8x128xf32>
    tpu.vector_store %arg9[%c0_119, %c0_120], %441 {strides = array<i32>} : memref<8x128xf32, #tpu.memory_space<vmem>>, vector<8x128xf32>,
    return
  }
  func.func @transform_0(%arg0: i32) -> (i32, i32) {
    %c0_i32 = arith.constant 0 : i32
    %c0_i32_0 = arith.constant 0 : i32
    return %arg0, %c0_i32 : i32, i32
  }
  func.func @transform_1(%arg0: i32) -> (i32, i32) {
    %c0_i32 = arith.constant 0 : i32
    %c0_i32_0 = arith.constant 0 : i32
    %c0_i32_1 = arith.constant 0 : i32
    return %c0_i32, %c0_i32_0 : i32, i32
  }
  func.func @transform_2(%arg0: i32) -> (i32, i32) {
    %c0_i32 = arith.constant 0 : i32
    %c0_i32_0 = arith.constant 0 : i32
    %c0_i32_1 = arith.constant 0 : i32
    return %c0_i32, %c0_i32_0 : i32, i32
  }
  func.func @transform_3(%arg0: i32) -> (i32, i32) {
    %c0_i32 = arith.constant 0 : i32
    %c0_i32_0 = arith.constant 0 : i32
    %c0_i32_1 = arith.constant 0 : i32
    return %c0_i32, %c0_i32_0 : i32, i32
  }
  func.func @transform_4(%arg0: i32) -> (i32, i32) {
    %c0_i32 = arith.constant 0 : i32
    %c0_i32_0 = arith.constant 0 : i32
    %c0_i32_1 = arith.constant 0 : i32
    return %c0_i32, %c0_i32_0 : i32, i32
  }
  func.func @transform_5(%arg0: i32) -> (i32, i32) {
    %c0_i32 = arith.constant 0 : i32
    %c0_i32_0 = arith.constant 0 : i32
    %c0_i32_1 = arith.constant 0 : i32
    return %c0_i32, %c0_i32_0 : i32, i32
  }
  func.func @transform_6(%arg0: i32) -> (i32, i32) {
    %c0_i32 = arith.constant 0 : i32
    %c0_i32_0 = arith.constant 0 : i32
    %c0_i32_1 = arith.constant 0 : i32
    return %c0_i32, %c0_i32_0 : i32, i32
  }
  func.func @transform_7(%arg0: i32) -> (i32, i32, i32) {
    %c0_i32 = arith.constant 0 : i32
    %c0_i32_0 = arith.constant 0 : i32
    %c0_i32_1 = arith.constant 0 : i32
    return %arg0, %c0_i32, %c0_i32_0 : i32, i32, i32
  }
  func.func @transform_8(%arg0: i32) -> (i32, i32) {
    %c0_i32 = arith.constant 0 : i32
    %c0_i32_0 = arith.constant 0 : i32
    %c0_i32_1 = arith.constant 0 : i32
    return %c0_i32, %c0_i32_0 : i32, i32
  }
}

</mosaic_0001>

<bundles_post_ra>
// kernel: context_encoder_forward.1
= control target key start
LH: loop header
LB: loop body
LE: loop exit
PB: predicated region body
PF: predicated region fallthrough
CT: control target
= control target key end

     0   :  { %vm53_vm0 = vcmask 64512   ;;  %v10015_v39 = vmov 0.0   ;;  %s10006_s3 = inlined_call_operand.vmem [shape: f32[128,384], index: 3, kind: input, shape index: {}]   ;;  %s10007_s1 = inlined_call_operand.vmem [shape: f32[8,384], index: 1, kind: input, shape index: {}]   ;;  %s10008_s0 = inlined_call_operand.vmem [shape: f32[64,8], index: 0, kind: input, shape index: {}]   ;;  %s10009_s4 = inlined_call_operand.vmem [shape: f32[1,128], index: 4, kind: input, shape index: {}]   ;;  %s10010_s5 = inlined_call_operand.vmem [shape: f32[256,512], index: 5, kind: input, shape index: {}]   ;;  %s10011_s2 = inlined_call_operand.vmem [shape: f32[1,384], index: 2, kind: input, shape index: {}]   ;;  %s10012_s6 = inlined_call_operand.vmem [shape: f32[1,512], index: 6, kind: input, shape index: {}]   ;;  %s10013_s7 = inlined_call_operand.vmem [shape: f32[8,8,128], index: 7, kind: output, shape index: {0}]   ;;  %s10014_s8 = inlined_call_operand.vmem [shape: f32[8,128], index: 8, kind: output, shape index: {1}]  }
   0x1   :  { %v4446_v0 = vld [vmem:[%s10006_s3 + $0x168] sm:$0xff]  ;;  %v4451_v1 = vld [vmem:[%s10006_s3 + $0x150] sm:$0xff]  ;;  %v42_v2 = vld [vmem:[%s10007_s1] sm:$0xff] }
   0x2   :  { %280 = vmatpush.msra.mxu3 %v4446_v0  ;;  %v4460_v3 = vld [vmem:[%s10006_s3 + $0x138] sm:$0xff]  ;;  %93 = vmatpush.msra.mxu0 %v42_v2  ;;  %v4465_v4 = vld [vmem:[%s10008_s0] sm:$0xff]  ;;  %v4479_v6 = vld [vmem:[%s10006_s3 + $0x108] sm:$0xff] }
   0x3   :  { %4230 = vmatpush.msra.mxu2 %v42_v2  ;;  %4167 = vmatmul.msk.f32.vlgmr.msra.gmra.mxu0 %vm53_vm0, %v4465_v4  ;;  %v4473_v5 = vld [vmem:[%s10006_s3 + $0x120] sm:$0xff]  ;;  %v4484_v7 = vld [vmem:[%s10006_s3 + $0x178] sm:$0xff]  ;;  %v4496_v9 = vld [vmem:[%s10006_s3 + $0xf0] sm:$0xff] }
   0x4   :  { %281 = vmatpush.msra.mxu3 %v4451_v1  ;;  %320 = vmatpush.msrb.mxu0 %v4484_v7  ;;  %v4491_v8 = vld [vmem:[%s10006_s3 + $0x160] sm:$0xff]  ;;  %v4501_v10 = vld [vmem:[%s10008_s0 + $0x8] sm:$0xff]  ;;  %v4513_v12 = vld [vmem:[%s10006_s3 + $0xd8] sm:$0xff] }
   0x5   :  { %v4508_v11 = vld [vmem:[%s10006_s3 + $0x148] sm:$0xff]  ;;  %v4521_v13 = vld [vmem:[%s10006_s3 + $0x130] sm:$0xff]  ;;  %v4526_v14 = vld [vmem:[%s10006_s3 + $0xc0] sm:$0xff] }
   0x6   :  { %282 = vmatpush.msra.mxu3 %v4460_v3  ;;  %321 = vmatpush.msrb.mxu0 %v4491_v8  ;;  %v4533_v15 = vld [vmem:[%s10006_s3 + $0x118] sm:$0xff]  ;;  %v4543_v17 = vld [vmem:[%s10006_s3 + $0xa8] sm:$0xff]  ;;  %v4552_v18 = vld [vmem:[%s10006_s3 + $0x100] sm:$0xff] }
   0x7   :  { %v4538_v16 = vld [vmem:[%s10008_s0 + $0x38] sm:$0xff]  ;;  %v4557_v19 = vld [vmem:[%s10006_s3 + $0x90] sm:$0xff]  ;;  %v4569_v21 = vld [vmem:[%s10006_s3 + $0xe8] sm:$0xff] }
   0x8   :  { %283 = vmatpush.msra.mxu3 %v4473_v5  ;;  %322 = vmatpush.msrb.mxu0 %v4508_v11  ;;  %v4562_v20 = vld [vmem:[%s10008_s0 + $0x10] sm:$0xff]  ;;  %v4574_v22 = vld [vmem:[%s10006_s3 + $0x78] sm:$0xff]  ;;  %v4588_v24 = vld [vmem:[%s10006_s3 + $0x60] sm:$0xff] }
   0x9   :  { %4174 = vmatmul.msk.f32.vlgmr.msra.gmra.mxu2 %vm53_vm0, %v4538_v16  ;;  %v4583_v23 = vld [vmem:[%s10006_s3 + $0xd0] sm:$0xff]  ;;  %v4595_v25 = vld [vmem:[%s10006_s3 + $0xb8] sm:$0xff]  ;;  %v43_v26 = vld [vmem:[%s10007_s1 + $0x8] sm:$0xff] }
   0xa   :  { %284 = vmatpush.msra.mxu3 %v4479_v6  ;;  %323 = vmatpush.msrb.mxu0 %v4521_v13  ;;  %v4603_v27 = vld [vmem:[%s10006_s3 + $0x48] sm:$0xff]  ;;  %v4610_v28 = vld [vmem:[%s10006_s3 + $0xa0] sm:$0xff]  ;;  %v4617_v29 = vld [vmem:[%s10006_s3 + $0x30] sm:$0xff] }
   0xb   :  { %4168 = vmatmul.msk.f32.gmra.mxu0 %vm53_vm0, %v4501_v10  ;;  %4231 = vmatpush.msrb.mxu2 %v43_v26  ;;  %v4622_v30 = vld [vmem:[%s10008_s0 + $0x18] sm:$0xff]  ;;  %v4629_v31 = vld [vmem:[%s10006_s3 + $0x88] sm:$0xff]  ;;  %v4646_v33 = vld [vmem:[%s10006_s3 + $0x70] sm:$0xff] }
   0xc   :  { %285 = vmatpush.msra.mxu3 %v4496_v9  ;;  %324 = vmatpush.msrb.mxu0 %v4533_v15  ;;  %v4636_v32 = vld [vmem:[%s10006_s3 + $0x18] sm:$0xff]  ;;  %v4651_v34 = vld [vmem:[%s10006_s3] sm:$0xff]  ;;  %v44_v36 = vld [vmem:[%s10007_s1 + $0x10] sm:$0xff] }
   0xd   :  { %134 = vmatpush.msra.mxu1 %v43_v26  ;;  %v4659_v35 = vld [vmem:[%s10006_s3 + $0x58] sm:$0xff]  ;;  %v4667_v37 = vld [vmem:[%s10006_s3 + $0x170] sm:$0xff]  ;;  %175 = vmatpush.msra.mxu2 %v44_v36  ;;  %v4674_v38 = vld [vmem:[%s10006_s3 + $0x40] sm:$0xff] }
   0xe   :  { %286 = vmatpush.msra.mxu3 %v4513_v12  ;;  %325 = vmatpush.msrb.mxu0 %v4552_v18  ;;  %v4682_v40 = vld [vmem:[%s10006_s3 + $0x158] sm:$0xff]  ;;  %v4687_v41 = vld [vmem:[%s10008_s0 + $0x20] sm:$0xff]  ;;  %v4694_v42 = vld [vmem:[%s10006_s3 + $0x28] sm:$0xff] }
   0xf   :  { %4175 = vmatmul.msk.f32.vlgmr.msra.gmra.mxu1 %vm53_vm0, %v4465_v4  ;;  %v272_v43 = vld [vmem:[%s10006_s3 + $0x140] sm:$0xff]  ;;  %v4708_v44 = vld [vmem:[%s10006_s3 + $0x10] sm:$0xff]  ;;  %v269_v45 = vld [vmem:[%s10006_s3 + $0x128] sm:$0xff] }
  0x10   :  { %287 = vmatpush.msra.mxu3 %v4526_v14  ;;  %326 = vmatpush.msrb.mxu0 %v4569_v21  ;;  %v266_v46 = vld [vmem:[%s10006_s3 + $0x110] sm:$0xff]  ;;  %v263_v47 = vld [vmem:[%s10006_s3 + $0xf8] sm:$0xff]  ;;  %v4728_v48 = vld [vmem:[%s10008_s0 + $0x28] sm:$0xff] }
  0x11   :  { %4182 = vmatmul.msk.f32.vlgmr.msrb.gmra.mxu2 %vm53_vm0, %v4538_v16  ;;  %396 = vmatpush.msrb.mxu1 %v4446_v0  ;;  %v260_v49 = vld [vmem:[%s10006_s3 + $0xe0] sm:$0xff]  ;;  %v257_v50 = vld [vmem:[%s10006_s3 + $0xc8] sm:$0xff]  ;;  %v254_v51 = vld [vmem:[%s10006_s3 + $0xb0] sm:$0xff] }
  0x12   :  { %288 = vmatpush.msra.mxu3 %v4543_v17  ;;  %327 = vmatpush.msrb.mxu0 %v4583_v23  ;;  %v251_v52 = vld [vmem:[%s10006_s3 + $0x98] sm:$0xff]  ;;  %v40_v53 = vld [vmem:[%s10008_s0 + $0x30] sm:$0xff]  ;;  %v248_v54 = vld [vmem:[%s10006_s3 + $0x80] sm:$0xff] }
  0x13   :  { %4169 = vmatmul.msk.f32.gmra.mxu0 %vm53_vm0, %v4562_v20  ;;  %397 = vmatpush.msrb.mxu1 %v4451_v1  ;;  %v245_v55 = vld [vmem:[%s10006_s3 + $0x68] sm:$0xff]  ;;  %v242_v56 = vld [vmem:[%s10006_s3 + $0x50] sm:$0xff]  ;;  %v239_v57 = vld [vmem:[%s10006_s3 + $0x38] sm:$0xff] }
  0x14   :  { %289 = vmatpush.msra.mxu3 %v4557_v19  ;;  %328 = vmatpush.msrb.mxu0 %v4595_v25  ;;  %v236_v58 = vld [vmem:[%s10006_s3 + $0x20] sm:$0xff]  ;;  %v233_v59 = vld [vmem:[%s10006_s3 + $0x8] sm:$0xff] }
  0x15   :  { %416 = vmatpush.msrb.mxu2 %v4667_v37  ;;  %398 = vmatpush.msrb.mxu1 %v4460_v3  ;;  %v4823_v62 = vld [vmem:[%s10010_s5 + $0x1e0] sm:$0xff] }
  0x16   :  { %290 = vmatpush.msra.mxu3 %v4574_v22  ;;  %329 = vmatpush.msrb.mxu0 %v4610_v28  ;;  %v4831_v0 = vld [vmem:[%s10010_s5 + $0x1c0] sm:$0xff] }
  0x17   :  { %417 = vmatpush.msrb.mxu2 %v4682_v40  ;;  %399 = vmatpush.msrb.mxu1 %v4473_v5  ;;  %v4836_v1 = vld [vmem:[%s10010_s5 + $0x1a0] sm:$0xff] }
  0x18   :  { %291 = vmatpush.msra.mxu3 %v4588_v24  ;;  %330 = vmatpush.msrb.mxu0 %v4629_v31  ;;  %v4842_v2 = vld [vmem:[%s10010_s5 + $0x180] sm:$0xff] }
  0x19   :  { %4183 = vmatmul.msk.f32.vlgmr.msra.gmra.mxu2 %vm53_vm0, %v4465_v4  ;;  %400 = vmatpush.msrb.mxu1 %v4479_v6  ;;  %v4848_v3 = vld [vmem:[%s10010_s5 + $0x160] sm:$0xff] }
  0x1a   :  { %292 = vmatpush.msra.mxu3 %v4603_v27  ;;  %331 = vmatpush.msrb.mxu0 %v4646_v33  ;;  %v4854_v4 = vld [vmem:[%s10010_s5 + $0x140] sm:$0xff] }
  0x1b   :  { %4170 = vmatmul.msk.f32.gmra.mxu0 %vm53_vm0, %v4622_v30  ;;  %418 = vmatpush.msrb.mxu2 %v272_v43  ;;  %v4862_v6 = vld [vmem:[%s10010_s5 + $0x120] sm:$0xff] }
  0x1c   :  { %293 = vmatpush.msra.mxu3 %v4617_v29  ;;  %332 = vmatpush.msrb.mxu0 %v4659_v35 }
  0x1d   :  { %419 = vmatpush.msrb.mxu2 %v269_v45  ;;  %4176 = vmatmul.msk.f32.gmra.mxu1 %vm53_vm0, %v4501_v10 }
  0x1e   :  { %294 = vmatpush.msra.mxu3 %v4636_v32  ;;  %333 = vmatpush.msrb.mxu0 %v4674_v38 }
  0x1f   :  { %420 = vmatpush.msrb.mxu2 %v266_v46  ;;  %401 = vmatpush.msrb.mxu1 %v4496_v9 }
  0x20   :  { %295 = vmatpush.msra.mxu3 %v4651_v34  ;;  %334 = vmatpush.msrb.mxu0 %v4694_v42 }
  0x21   :  { %296 = vmatmul.f32.vlgmr.msra.gmra.mxu3 %v10015_v39  ;;  %4184 = vmatmul.msk.f32.gmra.mxu2 %vm53_vm0, %v4501_v10  ;;  %v4883_v10 = vld [vmem:[%s10010_s5 + $0xe0] sm:$0xff] }
  0x22   :  { %300 = vmatpush.msrb.mxu3 %v4667_v37  ;;  %335 = vmatpush.msrb.mxu0 %v4708_v44 }
  0x23   :  { %4171 = vmatmul.msk.f32.gmra.mxu0 %vm53_vm0, %v4687_v41  ;;  %421 = vmatpush.msrb.mxu2 %v263_v47 }
  0x24   :  { %301 = vmatpush.msrb.mxu3 %v4682_v40  ;;  %402 = vmatpush.msrb.mxu1 %v4513_v12  ;;  %v4891_v12 = vld [vmem:[%s10010_s5 + $0xc0] sm:$0xff] }
  0x25   :  { %422 = vmatpush.msrb.mxu2 %v260_v49  ;;  %4177 = vmatmul.msk.f32.gmra.mxu1 %vm53_vm0, %v4562_v20 }
  0x26   :  { %302 = vmatpush.msrb.mxu3 %v272_v43  ;;  %403 = vmatpush.msrb.mxu1 %v4526_v14 }
  0x27   :  { %423 = vmatpush.msrb.mxu2 %v257_v50  ;;  %640 = vmatpush.msra.mxu0 %v4823_v62 }
  0x28   :  { %303 = vmatpush.msrb.mxu3 %v269_v45  ;;  %404 = vmatpush.msrb.mxu1 %v4543_v17  ;;  %v4904_v17 = vld [vmem:[%s10010_s5 + $0x80] sm:$0xff] }
  0x29   :  { %4185 = vmatmul.msk.f32.gmra.mxu2 %vm53_vm0, %v4562_v20  ;;  %641 = vmatpush.msra.mxu0 %v4831_v0  ;;  %v4915_v20 = vld [vmem:[%s10010_s5 + $0x1e8] sm:$0xff] }
  0x2a   :  { %304 = vmatpush.msrb.mxu3 %v266_v46  ;;  %424 = vmatpush.msrb.mxu2 %v254_v51  ;;  %v5029_v46 = vld [vmem:[%s10010_s5 + $0x340] sm:$0xff] }
  0x2b   :  { %4172 = vmatmul.msk.f32.gmra.mxu0 %vm53_vm0, %v4728_v48  ;;  %405 = vmatpush.msrb.mxu1 %v4557_v19  ;;  %v4910_v19 = vld [vmem:[%s10010_s5 + $0x3e0] sm:$0xff]  ;;  %10413 = vst [vmem:[#allocation12_spill] sm:$0xff] %v5029_v46 }
  0x2c   :  { %305 = vmatpush.msrb.mxu3 %v263_v47  ;;  %425 = vmatpush.msrb.mxu2 %v251_v52  ;;  %v5034_v47 = vld [vmem:[%s10010_s5 + $0x148] sm:$0xff] }
  0x2d   :  { %406 = vmatpush.msrb.mxu1 %v4574_v22  ;;  %642 = vmatpush.msra.mxu0 %v4836_v1  ;;  %10414 = vst [vmem:[#allocation13_spill] sm:$0xff] %v5034_v47 }
  0x2e   :  { %306 = vmatpush.msrb.mxu3 %v260_v49  ;;  %426 = vmatpush.msrb.mxu2 %v248_v54 }
  0x2f   :  { %407 = vmatpush.msrb.mxu1 %v4588_v24  ;;  %643 = vmatpush.msra.mxu0 %v4842_v2  ;;  %v4933_v24 = vld [vmem:[%s10010_s5 + $0x1c8] sm:$0xff] }
  0x30   :  { %307 = vmatpush.msrb.mxu3 %v257_v50  ;;  %427 = vmatpush.msrb.mxu2 %v245_v55  ;;  %v5050_v50 = vld [vmem:[%s10010_s5 + $0x1d0] sm:$0xff] }
  0x31   :  { %4186 = vmatmul.msk.f32.gmra.mxu2 %vm53_vm0, %v4622_v30  ;;  %408 = vmatpush.msrb.mxu1 %v4603_v27  ;;  %v4948_v27 = vld [vmem:[%s10010_s5 + $0x40] sm:$0xff] }
  0x32   :  { %308 = vmatpush.msrb.mxu3 %v254_v51  ;;  %4178 = vmatmul.msk.f32.gmra.mxu1 %vm53_vm0, %v4622_v30  ;;  %v4965_v30 = vld [vmem:[%s10010_s5 + $0x3c8] sm:$0xff]  ;;  %v5057_v51 = vld [vmem:[%s10010_s5 + $0x320] sm:$0xff] }
  0x33   :  { %4173 = vmatmul.msk.f32.gmra.mxu0 %vm53_vm0, %v40_v53  ;;  %428 = vmatpush.msrb.mxu2 %v242_v56  ;;  %10417 = vst [vmem:[#allocation16_spill] sm:$0xff] %v5057_v51 }
  0x34   :  { %309 = vmatpush.msrb.mxu3 %v251_v52  ;;  %409 = vmatpush.msrb.mxu1 %v4617_v29  ;;  %v4960_v29 = vld [vmem:[%s10010_s5 + $0x1a8] sm:$0xff] }
  0x35   :  { %429 = vmatpush.msrb.mxu2 %v239_v57  ;;  %644 = vmatpush.msra.mxu0 %v4848_v3  ;;  %v5062_v52 = vld [vmem:[%s10010_s5 + $0x128] sm:$0xff] }
  0x36   :  { %310 = vmatpush.msrb.mxu3 %v248_v54  ;;  %410 = vmatpush.msrb.mxu1 %v4636_v32  ;;  %v4979_v32 = vld [vmem:[%s10010_s5 + $0x380] sm:$0xff]  ;;  %10418 = vst [vmem:[#allocation17_spill] sm:$0xff] %v5062_v52  ;;  %v5074_v54 = vld [vmem:[%s10010_s5 + $0x1b0] sm:$0xff] }
  0x37   :  { %430 = vmatpush.msrb.mxu2 %v236_v58  ;;  %645 = vmatpush.msra.mxu0 %v4854_v4 }
  0x38   :  { %311 = vmatpush.msrb.mxu3 %v245_v55  ;;  %411 = vmatpush.msrb.mxu1 %v4651_v34  ;;  %v4989_v34 = vld [vmem:[%s10010_s5 + $0x3a8] sm:$0xff]  ;;  %v5081_v55 = vld [vmem:[%s10010_s5 + $0x300] sm:$0xff] }
  0x39   :  { %4187 = vmatmul.msk.f32.gmra.mxu2 %vm53_vm0, %v4687_v41  ;;  %646 = vmatpush.msra.mxu0 %v4862_v6  ;;  %10420 = vst [vmem:[#allocation19_spill] sm:$0xff] %v5081_v55 }
  0x3a   :  { %312 = vmatpush.msrb.mxu3 %v242_v56  ;;  %431 = vmatpush.msrb.mxu2 %v233_v59  ;;  %v5086_v56 = vld [vmem:[%s10010_s5 + $0x108] sm:$0xff] }
  0x3b   :  { %336 = vmatmul.f32.vlgmr.msrb.gmra.mxu0 %v10015_v39  ;;  %4179 = vmatmul.msk.f32.gmra.mxu1 %vm53_vm0, %v4687_v41  ;;  %v5008_v41 = vld [vmem:[%s10010_s5 + $0x168] sm:$0xff]  ;;  %10421 = vst [vmem:[#allocation20_spill] sm:$0xff] %v5086_v56 }
  0x3c   :  { %313 = vmatpush.msrb.mxu3 %v239_v57  ;;  %660 = vmatpush.msra.mxu1 %v4910_v19  ;;  %10412 = vst [vmem:[#allocation11_spill] sm:$0xff] %v5008_v41  ;;  %v5091_v57 = vld [vmem:[%s10010_s5 + $0x328] sm:$0xff] }
  0x3d   :  { %680 = vmatpush.msra.mxu2 %v4915_v20  ;;  %10422 = vst [vmem:[#allocation21_spill] sm:$0xff] %v5091_v57 }
  0x3e   :  { %314 = vmatpush.msrb.mxu3 %v236_v58  ;;  %v5098_v58 = vld [vmem:[%s10010_s5 + $0x190] sm:$0xff] }
  0x3f   :  { %681 = vmatpush.msra.mxu2 %v4933_v24 }
  0x40   :  { %315 = vmatpush.msrb.mxu3 %v233_v59  ;;  %v5105_v59 = vld [vmem:[%s10010_s5 + $0x2e0] sm:$0xff] }
  0x41   :  { %316 = vmatmul.f32.vlgmr.msrb.gmra.mxu3 %v10015_v39  ;;  %4188 = vmatmul.msk.f32.gmra.mxu2 %vm53_vm0, %v4728_v48  ;;  %10423 = vst [vmem:[#allocation22_spill] sm:$0xff] %v5105_v59 }
  0x42   :  { %436 = vmatpush.msra.mxu3 %v4484_v7  ;;  %v4868_v7 = vld [vmem:[%s10011_s2] sm:$0x7]  ;;  %682 = vmatpush.msra.mxu2 %v4960_v29 }
  0x43   :  { %4180 = vmatmul.msk.f32.gmra.mxu1 %vm53_vm0, %v4728_v48  ;;  %v4877_v9 = vperm.slane %v4868_v7, 0  ;;  %v5039_v48 = vld [vmem:[%s10010_s5 + $0x368] sm:$0xff] }
  0x44   :  { %437 = vmatpush.msra.mxu3 %v4491_v8  ;;  %v4873_v8 = vld [vmem:[%s10010_s5 + $0x100] sm:$0xff]  ;;  %10415 = vst [vmem:[#allocation14_spill] sm:$0xff] %v5039_v48 }
  0x45   :  { %10408 = vst [vmem:[#allocation7_spill] sm:$0xff] %v4877_v9  ;;  %647 = vmatpush.msra.mxu0 %v4873_v8 }
  0x46   :  { %438 = vmatpush.msra.mxu3 %v4508_v11 }
  0x47   :  { %648 = vmatpush.msra.mxu0 %v4883_v10 }
  0x48   :  { %439 = vmatpush.msra.mxu3 %v4521_v13 }
  0x49   :  { %4189 = vmatmul.msk.f32.gmra.mxu2 %vm53_vm0, %v40_v53  ;;  %649 = vmatpush.msra.mxu0 %v4891_v12 }
  0x4a   :  { %440 = vmatpush.msra.mxu3 %v4533_v15  ;;  %v4898_v15 = vld [vmem:[%s10010_s5 + $0xa0] sm:$0xff] }
  0x4b   :  { %4181 = vmatmul.msk.f32.gmra.mxu1 %vm53_vm0, %v40_v53  ;;  %650 = vmatpush.msra.mxu0 %v4898_v15  ;;  %v5067_v53 = vld [vmem:[%s10010_s5 + $0x348] sm:$0xff] }
  0x4c   :  { %441 = vmatpush.msra.mxu3 %v4552_v18  ;;  %10419 = vst [vmem:[#allocation18_spill] sm:$0xff] %v5067_v53 }
  0x4d   :  { %651 = vmatpush.msra.mxu0 %v4904_v17 }
  0x4e   :  { %442 = vmatpush.msra.mxu3 %v4569_v21  ;;  %v4922_v21 = vld [vmem:[%s10010_s5 + $0x60] sm:$0xff] }
  0x4f   :  { %652 = vmatpush.msra.mxu0 %v4922_v21 }
  0x50   :  { %443 = vmatpush.msra.mxu3 %v4583_v23  ;;  %v4928_v23 = vld [vmem:[%s10010_s5 + $0x3c0] sm:$0xff] }
  0x51   :  { %4190 = vmatmul.msk.f32.gmra.mxu2 %vm53_vm0, %v4538_v16  ;;  %661 = vmatpush.msra.mxu1 %v4928_v23 }
  0x52   :  { %444 = vmatpush.msra.mxu3 %v4595_v25  ;;  %v4938_v25 = vld [vmem:[%s10010_s5 + $0x3e8] sm:$0xff]  ;;  %653 = vmatpush.msra.mxu0 %v4948_v27 }
  0x54   :  { %445 = vmatpush.msra.mxu3 %v4610_v28  ;;  %v4955_v28 = vld [vmem:[%s10010_s5 + $0x3a0] sm:$0xff] }
  0x55   :  { %662 = vmatpush.msra.mxu1 %v4955_v28 }
  0x56   :  { %446 = vmatpush.msra.mxu3 %v4629_v31  ;;  %v4972_v31 = vld [vmem:[%s10010_s5 + $0x20] sm:$0xff] }
  0x57   :  { %654 = vmatpush.msra.mxu0 %v4972_v31  ;;  %663 = vmatpush.msra.mxu1 %v4979_v32 }
  0x58   :  { %447 = vmatpush.msra.mxu3 %v4646_v33  ;;  %v4984_v33 = vld [vmem:[%s10010_s5 + $0x188] sm:$0xff] }
  0x59   :  { %683 = vmatpush.msra.mxu2 %v4984_v33 }
  0x5a   :  { %448 = vmatpush.msra.mxu3 %v4659_v35  ;;  %v4996_v35 = vld [vmem:[%s10010_s5] sm:$0xff] }
  0x5b   :  { %655 = vmatpush.msra.mxu0 %v4996_v35  ;;  %684 = vmatpush.msra.mxu2 %v5008_v41 }
  0x5c   :  { %449 = vmatpush.msra.mxu3 %v4674_v38  ;;  %v5003_v38 = vld [vmem:[%s10010_s5 + $0x360] sm:$0xff] }
  0x5d   :  { %10411 = vst [vmem:[#allocation10_spill] sm:$0xff] %v5003_v38  ;;  %664 = vmatpush.msra.mxu1 %v5003_v38  ;;  %685 = vmatpush.msra.mxu2 %v5034_v47 }
  0x5e   :  { %450 = vmatpush.msra.mxu3 %v4694_v42  ;;  %v5013_v42 = vld [vmem:[%s10010_s5 + $0x388] sm:$0xff] }
  0x5f   :  { %665 = vmatpush.msra.mxu1 %v5029_v46  ;;  %686 = vmatpush.msra.mxu2 %v5062_v52 }
  0x60   :  { %451 = vmatpush.msra.mxu3 %v4708_v44  ;;  %v5022_v44 = vld [vmem:[%s10010_s5 + $0x1f0] sm:$0xff] }
  0x61   :  { %720 = vmatpush.msrb.mxu0 %v5022_v44  ;;  %666 = vmatpush.msra.mxu1 %v5057_v51  ;;  %v5337_v51 = vperm.slane %v4868_v7, 2 }
  0x62   :  { %700 = vmatpush.msrb.mxu3 %v4938_v25  ;;  %687 = vmatpush.msra.mxu2 %v5086_v56  ;;  %v5286_v56 = vld [vmem:[%s10010_s5 + $0x200] sm:$0xff] }
  0x63   :  { %721 = vmatpush.msrb.mxu0 %v5050_v50  ;;  %667 = vmatpush.msra.mxu1 %v5081_v55  ;;  %10447 = vst [vmem:[#allocation46_spill] sm:$0xff] %v5286_v56 }
  0x64   :  { %701 = vmatpush.msrb.mxu3 %v4965_v30  ;;  %10452 = vst [vmem:[#allocation51_spill] sm:$0xff] %v5337_v51 }
  0x65   :  { %722 = vmatpush.msrb.mxu0 %v5074_v54  ;;  %668 = vmatpush.msra.mxu1 %v5105_v59  ;;  %v5235_v59 = vld [vmem:[%s10010_s5 + $0x240] sm:$0xff] }
  0x66   :  { %702 = vmatpush.msrb.mxu3 %v4989_v34  ;;  %10440 = vst [vmem:[#allocation39_spill] sm:$0xff] %v5235_v59 }
  0x67   :  { %723 = vmatpush.msrb.mxu0 %v5098_v58 }
  0x68   :  { %703 = vmatpush.msrb.mxu3 %v5013_v42 }
  0x6a   :  { %704 = vmatpush.msrb.mxu3 %v5039_v48 }
  0x6c   :  { %705 = vmatpush.msrb.mxu3 %v5067_v53 }
  0x6e   :  { %706 = vmatpush.msrb.mxu3 %v5091_v57 }
  0x80   :  { %v95_v60 = vpop.f32.mrf.mxu0 }
  0x81   :  { %v96_v13 = vadd.f32 %v95_v60, %v4877_v9  ;;  %v5110_v60 = vld [vmem:[%s10010_s5 + $0xe8] sm:$0xff] }
  0x82   :  { %10424 = vst [vmem:[#allocation23_spill] sm:$0xff] %v5110_v60  ;;  %688 = vmatpush.msra.mxu2 %v5110_v60  ;;  %v5210_v60 = vld [vmem:[%s10010_s5 + $0x260] sm:$0xff] }
  0x83   :  { %10437 = vst [vmem:[#allocation36_spill] sm:$0xff] %v5210_v60 }
  0x88   :  { %v4818_v61 = vpop.f32.mrf.mxu0 }
  0x89   :  { %10405 = vst [vmem:[#allocation4_spill] sm:$0xff] %v4818_v61 }
  0x90   :  { %v4825_v63 = vpop.f32.mrf.mxu0 }
  0x91   :  { %10406 = vst [vmem:[#allocation5_spill] sm:$0xff] %v4825_v63  ;;  %v5179_v63 = vperm.slane %v4868_v7, 1 }
  0x93   :  { %10433 = vst [vmem:[#allocation32_spill] sm:$0xff] %v5179_v63 }
  0x98   :  { %v4856_v5 = vpop.f32.mrf.mxu0 }
  0x99   :  { %10407 = vst [vmem:[#allocation6_spill] sm:$0xff] %v4856_v5  ;;  %v5176_v5 = vld [vmem:[%s10010_s5 + $0x130] sm:$0xff] }
  0xa0   :  { %v4885_v11 = vpop.f32.mrf.mxu0 }
  0xa1   :  { %10409 = vst [vmem:[#allocation8_spill] sm:$0xff] %v4885_v11  ;;  %v5169_v11 = vld [vmem:[%s10010_s5 + $0x2c8] sm:$0xff] }
  0xa2   :  { %10432 = vst [vmem:[#allocation31_spill] sm:$0xff] %v5169_v11 }
  0xa4   :  { %v297_v14 = vpop.f32.mrf.mxu3 }
  0xa5   :  { %v340_v16 = vadd.f32 %v297_v14, %v96_v13  ;;  %v5115_v13 = vld [vmem:[%s10010_s5 + $0x308] sm:$0xff] }
  0xa6   :  { %10425 = vst [vmem:[#allocation24_spill] sm:$0xff] %v5115_v13  ;;  %707 = vmatpush.msrb.mxu3 %v5115_v13  ;;  %v5262_v13 = vld [vmem:[%s10010_s5 + $0x220] sm:$0xff] }
  0xa7   :  { %v4191_v18 = vmul.f32 -1.442695, %v340_v16  ;;  %v5124_v16 = vld [vmem:[%s10010_s5 + $0x170] sm:$0xff]  ;;  %10444 = vst [vmem:[#allocation43_spill] sm:$0xff] %v5262_v13 }
  0xa8   :  { %v110_v22 = vpop.f32.mrf.mxu0  ;;  %724 = vmatpush.msrb.mxu0 %v5124_v16 }
  0xa9   :  { %4234 = vpow2.f32 %v4191_v18  ;;  %v4941_v26 = vadd.f32 %v110_v22, %v4877_v9  ;;  %v5126_v18 = vpop.f32.mrf.mxu2  ;;  %v5133_v22 = vld [vmem:[%s10010_s5 + $0x2c0] sm:$0xff] }
  0xaa   :  { %10426 = vst [vmem:[#allocation25_spill] sm:$0xff] %v5126_v18  ;;  %669 = vmatpush.msra.mxu1 %v5133_v22  ;;  %v5152_v18 = vld [vmem:[%s10010_s5 + $0x150] sm:$0xff] }
  0xab   :  { %10410 = vst [vmem:[#allocation9_spill] sm:$0xff] %v4941_v26  ;;  %725 = vmatpush.msrb.mxu0 %v5152_v18  ;;  %v5164_v26 = vld [vmem:[%s10010_s5 + $0xa8] sm:$0xff] }
  0xac   :  { %10427 = vst [vmem:[#allocation26_spill] sm:$0xff] %v5133_v22 }
  0xad   :  { %10431 = vst [vmem:[#allocation30_spill] sm:$0xff] %v5164_v26  ;;  %726 = vmatpush.msrb.mxu0 %v5176_v5 }
  0xaf   :  { %v4235_v36 = vpop.eup %4234 }
  0xb0   :  { %v5015_v43 = vadd.f32 1.0, %v4235_v36  ;;  %v113_v45 = vpop.f32.mrf.mxu0  ;;  %v5138_v36 = vld [vmem:[%s10010_s5 + $0xc8] sm:$0xff] }
  0xb1   :  { %v5043_v49 = vadd.f32 %v113_v45, %v4877_v9  ;;  %10428 = vst [vmem:[#allocation27_spill] sm:$0xff] %v5138_v36  ;;  %v5143_v45 = vld [vmem:[%s10010_s5 + $0x2e8] sm:$0xff]  ;;  %689 = vmatpush.msra.mxu2 %v5138_v36  ;;  %v5186_v36 = vld [vmem:[%s10010_s5 + $0x280] sm:$0xff] }
  0xb2   :  { %4236 = vrcp.f32 %v5015_v43  ;;  %10429 = vst [vmem:[#allocation28_spill] sm:$0xff] %v5143_v45  ;;  %708 = vmatpush.msrb.mxu3 %v5143_v45  ;;  %v136_v45 = vpop.f32.mrf.mxu1  ;;  %vm355_vm2 = vweird.f32 %v5015_v43 }
  0xb3   :  { %10416 = vst [vmem:[#allocation15_spill] sm:$0xff] %v5043_v49  ;;  %v5159_v49 = vld [vmem:[%s10010_s5 + $0x2a0] sm:$0xff]  ;;  %690 = vmatpush.msra.mxu2 %v5164_v26  ;;  %v5191_v26 = vld [vmem:[%s10010_s5 + $0x88] sm:$0xff] }
  0xb4   :  { %10430 = vst [vmem:[#allocation29_spill] sm:$0xff] %v5159_v49  ;;  %670 = vmatpush.msra.mxu1 %v5159_v49  ;;  %709 = vmatpush.msrb.mxu3 %v5169_v11  ;;  %v5196_v49 = vld [vmem:[%s10010_s5 + $0x2a8] sm:$0xff]  ;;  %v5203_v11 = vld [vmem:[%s10010_s5 + $0x110] sm:$0xff] }
  0xb5   :  { %10434 = vst [vmem:[#allocation33_spill] sm:$0xff] %v5186_v36  ;;  %691 = vmatpush.msra.mxu2 %v5191_v26  ;;  %727 = vmatpush.msrb.mxu0 %v5203_v11 }
  0xb6   :  { %10435 = vst [vmem:[#allocation34_spill] sm:$0xff] %v5191_v26  ;;  %671 = vmatpush.msra.mxu1 %v5186_v36  ;;  %710 = vmatpush.msrb.mxu3 %v5196_v49  ;;  %v5220_v26 = vld [vmem:[%s10010_s5 + $0x288] sm:$0xff]  ;;  %v5227_v36 = vld [vmem:[%s10010_s5 + $0xf0] sm:$0xff] }
  0xb7   :  { %10436 = vst [vmem:[#allocation35_spill] sm:$0xff] %v5196_v49  ;;  %v137_v49 = vadd.f32 %v136_v45, %v5179_v63  ;;  %728 = vmatpush.msrb.mxu0 %v5227_v36  ;;  %v5255_v63 = vpop.f32.mrf.mxu2 }
  0xb8   :  { %v5117_v14 = vpop.eup %4236  ;;  %10439 = vst [vmem:[#allocation38_spill] sm:$0xff] %v5220_v26  ;;  %672 = vmatpush.msra.mxu1 %v5210_v60  ;;  %711 = vmatpush.msrb.mxu3 %v5220_v26  ;;  %v5245_v60 = vld [vmem:[%s10010_s5 + $0x268] sm:$0xff]  ;;  %v5253_v26 = vld [vmem:[%s10010_s5 + $0xd0] sm:$0xff] }
  0xb9   :  { %v351_v39 = vmul.f32 %v5117_v14, %v5015_v43  ;;  %10442 = vst [vmem:[#allocation41_spill] sm:$0xff] %v5245_v60  ;;  %729 = vmatpush.msrb.mxu0 %v5253_v26  ;;  %vm356_vm1 = vweird.f32 %v5117_v14 }
  0xba   :  { %673 = vmatpush.msra.mxu1 %v5235_v59  ;;  %10443 = vst [vmem:[#allocation42_spill] sm:$0xff] %v5255_v63  ;;  %712 = vmatpush.msrb.mxu3 %v5245_v60  ;;  %v5279_v59 = vld [vmem:[%s10010_s5 + $0xb0] sm:$0xff]  ;;  %vm357_vm3 = vmor %vm355_vm2, %vm356_vm1 }
  0xbb   :  { %v352_v22 = vsub.f32 1.0, %v351_v39  ;;  %v5215_v39 = vld [vmem:[%s10010_s5 + $0x68] sm:$0xff]  ;;  %730 = vmatpush.msrb.mxu0 %v5279_v59 }
  0xbc   :  { %10438 = vst [vmem:[#allocation37_spill] sm:$0xff] %v5215_v39  ;;  %692 = vmatpush.msra.mxu2 %v5215_v39  ;;  %v5240_v39 = vld [vmem:[%s10010_s5 + $0x48] sm:$0xff]  ;;  %674 = vmatpush.msra.mxu1 %v5262_v13 }
  0xbd   :  { %10441 = vst [vmem:[#allocation40_spill] sm:$0xff] %v5240_v39  ;;  %v353_v45 = vmul.f32 %v5117_v14, %v352_v22  ;;  %v5267_v22 = vld [vmem:[%s10010_s5 + $0x28] sm:$0xff] }
  0xbe   :  { %693 = vmatpush.msra.mxu2 %v5240_v39  ;;  %10445 = vst [vmem:[#allocation44_spill] sm:$0xff] %v5267_v22  ;;  %v5272_v39 = vld [vmem:[%s10010_s5 + $0x248] sm:$0xff]  ;;  %675 = vmatpush.msra.mxu1 %v5286_v56  ;;  %v337_v56 = vpop.f32.mrf.mxu0 }
  0xbf   :  { %10446 = vst [vmem:[#allocation45_spill] sm:$0xff] %v5272_v39  ;;  %713 = vmatpush.msrb.mxu3 %v5272_v39  ;;  %v5291_v13 = vld [vmem:[%s10010_s5 + $0x8] sm:$0xff]  ;;  %v361_v39 = vand.u32 2147483648, %v5015_v43 }
  0xc0   :  { %694 = vmatpush.msra.mxu2 %v5267_v22  ;;  %10448 = vst [vmem:[#allocation47_spill] sm:$0xff] %v5291_v13  ;;  %v5296_v22 = vld [vmem:[%s10010_s5 + $0x228] sm:$0xff] }
  0xc1   :  { %10449 = vst [vmem:[#allocation48_spill] sm:$0xff] %v5296_v22  ;;  %714 = vmatpush.msrb.mxu3 %v5296_v22  ;;  %v5325_v22 = vld [vmem:[%s10010_s5 + $0x70] sm:$0xff]  ;;  %v362_v57 = vor.u32 1.1754944e-38, %v361_v39 }
  0xc2   :  { %695 = vmatpush.msra.mxu2 %v5291_v13  ;;  %v5315_v13 = vld [vmem:[%s10009_s4] ss:$0 sm:$0xff] }
  0xc3   :  { %10450 = vst [vmem:[#allocation49_spill] sm:$0xff] %v5315_v13  ;;  %v383_v52 = vadd.f32 %v5315_v13, %v337_v56 }
  0xc4   :  { %v317_v63 = vpop.f32.mrf.mxu3 }
  0xc5   :  { %v341_v60 = vadd.f32 %v317_v63, %v137_v49  ;;  %v354_v63 = vadd.f32 %v5117_v14, %v353_v45  ;;  %v5305_v49 = vld [vmem:[%s10010_s5 + $0x90] sm:$0xff]  ;;  %v359_v45 = vand.u32 2147483647, %v5015_v43 }
  0xc6   :  { %731 = vmatpush.msrb.mxu0 %v5305_v49 }
  0xc7   :  { %v4192_v55 = vmul.f32 -1.442695, %v341_v60  ;;  %v5320_v60 = vld [vmem:[%s10010_s5 + $0x208] sm:$0xff]  ;;  %v358_v43 = vsel %vm357_vm3, %v5117_v14, %v354_v63  ;;  %vm360_vm4 = vcmp.eq.f32.partialorder %v359_v45, 8.507059e+37  ;;  %v177_v14 = vpop.f32.mrf.mxu2  ;;  %v5343_v63 = vld [vmem:[%s10010_s5 + $0x30] sm:$0xff] }
  0xc8   :  { %10451 = vst [vmem:[#allocation50_spill] sm:$0xff] %v5320_v60  ;;  %715 = vmatpush.msrb.mxu3 %v5320_v60  ;;  %732 = vmatpush.msrb.mxu0 %v5325_v22  ;;  %v363_v53 = vsel %vm360_vm4, %v362_v57, %v358_v43  ;;  %v5349_v45 = vld [vmem:[%s10010_s5 + $0x10] sm:$0xff]  ;;  %v178_v7 = vadd.f32 %v177_v14, %v5337_v51 }
  0xc9   :  { %4238 = vpow2.f32 %v4192_v55  ;;  %v5333_v55 = vld [vmem:[%s10010_s5 + $0x50] sm:$0xff]  ;;  %v384_v56 = vmul.f32 %v383_v52, %v363_v53 }
  0xca   :  { %733 = vmatpush.msrb.mxu0 %v5333_v55 }
  0xcb   :  { %v385_v57 = vadd.f32 %v384_v56, %v178_v7  ;;  %v5413_v56 = vld [vmem:[%s10010_s5 + $0x390] sm:$0xff]  ;;  %v5418_v7 = vld [vmem:[%s10010_s5 + $0x198] sm:$0xff] }
  0xcc   :  { %734 = vmatpush.msrb.mxu0 %v5343_v63  ;;  %10456 = vst [vmem:[#allocation55_spill] sm:$0xff] %v5413_v56 }
  0xcd   :  { %10457 = vst [vmem:[#allocation56_spill] sm:$0xff] %v5418_v7 }
  0xce   :  { %735 = vmatpush.msrb.mxu0 %v5349_v45 }
  0xcf   :  { %v4239_v39 = vpop.eup %4238 }
  0xd0   :  { %v349_v13 = vadd.f32 1.0, %v4239_v39 }
  0xd2   :  { %4240 = vrcp.f32 %v349_v13  ;;  %v376_v61 = vand.u32 2147483648, %v349_v13  ;;  %v374_v46 = vand.u32 2147483647, %v349_v13  ;;  %vm370_vm6 = vweird.f32 %v349_v13 }
  0xd3   :  { %4242 = vtanh.f32 %v385_v57  ;;  %v5423_v57 = vld [vmem:[%s10006_s3 + $0x168] sm:$0xff] }
  0xd4   :  { %v377_v52 = vor.u32 1.1754944e-38, %v376_v61  ;;  %vm375_vm8 = vcmp.eq.f32.partialorder %v374_v46, 8.507059e+37  ;;  %v5370_v61 = vld [vmem:[%s10010_s5 + $0x3f8] sm:$0xff] }
  0xd5   :  { %v5389_v46 = vld [vmem:[%s10010_s5 + $0x3d8] sm:$0xff] }
  0xd8   :  { %v4241_v43 = vpop.eup %4240 }
  0xd9   :  { %v366_v60 = vmul.f32 %v4241_v43, %v349_v13  ;;  %vm371_vm5 = vweird.f32 %v4241_v43  ;;  %v4243_v48 = vpop.eup %4242  ;;  %v5407_v13 = vld [vmem:[%s10010_s5 + $0x3b8] sm:$0xff] }
  0xda   :  { %vm372_vm7 = vmor %vm370_vm6, %vm371_vm5  ;;  %v387_v53 = vsub.f32 0.0, %v4243_v48  ;;  %10455 = vst [vmem:[#allocation54_spill] sm:$0xff] %v5407_v13 }
  0xdb   :  { %v367_v47 = vsub.f32 1.0, %v366_v60  ;;  %v5358_v60 = vld [vmem:[%s10010_s5 + $0x3f0] sm:$0xff] }
  0xdd   :  { %v368_v9 = vmul.f32 %v4241_v43, %v367_v47  ;;  %v5363_v47 = vld [vmem:[%s10010_s5 + $0x1f8] sm:$0xff] }
  0xdf   :  { %v369_v41 = vadd.f32 %v4241_v43, %v368_v9  ;;  %v5377_v9 = vld [vmem:[%s10010_s5 + $0x3d0] sm:$0xff] }
  0xe1   :  { %v373_v14 = vsel %vm372_vm7, %v4241_v43, %v369_v41  ;;  %v5382_v41 = vld [vmem:[%s10010_s5 + $0x1d8] sm:$0xff]  ;;  %v5431_v43 = vld [vmem:[%s10010_s5 + $0x370] sm:$0xff] }
  0xe2   :  { %v378_v39 = vsel %vm375_vm8, %v377_v52, %v373_v14  ;;  %10458 = vst [vmem:[#allocation57_spill] sm:$0xff] %v5431_v43  ;;  %v5439_v52 = vld [vmem:[%s10010_s5 + $0x178] sm:$0xff]  ;;  %v10461_v14 = vmov 0.0  }
  0xe3   :  { %v388_v51 = vmul.f32 %v387_v53, %v378_v39  ;;  %10459 = vst [vmem:[#allocation58_spill] sm:$0xff] %v5439_v52  ;;  %v5444_v53 = vld [vmem:[%s10010_s5 + $0x398] sm:$0xff]  ;;  %v5451_v39 = vld [vmem:[%s10010_s5 + $0x350] sm:$0xff] }
  0xe4   :  { %10460 = vst [vmem:[#allocation59_spill] sm:$0xff] %v5444_v53 }
  0xe5   :  { %v5353_v38 = vadd.f32 %v4243_v48, %v388_v51  ;;  %v5395_v48 = vld [vmem:[%s10010_s5 + $0x3b0] sm:$0xff]  ;;  %v5400_v51 = vld [vmem:[%s10010_s5 + $0x1b8] sm:$0xff]  ;;  %10462 = vst [vmem:[#allocation60_spill] sm:$0xff] %v5451_v39 }
  0xe6   :  { %10453 = vst [vmem:[#allocation52_spill] sm:$0xff] %v5395_v48 }
  0xe7   :  { %412 = vmatmul.f32.vlgmr.msrb.gmra.mxu1 %v5353_v38  ;;  %432 = vmatmul.f32.vlgmr.msrb.gmra.mxu2 %v5353_v38  ;;  %10454 = vst [vmem:[#allocation53_spill] sm:$0xff] %v5400_v51 }
  0xe8   :  { %452 = vmatmul.f32.vlgmr.msra.gmra.mxu3 %v5353_v38  ;;  %656 = vmatmul.f32.vlgmr.msra.gmra.mxu0 %v5353_v38 }
  0xe9   :  { %740 = vmatpush.msrb.mxu1 %v5358_v60  ;;  %760 = vmatpush.msrb.mxu2 %v5363_v47 }
  0xea   :  { %780 = vmatpush.msra.mxu3 %v5370_v61  ;;  %899 = vmatpush.msra.mxu0 %v5423_v57 }
  0xeb   :  { %741 = vmatpush.msrb.mxu1 %v5377_v9  ;;  %761 = vmatpush.msrb.mxu2 %v5382_v41 }
  0xec   :  { %781 = vmatpush.msra.mxu3 %v5389_v46 }
  0xed   :  { %742 = vmatpush.msrb.mxu1 %v5395_v48  ;;  %762 = vmatpush.msrb.mxu2 %v5400_v51  ;;  %v5494_v51 = vld [vmem:[%s10010_s5 + $0x310] sm:$0xff]  ;;  %v5505_v48 = vld [vmem:[%s10010_s5 + $0x118] sm:$0xff] }
  0xee   :  { %782 = vmatpush.msra.mxu3 %v5407_v13  ;;  %v5470_v13 = vld [vmem:[%s10010_s5 + $0x330] sm:$0xff]  ;;  %10469 = vst [vmem:[#allocation67_spill] sm:$0xff] %v5494_v51 }
  0xef   :  { %743 = vmatpush.msrb.mxu1 %v5413_v56  ;;  %763 = vmatpush.msrb.mxu2 %v5418_v7  ;;  %v5458_v7 = vld [vmem:[%s10010_s5 + $0x158] sm:$0xff]  ;;  %10465 = vst [vmem:[#allocation63_spill] sm:$0xff] %v5470_v13 }
  0xf0   :  { %676 = vmatmul.f32.vlgmr.msra.gmra.mxu1 %v10461_v14  ;;  %696 = vmatmul.f32.vlgmr.msra.gmra.mxu2 %v5353_v38  ;;  %10463 = vst [vmem:[#allocation61_spill] sm:$0xff] %v5458_v7  ;;  %v5463_v56 = vld [vmem:[%s10010_s5 + $0x378] sm:$0xff] }
  0xf1   :  { %736 = vmatmul.f32.vlgmr.msrb.gmra.mxu0 %v5353_v38  ;;  %744 = vmatpush.msrb.mxu1 %v5431_v43  ;;  %10464 = vst [vmem:[#allocation62_spill] sm:$0xff] %v5463_v56  ;;  %v5475_v43 = vld [vmem:[%s10006_s3 + $0x150] sm:$0xff] }
  0xf2   :  { %764 = vmatpush.msrb.mxu2 %v5439_v52  ;;  %783 = vmatpush.msra.mxu3 %v5444_v53  ;;  %10466 = vst [vmem:[#allocation64_spill] sm:$0xff] %v5475_v43  ;;  %v5482_v52 = vld [vmem:[%s10010_s5 + $0x138] sm:$0xff] }
  0xf3   :  { %716 = vmatmul.f32.vlgmr.msrb.gmra.mxu3 %v10461_v14  ;;  %745 = vmatpush.msrb.mxu1 %v5451_v39  ;;  %10467 = vst [vmem:[#allocation65_spill] sm:$0xff] %v5482_v52  ;;  %v5487_v53 = vld [vmem:[%s10010_s5 + $0x358] sm:$0xff] }
  0xf4   :  { %10468 = vst [vmem:[#allocation66_spill] sm:$0xff] %v5487_v53  ;;  %765 = vmatpush.msrb.mxu2 %v5458_v7  ;;  %784 = vmatpush.msra.mxu3 %v5463_v56  ;;  %v5499_v39 = vld [vmem:[%s10006_s3 + $0x138] sm:$0xff]  ;;  %v5523_v56 = vld [vmem:[%s10006_s3 + $0x120] sm:$0xff] }
  0xf5   :  { %10470 = vst [vmem:[#allocation68_spill] sm:$0xff] %v5499_v39  ;;  %746 = vmatpush.msrb.mxu1 %v5470_v13  ;;  %v5510_v7 = vld [vmem:[%s10010_s5 + $0x338] sm:$0xff]  ;;  %900 = vmatpush.msra.mxu0 %v5475_v43  ;;  %v5518_v13 = vld [vmem:[%s10010_s5 + $0x2f0] sm:$0xff] }
  0xf6   :  { %10471 = vst [vmem:[#allocation69_spill] sm:$0xff] %v5505_v48  ;;  %766 = vmatpush.msrb.mxu2 %v5482_v52  ;;  %785 = vmatpush.msra.mxu3 %v5487_v53  ;;  %v5529_v43 = vld [vmem:[%s10010_s5 + $0xf8] sm:$0xff]  ;;  %v5547_v53 = vld [vmem:[%s10006_s3 + $0x108] sm:$0xff] }
  0xf7   :  { %10472 = vst [vmem:[#allocation70_spill] sm:$0xff] %v5510_v7  ;;  %747 = vmatpush.msrb.mxu1 %v5494_v51  ;;  %v5534_v52 = vld [vmem:[%s10010_s5 + $0x318] sm:$0xff]  ;;  %901 = vmatpush.msra.mxu0 %v5499_v39  ;;  %v5542_v51 = vld [vmem:[%s10010_s5 + $0x2d0] sm:$0xff] }
  0xf8   :  { %10473 = vst [vmem:[#allocation71_spill] sm:$0xff] %v5518_v13  ;;  %767 = vmatpush.msrb.mxu2 %v5505_v48  ;;  %786 = vmatpush.msra.mxu3 %v5510_v7  ;;  %v5553_v39 = vld [vmem:[%s10010_s5 + $0xd8] sm:$0xff]  ;;  %v5571_v7 = vld [vmem:[%s10006_s3 + $0xf0] sm:$0xff] }
  0xf9   :  { %10474 = vst [vmem:[#allocation72_spill] sm:$0xff] %v5523_v56  ;;  %748 = vmatpush.msrb.mxu1 %v5518_v13  ;;  %v5558_v48 = vld [vmem:[%s10010_s5 + $0x2f8] sm:$0xff]  ;;  %902 = vmatpush.msra.mxu0 %v5523_v56  ;;  %v5566_v13 = vld [vmem:[%s10010_s5 + $0x2b0] sm:$0xff] }
  0xfa   :  { %10475 = vst [vmem:[#allocation73_spill] sm:$0xff] %v5529_v43  ;;  %768 = vmatpush.msrb.mxu2 %v5529_v43  ;;  %787 = vmatpush.msra.mxu3 %v5534_v52  ;;  %v5577_v56 = vld [vmem:[%s10010_s5 + $0xb8] sm:$0xff] }
  0xfb   :  { %10476 = vst [vmem:[#allocation74_spill] sm:$0xff] %v5534_v52  ;;  %749 = vmatpush.msrb.mxu1 %v5542_v51  ;;  %v5582_v43 = vld [vmem:[%s10010_s5 + $0x2d8] sm:$0xff]  ;;  %903 = vmatpush.msra.mxu0 %v5547_v53 }
  0xfc   :  { %10477 = vst [vmem:[#allocation75_spill] sm:$0xff] %v5542_v51  ;;  %769 = vmatpush.msrb.mxu2 %v5553_v39  ;;  %788 = vmatpush.msra.mxu3 %v5558_v48  ;;  %v5590_v51 = vld [vmem:[%s10010_s5 + $0x290] sm:$0xff]  ;;  %v5595_v52 = vld [vmem:[%s10006_s3 + $0xd8] sm:$0xff] }
  0xfd   :  { %10478 = vst [vmem:[#allocation76_spill] sm:$0xff] %v5547_v53  ;;  %750 = vmatpush.msrb.mxu1 %v5566_v13  ;;  %v5601_v53 = vld [vmem:[%s10010_s5 + $0x98] sm:$0xff]  ;;  %904 = vmatpush.msra.mxu0 %v5571_v7 }
  0xfe   :  { %10479 = vst [vmem:[#allocation77_spill] sm:$0xff] %v5553_v39  ;;  %v5606_v39 = vld [vmem:[%s10010_s5 + $0x2b8] sm:$0xff]  ;;  %770 = vmatpush.msrb.mxu2 %v5577_v56  ;;  %789 = vmatpush.msra.mxu3 %v5582_v43 }
  0xff   :  { %10480 = vst [vmem:[#allocation78_spill] sm:$0xff] %v5558_v48  ;;  %751 = vmatpush.msrb.mxu1 %v5590_v51  ;;  %v5620_v48 = vld [vmem:[%s10010_s5 + $0x78] sm:$0xff]  ;;  %905 = vmatpush.msra.mxu0 %v5595_v52 }
 0x100   :  { %10481 = vst [vmem:[#allocation79_spill] sm:$0xff] %v5566_v13  ;;  %v5614_v13 = vld [vmem:[%s10010_s5 + $0x270] sm:$0xff]  ;;  %771 = vmatpush.msrb.mxu2 %v5601_v53  ;;  %790 = vmatpush.msra.mxu3 %v5606_v39 }
 0x101   :  { %10482 = vst [vmem:[#allocation80_spill] sm:$0xff] %v5571_v7  ;;  %v5625_v7 = vld [vmem:[%s10010_s5 + $0x298] sm:$0xff]  ;;  %752 = vmatpush.msrb.mxu1 %v5614_v13 }
 0x102   :  { %10483 = vst [vmem:[#allocation81_spill] sm:$0xff] %v5577_v56  ;;  %v5639_v56 = vld [vmem:[%s10010_s5 + $0x58] sm:$0xff]  ;;  %772 = vmatpush.msrb.mxu2 %v5620_v48  ;;  %791 = vmatpush.msra.mxu3 %v5625_v7 }
 0x103   :  { %10484 = vst [vmem:[#allocation82_spill] sm:$0xff] %v5582_v43  ;;  %v5644_v43 = vld [vmem:[%s10010_s5 + $0x278] sm:$0xff] }
 0x104   :  { %10485 = vst [vmem:[#allocation83_spill] sm:$0xff] %v5590_v51  ;;  %v5633_v51 = vld [vmem:[%s10010_s5 + $0x250] sm:$0xff]  ;;  %773 = vmatpush.msrb.mxu2 %v5639_v56  ;;  %792 = vmatpush.msra.mxu3 %v5644_v43 }
 0x105   :  { %10486 = vst [vmem:[#allocation84_spill] sm:$0xff] %v5601_v53  ;;  %v5651_v53 = vld [vmem:[%s10010_s5 + $0x230] sm:$0xff]  ;;  %753 = vmatpush.msrb.mxu1 %v5633_v51 }
 0x106   :  { %10487 = vst [vmem:[#allocation85_spill] sm:$0xff] %v5606_v39  ;;  %v5662_v39 = vld [vmem:[%s10010_s5 + $0x258] sm:$0xff] }
 0x107   :  { %10488 = vst [vmem:[#allocation86_spill] sm:$0xff] %v5614_v13  ;;  %v5657_v13 = vld [vmem:[%s10010_s5 + $0x38] sm:$0xff]  ;;  %754 = vmatpush.msrb.mxu1 %v5651_v53  ;;  %793 = vmatpush.msra.mxu3 %v5662_v39 }
 0x108   :  { %10489 = vst [vmem:[#allocation87_spill] sm:$0xff] %v5620_v48  ;;  %v5669_v48 = vld [vmem:[%s10010_s5 + $0x210] sm:$0xff]  ;;  %774 = vmatpush.msrb.mxu2 %v5657_v13 }
 0x109   :  { %10490 = vst [vmem:[#allocation88_spill] sm:$0xff] %v5625_v7  ;;  %v5680_v7 = vld [vmem:[%s10010_s5 + $0x238] sm:$0xff]  ;;  %755 = vmatpush.msrb.mxu1 %v5669_v48 }
 0x10a   :  { %10491 = vst [vmem:[#allocation89_spill] sm:$0xff] %v5633_v51  ;;  %v5675_v51 = vld [vmem:[%s10010_s5 + $0x18] sm:$0xff]  ;;  %794 = vmatpush.msra.mxu3 %v5680_v7  ;;  %756 = vmatmul.f32.vlgmr.msrb.gmra.mxu1 %v10461_v14 }
 0x10b   :  { %10492 = vst [vmem:[#allocation90_spill] sm:$0xff] %v5639_v56  ;;  %775 = vmatpush.msrb.mxu2 %v5675_v51  ;;  %v5695_v56 = vld [vmem:[%s10006_s3 + $0x178] sm:$0xff]  ;;  %919 = vmatpush.msra.mxu1 %v4667_v37  ;;  %v5717_v37 = vld [vmem:[%s10006_s3 + $0x148] sm:$0xff] }
 0x10c   :  { %10493 = vst [vmem:[#allocation91_spill] sm:$0xff] %v5651_v53  ;;  %v5688_v53 = vld [vmem:[%s10010_s5 + $0x218] sm:$0xff]  ;;  %776 = vmatmul.f32.vlgmr.msrb.gmra.mxu2 %v5353_v38 }
 0x10d   :  { %10494 = vst [vmem:[#allocation92_spill] sm:$0xff] %v5669_v48  ;;  %795 = vmatpush.msra.mxu3 %v5688_v53  ;;  %v5704_v48 = vld [vmem:[%s10006_s3 + $0x160] sm:$0xff]  ;;  %939 = vmatpush.msra.mxu2 %v5695_v56 }
 0x10e   :  { %10495 = vst [vmem:[#allocation93_spill] sm:$0xff] %v5675_v51  ;;  %796 = vmatmul.f32.vlgmr.msra.gmra.mxu3 %v10461_v14  ;;  %v5711_v51 = vld [vmem:[%s10006_s3 + $0x140] sm:$0xff]  ;;  %920 = vmatpush.msra.mxu1 %v4682_v40  ;;  %v5724_v14 = vld [vmem:[%s10006_s3 + $0x128] sm:$0xff]  ;;  %v5730_v40 = vld [vmem:[%s10006_s3 + $0x130] sm:$0xff] }
 0x10f   :  { %10496 = vst [vmem:[#allocation94_spill] sm:$0xff] %v5711_v51  ;;  %1134 = vmatpush.msrb.mxu3 %v4823_v62  ;;  %940 = vmatpush.msra.mxu2 %v5704_v48  ;;  %v5737_v62 = vld [vmem:[%s10006_s3 + $0x110] sm:$0xff] }
 0x110   :  { %10497 = vst [vmem:[#allocation95_spill] sm:$0xff] %v5724_v14  ;;  %921 = vmatpush.msra.mxu1 %v5711_v51  ;;  %v5743_v51 = vld [vmem:[%s10006_s3 + $0x118] sm:$0xff] }
 0x111   :  { %1135 = vmatpush.msrb.mxu3 %v4831_v0  ;;  %941 = vmatpush.msra.mxu2 %v5717_v37  ;;  %10498 = vst [vmem:[#allocation96_spill] sm:$0xff] %v5737_v62  ;;  %v5750_v0 = vld [vmem:[%s10006_s3 + $0xf8] sm:$0xff] }
 0x112   :  { %922 = vmatpush.msra.mxu1 %v5724_v14  ;;  %v5756_v14 = vld [vmem:[%s10006_s3 + $0x100] sm:$0xff] }
 0x113   :  { %1136 = vmatpush.msrb.mxu3 %v4836_v1  ;;  %942 = vmatpush.msra.mxu2 %v5730_v40  ;;  %v5763_v1 = vld [vmem:[%s10006_s3 + $0xe0] sm:$0xff] }
 0x114   :  { %923 = vmatpush.msra.mxu1 %v5737_v62  ;;  %v5769_v62 = vld [vmem:[%s10006_s3 + $0xe8] sm:$0xff] }
 0x115   :  { %1137 = vmatpush.msrb.mxu3 %v4842_v2  ;;  %943 = vmatpush.msra.mxu2 %v5743_v51  ;;  %v5782_v2 = vpop.f32.mrf.mxu2 }
 0x116   :  { %924 = vmatpush.msra.mxu1 %v5750_v0 }
 0x117   :  { %1138 = vmatpush.msrb.mxu3 %v4848_v3  ;;  %944 = vmatpush.msra.mxu2 %v5756_v14  ;;  %v5786_v3 = vpop.f32.mrf.mxu1 }
 0x118   :  { %925 = vmatpush.msra.mxu1 %v5763_v1 }
 0x119   :  { %1139 = vmatpush.msrb.mxu3 %v4854_v4  ;;  %945 = vmatpush.msra.mxu2 %v5769_v62 }
 0x11b   :  { %1140 = vmatpush.msrb.mxu3 %v4862_v6 }
 0x11d   :  { %1141 = vmatpush.msrb.mxu3 %v4873_v8  ;;  %v5792_v4 = vpop.f32.mrf.mxu2 }
 0x11e   :  { %10499 = vst [vmem:[#allocation97_spill] sm:$0xff] %v5792_v4  ;;  %v5971_v4 = vld [vmem:[%s10006_s3] sm:$0xff] }
 0x11f   :  { %1142 = vmatpush.msrb.mxu3 %v4883_v10  ;;  %v5796_v6 = vpop.f32.mrf.mxu1 }
 0x120   :  { %10500 = vst [vmem:[#allocation98_spill] sm:$0xff] %v5796_v6  ;;  %v5976_v6 = vld [vmem:[%s10006_s3 + $0x8] sm:$0xff] }
 0x121   :  { %1143 = vmatpush.msrb.mxu3 %v4891_v12  ;;  %10522 = vst [vmem:[#allocation120_spill] sm:$0xff] %v5976_v6 }
 0x123   :  { %1144 = vmatpush.msrb.mxu3 %v4898_v15  ;;  %v5824_v15 = vld [vmem:[%s10006_s3 + $0xc8] sm:$0xff] }
 0x124   :  { %926 = vmatpush.msra.mxu1 %v5824_v15 }
 0x125   :  { %1145 = vmatpush.msrb.mxu3 %v4904_v17  ;;  %v5801_v8 = vpop.f32.mrf.mxu2  ;;  %v5829_v17 = vld [vmem:[%s10006_s3 + $0xd0] sm:$0xff] }
 0x126   :  { %10501 = vst [vmem:[#allocation99_spill] sm:$0xff] %v5801_v8  ;;  %946 = vmatpush.msra.mxu2 %v5829_v17  ;;  %v5961_v8 = vld [vmem:[%s10006_s3 + $0x28] sm:$0xff] }
 0x127   :  { %1146 = vmatpush.msrb.mxu3 %v4922_v21  ;;  %v5805_v10 = vpop.f32.mrf.mxu1  ;;  %v5837_v21 = vld [vmem:[%s10006_s3 + $0xa8] sm:$0xff]  ;;  %10520 = vst [vmem:[#allocation118_spill] sm:$0xff] %v5961_v8 }
 0x128   :  { %10502 = vst [vmem:[#allocation100_spill] sm:$0xff] %v5805_v10 }
 0x129   :  { %1147 = vmatpush.msrb.mxu3 %v4948_v27  ;;  %v5847_v27 = vld [vmem:[%s10006_s3 + $0xb8] sm:$0xff] }
 0x12a   :  { %10506 = vst [vmem:[#allocation104_spill] sm:$0xff] %v5847_v27  ;;  %947 = vmatpush.msra.mxu2 %v5847_v27 }
 0x12b   :  { %1148 = vmatpush.msrb.mxu3 %v4972_v31  ;;  %v5856_v31 = vld [vmem:[%s10006_s3 + $0x90] sm:$0xff] }
 0x12d   :  { %1149 = vmatpush.msrb.mxu3 %v4996_v35  ;;  %v5810_v12 = vpop.f32.mrf.mxu2  ;;  %v5861_v35 = vld [vmem:[%s10006_s3 + $0x98] sm:$0xff] }
 0x12e   :  { %10503 = vst [vmem:[#allocation101_spill] sm:$0xff] %v5810_v12  ;;  %v5951_v12 = vld [vmem:[%s10006_s3 + $0x18] sm:$0xff] }
 0x12f   :  { %1214 = vmatpush.msra.mxu3 %v5022_v44  ;;  %10507 = vst [vmem:[#allocation105_spill] sm:$0xff] %v5861_v35  ;;  %v5866_v44 = vld [vmem:[%s10006_s3 + $0xa0] sm:$0xff] }
 0x130   :  { %10508 = vst [vmem:[#allocation106_spill] sm:$0xff] %v5866_v44  ;;  %948 = vmatpush.msra.mxu2 %v5866_v44 }
 0x131   :  { %1215 = vmatpush.msra.mxu3 %v5050_v50 }
 0x133   :  { %1216 = vmatpush.msra.mxu3 %v5074_v54  ;;  %v5877_v54 = vld [vmem:[%s10006_s3 + $0x78] sm:$0xff] }
 0x135   :  { %1217 = vmatpush.msra.mxu3 %v5098_v58  ;;  %v5871_v50 = vpop.f32.mrf.mxu2  ;;  %v5882_v58 = vld [vmem:[%s10006_s3 + $0x80] sm:$0xff] }
 0x136   :  { %10509 = vst [vmem:[#allocation107_spill] sm:$0xff] %v5871_v50  ;;  %v5938_v50 = vld [vmem:[%s10006_s3 + $0x38] sm:$0xff] }
 0x137   :  { %1218 = vmatpush.msra.mxu3 %v5124_v16  ;;  %10510 = vst [vmem:[#allocation108_spill] sm:$0xff] %v5882_v58  ;;  %v5895_v16 = vld [vmem:[%s10006_s3 + $0x60] sm:$0xff] }
 0x138   :  { %10517 = vst [vmem:[#allocation115_spill] sm:$0xff] %v5938_v50 }
 0x139   :  { %1219 = vmatpush.msra.mxu3 %v5152_v18  ;;  %v5900_v18 = vld [vmem:[%s10006_s3 + $0x68] sm:$0xff] }
 0x13a   :  { %10512 = vst [vmem:[#allocation110_spill] sm:$0xff] %v5900_v18 }
 0x13b   :  { %1220 = vmatpush.msra.mxu3 %v5176_v5  ;;  %v5814_v5 = vpop.f32.mrf.mxu1 }
 0x13c   :  { %10504 = vst [vmem:[#allocation102_spill] sm:$0xff] %v5814_v5  ;;  %v5956_v5 = vld [vmem:[%s10006_s3 + $0x20] sm:$0xff] }
 0x13d   :  { %1221 = vmatpush.msra.mxu3 %v5203_v11  ;;  %v5819_v11 = vld [vmem:[%s10006_s3 + $0xc0] sm:$0xff]  ;;  %10519 = vst [vmem:[#allocation117_spill] sm:$0xff] %v5956_v5  ;;  %v5965_v10 = vpop.f32.mrf.mxu2 }
 0x13e   :  { %906 = vmatpush.msra.mxu0 %v5819_v11  ;;  %10521 = vst [vmem:[#allocation119_spill] sm:$0xff] %v5965_v10 }
 0x13f   :  { %1222 = vmatpush.msra.mxu3 %v5227_v36  ;;  %v5905_v36 = vld [vmem:[%s10006_s3 + $0x70] sm:$0xff] }
 0x140   :  { %907 = vmatpush.msra.mxu0 %v5837_v21  ;;  %10513 = vst [vmem:[#allocation111_spill] sm:$0xff] %v5905_v36 }
 0x141   :  { %1223 = vmatpush.msra.mxu3 %v5253_v26  ;;  %v5842_v26 = vld [vmem:[%s10006_s3 + $0xb0] sm:$0xff] }
 0x142   :  { %10505 = vst [vmem:[#allocation103_spill] sm:$0xff] %v5842_v26  ;;  %927 = vmatpush.msra.mxu1 %v5842_v26  ;;  %908 = vmatpush.msra.mxu0 %v5856_v31 }
 0x143   :  { %1224 = vmatpush.msra.mxu3 %v5279_v59  ;;  %v5887_v59 = vld [vmem:[%s10006_s3 + $0x88] sm:$0xff] }
 0x144   :  { %928 = vmatpush.msra.mxu1 %v5861_v35  ;;  %10511 = vst [vmem:[#allocation109_spill] sm:$0xff] %v5887_v59  ;;  %909 = vmatpush.msra.mxu0 %v5877_v54 }
 0x145   :  { %1225 = vmatpush.msra.mxu3 %v5305_v49  ;;  %949 = vmatpush.msra.mxu2 %v5887_v59  ;;  %v5915_v49 = vld [vmem:[%s10006_s3 + $0x48] sm:$0xff] }
 0x146   :  { %929 = vmatpush.msra.mxu1 %v5882_v58  ;;  %910 = vmatpush.msra.mxu0 %v5895_v16 }
 0x147   :  { %1226 = vmatpush.msra.mxu3 %v5325_v22  ;;  %v5909_v22 = vpop.f32.mrf.mxu1  ;;  %950 = vmatpush.msra.mxu2 %v5905_v36 }
 0x148   :  { %930 = vmatpush.msra.mxu1 %v5900_v18  ;;  %10514 = vst [vmem:[#allocation112_spill] sm:$0xff] %v5909_v22  ;;  %911 = vmatpush.msra.mxu0 %v5915_v49  ;;  %v5943_v22 = vld [vmem:[%s10006_s3 + $0x40] sm:$0xff] }
 0x149   :  { %1227 = vmatpush.msra.mxu3 %v5333_v55  ;;  %v5920_v55 = vld [vmem:[%s10006_s3 + $0x50] sm:$0xff]  ;;  %10518 = vst [vmem:[#allocation116_spill] sm:$0xff] %v5943_v22 }
 0x14a   :  { %10515 = vst [vmem:[#allocation113_spill] sm:$0xff] %v5920_v55  ;;  %931 = vmatpush.msra.mxu1 %v5920_v55 }
 0x14b   :  { %1228 = vmatpush.msra.mxu3 %v5343_v63  ;;  %v5925_v63 = vld [vmem:[%s10006_s3 + $0x58] sm:$0xff] }
 0x14c   :  { %10516 = vst [vmem:[#allocation114_spill] sm:$0xff] %v5925_v63  ;;  %951 = vmatpush.msra.mxu2 %v5925_v63  ;;  %932 = vmatpush.msra.mxu1 %v5938_v50 }
 0x14d   :  { %1229 = vmatpush.msra.mxu3 %v5349_v45  ;;  %v5933_v45 = vld [vmem:[%s10006_s3 + $0x30] sm:$0xff] }
 0x14e   :  { %912 = vmatpush.msra.mxu0 %v5933_v45  ;;  %952 = vmatpush.msra.mxu2 %v5943_v22  ;;  %v5981_v22 = vld [vmem:[%s10006_s3 + $0x10] sm:$0xff] }
 0x14f   :  { %933 = vmatpush.msra.mxu1 %v5956_v5  ;;  %10523 = vst [vmem:[#allocation121_spill] sm:$0xff] %v5981_v22  ;;  %v5989_v10 = vpop.f32.mrf.mxu1  ;;  %v10551_v5 = vld [vmem:[#allocation33_spill] sm:$0xff] }
 0x150   :  { %913 = vmatpush.msra.mxu0 %v5951_v12  ;;  %953 = vmatpush.msra.mxu2 %v5961_v8  ;;  %10524 = vst [vmem:[#allocation122_spill] sm:$0xff] %v5989_v10  ;;  %v10534_v10 = vld [vmem:[#allocation16_spill] sm:$0xff] }
 0x151   :  { %934 = vmatpush.msra.mxu1 %v5976_v6 }
 0x152   :  { %914 = vmatpush.msra.mxu0 %v5971_v4  ;;  %954 = vmatpush.msra.mxu2 %v5981_v22  ;;  %v10546_v22 = vld [vmem:[#allocation27_spill] sm:$0xff] }
 0x153   :  { %1174 = vmatpush.msrb.mxu1 %v4915_v20  ;;  %v10526_v20 = vld [vmem:[#allocation10_spill] sm:$0xff] }
 0x154   :  { %1154 = vmatpush.msrb.mxu0 %v4910_v19  ;;  %1194 = vmatpush.msrb.mxu2 %v4938_v25  ;;  %v6000_v19 = vpop.f32.mrf.mxu2  ;;  %v10529_v25 = vld [vmem:[#allocation12_spill] sm:$0xff] }
 0x155   :  { %1175 = vmatpush.msrb.mxu1 %v4933_v24  ;;  %10525 = vst [vmem:[#allocation123_spill] sm:$0xff] %v6000_v19  ;;  %v10528_v24 = vld [vmem:[#allocation14_spill] sm:$0xff]  ;;  %v10538_v19 = vld [vmem:[#allocation20_spill] sm:$0xff] }
 0x156   :  { %1155 = vmatpush.msrb.mxu0 %v4928_v23  ;;  %1195 = vmatpush.msrb.mxu2 %v4965_v30  ;;  %v10527_v23 = vld [vmem:[#allocation11_spill] sm:$0xff] }
 0x157   :  { %1176 = vmatpush.msrb.mxu1 %v4960_v29  ;;  %v10531_v29 = vld [vmem:[#allocation4_spill] sm:$0xff] }
 0x158   :  { %1156 = vmatpush.msrb.mxu0 %v4955_v28  ;;  %1196 = vmatpush.msrb.mxu2 %v4989_v34  ;;  %v10530_v28 = vld [vmem:[#allocation7_spill] sm:$0xff]  ;;  %v10532_v34 = vld [vmem:[#allocation13_spill] sm:$0xff] }
 0x159   :  { %1177 = vmatpush.msrb.mxu1 %v4984_v33  ;;  %v99_v30 = vadd.f32 %v10531_v29, %v10530_v28 }
 0x15a   :  { %1157 = vmatpush.msrb.mxu0 %v4979_v32  ;;  %1197 = vmatpush.msrb.mxu2 %v5013_v42  ;;  %v10533_v32 = vld [vmem:[#allocation18_spill] sm:$0xff] }
 0x15b   :  { %1178 = vmatpush.msrb.mxu1 %v10527_v23  ;;  %v10535_v23 = vld [vmem:[#allocation17_spill] sm:$0xff] }
 0x15c   :  { %1158 = vmatpush.msrb.mxu0 %v10526_v20  ;;  %1198 = vmatpush.msrb.mxu2 %v10528_v24  ;;  %v6014_v20 = vld [vmem:[%s10012_s6] sm:$0xf]  ;;  %v10536_v24 = vld [vmem:[#allocation21_spill] sm:$0xff] }
 0x15d   :  { %1179 = vmatpush.msrb.mxu1 %v10532_v34  ;;  %v10539_v34 = vld [vmem:[#allocation24_spill] sm:$0xff] }
 0x15e   :  { %1159 = vmatpush.msrb.mxu0 %v10529_v25  ;;  %1199 = vmatpush.msrb.mxu2 %v10533_v32  ;;  %v10537_v25 = vld [vmem:[#allocation19_spill] sm:$0xff]  ;;  %v6022_v32 = vperm.slane %v6014_v20, 0 }
 0x15f   :  { %1180 = vmatpush.msrb.mxu1 %v10535_v23  ;;  %v10543_v23 = vld [vmem:[#allocation23_spill] sm:$0xff] }
 0x160   :  { %1160 = vmatpush.msrb.mxu0 %v10534_v10  ;;  %1200 = vmatpush.msrb.mxu2 %v10536_v24  ;;  %10540 = vst [vmem:[#allocation10_spill] sm:$0xff] %v6022_v32  ;;  %v10541_v10 = vld [vmem:[#allocation22_spill] sm:$0xff]  ;;  %v10544_v24 = vld [vmem:[#allocation28_spill] sm:$0xff] }
 0x161   :  { %1181 = vmatpush.msrb.mxu1 %v10538_v19 }
 0x162   :  { %1161 = vmatpush.msrb.mxu0 %v10537_v25  ;;  %1201 = vmatpush.msrb.mxu2 %v10539_v34  ;;  %v10547_v34 = vld [vmem:[#allocation31_spill] sm:$0xff] }
 0x163   :  { %1182 = vmatpush.msrb.mxu1 %v10543_v23 }
 0x164   :  { %v413_v33 = vpop.f32.mrf.mxu1  ;;  %1162 = vmatpush.msrb.mxu0 %v10541_v10  ;;  %1202 = vmatpush.msrb.mxu2 %v10544_v24  ;;  %v10548_v10 = vld [vmem:[#allocation29_spill] sm:$0xff] }
 0x165   :  { %v456_v42 = vadd.f32 %v413_v33, %v99_v30  ;;  %v10542_v30 = vld [vmem:[#allocation32_spill] sm:$0xff]  ;;  %v657_v28 = vpop.f32.mrf.mxu0  ;;  %1183 = vmatpush.msrb.mxu1 %v10546_v22  ;;  %v10553_v22 = vld [vmem:[#allocation38_spill] sm:$0xff] }
 0x166   :  { %v140_v33 = vadd.f32 %v5786_v3, %v10542_v30  ;;  %1203 = vmatpush.msrb.mxu2 %v10547_v34  ;;  %v658_v6 = vadd.f32 %v657_v28, %v6022_v32  ;;  %v10550_v30 = vld [vmem:[#allocation35_spill] sm:$0xff]  ;;  %v6040_v34 = vperm.slane %v6014_v20, 1 }
 0x167   :  { %v4193_v29 = vmul.f32 -1.442695, %v456_v42  ;;  %v10545_v42 = vld [vmem:[#allocation26_spill] sm:$0xff] }
 0x168   :  { %1163 = vmatpush.msrb.mxu0 %v10545_v42  ;;  %1204 = vmatpush.msrb.mxu2 %v10550_v30  ;;  %10554 = vst [vmem:[#allocation11_spill] sm:$0xff] %v6040_v34  ;;  %v10557_v30 = vld [vmem:[#allocation41_spill] sm:$0xff] }
 0x169   :  { %4244 = vpow2.f32 %v4193_v29  ;;  %v10549_v29 = vld [vmem:[#allocation30_spill] sm:$0xff] }
 0x16a   :  { %v433_v25 = vpop.f32.mrf.mxu2  ;;  %1164 = vmatpush.msrb.mxu0 %v10548_v10  ;;  %1184 = vmatpush.msrb.mxu1 %v10549_v29  ;;  %v10556_v10 = vld [vmem:[#allocation37_spill] sm:$0xff] }
 0x16b   :  { %v457_v19 = vadd.f32 %v433_v25, %v140_v33  ;;  %v453_v23 = vpop.f32.mrf.mxu3  ;;  %v10552_v33 = vld [vmem:[#allocation34_spill] sm:$0xff]  ;;  %1205 = vmatpush.msrb.mxu2 %v10553_v22  ;;  %v10563_v22 = vld [vmem:[#allocation48_spill] sm:$0xff] }
 0x16c   :  { %1165 = vmatpush.msrb.mxu0 %v10551_v5  ;;  %1185 = vmatpush.msrb.mxu1 %v10552_v33  ;;  %v10559_v5 = vld [vmem:[#allocation40_spill] sm:$0xff] }
 0x16d   :  { %v4194_v8 = vmul.f32 -1.442695, %v457_v19  ;;  %v677_v3 = vpop.f32.mrf.mxu1  ;;  %v10555_v19 = vld [vmem:[#allocation36_spill] sm:$0xff]  ;;  %1206 = vmatpush.msrb.mxu2 %v10557_v30  ;;  %v10564_v30 = vld [vmem:[#allocation46_spill] sm:$0xff] }
 0x16e   :  { %v678_v24 = vadd.f32 %v677_v3, %v658_v6  ;;  %1166 = vmatpush.msrb.mxu0 %v10555_v19  ;;  %1186 = vmatpush.msrb.mxu1 %v10556_v10  ;;  %v10558_v6 = vld [vmem:[#allocation39_spill] sm:$0xff]  ;;  %v10560_v3 = vld [vmem:[#allocation45_spill] sm:$0xff]  ;;  %v10562_v33 = vld [vmem:[#allocation44_spill] sm:$0xff] }
 0x16f   :  { %v4245_v42 = vpop.eup %4244  ;;  %4246 = vpow2.f32 %v4194_v8  ;;  %1207 = vmatpush.msrb.mxu2 %v10560_v3 }
 0x170   :  { %v464_v25 = vadd.f32 1.0, %v4245_v42  ;;  %v4195_v28 = vmul.f32 -1.442695, %v678_v24  ;;  %1167 = vmatpush.msrb.mxu0 %v10558_v6  ;;  %1187 = vmatpush.msrb.mxu1 %v10559_v5  ;;  %v10561_v24 = vld [vmem:[#allocation43_spill] sm:$0xff]  ;;  %v10566_v5 = vld [vmem:[#allocation50_spill] sm:$0xff] }
 0x171   :  { %1208 = vmatpush.msrb.mxu2 %v10563_v22  ;;  %v10565_v6 = vld [vmem:[#allocation47_spill] sm:$0xff] }
 0x172   :  { %4248 = vrcp.f32 %v464_v25  ;;  %1168 = vmatpush.msrb.mxu0 %v10561_v24  ;;  %1188 = vmatpush.msrb.mxu1 %v10562_v33  ;;  %vm471_vm10 = vweird.f32 %v464_v25 }
 0x173   :  { %4250 = vpow2.f32 %v4195_v28  ;;  %v697_v8 = vpop.f32.mrf.mxu2  ;;  %1209 = vmatpush.msrb.mxu2 %v10566_v5 }
 0x174   :  { %v698_v29 = vadd.f32 %v697_v8, %v6040_v34  ;;  %1169 = vmatpush.msrb.mxu0 %v10564_v30  ;;  %1189 = vmatpush.msrb.mxu1 %v10565_v6 }
 0x175   :  { %v4247_v42 = vpop.eup %4246 }
 0x176   :  { %v6052_v19 = vadd.f32 1.0, %v4247_v42  ;;  %v717_v10 = vpop.f32.mrf.mxu3  ;;  %v477_v42 = vand.u32 2147483648, %v464_v25 }
 0x177   :  { %v718_v28 = vadd.f32 %v717_v10, %v698_v29  ;;  %v475_v29 = vand.u32 2147483647, %v464_v25 }
 0x178   :  { %v4249_v3 = vpop.eup %4248  ;;  %4252 = vrcp.f32 %v6052_v19  ;;  %v478_v5 = vor.u32 1.1754944e-38, %v477_v42  ;;  %vm486_vm15 = vweird.f32 %v6052_v19 }
 0x179   :  { %v4251_v8 = vpop.eup %4250  ;;  %v467_v24 = vmul.f32 %v4249_v3, %v464_v25  ;;  %v4196_v34 = vmul.f32 -1.442695, %v718_v28  ;;  %vm472_vm9 = vweird.f32 %v4249_v3  ;;  %vm476_vm12 = vcmp.eq.f32.partialorder %v475_v29, 8.507059e+37 }
 0x17a   :  { %v6058_v32 = vadd.f32 1.0, %v4251_v8  ;;  %vm473_vm11 = vmor %vm471_vm10, %vm472_vm9  ;;  %v10567_v8 = vld [vmem:[#allocation49_spill] sm:$0xff] }
 0x17b   :  { %v468_v33 = vsub.f32 1.0, %v467_v24  ;;  %4254 = vpow2.f32 %v4196_v34  ;;  %v496_v24 = vadd.f32 %v10567_v8, %v453_v23  ;;  %v492_v23 = vand.u32 2147483648, %v6052_v19  ;;  %v10586_v8 = vld [vmem:[#allocation60_spill] sm:$0xff] }
 0x17c   :  { %4256 = vrcp.f32 %v6058_v32  ;;  %vm813_vm1 = vweird.f32 %v6058_v32 }
 0x17d   :  { %v469_v22 = vmul.f32 %v4249_v3, %v468_v33  ;;  %v10568_v33 = vld [vmem:[#allocation51_spill] sm:$0xff] }
 0x17e   :  { %v4253_v10 = vpop.eup %4252  ;;  %v181_v18 = vadd.f32 %v5782_v2, %v10568_v33 }
 0x17f   :  { %v482_v30 = vmul.f32 %v4253_v10, %v6052_v19  ;;  %v470_v6 = vadd.f32 %v4249_v3, %v469_v22  ;;  %vm487_vm13 = vweird.f32 %v4253_v10 }
 0x180   :  { %vm6078_vm0 = vmor %vm486_vm15, %vm487_vm13 }
 0x181   :  { %v4255_v50 = vpop.eup %4254  ;;  %v483_v63 = vsub.f32 1.0, %v482_v30  ;;  %v474_v28 = vsel %vm473_vm11, %v4249_v3, %v470_v6  ;;  %v817_v6 = vand.u32 2147483647, %v6058_v32 }
 0x182   :  { %v4257_v34 = vpop.eup %4256  ;;  %v479_v55 = vsel %vm476_vm12, %v478_v5, %v474_v28  ;;  %v6063_v36 = vadd.f32 1.0, %v4255_v50  ;;  %v6071_v50 = vperm.slane %v6014_v20, 3 }
 0x183   :  { %v497_v59 = vmul.f32 %v496_v24, %v479_v55  ;;  %v809_v58 = vmul.f32 %v4257_v34, %v6058_v32  ;;  %v484_v22 = vmul.f32 %v4253_v10, %v483_v63  ;;  %vm814_vm14 = vweird.f32 %v4257_v34 }
 0x184   :  { %4258 = vrcp.f32 %v6063_v36  ;;  %10569 = vst [vmem:[#allocation14_spill] sm:$0xff] %v6071_v50  ;;  %v490_v55 = vand.u32 2147483647, %v6052_v19  ;;  %v737_v19 = vpop.f32.mrf.mxu0  ;;  %vm6091_vm2 = vmor %vm813_vm1, %vm814_vm14  ;;  %vm818_vm4 = vcmp.eq.f32.partialorder %v817_v6, 8.507059e+37  ;;  %vm828_vm6 = vweird.f32 %v6063_v36  ;;  %v10584_v6 = vld [vmem:[#allocation58_spill] sm:$0xff] }
 0x185   :  { %v498_v25 = vadd.f32 %v497_v59, %v181_v18  ;;  %v810_v42 = vsub.f32 1.0, %v809_v58  ;;  %v485_v29 = vadd.f32 %v4253_v10, %v484_v22  ;;  %v819_v59 = vand.u32 2147483648, %v6058_v32 }
 0x186   :  { %v6083_v18 = vperm.slane %v6014_v20, 2  ;;  %v493_v22 = vor.u32 1.1754944e-38, %v492_v23  ;;  %vm491_vm3 = vcmp.eq.f32.partialorder %v490_v55, 8.507059e+37  ;;  %v10581_v55 = vld [vmem:[#allocation56_spill] sm:$0xff] }
 0x187   :  { %4260 = vtanh.f32 %v498_v25  ;;  %v811_v3 = vmul.f32 %v4257_v34, %v810_v42  ;;  %v489_v5 = vsel %vm6078_vm0, %v4253_v10, %v485_v29  ;;  %v820_v10 = vor.u32 1.1754944e-38, %v819_v59  ;;  %v10582_v59 = vld [vmem:[#allocation59_spill] sm:$0xff] }
 0x188   :  { %10572 = vst [vmem:[#allocation12_spill] sm:$0xff] %v6083_v18  ;;  %v494_v29 = vsel %vm491_vm3, %v493_v22, %v489_v5  ;;  %v738_v33 = vadd.f32 %v737_v19, %v6083_v18  ;;  %v10585_v5 = vld [vmem:[#allocation62_spill] sm:$0xff]  ;;  %v10588_v22 = vld [vmem:[#allocation61_spill] sm:$0xff] }
 0x189   :  { %v812_v30 = vadd.f32 %v4257_v34, %v811_v3  ;;  %v757_v3 = vpop.f32.mrf.mxu1 }
 0x18a   :  { %v6073_v2 = vpop.eup %4258  ;;  %v758_v23 = vadd.f32 %v757_v3, %v738_v33  ;;  %v10578_v33 = vld [vmem:[#allocation54_spill] sm:$0xff]  ;;  %v10593_v3 = vld [vmem:[#allocation76_spill] sm:$0xff] }
 0x18b   :  { %v824_v63 = vmul.f32 %v6073_v2, %v6063_v36  ;;  %v816_v25 = vsel %vm6091_vm2, %v4257_v34, %v812_v30  ;;  %vm829_vm5 = vweird.f32 %v6073_v2 }
 0x18c   :  { %v821_v27 = vsel %vm818_vm4, %v820_v10, %v816_v25  ;;  %vm830_vm7 = vmor %vm828_vm6, %vm829_vm5  ;;  %v10590_v25 = vld [vmem:[#allocation63_spill] sm:$0xff]  ;;  %v10595_v10 = vld [vmem:[#allocation69_spill] sm:$0xff] }
 0x18d   :  { %v4261_v24 = vpop.eup %4260  ;;  %v825_v32 = vsub.f32 1.0, %v824_v63  ;;  %v10583_v63 = vld [vmem:[#allocation57_spill] sm:$0xff] }
 0x18e   :  { %v500_v42 = vsub.f32 %v5353_v38, %v4261_v24 }
 0x18f   :  { %v777_v28 = vpop.f32.mrf.mxu2  ;;  %v826_v34 = vmul.f32 %v6073_v2, %v825_v32  ;;  %v10592_v32 = vld [vmem:[#allocation70_spill] sm:$0xff] }
 0x190   :  { %v778_v20 = vadd.f32 %v777_v28, %v6071_v50  ;;  %v501_v35 = vmul.f32 %v500_v42, %v494_v29  ;;  %v10591_v42 = vld [vmem:[#allocation65_spill] sm:$0xff]  ;;  %v10596_v29 = vld [vmem:[#allocation74_spill] sm:$0xff] }
 0x191   :  { %v797_v58 = vpop.f32.mrf.mxu3  ;;  %v827_v38 = vadd.f32 %v6073_v2, %v826_v34  ;;  %v10598_v34 = vld [vmem:[#allocation71_spill] sm:$0xff] }
 0x192   :  { %v798_v44 = vadd.f32 %v797_v58, %v778_v20  ;;  %v6100_v28 = vadd.f32 %v4261_v24, %v501_v35  ;;  %v10576_v35 = vld [vmem:[#allocation52_spill] sm:$0xff]  ;;  %v10589_v20 = vld [vmem:[#allocation66_spill] sm:$0xff]  ;;  %v10594_v58 = vld [vmem:[#allocation67_spill] sm:$0xff] }
 0x193   :  { %v10587_v24 = vld [vmem:[#allocation72_spill] sm:$0xff] }
 0x194   :  { %v838_v26 = vmul.f32 %v821_v27, %v798_v44  ;;  %915 = vmatmul.f32.vlgmr.msra.gmra.mxu0 %v6100_v28  ;;  %935 = vmatmul.f32.vlgmr.msra.gmra.mxu1 %v6100_v28  ;;  %v834_v27 = vand.u32 2147483648, %v6063_v36 }
 0x195   :  { %955 = vmatmul.f32.vlgmr.msra.gmra.mxu2 %v6100_v28  ;;  %1150 = vmatmul.f32.vlgmr.msrb.gmra.mxu3 %v6100_v28 }
 0x196   :  { %v839_v30 = vadd.f32 %v838_v26, %v758_v23  ;;  %1234 = vmatpush.msra.mxu0 %v5358_v60  ;;  %1254 = vmatpush.msra.mxu1 %v5363_v47  ;;  %v832_v26 = vand.u32 2147483647, %v6063_v36  ;;  %v10575_v60 = vld [vmem:[#allocation64_spill] sm:$0xff]  ;;  %v831_v47 = vsel %vm830_vm7, %v6073_v2, %v827_v38  ;;  %v835_v44 = vor.u32 1.1754944e-38, %v834_v27  ;;  %v10600_v38 = vld [vmem:[#allocation78_spill] sm:$0xff]  ;;  %v10601_v27 = vld [vmem:[#allocation75_spill] sm:$0xff] }
 0x197   :  { %1274 = vmatpush.msra.mxu2 %v5370_v61  ;;  %1394 = vmatpush.msrb.mxu3 %v5423_v57  ;;  %v10577_v61 = vld [vmem:[#allocation53_spill] sm:$0xff]  ;;  %v10579_v36 = vld [vmem:[#allocation68_spill] sm:$0xff] }
 0x198   :  { %4262 = vtanh.f32 %v839_v30  ;;  %1235 = vmatpush.msra.mxu0 %v5377_v9  ;;  %1255 = vmatpush.msra.mxu1 %v5382_v41  ;;  %vm833_vm8 = vcmp.eq.f32.partialorder %v832_v26, 8.507059e+37  ;;  %v10580_v41 = vld [vmem:[#allocation55_spill] sm:$0xff]  ;;  %v10597_v23 = vld [vmem:[#allocation80_spill] sm:$0xff]  ;;  %v10599_v30 = vld [vmem:[#allocation73_spill] sm:$0xff] }
 0x199   :  { %1275 = vmatpush.msra.mxu2 %v5389_v46  ;;  %1395 = vmatpush.msrb.mxu3 %v10575_v60  ;;  %v836_v46 = vsel %vm833_vm8, %v835_v44, %v831_v47  ;;  %v10602_v26 = vld [vmem:[#allocation77_spill] sm:$0xff]  ;;  %v10603_v60 = vld [vmem:[#allocation82_spill] sm:$0xff]  ;;  %v10604_v47 = vld [vmem:[#allocation79_spill] sm:$0xff] }
 0x19a   :  { %1236 = vmatpush.msra.mxu0 %v10576_v35  ;;  %1256 = vmatpush.msra.mxu1 %v10577_v61  ;;  %v10605_v35 = vld [vmem:[#allocation81_spill] sm:$0xff]  ;;  %v10608_v44 = vld [vmem:[#allocation84_spill] sm:$0xff] }
 0x19b   :  { %1276 = vmatpush.msra.mxu2 %v10578_v33  ;;  %1396 = vmatpush.msrb.mxu3 %v10579_v36  ;;  %v10606_v61 = vld [vmem:[#allocation85_spill] sm:$0xff]  ;;  %v10610_v33 = vld [vmem:[#allocation86_spill] sm:$0xff]  ;;  %v10611_v36 = vld [vmem:[#allocation87_spill] sm:$0xff] }
 0x19c   :  { %1237 = vmatpush.msra.mxu0 %v10580_v41  ;;  %1257 = vmatpush.msra.mxu1 %v10581_v55  ;;  %v10633_v41 = vld [vmem:[#allocation118_spill] sm:$0xff]  ;;  %v10634_v55 = vld [vmem:[#allocation120_spill] sm:$0xff] }
 0x19d   :  { %1277 = vmatpush.msra.mxu2 %v10582_v59  ;;  %1190 = vmatmul.f32.vlgmr.msrb.gmra.mxu1 %v6100_v28  ;;  %v6253_v59 = vld [vmem:[%s10010_s5 + $0x180] sm:$0xff] }
 0x19e   :  { %v4263_v57 = vpop.eup %4262  ;;  %1230 = vmatmul.f32.vlgmr.msra.gmra.mxu3 %v6100_v28  ;;  %1238 = vmatpush.msra.mxu0 %v10583_v63  ;;  %v6265_v63 = vld [vmem:[%s10010_s5 + $0x140] sm:$0xff] }
 0x19f   :  { %v841_v9 = vsub.f32 0.0, %v4263_v57  ;;  %1258 = vmatpush.msra.mxu1 %v10584_v6  ;;  %1278 = vmatpush.msra.mxu2 %v10585_v5  ;;  %v6271_v6 = vld [vmem:[%s10010_s5 + $0x120] sm:$0xff] }
 0x1a0   :  { %1239 = vmatpush.msra.mxu0 %v10586_v8  ;;  %1397 = vmatpush.msrb.mxu3 %v10587_v24  ;;  %v6277_v5 = vld [vmem:[%s10010_s5 + $0x100] sm:$0xff] }
 0x1a1   :  { %v842_v2 = vmul.f32 %v841_v9, %v836_v46  ;;  %1259 = vmatpush.msra.mxu1 %v10588_v22  ;;  %1279 = vmatpush.msra.mxu2 %v10589_v20  ;;  %v10613_v9 = vld [vmem:[#allocation90_spill] sm:$0xff]  ;;  %v10635_v46 = vld [vmem:[#allocation121_spill] sm:$0xff]  ;;  %v6283_v8 = vld [vmem:[%s10010_s5 + $0xe0] sm:$0xff] }
 0x1a2   :  { %1240 = vmatpush.msra.mxu0 %v10590_v25  ;;  %1398 = vmatpush.msrb.mxu3 %v10593_v3  ;;  %v6289_v24 = vld [vmem:[%s10010_s5 + $0xc0] sm:$0xff] }
 0x1a3   :  { %v6133_v19 = vadd.f32 %v4263_v57, %v842_v2  ;;  %1260 = vmatpush.msra.mxu1 %v10591_v42  ;;  %1280 = vmatpush.msra.mxu2 %v10592_v32  ;;  %v10607_v57 = vld [vmem:[#allocation83_spill] sm:$0xff]  ;;  %v6259_v2 = vld [vmem:[%s10010_s5 + $0x160] sm:$0xff]  ;;  %v6312_v42 = vld [vmem:[%s10010_s5 + $0x1e8] sm:$0xff] }
 0x1a4   :  { %1241 = vmatpush.msra.mxu0 %v10594_v58  ;;  %1399 = vmatpush.msrb.mxu3 %v10597_v23  ;;  %v6295_v22 = vld [vmem:[%s10010_s5 + $0xa0] sm:$0xff]  ;;  %10637 = vst [vmem:[#allocation13_spill] sm:$0xff] %v6312_v42  ;;  %v6317_v32 = vld [vmem:[%s10010_s5 + $0x3e8] sm:$0xff] }
 0x1a5   :  { %1170 = vmatmul.f32.vlgmr.msrb.gmra.mxu0 %v6133_v19  ;;  %1210 = vmatmul.f32.vlgmr.msrb.gmra.mxu2 %v6133_v19  ;;  %844 = vst [vmem:[%s10013_s7] sm:$0xff] %v6133_v19  ;;  %v6301_v20 = vld [vmem:[%s10010_s5 + $0x80] sm:$0xff] }
 0x1a6   :  { %1261 = vmatpush.msra.mxu1 %v10595_v10  ;;  %1281 = vmatpush.msra.mxu2 %v10596_v29  ;;  %v6307_v25 = vld [vmem:[%s10010_s5 + $0x3e0] sm:$0xff]  ;;  %10638 = vst [vmem:[#allocation18_spill] sm:$0xff] %v6317_v32  ;;  %v6336_v10 = vld [vmem:[%s10010_s5 + $0x1c8] sm:$0xff] }
 0x1a7   :  { %1242 = vmatpush.msra.mxu0 %v10598_v34  ;;  %1400 = vmatpush.msrb.mxu3 %v5595_v52  ;;  %v10609_v52 = vld [vmem:[#allocation88_spill] sm:$0xff]  ;;  %10636 = vst [vmem:[#allocation4_spill] sm:$0xff] %v6307_v25  ;;  %v6341_v29 = vld [vmem:[%s10010_s5 + $0x3c8] sm:$0xff] }
 0x1a8   :  { %1262 = vmatpush.msra.mxu1 %v10599_v30  ;;  %1282 = vmatpush.msra.mxu2 %v10600_v38  ;;  %v6324_v3 = vld [vmem:[%s10010_s5 + $0x60] sm:$0xff]  ;;  %10640 = vst [vmem:[#allocation17_spill] sm:$0xff] %v6336_v10  ;;  %v6360_v30 = vld [vmem:[%s10010_s5 + $0x1a8] sm:$0xff] }
 0x1a9   :  { %1243 = vmatpush.msra.mxu0 %v10601_v27  ;;  %1401 = vmatpush.msrb.mxu3 %v5819_v11  ;;  %v10612_v11 = vld [vmem:[#allocation89_spill] sm:$0xff]  ;;  %v6331_v58 = vld [vmem:[%s10010_s5 + $0x3c0] sm:$0xff]  ;;  %10641 = vst [vmem:[#allocation21_spill] sm:$0xff] %v6341_v29 }
 0x1aa   :  { %1263 = vmatpush.msra.mxu1 %v10602_v26  ;;  %1283 = vmatpush.msra.mxu2 %v10603_v60  ;;  %10639 = vst [vmem:[#allocation16_spill] sm:$0xff] %v6331_v58  ;;  %v6348_v23 = vld [vmem:[%s10010_s5 + $0x40] sm:$0xff]  ;;  %v6365_v38 = vld [vmem:[%s10010_s5 + $0x3a8] sm:$0xff] }
 0x1ab   :  { %1244 = vmatpush.msra.mxu0 %v10604_v47  ;;  %1402 = vmatpush.msrb.mxu3 %v5837_v21  ;;  %v10614_v21 = vld [vmem:[#allocation91_spill] sm:$0xff]  ;;  %v6355_v34 = vld [vmem:[%s10010_s5 + $0x3a0] sm:$0xff]  ;;  %10643 = vst [vmem:[#allocation20_spill] sm:$0xff] %v6360_v30  ;;  %v6384_v60 = vld [vmem:[%s10010_s5 + $0x188] sm:$0xff] }
 0x1ac   :  { %1264 = vmatpush.msra.mxu1 %v10605_v35  ;;  %1284 = vmatpush.msra.mxu2 %v10606_v61  ;;  %10642 = vst [vmem:[#allocation19_spill] sm:$0xff] %v6355_v34  ;;  %v6372_v27 = vld [vmem:[%s10010_s5 + $0x20] sm:$0xff]  ;;  %v6389_v47 = vld [vmem:[%s10010_s5 + $0x388] sm:$0xff] }
 0x1ad   :  { %1245 = vmatpush.msra.mxu0 %v10607_v57  ;;  %1403 = vmatpush.msrb.mxu3 %v5856_v31  ;;  %v10615_v31 = vld [vmem:[#allocation92_spill] sm:$0xff]  ;;  %10644 = vst [vmem:[#allocation24_spill] sm:$0xff] %v6365_v38  ;;  %v6408_v57 = vld [vmem:[%s10010_s5 + $0x168] sm:$0xff] }
 0x1ae   :  { %1265 = vmatpush.msra.mxu1 %v10608_v44  ;;  %1285 = vmatpush.msra.mxu2 %v10609_v52  ;;  %v6379_v26 = vld [vmem:[%s10010_s5 + $0x380] sm:$0xff]  ;;  %10646 = vst [vmem:[#allocation23_spill] sm:$0xff] %v6384_v60  ;;  %v6413_v44 = vld [vmem:[%s10010_s5 + $0x368] sm:$0xff]  ;;  %v6420_v52 = vld [vmem:[%s10010_s5 + $0x1f0] sm:$0xff] }
 0x1af   :  { %1246 = vmatpush.msra.mxu0 %v10610_v33  ;;  %1404 = vmatpush.msrb.mxu3 %v5877_v54  ;;  %v6186_v54 = vld [vmem:[%s10006_s3 + $0x170] sm:$0xff]  ;;  %10645 = vst [vmem:[#allocation22_spill] sm:$0xff] %v6379_v26  ;;  %v6396_v35 = vld [vmem:[%s10010_s5] sm:$0xff] }
 0x1b0   :  { %1266 = vmatpush.msra.mxu1 %v10611_v36  ;;  %1286 = vmatpush.msra.mxu2 %v5644_v43  ;;  %v10616_v43 = vld [vmem:[#allocation93_spill] sm:$0xff]  ;;  %10647 = vst [vmem:[#allocation28_spill] sm:$0xff] %v6389_v47  ;;  %v6403_v61 = vld [vmem:[%s10010_s5 + $0x360] sm:$0xff] }
 0x1b1   :  { %1247 = vmatpush.msra.mxu0 %v10612_v11  ;;  %1405 = vmatpush.msrb.mxu3 %v5895_v16  ;;  %v10618_v16 = vld [vmem:[#allocation95_spill] sm:$0xff]  ;;  %10648 = vst [vmem:[#allocation26_spill] sm:$0xff] %v6403_v61  ;;  %v6427_v33 = vld [vmem:[%s10010_s5 + $0x340] sm:$0xff]  ;;  %v6432_v36 = vld [vmem:[%s10010_s5 + $0x148] sm:$0xff] }
 0x1b2   :  { %1267 = vmatpush.msra.mxu1 %v10613_v9  ;;  %1287 = vmatpush.msra.mxu2 %v5662_v39  ;;  %v6216_v39 = vld [vmem:[%s10010_s5 + $0x1a0] sm:$0xff]  ;;  %10649 = vst [vmem:[#allocation27_spill] sm:$0xff] %v6408_v57  ;;  %v6437_v11 = vld [vmem:[%s10010_s5 + $0x348] sm:$0xff]  ;;  %v10654_v9 = vld [vmem:[#allocation7_spill] sm:$0xff] }
 0x1b3   :  { %1248 = vmatpush.msra.mxu0 %v10614_v21  ;;  %1406 = vmatpush.msrb.mxu3 %v5915_v49  ;;  %v10631_v49 = vld [vmem:[#allocation116_spill] sm:$0xff]  ;;  %10650 = vst [vmem:[#allocation31_spill] sm:$0xff] %v6413_v44  ;;  %v10655_v21 = vld [vmem:[#allocation5_spill] sm:$0xff] }
 0x1b4   :  { %1268 = vmatpush.msra.mxu1 %v5657_v13  ;;  %1288 = vmatpush.msra.mxu2 %v5680_v7  ;;  %v6193_v13 = vld [vmem:[%s10010_s5 + $0x1e0] sm:$0xff]  ;;  %v6200_v7 = vld [vmem:[%s10006_s3 + $0x158] sm:$0xff]  ;;  %10651 = vst [vmem:[#allocation29_spill] sm:$0xff] %v6427_v33 }
 0x1b5   :  { %1249 = vmatpush.msra.mxu0 %v10615_v31  ;;  %1407 = vmatpush.msrb.mxu3 %v5933_v45  ;;  %v10632_v45 = vld [vmem:[#allocation117_spill] sm:$0xff]  ;;  %10652 = vst [vmem:[#allocation30_spill] sm:$0xff] %v6432_v36  ;;  %v102_v31 = vadd.f32 %v10655_v21, %v10654_v9 }
 0x1b6   :  { %1269 = vmatpush.msra.mxu1 %v10616_v43  ;;  %1289 = vmatpush.msra.mxu2 %v5688_v53  ;;  %v6207_v53 = vld [vmem:[%s10010_s5 + $0x1c0] sm:$0xff]  ;;  %10653 = vst [vmem:[#allocation35_spill] sm:$0xff] %v6437_v11  ;;  %v6513_v21 = vld [vmem:[%s10010_s5 + $0x2e8] sm:$0xff] }
 0x1b7   :  { %1250 = vmatmul.f32.vlgmr.msra.gmra.mxu0 %v6133_v19  ;;  %1270 = vmatmul.f32.vlgmr.msra.gmra.mxu1 %v6100_v28  ;;  %v10656_v43 = vld [vmem:[#allocation32_spill] sm:$0xff]  ;;  %10666 = vst [vmem:[#allocation45_spill] sm:$0xff] %v6513_v21 }
 0x1b8   :  { %1290 = vmatmul.f32.vlgmr.msra.gmra.mxu2 %v6133_v19  ;;  %1414 = vmatpush.msrb.mxu0 %v6186_v54 }
 0x1b9   :  { %1434 = vmatpush.msrb.mxu1 %v5695_v56  ;;  %1629 = vmatpush.msrb.mxu2 %v6193_v13  ;;  %v10617_v56 = vld [vmem:[#allocation94_spill] sm:$0xff] }
 0x1ba   :  { %1415 = vmatpush.msrb.mxu0 %v6200_v7  ;;  %1408 = vmatpush.msrb.mxu3 %v5951_v12  ;;  %v10623_v12 = vld [vmem:[#allocation106_spill] sm:$0xff] }
 0x1bb   :  { %1435 = vmatpush.msrb.mxu1 %v5704_v48  ;;  %1630 = vmatpush.msrb.mxu2 %v6207_v53  ;;  %v10619_v48 = vld [vmem:[#allocation96_spill] sm:$0xff] }
 0x1bc   :  { %1416 = vmatpush.msrb.mxu0 %v10617_v56  ;;  %1409 = vmatpush.msrb.mxu3 %v5971_v4  ;;  %v10621_v4 = vld [vmem:[#allocation104_spill] sm:$0xff]  ;;  %v10657_v56 = vld [vmem:[#allocation98_spill] sm:$0xff] }
 0x1bd   :  { %1436 = vmatpush.msrb.mxu1 %v5717_v37  ;;  %1631 = vmatpush.msrb.mxu2 %v6216_v39  ;;  %v10620_v37 = vld [vmem:[#allocation103_spill] sm:$0xff] }
 0x1be   :  { %1417 = vmatpush.msrb.mxu0 %v10618_v16  ;;  %1649 = vmatpush.msra.mxu3 %v6307_v25  ;;  %v143_v16 = vadd.f32 %v10657_v56, %v10656_v43  ;;  %v6527_v56 = vld [vmem:[%s10010_s5 + $0x2c0] sm:$0xff] }
 0x1bf   :  { %1437 = vmatpush.msrb.mxu1 %v5730_v40  ;;  %v10622_v40 = vld [vmem:[#allocation105_spill] sm:$0xff]  ;;  %1632 = vmatpush.msrb.mxu2 %v6253_v59  ;;  %10667 = vst [vmem:[#allocation43_spill] sm:$0xff] %v6527_v56 }
 0x1c0   :  { %1418 = vmatpush.msrb.mxu0 %v10619_v48  ;;  %1650 = vmatpush.msra.mxu3 %v6331_v58  ;;  %v6448_v48 = vld [vmem:[%s10010_s5 + $0x1d0] sm:$0xff] }
 0x1c1   :  { %1438 = vmatpush.msrb.mxu1 %v5743_v51  ;;  %v10624_v51 = vld [vmem:[#allocation108_spill] sm:$0xff]  ;;  %1633 = vmatpush.msrb.mxu2 %v6259_v2 }
 0x1c2   :  { %1419 = vmatpush.msrb.mxu0 %v5750_v0  ;;  %v10625_v0 = vld [vmem:[#allocation109_spill] sm:$0xff]  ;;  %1651 = vmatpush.msra.mxu3 %v6355_v34 }
 0x1c3   :  { %1439 = vmatpush.msrb.mxu1 %v5756_v14  ;;  %v10626_v14 = vld [vmem:[#allocation110_spill] sm:$0xff]  ;;  %1634 = vmatpush.msrb.mxu2 %v6265_v63 }
 0x1c4   :  { %1420 = vmatpush.msrb.mxu0 %v5763_v1  ;;  %v10627_v1 = vld [vmem:[#allocation111_spill] sm:$0xff]  ;;  %1652 = vmatpush.msra.mxu3 %v6379_v26  ;;  %v6736_v26 = vld [vmem:[%s10009_s4] ss:$0 sm:$0xff] }
 0x1c5   :  { %1440 = vmatpush.msrb.mxu1 %v5769_v62  ;;  %v10628_v62 = vld [vmem:[#allocation113_spill] sm:$0xff]  ;;  %1635 = vmatpush.msrb.mxu2 %v6271_v6  ;;  %10692 = vst [vmem:[#allocation65_spill] sm:$0xff] %v6736_v26 }
 0x1c6   :  { %1421 = vmatpush.msrb.mxu0 %v5824_v15  ;;  %v10629_v15 = vld [vmem:[#allocation114_spill] sm:$0xff]  ;;  %1653 = vmatpush.msra.mxu3 %v6403_v61 }
 0x1c7   :  { %1441 = vmatpush.msrb.mxu1 %v5829_v17  ;;  %v10630_v17 = vld [vmem:[#allocation115_spill] sm:$0xff]  ;;  %1636 = vmatpush.msrb.mxu2 %v6277_v5 }
 0x1c8   :  { %1422 = vmatpush.msrb.mxu0 %v10620_v37  ;;  %1654 = vmatpush.msra.mxu3 %v6427_v33 }
 0x1c9   :  { %1442 = vmatpush.msrb.mxu1 %v10621_v4  ;;  %1637 = vmatpush.msrb.mxu2 %v6283_v8 }
 0x1ca   :  { %1423 = vmatpush.msrb.mxu0 %v10622_v40  ;;  %v6455_v40 = vld [vmem:[%s10010_s5 + $0x320] sm:$0xff] }
 0x1cb   :  { %1443 = vmatpush.msrb.mxu1 %v10623_v12  ;;  %1638 = vmatpush.msrb.mxu2 %v6289_v24  ;;  %10658 = vst [vmem:[#allocation33_spill] sm:$0xff] %v6455_v40  ;;  %v6460_v12 = vld [vmem:[%s10010_s5 + $0x128] sm:$0xff] }
 0x1cc   :  { %1424 = vmatpush.msrb.mxu0 %v10624_v51  ;;  %10659 = vst [vmem:[#allocation34_spill] sm:$0xff] %v6460_v12  ;;  %v6465_v51 = vld [vmem:[%s10010_s5 + $0x328] sm:$0xff]  ;;  %1655 = vmatpush.msra.mxu3 %v6455_v40 }
 0x1cd   :  { %1444 = vmatpush.msrb.mxu1 %v10625_v0  ;;  %1639 = vmatpush.msrb.mxu2 %v6295_v22  ;;  %10660 = vst [vmem:[#allocation38_spill] sm:$0xff] %v6465_v51 }
 0x1ce   :  { %1425 = vmatpush.msrb.mxu0 %v10626_v14 }
 0x1cf   :  { %1445 = vmatpush.msrb.mxu1 %v10627_v1  ;;  %1640 = vmatpush.msrb.mxu2 %v6301_v20  ;;  %v6472_v1 = vld [vmem:[%s10010_s5 + $0x1b0] sm:$0xff] }
 0x1d0   :  { %1426 = vmatpush.msrb.mxu0 %v10628_v62  ;;  %v6479_v62 = vld [vmem:[%s10010_s5 + $0x300] sm:$0xff] }
 0x1d1   :  { %1446 = vmatpush.msrb.mxu1 %v10629_v15  ;;  %1641 = vmatpush.msrb.mxu2 %v6324_v3  ;;  %10661 = vst [vmem:[#allocation36_spill] sm:$0xff] %v6479_v62  ;;  %v6484_v15 = vld [vmem:[%s10010_s5 + $0x108] sm:$0xff] }
 0x1d2   :  { %1427 = vmatpush.msrb.mxu0 %v10630_v17  ;;  %10662 = vst [vmem:[#allocation37_spill] sm:$0xff] %v6484_v15  ;;  %v6489_v17 = vld [vmem:[%s10010_s5 + $0x308] sm:$0xff]  ;;  %1656 = vmatpush.msra.mxu3 %v6479_v62  ;;  %v6624_v62 = vld [vmem:[%s10010_s5 + $0xf0] sm:$0xff] }
 0x1d3   :  { %1447 = vmatpush.msrb.mxu1 %v10631_v49  ;;  %1642 = vmatpush.msrb.mxu2 %v6348_v23  ;;  %10663 = vst [vmem:[#allocation41_spill] sm:$0xff] %v6489_v17 }
 0x1d4   :  { %1428 = vmatpush.msrb.mxu0 %v10632_v45 }
 0x1d5   :  { %1448 = vmatpush.msrb.mxu1 %v10633_v41  ;;  %1643 = vmatpush.msrb.mxu2 %v6372_v27  ;;  %v6496_v41 = vld [vmem:[%s10010_s5 + $0x190] sm:$0xff] }
 0x1d6   :  { %1429 = vmatpush.msrb.mxu0 %v10634_v55  ;;  %v6503_v55 = vld [vmem:[%s10010_s5 + $0x2e0] sm:$0xff] }
 0x1d7   :  { %1449 = vmatpush.msrb.mxu1 %v10635_v46  ;;  %1644 = vmatpush.msrb.mxu2 %v6396_v35  ;;  %10664 = vst [vmem:[#allocation39_spill] sm:$0xff] %v6503_v55  ;;  %v6508_v46 = vld [vmem:[%s10010_s5 + $0xe8] sm:$0xff] }
 0x1d8   :  { %1669 = vmatpush.msra.mxu0 %v6312_v42  ;;  %10665 = vst [vmem:[#allocation40_spill] sm:$0xff] %v6508_v46  ;;  %1657 = vmatpush.msra.mxu3 %v6503_v55  ;;  %v6596_v55 = vld [vmem:[%s10010_s5 + $0x110] sm:$0xff] }
 0x1d9   :  { %1689 = vmatpush.msra.mxu1 %v6317_v32  ;;  %1709 = vmatpush.msra.mxu2 %v6420_v52 }
 0x1da   :  { %1670 = vmatpush.msra.mxu0 %v6336_v10  ;;  %1658 = vmatpush.msra.mxu3 %v6527_v56  ;;  %v6575_v56 = vld [vmem:[%s10010_s5 + $0x280] sm:$0xff] }
 0x1db   :  { %1690 = vmatpush.msra.mxu1 %v6341_v29  ;;  %1710 = vmatpush.msra.mxu2 %v6448_v48  ;;  %10673 = vst [vmem:[#allocation49_spill] sm:$0xff] %v6575_v56 }
 0x1dc   :  { %1671 = vmatpush.msra.mxu0 %v6360_v30  ;;  %v10694_v30 = vld [vmem:[#allocation97_spill] sm:$0xff] }
 0x1dd   :  { %1691 = vmatpush.msra.mxu1 %v6365_v38  ;;  %1711 = vmatpush.msra.mxu2 %v6472_v1  ;;  %v10693_v38 = vld [vmem:[#allocation51_spill] sm:$0xff] }
 0x1de   :  { %1672 = vmatpush.msra.mxu0 %v6384_v60 }
 0x1df   :  { %1692 = vmatpush.msra.mxu1 %v6389_v47  ;;  %1712 = vmatpush.msra.mxu2 %v6496_v41 }
 0x1e0   :  { %1673 = vmatpush.msra.mxu0 %v6408_v57 }
 0x1e1   :  { %1693 = vmatpush.msra.mxu1 %v6413_v44  ;;  %v6714_v44 = vld [vmem:[%s10010_s5 + $0x50] sm:$0xff] }
 0x1e2   :  { %1674 = vmatpush.msra.mxu0 %v6432_v36 }
 0x1e3   :  { %1694 = vmatpush.msra.mxu1 %v6437_v11  ;;  %v6681_v11 = vld [vmem:[%s10010_s5 + $0x200] sm:$0xff] }
 0x1e4   :  { %1675 = vmatpush.msra.mxu0 %v6460_v12  ;;  %v6656_v12 = vld [vmem:[%s10010_s5 + $0x220] sm:$0xff]  ;;  %10687 = vst [vmem:[#allocation60_spill] sm:$0xff] %v6681_v11 }
 0x1e5   :  { %1695 = vmatpush.msra.mxu1 %v6465_v51  ;;  %10683 = vst [vmem:[#allocation57_spill] sm:$0xff] %v6656_v12 }
 0x1e6   :  { %1676 = vmatpush.msra.mxu0 %v6484_v15 }
 0x1e7   :  { %1696 = vmatpush.msra.mxu1 %v6489_v17 }
 0x1e8   :  { %1677 = vmatpush.msra.mxu0 %v6508_v46 }
 0x1e9   :  { %1697 = vmatpush.msra.mxu1 %v6513_v21 }
 0x211   :  { %v916_v37 = vpop.f32.mrf.mxu0  ;;  %v936_v4 = vpop.f32.mrf.mxu1 }
 0x212   :  { %v959_v0 = vadd.f32 %v916_v37, %v102_v31  ;;  %v960_v14 = vadd.f32 %v936_v4, %v143_v16  ;;  %v6520_v31 = vld [vmem:[%s10010_s5 + $0x170] sm:$0xff]  ;;  %v6532_v16 = vld [vmem:[%s10010_s5 + $0xc8] sm:$0xff] }
 0x213   :  { %1713 = vmatpush.msra.mxu2 %v6520_v31  ;;  %10668 = vst [vmem:[#allocation44_spill] sm:$0xff] %v6532_v16  ;;  %v6537_v37 = vld [vmem:[%s10010_s5 + $0x2c8] sm:$0xff]  ;;  %1678 = vmatpush.msra.mxu0 %v6532_v16  ;;  %v6544_v4 = vld [vmem:[%s10010_s5 + $0x150] sm:$0xff] }
 0x214   :  { %v4197_v49 = vmul.f32 -1.442695, %v959_v0  ;;  %v4198_v45 = vmul.f32 -1.442695, %v960_v14  ;;  %10669 = vst [vmem:[#allocation48_spill] sm:$0xff] %v6537_v37  ;;  %1698 = vmatpush.msra.mxu1 %v6537_v37  ;;  %v6551_v0 = vld [vmem:[%s10010_s5 + $0x2a0] sm:$0xff] }
 0x215   :  { %1714 = vmatpush.msra.mxu2 %v6544_v4  ;;  %10670 = vst [vmem:[#allocation46_spill] sm:$0xff] %v6551_v0  ;;  %v6556_v14 = vld [vmem:[%s10010_s5 + $0xa8] sm:$0xff]  ;;  %1659 = vmatpush.msra.mxu3 %v6551_v0 }
 0x216   :  { %4264 = vpow2.f32 %v4197_v49  ;;  %10671 = vst [vmem:[#allocation47_spill] sm:$0xff] %v6556_v14  ;;  %v6561_v49 = vld [vmem:[%s10010_s5 + $0x2a8] sm:$0xff]  ;;  %1679 = vmatpush.msra.mxu0 %v6556_v14 }
 0x217   :  { %4266 = vpow2.f32 %v4198_v45  ;;  %10672 = vst [vmem:[#allocation50_spill] sm:$0xff] %v6561_v49  ;;  %v6568_v45 = vld [vmem:[%s10010_s5 + $0x130] sm:$0xff]  ;;  %1699 = vmatpush.msra.mxu1 %v6561_v49  ;;  %v6580_v14 = vld [vmem:[%s10010_s5 + $0x88] sm:$0xff]  ;;  %1660 = vmatpush.msra.mxu3 %v6575_v56 }
 0x218   :  { %v1151_v16 = vpop.f32.mrf.mxu3  ;;  %1715 = vmatpush.msra.mxu2 %v6568_v45  ;;  %10674 = vst [vmem:[#allocation64_spill] sm:$0xff] %v6580_v14  ;;  %v6585_v0 = vld [vmem:[%s10010_s5 + $0x288] sm:$0xff]  ;;  %v6589_v49 = vpop.f32.mrf.mxu2  ;;  %1680 = vmatpush.msra.mxu0 %v6580_v14 }
 0x219   :  { %10675 = vst [vmem:[#allocation52_spill] sm:$0xff] %v6585_v0  ;;  %1700 = vmatpush.msra.mxu1 %v6585_v0  ;;  %v6610_v14 = vld [vmem:[%s10010_s5 + $0x68] sm:$0xff] }
 0x21a   :  { %1716 = vmatpush.msra.mxu2 %v6596_v55  ;;  %10677 = vst [vmem:[#allocation54_spill] sm:$0xff] %v6610_v14  ;;  %v6615_v56 = vld [vmem:[%s10010_s5 + $0x268] sm:$0xff]  ;;  %1681 = vmatpush.msra.mxu0 %v6610_v14 }
 0x21b   :  { %10678 = vst [vmem:[#allocation68_spill] sm:$0xff] %v6615_v56  ;;  %1701 = vmatpush.msra.mxu1 %v6615_v56  ;;  %v6637_v14 = vld [vmem:[%s10010_s5 + $0x48] sm:$0xff]  ;;  %v6649_v56 = vld [vmem:[%s10010_s5 + $0xd0] sm:$0xff] }
 0x21c   :  { %v4265_v37 = vpop.eup %4264  ;;  %1717 = vmatpush.msra.mxu2 %v6624_v62  ;;  %10681 = vst [vmem:[#allocation56_spill] sm:$0xff] %v6637_v14  ;;  %1682 = vmatpush.msra.mxu0 %v6637_v14 }
 0x21d   :  { %v4267_v21 = vpop.eup %4266  ;;  %v6587_v46 = vadd.f32 1.0, %v4265_v37  ;;  %v6605_v37 = vld [vmem:[%s10010_s5 + $0x260] sm:$0xff] }
 0x21e   :  { %v6598_v17 = vadd.f32 1.0, %v4267_v21  ;;  %10676 = vst [vmem:[#allocation53_spill] sm:$0xff] %v6605_v37  ;;  %v10679_v21 = vld [vmem:[#allocation10_spill] sm:$0xff]  ;;  %1661 = vmatpush.msra.mxu3 %v6605_v37  ;;  %v6642_v37 = vld [vmem:[%s10010_s5 + $0x248] sm:$0xff]  ;;  %1718 = vmatpush.msra.mxu2 %v6649_v56 }
 0x21f   :  { %4268 = vrcp.f32 %v6587_v46  ;;  %v1152_v0 = vadd.f32 %v1151_v16, %v10679_v21  ;;  %v6632_v16 = vld [vmem:[%s10010_s5 + $0x240] sm:$0xff]  ;;  %10682 = vst [vmem:[#allocation59_spill] sm:$0xff] %v6642_v37  ;;  %v1191_v21 = vpop.f32.mrf.mxu1  ;;  %1702 = vmatpush.msra.mxu1 %v6642_v37  ;;  %v6673_v37 = vld [vmem:[%s10010_s5 + $0xb0] sm:$0xff]  ;;  %v978_v57 = vand.u32 2147483647, %v6587_v46  ;;  %vm974_vm10 = vweird.f32 %v6587_v46 }
 0x220   :  { %4270 = vrcp.f32 %v6598_v17  ;;  %10680 = vst [vmem:[#allocation55_spill] sm:$0xff] %v6632_v16  ;;  %1662 = vmatpush.msra.mxu3 %v6632_v16  ;;  %v10686_v16 = vld [vmem:[#allocation11_spill] sm:$0xff]  ;;  %1719 = vmatpush.msra.mxu2 %v6673_v37  ;;  %vm989_vm14 = vweird.f32 %v6598_v17 }
 0x221   :  { %v1192_v40 = vadd.f32 %v1191_v21, %v10686_v16  ;;  %vm979_vm12 = vcmp.eq.f32.partialorder %v978_v57, 8.507059e+37 }
 0x222   :  { %v1171_v15 = vpop.f32.mrf.mxu0  ;;  %1663 = vmatpush.msra.mxu3 %v6656_v12  ;;  %v6698_v12 = vld [vmem:[%s10010_s5 + $0x90] sm:$0xff] }
 0x223   :  { %v1172_v51 = vadd.f32 %v1171_v15, %v1152_v0  ;;  %v6661_v15 = vld [vmem:[%s10010_s5 + $0x28] sm:$0xff]  ;;  %1720 = vmatpush.msra.mxu2 %v6698_v12 }
 0x224   :  { %10684 = vst [vmem:[#allocation58_spill] sm:$0xff] %v6661_v15  ;;  %v6666_v0 = vld [vmem:[%s10010_s5 + $0x228] sm:$0xff]  ;;  %1683 = vmatpush.msra.mxu0 %v6661_v15  ;;  %1664 = vmatpush.msra.mxu3 %v6681_v11 }
 0x225   :  { %10685 = vst [vmem:[#allocation62_spill] sm:$0xff] %v6666_v0  ;;  %v4199_v14 = vmul.f32 -1.442695, %v1172_v51  ;;  %1703 = vmatpush.msra.mxu1 %v6666_v0  ;;  %v6686_v51 = vld [vmem:[%s10010_s5 + $0x8] sm:$0xff]  ;;  %v4269_v21 = vpop.eup %4268 }
 0x226   :  { %10688 = vst [vmem:[#allocation72_spill] sm:$0xff] %v6686_v51  ;;  %v6691_v15 = vld [vmem:[%s10010_s5 + $0x208] sm:$0xff]  ;;  %1684 = vmatpush.msra.mxu0 %v6686_v51  ;;  %v6700_v16 = vpop.eup %4270  ;;  %v970_v36 = vmul.f32 %v4269_v21, %v6587_v46  ;;  %vm975_vm9 = vweird.f32 %v4269_v21 }
 0x227   :  { %10689 = vst [vmem:[#allocation61_spill] sm:$0xff] %v6691_v15  ;;  %4272 = vpow2.f32 %v4199_v14  ;;  %1704 = vmatpush.msra.mxu1 %v6691_v15  ;;  %v6708_v14 = vld [vmem:[%s10010_s5 + $0x70] sm:$0xff]  ;;  %vm976_vm11 = vmor %vm974_vm10, %vm975_vm9  ;;  %vm990_vm13 = vweird.f32 %v6700_v16 }
 0x228   :  { %v1211_v0 = vpop.f32.mrf.mxu2  ;;  %v971_v51 = vsub.f32 1.0, %v970_v36  ;;  %1721 = vmatpush.msra.mxu2 %v6708_v14  ;;  %vm6752_vm15 = vmor %vm989_vm14, %vm990_vm13 }
 0x229   :  { %v1212_v33 = vadd.f32 %v1211_v0, %v1192_v40  ;;  %v985_v40 = vmul.f32 %v6700_v16, %v6598_v17  ;;  %v980_v0 = vand.u32 2147483648, %v6587_v46  ;;  %v999_v46 = vadd.f32 %v6736_v26, %v6589_v49 }
 0x22a   :  { %v972_v15 = vmul.f32 %v4269_v21, %v971_v51  ;;  %1722 = vmatpush.msra.mxu2 %v6714_v44  ;;  %v6731_v51 = vld [vmem:[%s10010_s5 + $0x10] sm:$0xff] }
 0x22b   :  { %v4200_v11 = vmul.f32 -1.442695, %v1212_v33  ;;  %v6724_v33 = vld [vmem:[%s10010_s5 + $0x30] sm:$0xff]  ;;  %10691 = vst [vmem:[#allocation63_spill] sm:$0xff] %v6731_v51  ;;  %v981_v47 = vor.u32 1.1754944e-38, %v980_v0 }
 0x22c   :  { %10690 = vst [vmem:[#allocation66_spill] sm:$0xff] %v6724_v33  ;;  %v973_v9 = vadd.f32 %v4269_v21, %v972_v15  ;;  %1723 = vmatpush.msra.mxu2 %v6724_v33 }
 0x22d   :  { %4274 = vpow2.f32 %v4200_v11  ;;  %v4273_v36 = vpop.eup %4272  ;;  %v986_v11 = vsub.f32 1.0, %v985_v40  ;;  %v184_v40 = vadd.f32 %v10694_v30, %v10693_v38 }
 0x22e   :  { %v1300_v61 = vadd.f32 1.0, %v4273_v36  ;;  %v977_v60 = vsel %vm976_vm11, %v4269_v21, %v973_v9  ;;  %1724 = vmatpush.msra.mxu2 %v6731_v51 }
 0x22f   :  { %v982_v15 = vsel %vm979_vm12, %v981_v47, %v977_v60  ;;  %v987_v9 = vmul.f32 %v6700_v16, %v986_v11  ;;  %v993_v60 = vand.u32 2147483647, %v6598_v17  ;;  %v995_v47 = vand.u32 2147483648, %v6598_v17 }
 0x230   :  { %4276 = vrcp.f32 %v1300_v61  ;;  %v1000_v34 = vmul.f32 %v999_v46, %v982_v15  ;;  %v1313_v46 = vand.u32 2147483648, %v1300_v61  ;;  %vm1307_vm2 = vweird.f32 %v1300_v61 }
 0x231   :  { %v988_v49 = vadd.f32 %v6700_v16, %v987_v9  ;;  %vm994_vm1 = vcmp.eq.f32.partialorder %v993_v60, 8.507059e+37  ;;  %v996_v17 = vor.u32 1.1754944e-38, %v995_v47 }
 0x232   :  { %v1001_v21 = vadd.f32 %v1000_v34, %v184_v40  ;;  %v1231_v40 = vpop.f32.mrf.mxu3  ;;  %v1314_v11 = vor.u32 1.1754944e-38, %v1313_v46  ;;  %v6778_v46 = vld [vmem:[%s10010_s5 + $0x1f8] sm:$0xff] }
 0x233   :  { %v4275_v36 = vpop.eup %4274 }
 0x234   :  { %v6744_v57 = vadd.f32 1.0, %v4275_v36  ;;  %v1271_v34 = vpop.f32.mrf.mxu1  ;;  %v992_v36 = vsel %vm6752_vm15, %v6700_v16, %v988_v49  ;;  %v1232_v16 = vadd.f32 %v1231_v40, %v6083_v18 }
 0x235   :  { %v1272_v43 = vadd.f32 %v1271_v34, %v6071_v50  ;;  %v997_v32 = vsel %vm994_vm1, %v996_v17, %v992_v36  ;;  %v6830_v36 = vld [vmem:[%s10006_s3 + $0x168] sm:$0xff]  ;;  %v6849_v17 = vld [vmem:[%s10006_s3 + $0x150] sm:$0xff] }
 0x236   :  { %4278 = vrcp.f32 %v6744_v57  ;;  %v4277_v0 = vpop.eup %4276  ;;  %vm1322_vm6 = vweird.f32 %v6744_v57  ;;  %v1326_v40 = vand.u32 2147483647, %v6744_v57 }
 0x237   :  { %4280 = vtanh.f32 %v1001_v21  ;;  %v1303_v26 = vmul.f32 %v4277_v0, %v1300_v61  ;;  %vm1308_vm0 = vweird.f32 %v4277_v0  ;;  %v1311_v21 = vand.u32 2147483647, %v1300_v61  ;;  %v6773_v61 = vld [vmem:[%s10010_s5 + $0x3f0] sm:$0xff] }
 0x238   :  { %vm1309_vm3 = vmor %vm1307_vm2, %vm1308_vm0  ;;  %vm1327_vm8 = vcmp.eq.f32.partialorder %v1326_v40, 8.507059e+37  ;;  %v6916_v40 = vld [vmem:[%s10010_s5 + $0x330] sm:$0xff] }
 0x239   :  { %v1304_v30 = vsub.f32 1.0, %v1303_v26  ;;  %vm1312_vm4 = vcmp.eq.f32.partialorder %v1311_v21, 8.507059e+37  ;;  %v6843_v21 = vld [vmem:[%s10010_s5 + $0x198] sm:$0xff]  ;;  %10701 = vst [vmem:[#allocation67_spill] sm:$0xff] %v6916_v40 }
 0x23b   :  { %v1305_v9 = vmul.f32 %v4277_v0, %v1304_v30  ;;  %v1291_v29 = vpop.f32.mrf.mxu2  ;;  %v1251_v30 = vpop.f32.mrf.mxu0 }
 0x23c   :  { %v6756_v15 = vpop.eup %4278  ;;  %v1292_v47 = vadd.f32 %v1291_v29, %v1272_v43  ;;  %v6817_v43 = vld [vmem:[%s10010_s5 + $0x1b8] sm:$0xff] }
 0x23d   :  { %v4281_v38 = vpop.eup %4280  ;;  %v1318_v26 = vmul.f32 %v6756_v15, %v6744_v57  ;;  %v1306_v58 = vadd.f32 %v4277_v0, %v1305_v9  ;;  %vm1323_vm5 = vweird.f32 %v6756_v15  ;;  %v6838_v9 = vld [vmem:[%s10010_s5 + $0x390] sm:$0xff] }
 0x23e   :  { %v1003_v10 = vsub.f32 %v6100_v28, %v4281_v38  ;;  %v1252_v28 = vadd.f32 %v1251_v30, %v1232_v16  ;;  %vm6853_vm7 = vmor %vm1322_vm6, %vm1323_vm5 }
 0x23f   :  { %v1319_v49 = vsub.f32 1.0, %v1318_v26  ;;  %v1310_v42 = vsel %vm1309_vm3, %v4277_v0, %v1306_v58  ;;  %v6797_v58 = vld [vmem:[%s10010_s5 + $0x1d8] sm:$0xff] }
 0x240   :  { %v1004_v60 = vmul.f32 %v1003_v10, %v997_v32  ;;  %v1315_v25 = vsel %vm1312_vm4, %v1314_v11, %v1310_v42  ;;  %v6792_v42 = vld [vmem:[%s10010_s5 + $0x3d0] sm:$0xff]  ;;  %v6804_v10 = vld [vmem:[%s10010_s5 + $0x3d8] sm:$0xff] }
 0x241   :  { %v1332_v33 = vmul.f32 %v1315_v25, %v1292_v47  ;;  %v1320_v34 = vmul.f32 %v6756_v15, %v1319_v49  ;;  %v6785_v25 = vld [vmem:[%s10010_s5 + $0x3f8] sm:$0xff]  ;;  %v6871_v49 = vld [vmem:[%s10010_s5 + $0x370] sm:$0xff] }
 0x242   :  { %v6767_v51 = vadd.f32 %v4281_v38, %v1004_v60  ;;  %v6812_v38 = vld [vmem:[%s10010_s5 + $0x3b0] sm:$0xff]  ;;  %v6825_v0 = vld [vmem:[%s10010_s5 + $0x3b8] sm:$0xff] }
 0x243   :  { %v1333_v32 = vadd.f32 %v1332_v33, %v1252_v28  ;;  %v1321_v29 = vadd.f32 %v6756_v15, %v1320_v34  ;;  %v1328_v33 = vand.u32 2147483648, %v6744_v57  ;;  %v6862_v26 = vld [vmem:[%s10010_s5 + $0x398] sm:$0xff]  ;;  %v6892_v28 = vld [vmem:[%s10010_s5 + $0x350] sm:$0xff]  ;;  %v6921_v57 = vld [vmem:[%s10006_s3 + $0x120] sm:$0xff] }
 0x244   :  { %1410 = vmatmul.f32.vlgmr.msrb.gmra.mxu3 %v6767_v51  ;;  %1430 = vmatmul.f32.vlgmr.msrb.gmra.mxu0 %v6767_v51  ;;  %v6879_v60 = vld [vmem:[%s10010_s5 + $0x178] sm:$0xff] }
 0x245   :  { %1450 = vmatmul.f32.vlgmr.msrb.gmra.mxu1 %v6767_v51  ;;  %1645 = vmatmul.f32.vlgmr.msrb.gmra.mxu2 %v6767_v51  ;;  %4282 = vtanh.f32 %v1333_v32  ;;  %v1325_v16 = vsel %vm6853_vm7, %v6756_v15, %v1321_v29  ;;  %v1329_v11 = vor.u32 1.1754944e-38, %v1328_v33  ;;  %v6884_v15 = vld [vmem:[%s10010_s5 + $0x378] sm:$0xff] }
 0x246   :  { %1729 = vmatpush.msrb.mxu3 %v6773_v61  ;;  %1749 = vmatpush.msrb.mxu0 %v6778_v46  ;;  %v6897_v34 = vld [vmem:[%s10006_s3 + $0x138] sm:$0xff] }
 0x247   :  { %1769 = vmatpush.msrb.mxu1 %v6785_v25  ;;  %1889 = vmatpush.msrb.mxu2 %v6830_v36  ;;  %v1330_v32 = vsel %vm1327_vm8, %v1329_v11, %v1325_v16  ;;  %v6909_v29 = vld [vmem:[%s10010_s5 + $0x358] sm:$0xff] }
 0x248   :  { %1730 = vmatpush.msrb.mxu3 %v6792_v42  ;;  %1750 = vmatpush.msrb.mxu0 %v6797_v58  ;;  %10700 = vst [vmem:[#allocation76_spill] sm:$0xff] %v6909_v29  ;;  %v6932_v11 = vld [vmem:[%s10010_s5 + $0x138] sm:$0xff] }
 0x249   :  { %1770 = vmatpush.msrb.mxu1 %v6804_v10  ;;  %1890 = vmatpush.msrb.mxu2 %v6849_v17  ;;  %10702 = vst [vmem:[#allocation69_spill] sm:$0xff] %v6932_v11 }
 0x24a   :  { %1731 = vmatpush.msrb.mxu3 %v6812_v38  ;;  %1751 = vmatpush.msrb.mxu0 %v6817_v43 }
 0x24b   :  { %1771 = vmatpush.msrb.mxu1 %v6825_v0  ;;  %v4283_v30 = vpop.eup %4282  ;;  %1891 = vmatpush.msrb.mxu2 %v6897_v34 }
 0x24c   :  { %1732 = vmatpush.msrb.mxu3 %v6838_v9  ;;  %1752 = vmatpush.msrb.mxu0 %v6843_v21  ;;  %v1335_v47 = vsub.f32 %v6133_v19, %v4283_v30  ;;  %v6904_v19 = vld [vmem:[%s10010_s5 + $0x158] sm:$0xff] }
 0x24d   :  { %1772 = vmatpush.msrb.mxu1 %v6862_v26  ;;  %1685 = vmatmul.f32.vlgmr.msra.gmra.mxu0 %v6767_v51  ;;  %10699 = vst [vmem:[#allocation70_spill] sm:$0xff] %v6904_v19 }
 0x24e   :  { %1725 = vmatmul.f32.vlgmr.msra.gmra.mxu2 %v6767_v51  ;;  %1733 = vmatpush.msrb.mxu3 %v6871_v49  ;;  %v1336_v33 = vmul.f32 %v1335_v47, %v1330_v32  ;;  %v6937_v47 = vld [vmem:[%s10010_s5 + $0x338] sm:$0xff] }
 0x24f   :  { %1753 = vmatpush.msrb.mxu0 %v6879_v60  ;;  %1773 = vmatpush.msrb.mxu1 %v6884_v15  ;;  %10703 = vst [vmem:[#allocation74_spill] sm:$0xff] %v6937_v47  ;;  %v6951_v32 = vld [vmem:[%s10010_s5 + $0x118] sm:$0xff] }
 0x250   :  { %1734 = vmatpush.msrb.mxu3 %v6892_v28  ;;  %v6925_v16 = vadd.f32 %v4283_v30, %v1336_v33  ;;  %v6943_v30 = vld [vmem:[%s10010_s5 + $0x310] sm:$0xff]  ;;  %1892 = vmatpush.msrb.mxu2 %v6921_v57  ;;  %10705 = vst [vmem:[#allocation71_spill] sm:$0xff] %v6951_v32  ;;  %v6956_v33 = vld [vmem:[%s10010_s5 + $0x318] sm:$0xff] }
 0x251   :  { %1754 = vmatpush.msrb.mxu0 %v6904_v19  ;;  %1774 = vmatpush.msrb.mxu1 %v6909_v29  ;;  %10704 = vst [vmem:[#allocation80_spill] sm:$0xff] %v6943_v30  ;;  %v6973_v29 = vld [vmem:[%s10010_s5 + $0xf8] sm:$0xff] }
 0x252   :  { %1735 = vmatpush.msrb.mxu3 %v6916_v40  ;;  %1705 = vmatmul.f32.vlgmr.msra.gmra.mxu1 %v6925_v16  ;;  %10706 = vst [vmem:[#allocation73_spill] sm:$0xff] %v6956_v33  ;;  %v6967_v40 = vld [vmem:[%s10010_s5 + $0x2f0] sm:$0xff]  ;;  %v6978_v19 = vld [vmem:[%s10010_s5 + $0x2f8] sm:$0xff] }
 0x253   :  { %1665 = vmatmul.f32.vlgmr.msra.gmra.mxu3 %v6925_v16  ;;  %4201 = vst [vmem:[%s10013_s7 + $0x8] sm:$0xff] %v6925_v16  ;;  %1755 = vmatpush.msrb.mxu0 %v6932_v11  ;;  %v6996_v11 = vld [vmem:[%s10010_s5 + $0x2d8] sm:$0xff] }
 0x254   :  { %1775 = vmatpush.msrb.mxu1 %v6937_v47  ;;  %10707 = vst [vmem:[#allocation78_spill] sm:$0xff] %v6967_v40  ;;  %1736 = vmatpush.msrb.mxu3 %v6943_v30  ;;  %v6985_v47 = vld [vmem:[%s10010_s5 + $0x2d0] sm:$0xff]  ;;  %v6991_v30 = vld [vmem:[%s10010_s5 + $0xd8] sm:$0xff] }
 0x255   :  { %10708 = vst [vmem:[#allocation75_spill] sm:$0xff] %v6973_v29  ;;  %1756 = vmatpush.msrb.mxu0 %v6951_v32  ;;  %v7014_v32 = vld [vmem:[%s10010_s5 + $0x2b8] sm:$0xff] }
 0x256   :  { %10709 = vst [vmem:[#allocation77_spill] sm:$0xff] %v6978_v19  ;;  %1776 = vmatpush.msrb.mxu1 %v6956_v33  ;;  %1737 = vmatpush.msrb.mxu3 %v6967_v40  ;;  %v7003_v33 = vld [vmem:[%s10010_s5 + $0x2b0] sm:$0xff]  ;;  %v7009_v40 = vld [vmem:[%s10010_s5 + $0xb8] sm:$0xff] }
 0x257   :  { %10710 = vst [vmem:[#allocation82_spill] sm:$0xff] %v6985_v47  ;;  %1757 = vmatpush.msrb.mxu0 %v6973_v29  ;;  %v7032_v29 = vld [vmem:[%s10010_s5 + $0x298] sm:$0xff] }
 0x258   :  { %10711 = vst [vmem:[#allocation79_spill] sm:$0xff] %v6991_v30  ;;  %1777 = vmatpush.msrb.mxu1 %v6978_v19  ;;  %1738 = vmatpush.msrb.mxu3 %v6985_v47  ;;  %v7021_v19 = vld [vmem:[%s10010_s5 + $0x290] sm:$0xff]  ;;  %v7027_v47 = vld [vmem:[%s10010_s5 + $0x98] sm:$0xff] }
 0x259   :  { %10712 = vst [vmem:[#allocation81_spill] sm:$0xff] %v6996_v11  ;;  %1758 = vmatpush.msrb.mxu0 %v6991_v30  ;;  %v7050_v30 = vld [vmem:[%s10010_s5 + $0x278] sm:$0xff] }
 0x25a   :  { %10713 = vst [vmem:[#allocation85_spill] sm:$0xff] %v7003_v33  ;;  %1778 = vmatpush.msrb.mxu1 %v6996_v11  ;;  %1739 = vmatpush.msrb.mxu3 %v7003_v33  ;;  %v7039_v11 = vld [vmem:[%s10010_s5 + $0x270] sm:$0xff]  ;;  %v7045_v33 = vld [vmem:[%s10010_s5 + $0x78] sm:$0xff] }
 0x25b   :  { %10714 = vst [vmem:[#allocation83_spill] sm:$0xff] %v7009_v40  ;;  %1759 = vmatpush.msrb.mxu0 %v7009_v40  ;;  %v7068_v40 = vld [vmem:[%s10010_s5 + $0x258] sm:$0xff] }
 0x25c   :  { %10715 = vst [vmem:[#allocation84_spill] sm:$0xff] %v7014_v32  ;;  %1779 = vmatpush.msrb.mxu1 %v7014_v32  ;;  %1740 = vmatpush.msrb.mxu3 %v7021_v19  ;;  %v7057_v32 = vld [vmem:[%s10010_s5 + $0x250] sm:$0xff] }
 0x25d   :  { %10716 = vst [vmem:[#allocation88_spill] sm:$0xff] %v7021_v19  ;;  %1760 = vmatpush.msrb.mxu0 %v7027_v47  ;;  %v7063_v19 = vld [vmem:[%s10010_s5 + $0x58] sm:$0xff] }
 0x25e   :  { %10717 = vst [vmem:[#allocation86_spill] sm:$0xff] %v7027_v47  ;;  %1780 = vmatpush.msrb.mxu1 %v7032_v29  ;;  %1741 = vmatpush.msrb.mxu3 %v7039_v11  ;;  %v7086_v47 = vld [vmem:[%s10010_s5 + $0x238] sm:$0xff] }
 0x25f   :  { %10718 = vst [vmem:[#allocation87_spill] sm:$0xff] %v7032_v29  ;;  %1761 = vmatpush.msrb.mxu0 %v7045_v33  ;;  %v7075_v29 = vld [vmem:[%s10010_s5 + $0x230] sm:$0xff] }
 0x260   :  { %10719 = vst [vmem:[#allocation89_spill] sm:$0xff] %v7039_v11  ;;  %1781 = vmatpush.msrb.mxu1 %v7050_v30  ;;  %1742 = vmatpush.msrb.mxu3 %v7057_v32  ;;  %v7081_v11 = vld [vmem:[%s10010_s5 + $0x38] sm:$0xff] }
 0x261   :  { %10720 = vst [vmem:[#allocation90_spill] sm:$0xff] %v7045_v33  ;;  %1762 = vmatpush.msrb.mxu0 %v7063_v19  ;;  %v7104_v33 = vld [vmem:[%s10010_s5 + $0x218] sm:$0xff] }
 0x262   :  { %10721 = vst [vmem:[#allocation91_spill] sm:$0xff] %v7050_v30  ;;  %1782 = vmatpush.msrb.mxu1 %v7068_v40  ;;  %v7093_v30 = vld [vmem:[%s10010_s5 + $0x210] sm:$0xff]  ;;  %1743 = vmatpush.msrb.mxu3 %v7075_v29 }
 0x263   :  { %10722 = vst [vmem:[#allocation92_spill] sm:$0xff] %v7057_v32  ;;  %v7099_v32 = vld [vmem:[%s10010_s5 + $0x18] sm:$0xff]  ;;  %1763 = vmatpush.msrb.mxu0 %v7081_v11 }
 0x264   :  { %10723 = vst [vmem:[#allocation93_spill] sm:$0xff] %v7075_v29  ;;  %1783 = vmatpush.msrb.mxu1 %v7086_v47  ;;  %1744 = vmatpush.msrb.mxu3 %v7093_v30  ;;  %v7114_v29 = vld [vmem:[%s10006_s3 + $0x178] sm:$0xff] }
 0x265   :  { %10724 = vst [vmem:[#allocation94_spill] sm:$0xff] %v7093_v30  ;;  %1764 = vmatpush.msrb.mxu0 %v7099_v32  ;;  %1745 = vmatmul.f32.vlgmr.msrb.gmra.mxu3 %v6925_v16  ;;  %v7123_v30 = vld [vmem:[%s10006_s3 + $0x160] sm:$0xff] }
 0x266   :  { %10725 = vst [vmem:[#allocation95_spill] sm:$0xff] %v7099_v32  ;;  %1784 = vmatpush.msrb.mxu1 %v7104_v33  ;;  %1765 = vmatmul.f32.vlgmr.msrb.gmra.mxu0 %v6767_v51 }
 0x267   :  { %10726 = vst [vmem:[#allocation96_spill] sm:$0xff] %v7104_v33  ;;  %1785 = vmatmul.f32.vlgmr.msrb.gmra.mxu1 %v6925_v16  ;;  %1909 = vmatpush.msra.mxu3 %v6186_v54  ;;  %v7129_v33 = vld [vmem:[%s10006_s3 + $0x140] sm:$0xff]  ;;  %v7136_v54 = vld [vmem:[%s10006_s3 + $0x148] sm:$0xff] }
 0x268   :  { %10727 = vst [vmem:[#allocation103_spill] sm:$0xff] %v7114_v29  ;;  %1929 = vmatpush.msra.mxu0 %v7114_v29  ;;  %2124 = vmatpush.msra.mxu1 %v6193_v13  ;;  %v7142_v29 = vld [vmem:[%s10006_s3 + $0x128] sm:$0xff]  ;;  %v7149_v13 = vld [vmem:[%s10006_s3 + $0x130] sm:$0xff] }
 0x269   :  { %10728 = vst [vmem:[#allocation104_spill] sm:$0xff] %v7123_v30  ;;  %1910 = vmatpush.msra.mxu3 %v6200_v7  ;;  %v10733_v7 = vld [vmem:[#allocation66_spill] sm:$0xff] }
 0x26a   :  { %10729 = vst [vmem:[#allocation105_spill] sm:$0xff] %v7129_v33  ;;  %1930 = vmatpush.msra.mxu0 %v7123_v30  ;;  %2125 = vmatpush.msra.mxu1 %v6207_v53  ;;  %v7186_v53 = vld [vmem:[%s10006_s3 + $0x108] sm:$0xff] }
 0x26b   :  { %10730 = vst [vmem:[#allocation106_spill] sm:$0xff] %v7136_v54  ;;  %1911 = vmatpush.msra.mxu3 %v7129_v33  ;;  %1893 = vmatpush.msrb.mxu2 %v7186_v53  ;;  %v10818_v33 = vld [vmem:[#allocation99_spill] sm:$0xff] }
 0x26c   :  { %10731 = vst [vmem:[#allocation108_spill] sm:$0xff] %v7142_v29  ;;  %1931 = vmatpush.msra.mxu0 %v7136_v54  ;;  %2126 = vmatpush.msra.mxu1 %v6216_v39  ;;  %v7191_v39 = vld [vmem:[%s10006_s3 + $0x110] sm:$0xff] }
 0x26d   :  { %10732 = vst [vmem:[#allocation109_spill] sm:$0xff] %v7149_v13  ;;  %1912 = vmatpush.msra.mxu3 %v7142_v29 }
 0x26e   :  { %1932 = vmatpush.msra.mxu0 %v7149_v13  ;;  %2127 = vmatpush.msra.mxu1 %v6253_v59  ;;  %10734 = vst [vmem:[#allocation110_spill] sm:$0xff] %v7191_v39  ;;  %v7196_v59 = vld [vmem:[%s10006_s3 + $0x118] sm:$0xff] }
 0x26f   :  { %10735 = vst [vmem:[#allocation111_spill] sm:$0xff] %v7196_v59  ;;  %1913 = vmatpush.msra.mxu3 %v7191_v39 }
 0x270   :  { %2128 = vmatpush.msra.mxu1 %v6259_v2  ;;  %1933 = vmatpush.msra.mxu0 %v7196_v59  ;;  %v7204_v2 = vld [vmem:[%s10006_s3 + $0xf0] sm:$0xff] }
 0x271   :  { %1894 = vmatpush.msrb.mxu2 %v7204_v2  ;;  %v10805_v59 = vld [vmem:[#allocation54_spill] sm:$0xff] }
 0x272   :  { %2129 = vmatpush.msra.mxu1 %v6265_v63  ;;  %v7209_v63 = vld [vmem:[%s10006_s3 + $0xf8] sm:$0xff] }
 0x273   :  { %10736 = vst [vmem:[#allocation113_spill] sm:$0xff] %v7209_v63  ;;  %1914 = vmatpush.msra.mxu3 %v7209_v63 }
 0x274   :  { %2130 = vmatpush.msra.mxu1 %v6271_v6  ;;  %v7214_v6 = vld [vmem:[%s10006_s3 + $0x100] sm:$0xff] }
 0x275   :  { %10737 = vst [vmem:[#allocation114_spill] sm:$0xff] %v7214_v6  ;;  %1934 = vmatpush.msra.mxu0 %v7214_v6  ;;  %v10779_v6 = vld [vmem:[#allocation27_spill] sm:$0xff] }
 0x276   :  { %2131 = vmatpush.msra.mxu1 %v6277_v5  ;;  %v10738_v5 = vld [vmem:[#allocation63_spill] sm:$0xff] }
 0x278   :  { %2132 = vmatpush.msra.mxu1 %v6283_v8  ;;  %v7223_v8 = vld [vmem:[%s10006_s3 + $0xd8] sm:$0xff] }
 0x279   :  { %1895 = vmatpush.msrb.mxu2 %v7223_v8 }
 0x27a   :  { %2133 = vmatpush.msra.mxu1 %v6289_v24  ;;  %v7228_v24 = vld [vmem:[%s10006_s3 + $0xe0] sm:$0xff] }
 0x27b   :  { %10739 = vst [vmem:[#allocation115_spill] sm:$0xff] %v7228_v24  ;;  %1915 = vmatpush.msra.mxu3 %v7228_v24  ;;  %v10774_v24 = vld [vmem:[#allocation23_spill] sm:$0xff] }
 0x27c   :  { %2134 = vmatpush.msra.mxu1 %v6295_v22  ;;  %v7233_v22 = vld [vmem:[%s10006_s3 + $0xe8] sm:$0xff] }
 0x27d   :  { %10740 = vst [vmem:[#allocation116_spill] sm:$0xff] %v7233_v22  ;;  %1935 = vmatpush.msra.mxu0 %v7233_v22  ;;  %v10770_v22 = vld [vmem:[#allocation19_spill] sm:$0xff] }
 0x27e   :  { %2135 = vmatpush.msra.mxu1 %v6301_v20  ;;  %v7241_v20 = vld [vmem:[%s10006_s3 + $0xc0] sm:$0xff] }
 0x27f   :  { %1896 = vmatpush.msrb.mxu2 %v7241_v20 }
 0x280   :  { %2136 = vmatpush.msra.mxu1 %v6324_v3  ;;  %v7246_v3 = vld [vmem:[%s10006_s3 + $0xc8] sm:$0xff] }
 0x281   :  { %10741 = vst [vmem:[#allocation117_spill] sm:$0xff] %v7246_v3  ;;  %1916 = vmatpush.msra.mxu3 %v7246_v3 }
 0x282   :  { %2137 = vmatpush.msra.mxu1 %v6348_v23  ;;  %v7251_v23 = vld [vmem:[%s10006_s3 + $0xd0] sm:$0xff] }
 0x283   :  { %10742 = vst [vmem:[#allocation118_spill] sm:$0xff] %v7251_v23  ;;  %1936 = vmatpush.msra.mxu0 %v7251_v23  ;;  %v10769_v23 = vld [vmem:[#allocation21_spill] sm:$0xff] }
 0x284   :  { %2138 = vmatpush.msra.mxu1 %v6372_v27  ;;  %v7259_v27 = vld [vmem:[%s10006_s3 + $0xa8] sm:$0xff] }
 0x285   :  { %1897 = vmatpush.msrb.mxu2 %v7259_v27 }
 0x286   :  { %2139 = vmatpush.msra.mxu1 %v6396_v35  ;;  %v7264_v35 = vld [vmem:[%s10006_s3 + $0xb0] sm:$0xff] }
 0x287   :  { %10743 = vst [vmem:[#allocation120_spill] sm:$0xff] %v7264_v35  ;;  %1917 = vmatpush.msra.mxu3 %v7264_v35  ;;  %v10768_v35 = vld [vmem:[#allocation17_spill] sm:$0xff] }
 0x288   :  { %2204 = vmatpush.msrb.mxu1 %v6420_v52  ;;  %v7277_v52 = vld [vmem:[%s10006_s3 + $0x90] sm:$0xff] }
 0x289   :  { %1898 = vmatpush.msrb.mxu2 %v7277_v52 }
 0x28a   :  { %2205 = vmatpush.msrb.mxu1 %v6448_v48  ;;  %v7282_v48 = vld [vmem:[%s10006_s3 + $0x98] sm:$0xff] }
 0x28b   :  { %10745 = vst [vmem:[#allocation5_spill] sm:$0xff] %v7282_v48  ;;  %1918 = vmatpush.msra.mxu3 %v7282_v48  ;;  %v10767_v48 = vld [vmem:[#allocation100_spill] sm:$0xff] }
 0x28c   :  { %2206 = vmatpush.msrb.mxu1 %v6472_v1  ;;  %v7295_v1 = vld [vmem:[%s10006_s3 + $0x78] sm:$0xff] }
 0x28d   :  { %1899 = vmatpush.msrb.mxu2 %v7295_v1 }
 0x28e   :  { %2207 = vmatpush.msrb.mxu1 %v6496_v41  ;;  %v7305_v41 = vld [vmem:[%s10006_s3 + $0x88] sm:$0xff] }
 0x28f   :  { %10748 = vst [vmem:[#allocation66_spill] sm:$0xff] %v7305_v41 }
 0x290   :  { %2208 = vmatpush.msrb.mxu1 %v6520_v31  ;;  %v7318_v31 = vld [vmem:[%s10006_s3 + $0x68] sm:$0xff] }
 0x291   :  { %10749 = vst [vmem:[#allocation63_spill] sm:$0xff] %v7318_v31 }
 0x292   :  { %2209 = vmatpush.msrb.mxu1 %v6544_v4  ;;  %v7331_v4 = vld [vmem:[%s10006_s3 + $0x48] sm:$0xff] }
 0x294   :  { %2210 = vmatpush.msrb.mxu1 %v6568_v45  ;;  %v7336_v45 = vld [vmem:[%s10006_s3 + $0x50] sm:$0xff] }
 0x295   :  { %10751 = vst [vmem:[#allocation125_spill] sm:$0xff] %v7336_v45 }
 0x296   :  { %2211 = vmatpush.msrb.mxu1 %v6596_v55  ;;  %v7313_v55 = vld [vmem:[%s10006_s3 + $0x60] sm:$0xff] }
 0x297   :  { %1900 = vmatpush.msrb.mxu2 %v7313_v55 }
 0x298   :  { %2212 = vmatpush.msrb.mxu1 %v6624_v62  ;;  %v7300_v62 = vld [vmem:[%s10006_s3 + $0x80] sm:$0xff] }
 0x299   :  { %10747 = vst [vmem:[#allocation97_spill] sm:$0xff] %v7300_v62  ;;  %1919 = vmatpush.msra.mxu3 %v7300_v62  ;;  %1901 = vmatpush.msrb.mxu2 %v7331_v4  ;;  %v10765_v62 = vld [vmem:[#allocation16_spill] sm:$0xff] }
 0x29a   :  { %2213 = vmatpush.msrb.mxu1 %v6649_v56  ;;  %v7323_v56 = vld [vmem:[%s10006_s3 + $0x70] sm:$0xff] }
 0x29b   :  { %10750 = vst [vmem:[#allocation124_spill] sm:$0xff] %v7323_v56  ;;  %1920 = vmatpush.msra.mxu3 %v7318_v31  ;;  %v7395_v31 = vld [vmem:[%s10006_s3 + $0x10] sm:$0xff] }
 0x29c   :  { %2214 = vmatpush.msrb.mxu1 %v6673_v37  ;;  %v7341_v37 = vld [vmem:[%s10006_s3 + $0x58] sm:$0xff]  ;;  %10761 = vst [vmem:[#allocation135_spill] sm:$0xff] %v7395_v31 }
 0x29d   :  { %10752 = vst [vmem:[#allocation126_spill] sm:$0xff] %v7341_v37  ;;  %1921 = vmatpush.msra.mxu3 %v7336_v45  ;;  %v7372_v45 = vld [vmem:[%s10006_s3 + $0x20] sm:$0xff] }
 0x29e   :  { %2215 = vmatpush.msrb.mxu1 %v6698_v12  ;;  %v7287_v12 = vld [vmem:[%s10006_s3 + $0xa0] sm:$0xff]  ;;  %10757 = vst [vmem:[#allocation131_spill] sm:$0xff] %v7372_v45 }
 0x29f   :  { %10746 = vst [vmem:[#allocation98_spill] sm:$0xff] %v7287_v12 }
 0x2a0   :  { %2216 = vmatpush.msrb.mxu1 %v6708_v14  ;;  %v7349_v14 = vld [vmem:[%s10006_s3 + $0x30] sm:$0xff] }
 0x2a1   :  { %10753 = vst [vmem:[#allocation127_spill] sm:$0xff] %v7349_v14  ;;  %1902 = vmatpush.msrb.mxu2 %v7349_v14 }
 0x2a2   :  { %2217 = vmatpush.msrb.mxu1 %v6714_v44  ;;  %v7269_v44 = vld [vmem:[%s10006_s3 + $0xb8] sm:$0xff] }
 0x2a3   :  { %10744 = vst [vmem:[#allocation121_spill] sm:$0xff] %v7269_v44  ;;  %1937 = vmatpush.msra.mxu0 %v7269_v44 }
 0x2a4   :  { %2218 = vmatpush.msrb.mxu1 %v10733_v7  ;;  %v7354_v7 = vld [vmem:[%s10006_s3 + $0x38] sm:$0xff] }
 0x2a5   :  { %1938 = vmatpush.msra.mxu0 %v7287_v12  ;;  %10754 = vst [vmem:[#allocation128_spill] sm:$0xff] %v7354_v7  ;;  %1922 = vmatpush.msra.mxu3 %v7354_v7  ;;  %v7390_v7 = vld [vmem:[%s10006_s3 + $0x8] sm:$0xff]  ;;  %v10766_v12 = vld [vmem:[#allocation32_spill] sm:$0xff] }
 0x2a6   :  { %2219 = vmatpush.msrb.mxu1 %v10738_v5  ;;  %v7359_v5 = vld [vmem:[%s10006_s3 + $0x40] sm:$0xff]  ;;  %10760 = vst [vmem:[#allocation134_spill] sm:$0xff] %v7390_v7  ;;  %v146_v44 = vadd.f32 %v10767_v48, %v10766_v12  ;;  %v10776_v48 = vld [vmem:[#allocation26_spill] sm:$0xff] }
 0x2a7   :  { %1939 = vmatpush.msra.mxu0 %v7305_v41  ;;  %10755 = vst [vmem:[#allocation129_spill] sm:$0xff] %v7359_v5  ;;  %1923 = vmatpush.msra.mxu3 %v7372_v45  ;;  %v10763_v45 = vld [vmem:[#allocation13_spill] sm:$0xff]  ;;  %v10764_v41 = vld [vmem:[#allocation18_spill] sm:$0xff] }
 0x2a8   :  { %v10778_v12 = vld [vmem:[#allocation6_spill] sm:$0xff] }
 0x2a9   :  { %1940 = vmatpush.msra.mxu0 %v7323_v56  ;;  %v7377_v56 = vld [vmem:[%s10006_s3 + $0x28] sm:$0xff]  ;;  %1924 = vmatpush.msra.mxu3 %v7390_v7 }
 0x2aa   :  { %10758 = vst [vmem:[#allocation132_spill] sm:$0xff] %v7377_v56 }
 0x2ab   :  { %1941 = vmatpush.msra.mxu0 %v7341_v37  ;;  %v7367_v37 = vld [vmem:[%s10006_s3 + $0x18] sm:$0xff]  ;;  %2164 = vmatpush.msrb.mxu3 %v10763_v45  ;;  %v10773_v45 = vld [vmem:[#allocation22_spill] sm:$0xff] }
 0x2ac   :  { %10756 = vst [vmem:[#allocation130_spill] sm:$0xff] %v7367_v37  ;;  %1903 = vmatpush.msrb.mxu2 %v7367_v37 }
 0x2ad   :  { %1942 = vmatpush.msra.mxu0 %v7359_v5  ;;  %v7385_v5 = vld [vmem:[%s10006_s3] sm:$0xff]  ;;  %2165 = vmatpush.msrb.mxu3 %v10768_v35  ;;  %v10777_v35 = vld [vmem:[#allocation7_spill] sm:$0xff] }
 0x2ae   :  { %10759 = vst [vmem:[#allocation133_spill] sm:$0xff] %v7385_v5  ;;  %1904 = vmatpush.msrb.mxu2 %v7385_v5 }
 0x2af   :  { %1943 = vmatpush.msra.mxu0 %v7377_v56  ;;  %v10762_v56 = vld [vmem:[#allocation4_spill] sm:$0xff] }
 0x2b0   :  { %2144 = vmatpush.msra.mxu2 %v10762_v56  ;;  %v10772_v56 = vld [vmem:[#allocation24_spill] sm:$0xff] }
 0x2b1   :  { %1944 = vmatpush.msra.mxu0 %v7395_v31  ;;  %v10771_v31 = vld [vmem:[#allocation20_spill] sm:$0xff] }
 0x2b2   :  { %2145 = vmatpush.msra.mxu2 %v10765_v62  ;;  %2166 = vmatpush.msrb.mxu3 %v10771_v31  ;;  %v10775_v62 = vld [vmem:[#allocation28_spill] sm:$0xff] }
 0x2b3   :  { %2184 = vmatpush.msrb.mxu0 %v10764_v41 }
 0x2b4   :  { %2146 = vmatpush.msra.mxu2 %v10770_v22  ;;  %2167 = vmatpush.msrb.mxu3 %v10774_v24  ;;  %v10780_v22 = vld [vmem:[#allocation31_spill] sm:$0xff] }
 0x2b5   :  { %2185 = vmatpush.msrb.mxu0 %v10769_v23  ;;  %v105_v23 = vadd.f32 %v10778_v12, %v10777_v35  ;;  %v10783_v24 = vld [vmem:[#allocation35_spill] sm:$0xff]  ;;  %v10785_v12 = vld [vmem:[#allocation34_spill] sm:$0xff] }
 0x2b6   :  { %2147 = vmatpush.msra.mxu2 %v10773_v45  ;;  %2168 = vmatpush.msrb.mxu3 %v10779_v6  ;;  %v10784_v45 = vld [vmem:[#allocation33_spill] sm:$0xff]  ;;  %v10786_v6 = vld [vmem:[#allocation38_spill] sm:$0xff]  ;;  %v10791_v35 = vld [vmem:[#allocation39_spill] sm:$0xff] }
 0x2b7   :  { %2186 = vmatpush.msrb.mxu0 %v10772_v56  ;;  %v10782_v56 = vld [vmem:[#allocation30_spill] sm:$0xff] }
 0x2b8   :  { %2148 = vmatpush.msra.mxu2 %v10776_v48  ;;  %2169 = vmatpush.msrb.mxu3 %v10782_v56 }
 0x2b9   :  { %2187 = vmatpush.msrb.mxu0 %v10775_v62 }
 0x2ba   :  { %2170 = vmatpush.msrb.mxu3 %v10785_v12 }
 0x2bb   :  { %2188 = vmatpush.msrb.mxu0 %v10780_v22  ;;  %v10787_v22 = vld [vmem:[#allocation36_spill] sm:$0xff] }
 0x2bd   :  { %2189 = vmatpush.msrb.mxu0 %v10783_v24  ;;  %v10792_v24 = vld [vmem:[#allocation40_spill] sm:$0xff] }
 0x2bf   :  { %2190 = vmatpush.msrb.mxu0 %v10786_v6 }
 0x2c1   :  { %v1431_v3 = vpop.f32.mrf.mxu0 }
 0x2c2   :  { %v1455_v7 = vadd.f32 %v1431_v3, %v146_v44  ;;  %v10781_v44 = vld [vmem:[#allocation29_spill] sm:$0xff]  ;;  %v7420_v31 = vpop.f32.mrf.mxu1 }
 0x2c3   :  { %2149 = vmatpush.msra.mxu2 %v10781_v44  ;;  %v10789_v44 = vld [vmem:[#allocation41_spill] sm:$0xff] }
 0x2c4   :  { %v4203_v41 = vmul.f32 -1.442695, %v1455_v7  ;;  %2191 = vmatpush.msrb.mxu0 %v10789_v44  ;;  %v10797_v44 = vld [vmem:[#allocation46_spill] sm:$0xff] }
 0x2c5   :  { %2150 = vmatpush.msra.mxu2 %v10784_v45  ;;  %v10794_v45 = vld [vmem:[#allocation43_spill] sm:$0xff] }
 0x2c6   :  { %4284 = vpow2.f32 %v4203_v41  ;;  %v10788_v41 = vld [vmem:[#allocation37_spill] sm:$0xff] }
 0x2c7   :  { %v1411_v3 = vpop.f32.mrf.mxu3  ;;  %2151 = vmatpush.msra.mxu2 %v10787_v22  ;;  %2171 = vmatpush.msrb.mxu3 %v10788_v41  ;;  %v10795_v22 = vld [vmem:[#allocation44_spill] sm:$0xff] }
 0x2c8   :  { %v1454_v7 = vadd.f32 %v1411_v3, %v105_v23  ;;  %v10790_v3 = vld [vmem:[#allocation11_spill] sm:$0xff] }
 0x2c9   :  { %2152 = vmatpush.msra.mxu2 %v10791_v35  ;;  %2172 = vmatpush.msrb.mxu3 %v10792_v24  ;;  %v10799_v35 = vld [vmem:[#allocation50_spill] sm:$0xff] }
 0x2ca   :  { %v4202_v62 = vmul.f32 -1.442695, %v1454_v7  ;;  %v1686_v48 = vpop.f32.mrf.mxu0  ;;  %v10793_v7 = vld [vmem:[#allocation45_spill] sm:$0xff] }
 0x2cb   :  { %v1687_v56 = vadd.f32 %v1686_v48, %v10790_v3  ;;  %2192 = vmatpush.msrb.mxu0 %v10793_v7  ;;  %2153 = vmatpush.msra.mxu2 %v10794_v45  ;;  %v1646_v48 = vpop.f32.mrf.mxu2  ;;  %v10798_v3 = vld [vmem:[#allocation47_spill] sm:$0xff]  ;;  %v10800_v7 = vld [vmem:[#allocation49_spill] sm:$0xff]  ;;  %v10801_v45 = vld [vmem:[#allocation64_spill] sm:$0xff] }
 0x2cc   :  { %4286 = vpow2.f32 %v4202_v62  ;;  %v4285_v23 = vpop.eup %4284  ;;  %2173 = vmatpush.msrb.mxu3 %v10795_v22  ;;  %v10796_v62 = vld [vmem:[#allocation48_spill] sm:$0xff] }
 0x2cd   :  { %v7435_v12 = vadd.f32 1.0, %v4285_v23  ;;  %2193 = vmatpush.msrb.mxu0 %v10796_v62  ;;  %2154 = vmatpush.msra.mxu2 %v10797_v44  ;;  %v10802_v22 = vld [vmem:[#allocation52_spill] sm:$0xff]  ;;  %v10804_v62 = vld [vmem:[#allocation53_spill] sm:$0xff] }
 0x2ce   :  { %2174 = vmatpush.msrb.mxu3 %v10798_v3  ;;  %v10806_v3 = vld [vmem:[#allocation68_spill] sm:$0xff] }
 0x2cf   :  { %v1706_v6 = vpop.f32.mrf.mxu1  ;;  %2194 = vmatpush.msrb.mxu0 %v10799_v35  ;;  %2155 = vmatpush.msra.mxu2 %v10800_v7  ;;  %4288 = vrcp.f32 %v7435_v12  ;;  %v10807_v35 = vld [vmem:[#allocation55_spill] sm:$0xff]  ;;  %v10808_v7 = vld [vmem:[#allocation56_spill] sm:$0xff]  ;;  %vm1484_vm14 = vweird.f32 %v7435_v12 }
 0x2d0   :  { %v1707_v41 = vadd.f32 %v1706_v6, %v1687_v56  ;;  %2175 = vmatpush.msrb.mxu3 %v10801_v45  ;;  %v10803_v56 = vld [vmem:[#allocation10_spill] sm:$0xff] }
 0x2d1   :  { %2195 = vmatpush.msrb.mxu0 %v10802_v22  ;;  %v1647_v6 = vadd.f32 %v1646_v48, %v10803_v56  ;;  %2156 = vmatpush.msra.mxu2 %v10804_v62  ;;  %v10810_v22 = vld [vmem:[#allocation57_spill] sm:$0xff]  ;;  %v10811_v48 = vld [vmem:[#allocation58_spill] sm:$0xff] }
 0x2d2   :  { %v4287_v63 = vpop.eup %4286  ;;  %v4205_v23 = vmul.f32 -1.442695, %v1707_v41  ;;  %2176 = vmatpush.msrb.mxu3 %v10805_v59  ;;  %v10809_v41 = vld [vmem:[#allocation59_spill] sm:$0xff]  ;;  %v10812_v62 = vld [vmem:[#allocation62_spill] sm:$0xff]  ;;  %v10813_v59 = vld [vmem:[#allocation60_spill] sm:$0xff] }
 0x2d3   :  { %v1462_v24 = vadd.f32 1.0, %v4287_v63  ;;  %2196 = vmatpush.msrb.mxu0 %v10806_v3  ;;  %2157 = vmatpush.msra.mxu2 %v10807_v35 }
 0x2d4   :  { %2177 = vmatpush.msrb.mxu3 %v10808_v7 }
 0x2d5   :  { %4290 = vrcp.f32 %v1462_v24  ;;  %2197 = vmatpush.msrb.mxu0 %v10809_v41  ;;  %2158 = vmatpush.msra.mxu2 %v10810_v22  ;;  %v4289_v39 = vpop.eup %4288  ;;  %v1475_v7 = vand.u32 2147483648, %v1462_v24  ;;  %v1473_v22 = vand.u32 2147483647, %v1462_v24  ;;  %vm1469_vm10 = vweird.f32 %v1462_v24 }
 0x2d6   :  { %v1666_v44 = vpop.f32.mrf.mxu3  ;;  %4292 = vpow2.f32 %v4205_v23  ;;  %2178 = vmatpush.msrb.mxu3 %v10811_v48  ;;  %v10815_v23 = vld [vmem:[#allocation61_spill] sm:$0xff]  ;;  %v1480_v35 = vmul.f32 %v4289_v39, %v7435_v12  ;;  %vm1485_vm13 = vweird.f32 %v4289_v39 }
 0x2d7   :  { %v1667_v63 = vadd.f32 %v1666_v44, %v1647_v6  ;;  %2198 = vmatpush.msrb.mxu0 %v10812_v62  ;;  %2159 = vmatpush.msra.mxu2 %v10813_v59  ;;  %v10814_v44 = vld [vmem:[#allocation72_spill] sm:$0xff]  ;;  %v1476_v29 = vor.u32 1.1754944e-38, %v1475_v7  ;;  %vm1474_vm12 = vcmp.eq.f32.partialorder %v1473_v22, 8.507059e+37  ;;  %vm7471_vm15 = vmor %vm1484_vm14, %vm1485_vm13 }
 0x2d8   :  { %2179 = vmatpush.msrb.mxu3 %v10814_v44  ;;  %v1481_v62 = vsub.f32 1.0, %v1480_v35  ;;  %v10816_v44 = vld [vmem:[#allocation65_spill] sm:$0xff] }
 0x2d9   :  { %v4204_v45 = vmul.f32 -1.442695, %v1667_v63  ;;  %2199 = vmatpush.msrb.mxu0 %v10815_v23  ;;  %v1494_v23 = vadd.f32 %v10816_v44, %v7420_v31  ;;  %v1490_v31 = vand.u32 2147483648, %v7435_v12 }
 0x2db   :  { %v4291_v56 = vpop.eup %4290  ;;  %4294 = vpow2.f32 %v4204_v45 }
 0x2dc   :  { %v1465_v6 = vmul.f32 %v4291_v56, %v1462_v24  ;;  %v4293_v3 = vpop.eup %4292  ;;  %vm1470_vm9 = vweird.f32 %v4291_v56 }
 0x2dd   :  { %v7460_v13 = vadd.f32 1.0, %v4293_v3  ;;  %vm1471_vm11 = vmor %vm1469_vm10, %vm1470_vm9  ;;  %v1482_v3 = vmul.f32 %v4289_v39, %v1481_v62  ;;  %v1726_v62 = vpop.f32.mrf.mxu2 }
 0x2de   :  { %v1466_v63 = vsub.f32 1.0, %v1465_v6 }
 0x2df   :  { %v1483_v24 = vadd.f32 %v4289_v39, %v1482_v3  ;;  %v1491_v3 = vor.u32 1.1754944e-38, %v1490_v31  ;;  %vm1817_vm6 = vweird.f32 %v7460_v13 }
 0x2e0   :  { %v1467_v41 = vmul.f32 %v4291_v56, %v1466_v63  ;;  %v10817_v63 = vld [vmem:[#allocation51_spill] sm:$0xff] }
 0x2e1   :  { %v4295_v48 = vpop.eup %4294  ;;  %v187_v5 = vadd.f32 %v10818_v33, %v10817_v63  ;;  %v1488_v33 = vand.u32 2147483647, %v7435_v12 }
 0x2e2   :  { %v1468_v45 = vadd.f32 %v4291_v56, %v1467_v41  ;;  %v1795_v59 = vadd.f32 1.0, %v4295_v48 }
 0x2e3   :  { %vm1489_vm1 = vcmp.eq.f32.partialorder %v1488_v33, 8.507059e+37 }
 0x2e4   :  { %v1472_v54 = vsel %vm1471_vm11, %v4291_v56, %v1468_v45  ;;  %4296 = vrcp.f32 %v1795_v59  ;;  %v1808_v22 = vand.u32 2147483648, %v1795_v59  ;;  %vm1802_vm2 = vweird.f32 %v1795_v59 }
 0x2e5   :  { %v1477_v6 = vsel %vm1474_vm12, %v1476_v29, %v1472_v54  ;;  %4298 = vrcp.f32 %v7460_v13  ;;  %v1766_v29 = vpop.f32.mrf.mxu0 }
 0x2e6   :  { %v1495_v30 = vmul.f32 %v1494_v23, %v1477_v6  ;;  %v1767_v45 = vadd.f32 %v1766_v29, %v6071_v50  ;;  %v1806_v23 = vand.u32 2147483647, %v1795_v59  ;;  %v1809_v63 = vor.u32 1.1754944e-38, %v1808_v22  ;;  %v10852_v22 = vld [vmem:[#allocation104_spill] sm:$0xff] }
 0x2e8   :  { %v1496_v35 = vadd.f32 %v1495_v30, %v187_v5  ;;  %v1487_v30 = vsel %vm7471_vm15, %v4289_v39, %v1483_v24  ;;  %v1727_v39 = vadd.f32 %v1726_v62, %v6083_v18  ;;  %v1786_v24 = vpop.f32.mrf.mxu1  ;;  %v1746_v37 = vpop.f32.mrf.mxu3  ;;  %vm1807_vm4 = vcmp.eq.f32.partialorder %v1806_v23, 8.507059e+37  ;;  %v10853_v62 = vld [vmem:[#allocation133_spill] sm:$0xff]  ;;  %v10856_v23 = vld [vmem:[#allocation108_spill] sm:$0xff] }
 0x2e9   :  { %v1787_v29 = vadd.f32 %v1786_v24, %v1767_v45  ;;  %v10854_v45 = vld [vmem:[#allocation105_spill] sm:$0xff] }
 0x2ea   :  { %v4297_v41 = vpop.eup %4296  ;;  %4300 = vtanh.f32 %v1496_v35  ;;  %v1747_v33 = vadd.f32 %v1746_v37, %v1727_v39  ;;  %v10837_v37 = vld [vmem:[#allocation84_spill] sm:$0xff]  ;;  %v10864_v24 = vld [vmem:[#allocation117_spill] sm:$0xff] }
 0x2eb   :  { %v7467_v7 = vpop.eup %4298  ;;  %v1798_v48 = vmul.f32 %v4297_v41, %v1795_v59  ;;  %vm1803_vm0 = vweird.f32 %v4297_v41  ;;  %v10863_v39 = vld [vmem:[#allocation116_spill] sm:$0xff] }
 0x2ec   :  { %v1813_v5 = vmul.f32 %v7467_v7, %v7460_v13  ;;  %vm1804_vm3 = vmor %vm1802_vm2, %vm1803_vm0  ;;  %vm1818_vm5 = vweird.f32 %v7467_v7 }
 0x2ed   :  { %v1799_v56 = vsub.f32 1.0, %v1798_v48  ;;  %v1492_v48 = vsel %vm1489_vm1, %v1491_v3, %v1487_v30  ;;  %vm1819_vm7 = vmor %vm1817_vm6, %vm1818_vm5  ;;  %v10843_v30 = vld [vmem:[#allocation91_spill] sm:$0xff]  ;;  %v10858_v3 = vld [vmem:[#allocation110_spill] sm:$0xff] }
 0x2ee   :  { %v1814_v54 = vsub.f32 1.0, %v1813_v5  ;;  %v7569_v5 = vld [vmem:[%s10006_s3 + $0x170] sm:$0xff] }
 0x2ef   :  { %v1800_v44 = vmul.f32 %v4297_v41, %v1799_v56 }
 0x2f0   :  { %v4301_v6 = vpop.eup %4300 }
 0x2f1   :  { %v1498_v35 = vsub.f32 %v6767_v51, %v4301_v6  ;;  %v1801_v12 = vadd.f32 %v4297_v41, %v1800_v44  ;;  %v1815_v51 = vmul.f32 %v7467_v7, %v1814_v54  ;;  %v10855_v44 = vld [vmem:[#allocation106_spill] sm:$0xff]  ;;  %v10862_v54 = vld [vmem:[#allocation115_spill] sm:$0xff] }
 0x2f3   :  { %v1499_v32 = vmul.f32 %v1498_v35, %v1492_v48  ;;  %v1805_v56 = vsel %vm1804_vm3, %v4297_v41, %v1801_v12  ;;  %v10840_v41 = vld [vmem:[#allocation87_spill] sm:$0xff]  ;;  %v10860_v12 = vld [vmem:[#allocation113_spill] sm:$0xff]  ;;  %v10861_v48 = vld [vmem:[#allocation114_spill] sm:$0xff] }
 0x2f4   :  { %v1810_v50 = vsel %vm1807_vm4, %v1809_v63, %v1805_v56  ;;  %v10839_v63 = vld [vmem:[#allocation86_spill] sm:$0xff]  ;;  %v10859_v35 = vld [vmem:[#allocation111_spill] sm:$0xff]  ;;  %v10866_v56 = vld [vmem:[#allocation120_spill] sm:$0xff] }
 0x2f5   :  { %v7483_v14 = vadd.f32 %v4301_v6, %v1499_v32  ;;  %v1827_v31 = vmul.f32 %v1810_v50, %v1787_v29  ;;  %v1816_v50 = vadd.f32 %v7467_v7, %v1815_v51  ;;  %v1823_v32 = vand.u32 2147483648, %v7460_v13  ;;  %v10857_v6 = vld [vmem:[#allocation109_spill] sm:$0xff]  ;;  %v10865_v29 = vld [vmem:[#allocation118_spill] sm:$0xff] }
 0x2f6   :  { %v10869_v51 = vld [vmem:[#allocation98_spill] sm:$0xff] }
 0x2f7   :  { %v1828_v59 = vadd.f32 %v1827_v31, %v1747_v33  ;;  %1905 = vmatmul.f32.vlgmr.msrb.gmra.mxu2 %v7483_v14  ;;  %1925 = vmatmul.f32.vlgmr.msra.gmra.mxu3 %v7483_v14  ;;  %v10867_v31 = vld [vmem:[#allocation121_spill] sm:$0xff] }
 0x2f8   :  { %1945 = vmatmul.f32.vlgmr.msra.gmra.mxu0 %v7483_v14  ;;  %2140 = vmatmul.f32.vlgmr.msra.gmra.mxu1 %v7483_v14  ;;  %v10868_v33 = vld [vmem:[#allocation5_spill] sm:$0xff] }
 0x2f9   :  { %4302 = vtanh.f32 %v1828_v59  ;;  %2224 = vmatpush.msrb.mxu2 %v6773_v61  ;;  %2244 = vmatpush.msra.mxu3 %v6778_v46  ;;  %v1821_v61 = vand.u32 2147483647, %v7460_v13  ;;  %v1820_v46 = vsel %vm1819_vm7, %v7467_v7, %v1816_v50  ;;  %v10834_v13 = vld [vmem:[#allocation81_spill] sm:$0xff]  ;;  %v10842_v7 = vld [vmem:[#allocation90_spill] sm:$0xff] }
 0x2fa   :  { %2264 = vmatpush.msra.mxu0 %v6785_v25  ;;  %2384 = vmatpush.msra.mxu1 %v6830_v36  ;;  %v10822_v36 = vld [vmem:[#allocation76_spill] sm:$0xff]  ;;  %v10870_v59 = vld [vmem:[#allocation97_spill] sm:$0xff]  ;;  %v10871_v50 = vld [vmem:[#allocation66_spill] sm:$0xff] }
 0x2fb   :  { %2225 = vmatpush.msrb.mxu2 %v6792_v42  ;;  %2245 = vmatpush.msra.mxu3 %v6797_v58  ;;  %v1824_v42 = vor.u32 1.1754944e-38, %v1823_v32  ;;  %vm1822_vm8 = vcmp.eq.f32.partialorder %v1821_v61, 8.507059e+37  ;;  %v10872_v32 = vld [vmem:[#allocation63_spill] sm:$0xff]  ;;  %v10873_v61 = vld [vmem:[#allocation124_spill] sm:$0xff] }
 0x2fc   :  { %2265 = vmatpush.msra.mxu0 %v6804_v10  ;;  %2385 = vmatpush.msra.mxu1 %v6849_v17  ;;  %v10825_v17 = vld [vmem:[#allocation74_spill] sm:$0xff] }
 0x2fd   :  { %2226 = vmatpush.msrb.mxu2 %v6812_v38  ;;  %2246 = vmatpush.msra.mxu3 %v6817_v43  ;;  %v1825_v10 = vsel %vm1822_vm8, %v1824_v42, %v1820_v46  ;;  %v10874_v46 = vld [vmem:[#allocation125_spill] sm:$0xff]  ;;  %v10876_v42 = vld [vmem:[#allocation128_spill] sm:$0xff] }
 0x2fe   :  { %2266 = vmatpush.msra.mxu0 %v6825_v0  ;;  %2386 = vmatpush.msra.mxu1 %v6897_v34  ;;  %v10821_v0 = vld [vmem:[#allocation70_spill] sm:$0xff]  ;;  %v10831_v34 = vld [vmem:[#allocation77_spill] sm:$0xff] }
 0x2ff   :  { %v4303_v25 = vpop.eup %4302  ;;  %2227 = vmatpush.msrb.mxu2 %v6838_v9  ;;  %2247 = vmatpush.msra.mxu3 %v6843_v21  ;;  %v10823_v9 = vld [vmem:[#allocation67_spill] sm:$0xff]  ;;  %v10824_v21 = vld [vmem:[#allocation69_spill] sm:$0xff] }
 0x300   :  { %v1830_v58 = vsub.f32 %v6925_v16, %v4303_v25  ;;  %2267 = vmatpush.msra.mxu0 %v6862_v26  ;;  %2180 = vmatmul.f32.vlgmr.msrb.gmra.mxu3 %v7483_v14  ;;  %v10826_v26 = vld [vmem:[#allocation80_spill] sm:$0xff]  ;;  %v10833_v16 = vld [vmem:[#allocation79_spill] sm:$0xff] }
 0x301   :  { %2220 = vmatmul.f32.vlgmr.msrb.gmra.mxu1 %v7483_v14  ;;  %2228 = vmatpush.msrb.mxu2 %v6871_v49  ;;  %v10827_v49 = vld [vmem:[#allocation71_spill] sm:$0xff] }
 0x302   :  { %v1831_v38 = vmul.f32 %v1830_v58, %v1825_v10  ;;  %2248 = vmatpush.msra.mxu3 %v6879_v60  ;;  %2268 = vmatpush.msra.mxu0 %v6884_v15  ;;  %v10828_v60 = vld [vmem:[#allocation73_spill] sm:$0xff]  ;;  %v10829_v15 = vld [vmem:[#allocation78_spill] sm:$0xff]  ;;  %v10878_v10 = vld [vmem:[#allocation131_spill] sm:$0xff] }
 0x303   :  { %2229 = vmatpush.msrb.mxu2 %v6892_v28  ;;  %2387 = vmatpush.msra.mxu1 %v6921_v57  ;;  %v10830_v28 = vld [vmem:[#allocation75_spill] sm:$0xff]  ;;  %v10832_v57 = vld [vmem:[#allocation82_spill] sm:$0xff]  ;;  %v10877_v58 = vld [vmem:[#allocation129_spill] sm:$0xff] }
 0x304   :  { %v7519_v43 = vadd.f32 %v4303_v25, %v1831_v38  ;;  %2249 = vmatpush.msra.mxu3 %v10821_v0  ;;  %2269 = vmatpush.msra.mxu0 %v10822_v36  ;;  %v10875_v25 = vld [vmem:[#allocation126_spill] sm:$0xff]  ;;  %v10879_v38 = vld [vmem:[#allocation132_spill] sm:$0xff]  ;;  %v10881_v36 = vld [vmem:[#allocation135_spill] sm:$0xff] }
 0x305   :  { %2230 = vmatpush.msrb.mxu2 %v10823_v9  ;;  %2388 = vmatpush.msra.mxu1 %v7186_v53  ;;  %v10835_v53 = vld [vmem:[#allocation85_spill] sm:$0xff]  ;;  %v10880_v0 = vld [vmem:[#allocation134_spill] sm:$0xff]  ;;  %v7619_v9 = vld [vmem:[%s10010_s5 + $0x1e0] sm:$0xff] }
 0x306   :  { %4206 = vst [vmem:[%s10013_s7 + $0x10] sm:$0xff] %v7519_v43  ;;  %2160 = vmatmul.f32.vlgmr.msra.gmra.mxu2 %v7519_v43  ;;  %2200 = vmatmul.f32.vlgmr.msrb.gmra.mxu0 %v7519_v43 }
 0x307   :  { %2250 = vmatpush.msra.mxu3 %v10824_v21  ;;  %2270 = vmatpush.msra.mxu0 %v10825_v17  ;;  %v7624_v21 = vld [vmem:[%s10010_s5 + $0x1c0] sm:$0xff] }
 0x308   :  { %2231 = vmatpush.msrb.mxu2 %v10826_v26  ;;  %2389 = vmatpush.msra.mxu1 %v7204_v2  ;;  %v10836_v2 = vld [vmem:[#allocation83_spill] sm:$0xff]  ;;  %v7630_v17 = vld [vmem:[%s10010_s5 + $0x1a0] sm:$0xff] }
 0x309   :  { %2251 = vmatpush.msra.mxu3 %v10827_v49  ;;  %2271 = vmatpush.msra.mxu0 %v10828_v60  ;;  %v7637_v26 = vld [vmem:[%s10010_s5 + $0x180] sm:$0xff] }
 0x30a   :  { %2232 = vmatpush.msrb.mxu2 %v10829_v15  ;;  %2390 = vmatpush.msra.mxu1 %v7223_v8  ;;  %v10838_v8 = vld [vmem:[#allocation88_spill] sm:$0xff] }
 0x30b   :  { %2252 = vmatpush.msra.mxu3 %v10830_v28  ;;  %2272 = vmatpush.msra.mxu0 %v10831_v34  ;;  %v7643_v49 = vld [vmem:[%s10010_s5 + $0x160] sm:$0xff] }
 0x30c   :  { %2233 = vmatpush.msrb.mxu2 %v10832_v57  ;;  %2391 = vmatpush.msra.mxu1 %v7241_v20  ;;  %v10841_v20 = vld [vmem:[#allocation89_spill] sm:$0xff]  ;;  %v7649_v60 = vld [vmem:[%s10010_s5 + $0x140] sm:$0xff] }
 0x30d   :  { %2253 = vmatpush.msra.mxu3 %v10833_v16  ;;  %2273 = vmatpush.msra.mxu0 %v10834_v13  ;;  %v7655_v15 = vld [vmem:[%s10010_s5 + $0x120] sm:$0xff] }
 0x30e   :  { %2234 = vmatpush.msrb.mxu2 %v10835_v53  ;;  %2392 = vmatpush.msra.mxu1 %v7259_v27  ;;  %v10844_v27 = vld [vmem:[#allocation92_spill] sm:$0xff] }
 0x30f   :  { %2254 = vmatpush.msra.mxu3 %v10836_v2  ;;  %2274 = vmatpush.msra.mxu0 %v10837_v37  ;;  %v7661_v28 = vld [vmem:[%s10010_s5 + $0x100] sm:$0xff]  ;;  %v7696_v2 = vld [vmem:[%s10010_s5 + $0x1e8] sm:$0xff] }
 0x310   :  { %2235 = vmatpush.msrb.mxu2 %v10838_v8  ;;  %2393 = vmatpush.msra.mxu1 %v7277_v52  ;;  %v10845_v52 = vld [vmem:[#allocation93_spill] sm:$0xff]  ;;  %v7667_v34 = vld [vmem:[%s10010_s5 + $0xe0] sm:$0xff]  ;;  %10883 = vst [vmem:[#allocation13_spill] sm:$0xff] %v7696_v2 }
 0x311   :  { %2255 = vmatpush.msra.mxu3 %v10839_v63  ;;  %2275 = vmatpush.msra.mxu0 %v10840_v41  ;;  %v7673_v57 = vld [vmem:[%s10010_s5 + $0xc0] sm:$0xff]  ;;  %v7701_v37 = vld [vmem:[%s10010_s5 + $0x3e8] sm:$0xff] }
 0x312   :  { %2236 = vmatpush.msrb.mxu2 %v10841_v20  ;;  %2394 = vmatpush.msra.mxu1 %v7295_v1  ;;  %v10846_v1 = vld [vmem:[#allocation94_spill] sm:$0xff]  ;;  %v7679_v16 = vld [vmem:[%s10010_s5 + $0xa0] sm:$0xff]  ;;  %10884 = vst [vmem:[#allocation18_spill] sm:$0xff] %v7701_v37  ;;  %v7720_v41 = vld [vmem:[%s10010_s5 + $0x1c8] sm:$0xff] }
 0x313   :  { %2256 = vmatpush.msra.mxu3 %v10842_v7  ;;  %2276 = vmatpush.msra.mxu0 %v10843_v30  ;;  %v7685_v13 = vld [vmem:[%s10010_s5 + $0x80] sm:$0xff]  ;;  %10886 = vst [vmem:[#allocation100_spill] sm:$0xff] %v7720_v41  ;;  %v7725_v20 = vld [vmem:[%s10010_s5 + $0x3c8] sm:$0xff] }
 0x314   :  { %2237 = vmatpush.msrb.mxu2 %v10844_v27  ;;  %2395 = vmatpush.msra.mxu1 %v7313_v55  ;;  %v10847_v55 = vld [vmem:[#allocation127_spill] sm:$0xff]  ;;  %v7691_v53 = vld [vmem:[%s10010_s5 + $0x3e0] sm:$0xff]  ;;  %10887 = vst [vmem:[#allocation17_spill] sm:$0xff] %v7725_v20  ;;  %v7744_v27 = vld [vmem:[%s10010_s5 + $0x1a8] sm:$0xff] }
 0x315   :  { %2257 = vmatpush.msra.mxu3 %v7063_v19  ;;  %2277 = vmatpush.msra.mxu0 %v7068_v40  ;;  %v10848_v19 = vld [vmem:[#allocation95_spill] sm:$0xff]  ;;  %v10849_v40 = vld [vmem:[#allocation96_spill] sm:$0xff]  ;;  %10882 = vst [vmem:[#allocation4_spill] sm:$0xff] %v7691_v53 }
 0x316   :  { %2238 = vmatpush.msrb.mxu2 %v10845_v52  ;;  %2396 = vmatpush.msra.mxu1 %v7331_v4  ;;  %v10851_v4 = vld [vmem:[#allocation130_spill] sm:$0xff]  ;;  %v7708_v8 = vld [vmem:[%s10010_s5 + $0x60] sm:$0xff]  ;;  %10889 = vst [vmem:[#allocation19_spill] sm:$0xff] %v7744_v27  ;;  %v7749_v52 = vld [vmem:[%s10010_s5 + $0x3a8] sm:$0xff] }
 0x317   :  { %2258 = vmatpush.msra.mxu3 %v7081_v11  ;;  %2278 = vmatpush.msra.mxu0 %v7086_v47  ;;  %v7579_v11 = vld [vmem:[%s10006_s3 + $0x158] sm:$0xff]  ;;  %v7715_v63 = vld [vmem:[%s10010_s5 + $0x3c0] sm:$0xff]  ;;  %10890 = vst [vmem:[#allocation20_spill] sm:$0xff] %v7749_v52 }
 0x318   :  { %2239 = vmatpush.msrb.mxu2 %v10846_v1  ;;  %2397 = vmatpush.msra.mxu1 %v10847_v55  ;;  %v10850_v47 = vld [vmem:[#allocation103_spill] sm:$0xff]  ;;  %10885 = vst [vmem:[#allocation16_spill] sm:$0xff] %v7715_v63  ;;  %v7732_v7 = vld [vmem:[%s10010_s5 + $0x40] sm:$0xff] }
 0x319   :  { %2259 = vmatpush.msra.mxu3 %v10848_v19  ;;  %2279 = vmatpush.msra.mxu0 %v10849_v40  ;;  %v7739_v30 = vld [vmem:[%s10010_s5 + $0x3a0] sm:$0xff]  ;;  %v7768_v19 = vld [vmem:[%s10010_s5 + $0x188] sm:$0xff] }
 0x31a   :  { %2240 = vmatmul.f32.vlgmr.msrb.gmra.mxu2 %v7519_v43  ;;  %2260 = vmatmul.f32.vlgmr.msra.gmra.mxu3 %v7483_v14  ;;  %10888 = vst [vmem:[#allocation21_spill] sm:$0xff] %v7739_v30  ;;  %v7756_v1 = vld [vmem:[%s10010_s5 + $0x20] sm:$0xff]  ;;  %v7773_v40 = vld [vmem:[%s10010_s5 + $0x388] sm:$0xff] }
 0x31b   :  { %2280 = vmatmul.f32.vlgmr.msra.gmra.mxu0 %v7519_v43  ;;  %2404 = vmatpush.msra.mxu2 %v7569_v5  ;;  %v7763_v55 = vld [vmem:[%s10010_s5 + $0x380] sm:$0xff]  ;;  %10892 = vst [vmem:[#allocation22_spill] sm:$0xff] %v7768_v19 }
 0x31c   :  { %2424 = vmatpush.msrb.mxu3 %v10850_v47  ;;  %2398 = vmatpush.msra.mxu1 %v10851_v4  ;;  %10891 = vst [vmem:[#allocation24_spill] sm:$0xff] %v7763_v55  ;;  %v7780_v47 = vld [vmem:[%s10010_s5] sm:$0xff] }
 0x31d   :  { %2405 = vmatpush.msra.mxu2 %v7579_v11  ;;  %2619 = vmatpush.msrb.mxu0 %v7619_v9  ;;  %10893 = vst [vmem:[#allocation23_spill] sm:$0xff] %v7773_v40  ;;  %v7787_v4 = vld [vmem:[%s10010_s5 + $0x360] sm:$0xff] }
 0x31e   :  { %2425 = vmatpush.msrb.mxu3 %v10852_v22  ;;  %2399 = vmatpush.msra.mxu1 %v10853_v62  ;;  %10894 = vst [vmem:[#allocation28_spill] sm:$0xff] %v7787_v4  ;;  %v7792_v22 = vld [vmem:[%s10010_s5 + $0x168] sm:$0xff] }
 0x31f   :  { %2406 = vmatpush.msra.mxu2 %v10854_v45  ;;  %2620 = vmatpush.msrb.mxu0 %v7624_v21  ;;  %10895 = vst [vmem:[#allocation26_spill] sm:$0xff] %v7792_v22  ;;  %v7797_v62 = vld [vmem:[%s10010_s5 + $0x368] sm:$0xff]  ;;  %v10897_v45 = vld [vmem:[#allocation7_spill] sm:$0xff] }
 0x320   :  { %2426 = vmatpush.msrb.mxu3 %v10855_v44  ;;  %2639 = vmatpush.msrb.mxu1 %v7691_v53  ;;  %10896 = vst [vmem:[#allocation6_spill] sm:$0xff] %v7797_v62  ;;  %v10898_v44 = vld [vmem:[#allocation8_spill] sm:$0xff] }
 0x321   :  { %2407 = vmatpush.msra.mxu2 %v10856_v23  ;;  %2621 = vmatpush.msrb.mxu0 %v7630_v17  ;;  %v108_v23 = vadd.f32 %v10898_v44, %v10897_v45  ;;  %v7899_v44 = vld [vmem:[%s10010_s5 + $0x2e8] sm:$0xff] }
 0x322   :  { %2427 = vmatpush.msrb.mxu3 %v10857_v6  ;;  %2640 = vmatpush.msrb.mxu1 %v7715_v63  ;;  %v10899_v6 = vld [vmem:[#allocation32_spill] sm:$0xff]  ;;  %10912 = vst [vmem:[#allocation39_spill] sm:$0xff] %v7899_v44 }
 0x323   :  { %2408 = vmatpush.msra.mxu2 %v10858_v3  ;;  %2622 = vmatpush.msrb.mxu0 %v7637_v26  ;;  %v10900_v3 = vld [vmem:[#allocation102_spill] sm:$0xff] }
 0x324   :  { %2428 = vmatpush.msrb.mxu3 %v10859_v35  ;;  %2641 = vmatpush.msrb.mxu1 %v7739_v30  ;;  %v149_v35 = vadd.f32 %v10900_v3, %v10899_v6 }
 0x325   :  { %2409 = vmatpush.msra.mxu2 %v10860_v12  ;;  %2623 = vmatpush.msrb.mxu0 %v7643_v49  ;;  %v7808_v12 = vld [vmem:[%s10010_s5 + $0x1f0] sm:$0xff] }
 0x326   :  { %2429 = vmatpush.msrb.mxu3 %v10861_v48  ;;  %2642 = vmatpush.msrb.mxu1 %v7763_v55 }
 0x327   :  { %2410 = vmatpush.msra.mxu2 %v10862_v54  ;;  %2624 = vmatpush.msrb.mxu0 %v7649_v60 }
 0x328   :  { %2430 = vmatpush.msrb.mxu3 %v10863_v39  ;;  %2643 = vmatpush.msrb.mxu1 %v7787_v4  ;;  %v7815_v39 = vld [vmem:[%s10010_s5 + $0x340] sm:$0xff] }
 0x329   :  { %2411 = vmatpush.msra.mxu2 %v10864_v24  ;;  %2625 = vmatpush.msrb.mxu0 %v7655_v15  ;;  %10901 = vst [vmem:[#allocation27_spill] sm:$0xff] %v7815_v39  ;;  %v7820_v24 = vld [vmem:[%s10010_s5 + $0x148] sm:$0xff] }
 0x32a   :  { %2431 = vmatpush.msrb.mxu3 %v10865_v29  ;;  %10902 = vst [vmem:[#allocation31_spill] sm:$0xff] %v7820_v24  ;;  %v7825_v29 = vld [vmem:[%s10010_s5 + $0x348] sm:$0xff]  ;;  %2644 = vmatpush.msrb.mxu1 %v7815_v39 }
 0x32b   :  { %2412 = vmatpush.msra.mxu2 %v10866_v56  ;;  %2626 = vmatpush.msrb.mxu0 %v7661_v28  ;;  %10903 = vst [vmem:[#allocation29_spill] sm:$0xff] %v7825_v29 }
 0x32c   :  { %2432 = vmatpush.msrb.mxu3 %v10867_v31 }
 0x32d   :  { %2413 = vmatpush.msra.mxu2 %v10868_v33  ;;  %2627 = vmatpush.msrb.mxu0 %v7667_v34  ;;  %v7832_v33 = vld [vmem:[%s10010_s5 + $0x1d0] sm:$0xff] }
 0x32e   :  { %2433 = vmatpush.msrb.mxu3 %v10869_v51  ;;  %v7839_v51 = vld [vmem:[%s10010_s5 + $0x320] sm:$0xff] }
 0x32f   :  { %2414 = vmatpush.msra.mxu2 %v10870_v59  ;;  %2628 = vmatpush.msrb.mxu0 %v7673_v57  ;;  %10904 = vst [vmem:[#allocation30_spill] sm:$0xff] %v7839_v51  ;;  %v7844_v59 = vld [vmem:[%s10010_s5 + $0x128] sm:$0xff] }
 0x330   :  { %2434 = vmatpush.msrb.mxu3 %v10871_v50  ;;  %10905 = vst [vmem:[#allocation35_spill] sm:$0xff] %v7844_v59  ;;  %v7849_v50 = vld [vmem:[%s10010_s5 + $0x328] sm:$0xff]  ;;  %2645 = vmatpush.msrb.mxu1 %v7839_v51 }
 0x331   :  { %2415 = vmatpush.msra.mxu2 %v10872_v32  ;;  %2629 = vmatpush.msrb.mxu0 %v7679_v16  ;;  %10906 = vst [vmem:[#allocation33_spill] sm:$0xff] %v7849_v50 }
 0x332   :  { %2435 = vmatpush.msrb.mxu3 %v10873_v61 }
 0x333   :  { %2416 = vmatpush.msra.mxu2 %v10874_v46  ;;  %2630 = vmatpush.msrb.mxu0 %v7685_v13 }
 0x334   :  { %2436 = vmatpush.msrb.mxu3 %v10875_v25  ;;  %v7858_v25 = vld [vmem:[%s10010_s5 + $0x1b0] sm:$0xff] }
 0x335   :  { %2417 = vmatpush.msra.mxu2 %v10876_v42  ;;  %2631 = vmatpush.msrb.mxu0 %v7708_v8  ;;  %v7865_v42 = vld [vmem:[%s10010_s5 + $0x300] sm:$0xff] }
 0x336   :  { %2437 = vmatpush.msrb.mxu3 %v10877_v58  ;;  %10907 = vst [vmem:[#allocation34_spill] sm:$0xff] %v7865_v42  ;;  %v7870_v58 = vld [vmem:[%s10010_s5 + $0x108] sm:$0xff]  ;;  %2646 = vmatpush.msrb.mxu1 %v7865_v42  ;;  %v8017_v42 = vld [vmem:[%s10010_s5 + $0x240] sm:$0xff] }
 0x337   :  { %2418 = vmatpush.msra.mxu2 %v10878_v10  ;;  %2632 = vmatpush.msrb.mxu0 %v7732_v7  ;;  %10908 = vst [vmem:[#allocation38_spill] sm:$0xff] %v7870_v58  ;;  %v7875_v10 = vld [vmem:[%s10010_s5 + $0x308] sm:$0xff] }
 0x338   :  { %2438 = vmatpush.msrb.mxu3 %v10879_v38  ;;  %10909 = vst [vmem:[#allocation36_spill] sm:$0xff] %v7875_v10  ;;  %v7882_v38 = vld [vmem:[%s10010_s5 + $0x190] sm:$0xff] }
 0x339   :  { %2419 = vmatpush.msra.mxu2 %v10880_v0  ;;  %2633 = vmatpush.msrb.mxu0 %v7756_v1  ;;  %v7889_v0 = vld [vmem:[%s10010_s5 + $0x2e0] sm:$0xff]  ;;  %10927 = vst [vmem:[#allocation54_spill] sm:$0xff] %v8017_v42 }
 0x33a   :  { %2439 = vmatpush.msrb.mxu3 %v10881_v36  ;;  %10910 = vst [vmem:[#allocation37_spill] sm:$0xff] %v7889_v0  ;;  %v7894_v36 = vld [vmem:[%s10010_s5 + $0xe8] sm:$0xff]  ;;  %2647 = vmatpush.msrb.mxu1 %v7889_v0  ;;  %v7957_v0 = vld [vmem:[%s10010_s5 + $0x130] sm:$0xff] }
 0x33b   :  { %2659 = vmatpush.msrb.mxu2 %v7696_v2  ;;  %2634 = vmatpush.msrb.mxu0 %v7780_v47  ;;  %10911 = vst [vmem:[#allocation41_spill] sm:$0xff] %v7894_v36 }
 0x33c   :  { %2679 = vmatpush.msra.mxu3 %v7701_v37 }
 0x33d   :  { %2660 = vmatpush.msrb.mxu2 %v7720_v41  ;;  %2699 = vmatpush.msra.mxu0 %v7808_v12 }
 0x33e   :  { %2680 = vmatpush.msra.mxu3 %v7725_v20 }
 0x33f   :  { %2661 = vmatpush.msrb.mxu2 %v7744_v27  ;;  %2700 = vmatpush.msra.mxu0 %v7832_v33 }
 0x340   :  { %2681 = vmatpush.msra.mxu3 %v7749_v52 }
 0x341   :  { %2662 = vmatpush.msrb.mxu2 %v7768_v19  ;;  %2701 = vmatpush.msra.mxu0 %v7858_v25 }
 0x342   :  { %2682 = vmatpush.msra.mxu3 %v7773_v40  ;;  %v8116_v40 = vld [vmem:[%s10009_s4] ss:$0 sm:$0xff] }
 0x343   :  { %2663 = vmatpush.msrb.mxu2 %v7792_v22  ;;  %2702 = vmatpush.msra.mxu0 %v7882_v38  ;;  %10936 = vst [vmem:[#allocation72_spill] sm:$0xff] %v8116_v40 }
 0x344   :  { %2683 = vmatpush.msra.mxu3 %v7797_v62 }
 0x345   :  { %2664 = vmatpush.msrb.mxu2 %v7820_v24 }
 0x346   :  { %2684 = vmatpush.msra.mxu3 %v7825_v29 }
 0x347   :  { %2665 = vmatpush.msrb.mxu2 %v7844_v59 }
 0x348   :  { %2685 = vmatpush.msra.mxu3 %v7849_v50 }
 0x349   :  { %2666 = vmatpush.msrb.mxu2 %v7870_v58 }
 0x34a   :  { %2686 = vmatpush.msra.mxu3 %v7875_v10 }
 0x34b   :  { %2667 = vmatpush.msrb.mxu2 %v7894_v36 }
 0x34c   :  { %2687 = vmatpush.msra.mxu3 %v7899_v44 }
 0x375   :  { %v7851_v32 = vpop.f32.mrf.mxu0  ;;  %v2141_v45 = vpop.f32.mrf.mxu1 }
 0x37a   :  { %v1906_v48 = vpop.f32.mrf.mxu2  ;;  %v1926_v54 = vpop.f32.mrf.mxu3 }
 0x37b   :  { %v1949_v56 = vadd.f32 %v1906_v48, %v108_v23  ;;  %v1950_v31 = vadd.f32 %v1926_v54, %v149_v35  ;;  %v7906_v23 = vld [vmem:[%s10010_s5 + $0x170] sm:$0xff]  ;;  %v7913_v35 = vld [vmem:[%s10010_s5 + $0x2c0] sm:$0xff]  ;;  %v7918_v48 = vld [vmem:[%s10010_s5 + $0xc8] sm:$0xff] }
 0x37c   :  { %2703 = vmatpush.msra.mxu0 %v7906_v23  ;;  %10913 = vst [vmem:[#allocation40_spill] sm:$0xff] %v7913_v35  ;;  %v7923_v54 = vld [vmem:[%s10010_s5 + $0x2c8] sm:$0xff]  ;;  %2648 = vmatpush.msrb.mxu1 %v7913_v35 }
 0x37d   :  { %v4207_v61 = vmul.f32 -1.442695, %v1949_v56  ;;  %v4208_v46 = vmul.f32 -1.442695, %v1950_v31  ;;  %10914 = vst [vmem:[#allocation45_spill] sm:$0xff] %v7918_v48  ;;  %v10916_v56 = vld [vmem:[#allocation11_spill] sm:$0xff]  ;;  %2668 = vmatpush.msrb.mxu2 %v7918_v48  ;;  %2688 = vmatpush.msra.mxu3 %v7923_v54 }
 0x37e   :  { %10915 = vst [vmem:[#allocation43_spill] sm:$0xff] %v7923_v54  ;;  %v7948_v48 = vld [vmem:[%s10010_s5 + $0x2a8] sm:$0xff] }
 0x37f   :  { %4304 = vpow2.f32 %v4207_v61  ;;  %v7931_v61 = vld [vmem:[%s10010_s5 + $0x150] sm:$0xff]  ;;  %10919 = vst [vmem:[#allocation46_spill] sm:$0xff] %v7948_v48  ;;  %2689 = vmatpush.msra.mxu3 %v7948_v48 }
 0x380   :  { %4306 = vpow2.f32 %v4208_v46  ;;  %2704 = vmatpush.msra.mxu0 %v7931_v61  ;;  %v7985_v48 = vld [vmem:[%s10010_s5 + $0x110] sm:$0xff] }
 0x382   :  { %2705 = vmatpush.msra.mxu0 %v7957_v0 }
 0x383   :  { %v2181_v3 = vpop.f32.mrf.mxu3  ;;  %v2201_v44 = vpop.f32.mrf.mxu0 }
 0x384   :  { %v2182_v31 = vadd.f32 %v2181_v3, %v10916_v56  ;;  %v7938_v3 = vld [vmem:[%s10010_s5 + $0x2a0] sm:$0xff]  ;;  %v7943_v56 = vld [vmem:[%s10010_s5 + $0xa8] sm:$0xff]  ;;  %2706 = vmatpush.msra.mxu0 %v7985_v48 }
 0x385   :  { %v4305_v46 = vpop.eup %4304  ;;  %10917 = vst [vmem:[#allocation44_spill] sm:$0xff] %v7938_v3  ;;  %2649 = vmatpush.msrb.mxu1 %v7938_v3  ;;  %2669 = vmatpush.msrb.mxu2 %v7943_v56 }
 0x386   :  { %10918 = vst [vmem:[#allocation48_spill] sm:$0xff] %v7943_v56  ;;  %v4307_v35 = vpop.eup %4306  ;;  %v7950_v36 = vadd.f32 1.0, %v4305_v46  ;;  %v2202_v54 = vadd.f32 %v2201_v44, %v2182_v31  ;;  %v7966_v46 = vld [vmem:[%s10010_s5 + $0x280] sm:$0xff]  ;;  %v7971_v44 = vld [vmem:[%s10010_s5 + $0x88] sm:$0xff] }
 0x387   :  { %v7959_v10 = vadd.f32 1.0, %v4307_v35  ;;  %10920 = vst [vmem:[#allocation47_spill] sm:$0xff] %v7966_v46  ;;  %v7976_v31 = vld [vmem:[%s10010_s5 + $0x288] sm:$0xff]  ;;  %v10923_v35 = vld [vmem:[#allocation10_spill] sm:$0xff]  ;;  %2650 = vmatpush.msrb.mxu1 %v7966_v46  ;;  %2670 = vmatpush.msrb.mxu2 %v7971_v44 }
 0x388   :  { %10921 = vst [vmem:[#allocation50_spill] sm:$0xff] %v7971_v44  ;;  %v2142_v56 = vadd.f32 %v2141_v45, %v10923_v35  ;;  %4308 = vrcp.f32 %v7950_v36  ;;  %2690 = vmatpush.msra.mxu3 %v7976_v31  ;;  %v7993_v45 = vld [vmem:[%s10010_s5 + $0x260] sm:$0xff]  ;;  %v7998_v44 = vld [vmem:[%s10010_s5 + $0x68] sm:$0xff]  ;;  %v4210_v46 = vmul.f32 -1.442695, %v2202_v54  ;;  %v1970_v6 = vand.u32 2147483648, %v7950_v36 }
 0x389   :  { %10922 = vst [vmem:[#allocation49_spill] sm:$0xff] %v7976_v31  ;;  %4310 = vrcp.f32 %v7959_v10  ;;  %v2161_v3 = vpop.f32.mrf.mxu2  ;;  %v8003_v35 = vld [vmem:[%s10010_s5 + $0x268] sm:$0xff]  ;;  %2651 = vmatpush.msrb.mxu1 %v7993_v45  ;;  %2671 = vmatpush.msrb.mxu2 %v7998_v44  ;;  %v8010_v31 = vld [vmem:[%s10010_s5 + $0xf0] sm:$0xff]  ;;  %v1968_v29 = vand.u32 2147483647, %v7950_v36  ;;  %vm1964_vm10 = vweird.f32 %v7950_v36  ;;  %vm1979_vm14 = vweird.f32 %v7959_v10 }
 0x38a   :  { %10924 = vst [vmem:[#allocation64_spill] sm:$0xff] %v7993_v45  ;;  %v2162_v58 = vadd.f32 %v2161_v3, %v2142_v56  ;;  %2691 = vmatpush.msra.mxu3 %v8003_v35  ;;  %2707 = vmatpush.msra.mxu0 %v8010_v31  ;;  %v8022_v54 = vld [vmem:[%s10010_s5 + $0x48] sm:$0xff]  ;;  %4312 = vpow2.f32 %v4210_v46  ;;  %v1971_v62 = vor.u32 1.1754944e-38, %v1970_v6 }
 0x38b   :  { %10925 = vst [vmem:[#allocation52_spill] sm:$0xff] %v7998_v44  ;;  %v8027_v56 = vld [vmem:[%s10010_s5 + $0x248] sm:$0xff]  ;;  %2652 = vmatpush.msrb.mxu1 %v8017_v42  ;;  %2672 = vmatpush.msrb.mxu2 %v8022_v54  ;;  %v8041_v44 = vld [vmem:[%s10010_s5 + $0x220] sm:$0xff]  ;;  %vm1969_vm12 = vcmp.eq.f32.partialorder %v1968_v29, 8.507059e+37 }
 0x38c   :  { %10926 = vst [vmem:[#allocation53_spill] sm:$0xff] %v8003_v35  ;;  %v4209_v3 = vmul.f32 -1.442695, %v2162_v58  ;;  %v8034_v35 = vld [vmem:[%s10010_s5 + $0xd0] sm:$0xff]  ;;  %2692 = vmatpush.msra.mxu3 %v8027_v56  ;;  %v8046_v58 = vld [vmem:[%s10010_s5 + $0x28] sm:$0xff] }
 0x38d   :  { %10928 = vst [vmem:[#allocation68_spill] sm:$0xff] %v8022_v54  ;;  %2708 = vmatpush.msra.mxu0 %v8034_v35  ;;  %v8051_v46 = vld [vmem:[%s10010_s5 + $0x228] sm:$0xff]  ;;  %2653 = vmatpush.msrb.mxu1 %v8041_v44 }
 0x38e   :  { %10929 = vst [vmem:[#allocation55_spill] sm:$0xff] %v8027_v56  ;;  %v4309_v54 = vpop.eup %4308  ;;  %4314 = vpow2.f32 %v4209_v3  ;;  %2673 = vmatpush.msrb.mxu2 %v8046_v58  ;;  %v8058_v56 = vld [vmem:[%s10010_s5 + $0xb0] sm:$0xff]  ;;  %2693 = vmatpush.msra.mxu3 %v8051_v46  ;;  %v8068_v3 = vld [vmem:[%s10010_s5 + $0x200] sm:$0xff] }
 0x38f   :  { %10930 = vst [vmem:[#allocation56_spill] sm:$0xff] %v8041_v44  ;;  %v8060_v42 = vpop.eup %4310  ;;  %v1960_v45 = vmul.f32 %v4309_v54, %v7950_v36  ;;  %2709 = vmatpush.msra.mxu0 %v8058_v56  ;;  %v8078_v44 = vld [vmem:[%s10010_s5 + $0x208] sm:$0xff]  ;;  %2654 = vmatpush.msrb.mxu1 %v8068_v3  ;;  %vm1965_vm9 = vweird.f32 %v4309_v54 }
 0x390   :  { %10931 = vst [vmem:[#allocation59_spill] sm:$0xff] %v8046_v58  ;;  %v8073_v58 = vld [vmem:[%s10010_s5 + $0x8] sm:$0xff]  ;;  %2694 = vmatpush.msra.mxu3 %v8078_v44  ;;  %v4313_v59 = vpop.eup %4312  ;;  %v1975_v51 = vmul.f32 %v8060_v42, %v7959_v10  ;;  %vm1966_vm11 = vmor %vm1964_vm10, %vm1965_vm9  ;;  %vm1980_vm13 = vweird.f32 %v8060_v42 }
 0x391   :  { %10932 = vst [vmem:[#allocation57_spill] sm:$0xff] %v8051_v46  ;;  %2674 = vmatpush.msrb.mxu2 %v8073_v58  ;;  %v8085_v46 = vld [vmem:[%s10010_s5 + $0x90] sm:$0xff]  ;;  %v1961_v50 = vsub.f32 1.0, %v1960_v45  ;;  %v8105_v39 = vadd.f32 1.0, %v4313_v59  ;;  %v1989_v59 = vadd.f32 %v8116_v40, %v7851_v32  ;;  %vm1981_vm15 = vmor %vm1979_vm14, %vm1980_vm13 }
 0x392   :  { %10933 = vst [vmem:[#allocation58_spill] sm:$0xff] %v8068_v3  ;;  %2710 = vmatpush.msra.mxu0 %v8085_v46  ;;  %v8102_v45 = vld [vmem:[%s10010_s5 + $0x50] sm:$0xff]  ;;  %v1976_v22 = vsub.f32 1.0, %v1975_v51  ;;  %v10937_v51 = vld [vmem:[#allocation51_spill] sm:$0xff] }
 0x393   :  { %10934 = vst [vmem:[#allocation62_spill] sm:$0xff] %v8073_v58  ;;  %v8095_v58 = vld [vmem:[%s10010_s5 + $0x70] sm:$0xff]  ;;  %v1962_v3 = vmul.f32 %v4309_v54, %v1961_v50  ;;  %vm2312_vm6 = vweird.f32 %v8105_v39 }
 0x394   :  { %10935 = vst [vmem:[#allocation60_spill] sm:$0xff] %v8078_v44  ;;  %2711 = vmatpush.msra.mxu0 %v8095_v58  ;;  %v4315_v44 = vpop.eup %4314  ;;  %v8111_v50 = vld [vmem:[%s10010_s5 + $0x30] sm:$0xff] }
 0x395   :  { %v1963_v24 = vadd.f32 %v4309_v54, %v1962_v3  ;;  %v2290_v4 = vadd.f32 1.0, %v4315_v44  ;;  %v8124_v3 = vld [vmem:[%s10010_s5 + $0x10] sm:$0xff]  ;;  %v10938_v44 = vld [vmem:[#allocation101_spill] sm:$0xff] }
 0x396   :  { %2712 = vmatpush.msra.mxu0 %v8102_v45  ;;  %v190_v19 = vadd.f32 %v10938_v44, %v10937_v51  ;;  %v10939_v51 = vld [vmem:[#allocation14_spill] sm:$0xff] }
 0x397   :  { %v1967_v36 = vsel %vm1966_vm11, %v4309_v54, %v1963_v24  ;;  %4316 = vrcp.f32 %v2290_v4  ;;  %v1977_v24 = vmul.f32 %v8060_v42, %v1976_v22  ;;  %v2301_v30 = vand.u32 2147483647, %v2290_v4 }
 0x398   :  { %2713 = vmatpush.msra.mxu0 %v8111_v50  ;;  %v1972_v6 = vsel %vm1969_vm12, %v1971_v62, %v1967_v36  ;;  %4318 = vrcp.f32 %v8105_v39  ;;  %v1985_v62 = vand.u32 2147483648, %v7959_v10  ;;  %vm2297_vm2 = vweird.f32 %v2290_v4 }
 0x399   :  { %v1990_v55 = vmul.f32 %v1989_v59, %v1972_v6  ;;  %v1978_v54 = vadd.f32 %v8060_v42, %v1977_v24  ;;  %v1983_v59 = vand.u32 2147483647, %v7959_v10  ;;  %v2303_v24 = vand.u32 2147483648, %v2290_v4  ;;  %v2221_v10 = vpop.f32.mrf.mxu1 }
 0x39a   :  { %2714 = vmatpush.msra.mxu0 %v8124_v3  ;;  %v2222_v2 = vadd.f32 %v2221_v10, %v6083_v18  ;;  %vm2302_vm4 = vcmp.eq.f32.partialorder %v2301_v30, 8.507059e+37  ;;  %v8181_v30 = vld [vmem:[%s10010_s5 + $0x3d8] sm:$0xff]  ;;  %v2316_v10 = vand.u32 2147483647, %v8105_v39 }
 0x39b   :  { %v1991_v29 = vadd.f32 %v1990_v55, %v190_v19  ;;  %v1982_v55 = vsel %vm1981_vm15, %v8060_v42, %v1978_v54  ;;  %v1986_v19 = vor.u32 1.1754944e-38, %v1985_v62  ;;  %vm1984_vm1 = vcmp.eq.f32.partialorder %v1983_v59, 8.507059e+37  ;;  %v2281_v54 = vpop.f32.mrf.mxu0 }
 0x39c   :  { %v2304_v37 = vor.u32 1.1754944e-38, %v2303_v24  ;;  %v8218_v24 = vld [vmem:[%s10010_s5 + $0x390] sm:$0xff]  ;;  %vm2317_vm8 = vcmp.eq.f32.partialorder %v2316_v10, 8.507059e+37  ;;  %v8298_v10 = vld [vmem:[%s10006_s3 + $0x120] sm:$0xff] }
 0x39d   :  { %4320 = vtanh.f32 %v1991_v29  ;;  %v4317_v32 = vpop.eup %4316  ;;  %v2261_v6 = vpop.f32.mrf.mxu3  ;;  %v1987_v41 = vsel %vm1984_vm1, %v1986_v19, %v1982_v55  ;;  %v8206_v55 = vld [vmem:[%s10010_s5 + $0x3b8] sm:$0xff]  ;;  %v8211_v19 = vld [vmem:[%s10006_s3 + $0x150] sm:$0xff] }
 0x39e   :  { %v8134_v36 = vpop.eup %4318  ;;  %v2293_v40 = vmul.f32 %v4317_v32, %v2290_v4  ;;  %v2262_v52 = vadd.f32 %v2261_v6, %v10939_v51  ;;  %vm2298_vm0 = vweird.f32 %v4317_v32  ;;  %v2241_v62 = vpop.f32.mrf.mxu2  ;;  %v8192_v4 = vld [vmem:[%s10010_s5 + $0x1b8] sm:$0xff] }
 0x39f   :  { %v2308_v22 = vmul.f32 %v8134_v36, %v8105_v39  ;;  %vm2299_vm3 = vmor %vm2297_vm2, %vm2298_vm0  ;;  %v2242_v51 = vadd.f32 %v2241_v62, %v2222_v2  ;;  %vm2313_vm5 = vweird.f32 %v8134_v36  ;;  %v8256_v62 = vld [vmem:[%s10010_s5 + $0x178] sm:$0xff] }
 0x3a0   :  { %v2294_v44 = vsub.f32 1.0, %v2293_v40  ;;  %v2282_v53 = vadd.f32 %v2281_v54, %v2262_v52  ;;  %v8187_v52 = vld [vmem:[%s10010_s5 + $0x3b0] sm:$0xff]  ;;  %vm8237_vm7 = vmor %vm2312_vm6, %vm2313_vm5 }
 0x3a1   :  { %v2309_v42 = vsub.f32 1.0, %v2308_v22  ;;  %v2318_v22 = vand.u32 2147483648, %v8105_v39  ;;  %v8245_v39 = vld [vmem:[%s10010_s5 + $0x370] sm:$0xff] }
 0x3a2   :  { %v2295_v27 = vmul.f32 %v4317_v32, %v2294_v44  ;;  %10942 = vst [vmem:[#allocation61_spill] sm:$0xff] %v8245_v39 }
 0x3a3   :  { %v4321_v29 = vpop.eup %4320 }
 0x3a4   :  { %v1993_v20 = vsub.f32 %v7483_v14, %v4321_v29  ;;  %v2296_v63 = vadd.f32 %v4317_v32, %v2295_v27  ;;  %v8149_v27 = vld [vmem:[%s10010_s5 + $0x3f0] sm:$0xff] }
 0x3a6   :  { %v1994_v40 = vmul.f32 %v1993_v20, %v1987_v41  ;;  %v2300_v6 = vsel %vm2299_vm3, %v4317_v32, %v2296_v63  ;;  %v8154_v41 = vld [vmem:[%s10010_s5 + $0x1f8] sm:$0xff]  ;;  %v2310_v20 = vmul.f32 %v8134_v36, %v2309_v42 }
 0x3a7   :  { %v2305_v59 = vsel %vm2302_vm4, %v2304_v37, %v2300_v6  ;;  %v8169_v37 = vld [vmem:[%s10010_s5 + $0x3d0] sm:$0xff]  ;;  %v8174_v63 = vld [vmem:[%s10010_s5 + $0x1d8] sm:$0xff] }
 0x3a8   :  { %v8144_v44 = vadd.f32 %v4321_v29, %v1994_v40  ;;  %v2322_v14 = vmul.f32 %v2305_v59, %v2282_v53  ;;  %v8162_v53 = vld [vmem:[%s10010_s5 + $0x3f8] sm:$0xff]  ;;  %v2311_v32 = vadd.f32 %v8134_v36, %v2310_v20 }
 0x3a9   :  { %v8223_v29 = vld [vmem:[%s10010_s5 + $0x198] sm:$0xff] }
 0x3aa   :  { %2400 = vmatmul.f32.vlgmr.msra.gmra.mxu1 %v8144_v44  ;;  %2420 = vmatmul.f32.vlgmr.msra.gmra.mxu2 %v8144_v44  ;;  %v2323_v2 = vadd.f32 %v2322_v14, %v2242_v51  ;;  %v8197_v51 = vld [vmem:[%s10006_s3 + $0x168] sm:$0xff]  ;;  %v8233_v40 = vld [vmem:[%s10010_s5 + $0x398] sm:$0xff]  ;;  %v2315_v54 = vsel %vm8237_vm7, %v8134_v36, %v2311_v32  ;;  %v2319_v14 = vor.u32 1.1754944e-38, %v2318_v22  ;;  %v8268_v36 = vld [vmem:[%s10010_s5 + $0x350] sm:$0xff] }
 0x3ab   :  { %2440 = vmatmul.f32.vlgmr.msrb.gmra.mxu3 %v8144_v44  ;;  %2635 = vmatmul.f32.vlgmr.msrb.gmra.mxu0 %v8144_v44  ;;  %v8261_v6 = vld [vmem:[%s10010_s5 + $0x378] sm:$0xff] }
 0x3ac   :  { %2719 = vmatpush.msra.mxu1 %v8149_v27  ;;  %2739 = vmatpush.msra.mxu2 %v8154_v41  ;;  %4322 = vtanh.f32 %v2323_v2  ;;  %10943 = vst [vmem:[#allocation65_spill] sm:$0xff] %v8261_v6  ;;  %v8273_v20 = vld [vmem:[%s10006_s3 + $0x138] sm:$0xff]  ;;  %v2320_v42 = vsel %vm2317_vm8, %v2319_v14, %v2315_v54 }
 0x3ad   :  { %2759 = vmatpush.msrb.mxu3 %v8162_v53  ;;  %2879 = vmatpush.msrb.mxu0 %v8197_v51  ;;  %v8281_v32 = vld [vmem:[%s10010_s5 + $0x158] sm:$0xff] }
 0x3ae   :  { %2720 = vmatpush.msra.mxu1 %v8169_v37  ;;  %2740 = vmatpush.msra.mxu2 %v8174_v63  ;;  %10944 = vst [vmem:[#allocation99_spill] sm:$0xff] %v8281_v32  ;;  %v8286_v22 = vld [vmem:[%s10010_s5 + $0x358] sm:$0xff] }
 0x3af   :  { %2760 = vmatpush.msrb.mxu3 %v8181_v30  ;;  %2880 = vmatpush.msrb.mxu0 %v8211_v19  ;;  %10945 = vst [vmem:[#allocation70_spill] sm:$0xff] %v8286_v22  ;;  %v8304_v54 = vld [vmem:[%s10010_s5 + $0x138] sm:$0xff] }
 0x3b0   :  { %2721 = vmatpush.msra.mxu1 %v8187_v52  ;;  %2741 = vmatpush.msra.mxu2 %v8192_v4  ;;  %10947 = vst [vmem:[#allocation67_spill] sm:$0xff] %v8304_v54  ;;  %v8309_v14 = vld [vmem:[%s10010_s5 + $0x338] sm:$0xff] }
 0x3b1   :  { %2761 = vmatpush.msrb.mxu3 %v8206_v55  ;;  %10948 = vst [vmem:[#allocation69_spill] sm:$0xff] %v8309_v14  ;;  %2881 = vmatpush.msrb.mxu0 %v8273_v20 }
 0x3b2   :  { %2722 = vmatpush.msra.mxu1 %v8218_v24  ;;  %2742 = vmatpush.msra.mxu2 %v8223_v29  ;;  %v4323_v59 = vpop.eup %4322 }
 0x3b3   :  { %2762 = vmatpush.msrb.mxu3 %v8233_v40  ;;  %2675 = vmatmul.f32.vlgmr.msrb.gmra.mxu2 %v8144_v44  ;;  %v2325_v2 = vsub.f32 %v7519_v43, %v4323_v59  ;;  %v8293_v43 = vld [vmem:[%s10010_s5 + $0x330] sm:$0xff] }
 0x3b4   :  { %2715 = vmatmul.f32.vlgmr.msra.gmra.mxu0 %v8144_v44  ;;  %2723 = vmatpush.msra.mxu1 %v8245_v39  ;;  %10946 = vst [vmem:[#allocation76_spill] sm:$0xff] %v8293_v43 }
 0x3b5   :  { %2743 = vmatpush.msra.mxu2 %v8256_v62  ;;  %2763 = vmatpush.msrb.mxu3 %v8261_v6  ;;  %v2326_v39 = vmul.f32 %v2325_v2, %v2320_v42  ;;  %v8320_v2 = vld [vmem:[%s10010_s5 + $0x310] sm:$0xff]  ;;  %v8325_v42 = vld [vmem:[%s10010_s5 + $0x118] sm:$0xff] }
 0x3b6   :  { %2724 = vmatpush.msra.mxu1 %v8268_v36  ;;  %10949 = vst [vmem:[#allocation74_spill] sm:$0xff] %v8320_v2  ;;  %2882 = vmatpush.msrb.mxu0 %v8298_v10 }
 0x3b7   :  { %2744 = vmatpush.msra.mxu2 %v8281_v32  ;;  %2764 = vmatpush.msrb.mxu3 %v8286_v22  ;;  %v8314_v6 = vadd.f32 %v4323_v59, %v2326_v39  ;;  %10950 = vst [vmem:[#allocation80_spill] sm:$0xff] %v8325_v42  ;;  %v8333_v39 = vld [vmem:[%s10010_s5 + $0x318] sm:$0xff]  ;;  %v8338_v59 = vld [vmem:[%s10006_s3 + $0x108] sm:$0xff]  ;;  %v8366_v22 = vld [vmem:[%s10006_s3 + $0xf0] sm:$0xff] }
 0x3b8   :  { %2725 = vmatpush.msra.mxu1 %v8293_v43  ;;  %10951 = vst [vmem:[#allocation71_spill] sm:$0xff] %v8333_v39  ;;  %v8361_v43 = vld [vmem:[%s10010_s5 + $0x2f8] sm:$0xff]  ;;  %v8372_v32 = vld [vmem:[%s10010_s5 + $0x2d0] sm:$0xff]  ;;  %2883 = vmatpush.msrb.mxu0 %v8338_v59 }
 0x3b9   :  { %2745 = vmatpush.msra.mxu2 %v8304_v54  ;;  %2765 = vmatpush.msrb.mxu3 %v8309_v14  ;;  %10952 = vst [vmem:[#allocation73_spill] sm:$0xff] %v8338_v59  ;;  %v8349_v14 = vld [vmem:[%s10010_s5 + $0x2f0] sm:$0xff]  ;;  %v8354_v54 = vld [vmem:[%s10010_s5 + $0xf8] sm:$0xff] }
 0x3ba   :  { %4211 = vst [vmem:[%s10013_s7 + $0x18] sm:$0xff] %v8314_v6  ;;  %2655 = vmatmul.f32.vlgmr.msrb.gmra.mxu1 %v8314_v6  ;;  %2695 = vmatmul.f32.vlgmr.msra.gmra.mxu3 %v8314_v6  ;;  %v8396_v59 = vld [vmem:[%s10010_s5 + $0x2b0] sm:$0xff] }
 0x3bb   :  { %10953 = vst [vmem:[#allocation78_spill] sm:$0xff] %v8349_v14  ;;  %2726 = vmatpush.msra.mxu1 %v8320_v2  ;;  %2746 = vmatpush.msra.mxu2 %v8325_v42  ;;  %v8377_v42 = vld [vmem:[%s10010_s5 + $0xd8] sm:$0xff] }
 0x3bc   :  { %10954 = vst [vmem:[#allocation75_spill] sm:$0xff] %v8354_v54  ;;  %2766 = vmatpush.msrb.mxu3 %v8333_v39  ;;  %v8385_v39 = vld [vmem:[%s10010_s5 + $0x2d8] sm:$0xff]  ;;  %2884 = vmatpush.msrb.mxu0 %v8366_v22 }
 0x3bd   :  { %10955 = vst [vmem:[#allocation77_spill] sm:$0xff] %v8361_v43  ;;  %2727 = vmatpush.msra.mxu1 %v8349_v14  ;;  %2747 = vmatpush.msra.mxu2 %v8354_v54  ;;  %v8390_v2 = vld [vmem:[%s10006_s3 + $0xd8] sm:$0xff]  ;;  %v8415_v14 = vld [vmem:[%s10010_s5 + $0x290] sm:$0xff] }
 0x3be   :  { %10956 = vst [vmem:[#allocation82_spill] sm:$0xff] %v8366_v22  ;;  %2767 = vmatpush.msrb.mxu3 %v8361_v43  ;;  %v8401_v54 = vld [vmem:[%s10010_s5 + $0xb8] sm:$0xff]  ;;  %2885 = vmatpush.msrb.mxu0 %v8390_v2 }
 0x3bf   :  { %10957 = vst [vmem:[#allocation79_spill] sm:$0xff] %v8372_v32  ;;  %2728 = vmatpush.msra.mxu1 %v8372_v32  ;;  %2748 = vmatpush.msra.mxu2 %v8377_v42  ;;  %v8409_v43 = vld [vmem:[%s10010_s5 + $0x2b8] sm:$0xff] }
 0x3c0   :  { %10958 = vst [vmem:[#allocation81_spill] sm:$0xff] %v8377_v42  ;;  %2768 = vmatpush.msrb.mxu3 %v8385_v39  ;;  %v8420_v22 = vld [vmem:[%s10010_s5 + $0x98] sm:$0xff]  ;;  %v8434_v42 = vld [vmem:[%s10010_s5 + $0x270] sm:$0xff] }
 0x3c1   :  { %10959 = vst [vmem:[#allocation85_spill] sm:$0xff] %v8385_v39  ;;  %2729 = vmatpush.msra.mxu1 %v8396_v59  ;;  %2749 = vmatpush.msra.mxu2 %v8401_v54  ;;  %v8428_v39 = vld [vmem:[%s10010_s5 + $0x298] sm:$0xff] }
 0x3c2   :  { %10960 = vst [vmem:[#allocation83_spill] sm:$0xff] %v8396_v59  ;;  %2769 = vmatpush.msrb.mxu3 %v8409_v43  ;;  %v8439_v32 = vld [vmem:[%s10010_s5 + $0x78] sm:$0xff] }
 0x3c3   :  { %10961 = vst [vmem:[#allocation84_spill] sm:$0xff] %v8401_v54  ;;  %2730 = vmatpush.msra.mxu1 %v8415_v14  ;;  %2750 = vmatpush.msra.mxu2 %v8420_v22  ;;  %v8446_v54 = vld [vmem:[%s10010_s5 + $0x278] sm:$0xff] }
 0x3c4   :  { %10962 = vst [vmem:[#allocation88_spill] sm:$0xff] %v8409_v43  ;;  %2770 = vmatpush.msrb.mxu3 %v8428_v39  ;;  %v8452_v43 = vld [vmem:[%s10010_s5 + $0x250] sm:$0xff]  ;;  %v8457_v59 = vld [vmem:[%s10010_s5 + $0x58] sm:$0xff] }
 0x3c5   :  { %10963 = vst [vmem:[#allocation86_spill] sm:$0xff] %v8415_v14  ;;  %2731 = vmatpush.msra.mxu1 %v8434_v42  ;;  %2751 = vmatpush.msra.mxu2 %v8439_v32  ;;  %v8475_v14 = vld [vmem:[%s10010_s5 + $0x38] sm:$0xff] }
 0x3c6   :  { %10964 = vst [vmem:[#allocation87_spill] sm:$0xff] %v8420_v22  ;;  %v8464_v22 = vld [vmem:[%s10010_s5 + $0x258] sm:$0xff]  ;;  %2771 = vmatpush.msrb.mxu3 %v8446_v54 }
 0x3c7   :  { %10965 = vst [vmem:[#allocation89_spill] sm:$0xff] %v8428_v39  ;;  %v8470_v39 = vld [vmem:[%s10010_s5 + $0x230] sm:$0xff]  ;;  %2732 = vmatpush.msra.mxu1 %v8452_v43  ;;  %2752 = vmatpush.msra.mxu2 %v8457_v59 }
 0x3c8   :  { %10966 = vst [vmem:[#allocation90_spill] sm:$0xff] %v8434_v42  ;;  %2772 = vmatpush.msrb.mxu3 %v8464_v22  ;;  %v8493_v42 = vld [vmem:[%s10010_s5 + $0x18] sm:$0xff] }
 0x3c9   :  { %10967 = vst [vmem:[#allocation91_spill] sm:$0xff] %v8439_v32  ;;  %v8482_v32 = vld [vmem:[%s10010_s5 + $0x238] sm:$0xff]  ;;  %2733 = vmatpush.msra.mxu1 %v8470_v39  ;;  %2753 = vmatpush.msra.mxu2 %v8475_v14 }
 0x3ca   :  { %10968 = vst [vmem:[#allocation92_spill] sm:$0xff] %v8446_v54  ;;  %v8488_v54 = vld [vmem:[%s10010_s5 + $0x210] sm:$0xff]  ;;  %2773 = vmatpush.msrb.mxu3 %v8482_v32 }
 0x3cb   :  { %10969 = vst [vmem:[#allocation93_spill] sm:$0xff] %v8457_v59  ;;  %v8500_v59 = vld [vmem:[%s10010_s5 + $0x218] sm:$0xff]  ;;  %2734 = vmatpush.msra.mxu1 %v8488_v54  ;;  %2754 = vmatpush.msra.mxu2 %v8493_v42 }
 0x3cc   :  { %10970 = vst [vmem:[#allocation94_spill] sm:$0xff] %v8464_v22  ;;  %v8508_v22 = vld [vmem:[%s10006_s3 + $0x178] sm:$0xff]  ;;  %2774 = vmatpush.msrb.mxu3 %v8500_v59  ;;  %2735 = vmatmul.f32.vlgmr.msra.gmra.mxu1 %v8314_v6 }
 0x3cd   :  { %10971 = vst [vmem:[#allocation127_spill] sm:$0xff] %v8482_v32  ;;  %2755 = vmatmul.f32.vlgmr.msra.gmra.mxu2 %v8144_v44  ;;  %2775 = vmatmul.f32.vlgmr.msrb.gmra.mxu3 %v8314_v6  ;;  %v8517_v32 = vld [vmem:[%s10006_s3 + $0x160] sm:$0xff] }
 0x3ce   :  { %10972 = vst [vmem:[#allocation95_spill] sm:$0xff] %v8493_v42  ;;  %2899 = vmatpush.msrb.mxu1 %v7569_v5  ;;  %2919 = vmatpush.msrb.mxu2 %v8508_v22  ;;  %v8524_v42 = vld [vmem:[%s10006_s3 + $0x140] sm:$0xff]  ;;  %v8537_v5 = vld [vmem:[%s10006_s3 + $0x128] sm:$0xff] }
 0x3cf   :  { %10973 = vst [vmem:[#allocation96_spill] sm:$0xff] %v8500_v59  ;;  %v8529_v59 = vld [vmem:[%s10006_s3 + $0x148] sm:$0xff]  ;;  %3114 = vmatpush.msra.mxu3 %v7619_v9  ;;  %v8555_v9 = vld [vmem:[%s10006_s3 + $0x118] sm:$0xff] }
 0x3d0   :  { %10974 = vst [vmem:[#allocation103_spill] sm:$0xff] %v8508_v22  ;;  %2900 = vmatpush.msrb.mxu1 %v7579_v11  ;;  %2920 = vmatpush.msrb.mxu2 %v8517_v32  ;;  %v8542_v22 = vld [vmem:[%s10006_s3 + $0x130] sm:$0xff] }
 0x3d1   :  { %10975 = vst [vmem:[#allocation130_spill] sm:$0xff] %v8529_v59  ;;  %3115 = vmatpush.msra.mxu3 %v7624_v21  ;;  %v8550_v11 = vld [vmem:[%s10006_s3 + $0x110] sm:$0xff]  ;;  %v8563_v21 = vld [vmem:[%s10006_s3 + $0xf8] sm:$0xff] }
 0x3d2   :  { %10976 = vst [vmem:[#allocation104_spill] sm:$0xff] %v8542_v22  ;;  %2901 = vmatpush.msrb.mxu1 %v8524_v42  ;;  %2921 = vmatpush.msrb.mxu2 %v8529_v59  ;;  %v8568_v59 = vld [vmem:[%s10006_s3 + $0x100] sm:$0xff] }
 0x3d3   :  { %10977 = vst [vmem:[#allocation133_spill] sm:$0xff] %v8550_v11  ;;  %3116 = vmatpush.msra.mxu3 %v7630_v17  ;;  %v8576_v17 = vld [vmem:[%s10006_s3 + $0xe0] sm:$0xff] }
 0x3d4   :  { %10978 = vst [vmem:[#allocation105_spill] sm:$0xff] %v8555_v9  ;;  %2902 = vmatpush.msrb.mxu1 %v8537_v5  ;;  %2922 = vmatpush.msrb.mxu2 %v8542_v22  ;;  %v8581_v22 = vld [vmem:[%s10006_s3 + $0xe8] sm:$0xff] }
 0x3d5   :  { %10979 = vst [vmem:[#allocation106_spill] sm:$0xff] %v8563_v21  ;;  %3117 = vmatpush.msra.mxu3 %v7637_v26  ;;  %v8618_v26 = vld [vmem:[%s10006_s3 + $0xc0] sm:$0xff] }
 0x3d6   :  { %10980 = vst [vmem:[#allocation108_spill] sm:$0xff] %v8568_v59  ;;  %2903 = vmatpush.msrb.mxu1 %v8550_v11  ;;  %2923 = vmatpush.msrb.mxu2 %v8555_v9 }
 0x3d7   :  { %10981 = vst [vmem:[#allocation109_spill] sm:$0xff] %v8576_v17  ;;  %3118 = vmatpush.msra.mxu3 %v7643_v49  ;;  %v8623_v49 = vld [vmem:[%s10006_s3 + $0xc8] sm:$0xff]  ;;  %2886 = vmatpush.msrb.mxu0 %v8618_v26 }
 0x3d8   :  { %10982 = vst [vmem:[#allocation110_spill] sm:$0xff] %v8581_v22  ;;  %2904 = vmatpush.msrb.mxu1 %v8563_v21  ;;  %2924 = vmatpush.msrb.mxu2 %v8568_v59 }
 0x3d9   :  { %3119 = vmatpush.msra.mxu3 %v7649_v60  ;;  %10983 = vst [vmem:[#allocation111_spill] sm:$0xff] %v8623_v49  ;;  %v8628_v60 = vld [vmem:[%s10006_s3 + $0xd0] sm:$0xff] }
 0x3da   :  { %2905 = vmatpush.msrb.mxu1 %v8576_v17  ;;  %2925 = vmatpush.msrb.mxu2 %v8581_v22  ;;  %10984 = vst [vmem:[#allocation113_spill] sm:$0xff] %v8628_v60  ;;  %v11056_v17 = vld [vmem:[#allocation107_spill] sm:$0xff] }
 0x3db   :  { %3120 = vmatpush.msra.mxu3 %v7655_v15  ;;  %v8636_v15 = vld [vmem:[%s10006_s3 + $0xa8] sm:$0xff] }
 0x3dc   :  { %2906 = vmatpush.msrb.mxu1 %v8623_v49  ;;  %2926 = vmatpush.msrb.mxu2 %v8628_v60 }
 0x3dd   :  { %3121 = vmatpush.msra.mxu3 %v7661_v28  ;;  %v8641_v28 = vld [vmem:[%s10006_s3 + $0xb0] sm:$0xff]  ;;  %2887 = vmatpush.msrb.mxu0 %v8636_v15 }
 0x3de   :  { %10985 = vst [vmem:[#allocation114_spill] sm:$0xff] %v8641_v28  ;;  %2907 = vmatpush.msrb.mxu1 %v8641_v28 }
 0x3df   :  { %3122 = vmatpush.msra.mxu3 %v7667_v34  ;;  %v8646_v34 = vld [vmem:[%s10006_s3 + $0xb8] sm:$0xff] }
 0x3e0   :  { %10986 = vst [vmem:[#allocation115_spill] sm:$0xff] %v8646_v34  ;;  %2927 = vmatpush.msrb.mxu2 %v8646_v34  ;;  %v11044_v34 = vld [vmem:[#allocation54_spill] sm:$0xff] }
 0x3e1   :  { %3123 = vmatpush.msra.mxu3 %v7673_v57  ;;  %v8654_v57 = vld [vmem:[%s10006_s3 + $0x90] sm:$0xff] }
 0x3e2   :  { %2888 = vmatpush.msrb.mxu0 %v8654_v57 }
 0x3e3   :  { %3124 = vmatpush.msra.mxu3 %v7679_v16  ;;  %v8659_v16 = vld [vmem:[%s10006_s3 + $0x98] sm:$0xff] }
 0x3e4   :  { %10987 = vst [vmem:[#allocation116_spill] sm:$0xff] %v8659_v16  ;;  %2908 = vmatpush.msrb.mxu1 %v8659_v16  ;;  %v11042_v16 = vld [vmem:[#allocation52_spill] sm:$0xff] }
 0x3e5   :  { %3125 = vmatpush.msra.mxu3 %v7685_v13  ;;  %v8664_v13 = vld [vmem:[%s10006_s3 + $0xa0] sm:$0xff] }
 0x3e6   :  { %10988 = vst [vmem:[#allocation117_spill] sm:$0xff] %v8664_v13  ;;  %2928 = vmatpush.msrb.mxu2 %v8664_v13  ;;  %v11030_v13 = vld [vmem:[#allocation39_spill] sm:$0xff] }
 0x3e7   :  { %3126 = vmatpush.msra.mxu3 %v7708_v8  ;;  %v8672_v8 = vld [vmem:[%s10006_s3 + $0x78] sm:$0xff] }
 0x3e8   :  { %2889 = vmatpush.msrb.mxu0 %v8672_v8 }
 0x3e9   :  { %3127 = vmatpush.msra.mxu3 %v7732_v7  ;;  %v8677_v7 = vld [vmem:[%s10006_s3 + $0x80] sm:$0xff] }
 0x3ea   :  { %10989 = vst [vmem:[#allocation118_spill] sm:$0xff] %v8677_v7  ;;  %2909 = vmatpush.msrb.mxu1 %v8677_v7 }
 0x3eb   :  { %3128 = vmatpush.msra.mxu3 %v7756_v1  ;;  %v8682_v1 = vld [vmem:[%s10006_s3 + $0x88] sm:$0xff] }
 0x3ec   :  { %10990 = vst [vmem:[#allocation120_spill] sm:$0xff] %v8682_v1  ;;  %2929 = vmatpush.msrb.mxu2 %v8682_v1  ;;  %v11018_v1 = vld [vmem:[#allocation31_spill] sm:$0xff] }
 0x3ed   :  { %3129 = vmatpush.msra.mxu3 %v7780_v47  ;;  %v8690_v47 = vld [vmem:[%s10006_s3 + $0x60] sm:$0xff] }
 0x3ee   :  { %2890 = vmatpush.msrb.mxu0 %v8690_v47 }
 0x3ef   :  { %3194 = vmatpush.msrb.mxu3 %v7808_v12  ;;  %v8695_v12 = vld [vmem:[%s10006_s3 + $0x68] sm:$0xff] }
 0x3f0   :  { %10991 = vst [vmem:[#allocation121_spill] sm:$0xff] %v8695_v12  ;;  %2910 = vmatpush.msrb.mxu1 %v8695_v12 }
 0x3f1   :  { %3195 = vmatpush.msrb.mxu3 %v7832_v33  ;;  %v8700_v33 = vld [vmem:[%s10006_s3 + $0x70] sm:$0xff] }
 0x3f2   :  { %10992 = vst [vmem:[#allocation5_spill] sm:$0xff] %v8700_v33  ;;  %2930 = vmatpush.msrb.mxu2 %v8700_v33  ;;  %v11009_v33 = vld [vmem:[#allocation20_spill] sm:$0xff] }
 0x3f3   :  { %3196 = vmatpush.msrb.mxu3 %v7858_v25  ;;  %v8708_v25 = vld [vmem:[%s10006_s3 + $0x48] sm:$0xff] }
 0x3f4   :  { %2891 = vmatpush.msrb.mxu0 %v8708_v25 }
 0x3f5   :  { %3197 = vmatpush.msrb.mxu3 %v7882_v38  ;;  %v8713_v38 = vld [vmem:[%s10006_s3 + $0x50] sm:$0xff] }
 0x3f6   :  { %10993 = vst [vmem:[#allocation98_spill] sm:$0xff] %v8713_v38  ;;  %2911 = vmatpush.msrb.mxu1 %v8713_v38  ;;  %v11008_v38 = vld [vmem:[#allocation19_spill] sm:$0xff] }
 0x3f7   :  { %3198 = vmatpush.msrb.mxu3 %v7906_v23  ;;  %v8726_v23 = vld [vmem:[%s10006_s3 + $0x30] sm:$0xff] }
 0x3f8   :  { %2892 = vmatpush.msrb.mxu0 %v8726_v23 }
 0x3f9   :  { %3199 = vmatpush.msrb.mxu3 %v7931_v61  ;;  %v8736_v61 = vld [vmem:[%s10006_s3 + $0x40] sm:$0xff] }
 0x3fa   :  { %10996 = vst [vmem:[#allocation63_spill] sm:$0xff] %v8736_v61 }
 0x3fb   :  { %3200 = vmatpush.msrb.mxu3 %v7957_v0  ;;  %v8718_v0 = vld [vmem:[%s10006_s3 + $0x58] sm:$0xff] }
 0x3fc   :  { %10994 = vst [vmem:[#allocation97_spill] sm:$0xff] %v8718_v0  ;;  %2931 = vmatpush.msrb.mxu2 %v8718_v0  ;;  %v11007_v0 = vld [vmem:[#allocation21_spill] sm:$0xff] }
 0x3fd   :  { %3201 = vmatpush.msrb.mxu3 %v7985_v48  ;;  %v8731_v48 = vld [vmem:[%s10006_s3 + $0x38] sm:$0xff] }
 0x3fe   :  { %10995 = vst [vmem:[#allocation66_spill] sm:$0xff] %v8731_v48  ;;  %2912 = vmatpush.msrb.mxu1 %v8731_v48  ;;  %2932 = vmatpush.msrb.mxu2 %v8736_v61  ;;  %v11005_v61 = vld [vmem:[#allocation100_spill] sm:$0xff]  ;;  %v11006_v48 = vld [vmem:[#allocation17_spill] sm:$0xff] }
 0x3ff   :  { %3202 = vmatpush.msrb.mxu3 %v8010_v31  ;;  %v8744_v31 = vld [vmem:[%s10006_s3 + $0x18] sm:$0xff] }
 0x400   :  { %2893 = vmatpush.msrb.mxu0 %v8744_v31 }
 0x401   :  { %3203 = vmatpush.msrb.mxu3 %v8034_v35  ;;  %v8749_v35 = vld [vmem:[%s10006_s3 + $0x20] sm:$0xff] }
 0x402   :  { %10997 = vst [vmem:[#allocation124_spill] sm:$0xff] %v8749_v35  ;;  %2913 = vmatpush.msrb.mxu1 %v8749_v35  ;;  %v11004_v35 = vld [vmem:[#allocation16_spill] sm:$0xff] }
 0x403   :  { %3204 = vmatpush.msrb.mxu3 %v8058_v56  ;;  %v8754_v56 = vld [vmem:[%s10006_s3 + $0x28] sm:$0xff] }
 0x404   :  { %10998 = vst [vmem:[#allocation125_spill] sm:$0xff] %v8754_v56  ;;  %2933 = vmatpush.msrb.mxu2 %v8754_v56  ;;  %v11003_v56 = vld [vmem:[#allocation18_spill] sm:$0xff] }
 0x405   :  { %3205 = vmatpush.msrb.mxu3 %v8085_v46  ;;  %v8767_v46 = vld [vmem:[%s10006_s3 + $0x8] sm:$0xff] }
 0x406   :  { %10999 = vst [vmem:[#allocation126_spill] sm:$0xff] %v8767_v46  ;;  %2914 = vmatpush.msrb.mxu1 %v8767_v46  ;;  %v11010_v46 = vld [vmem:[#allocation24_spill] sm:$0xff] }
 0x407   :  { %3206 = vmatpush.msrb.mxu3 %v8095_v58  ;;  %v8762_v58 = vld [vmem:[%s10006_s3] sm:$0xff] }
 0x408   :  { %2894 = vmatpush.msrb.mxu0 %v8762_v58 }
 0x409   :  { %3207 = vmatpush.msrb.mxu3 %v8102_v45  ;;  %v8772_v45 = vld [vmem:[%s10006_s3 + $0x10] sm:$0xff] }
 0x40a   :  { %11000 = vst [vmem:[#allocation128_spill] sm:$0xff] %v8772_v45  ;;  %2934 = vmatpush.msrb.mxu2 %v8772_v45  ;;  %v11011_v45 = vld [vmem:[#allocation22_spill] sm:$0xff] }
 0x40b   :  { %3208 = vmatpush.msrb.mxu3 %v8111_v50  ;;  %v11001_v50 = vld [vmem:[#allocation4_spill] sm:$0xff] }
 0x40c   :  { %3134 = vmatpush.msra.mxu0 %v11001_v50  ;;  %3174 = vmatpush.msra.mxu2 %v11003_v56  ;;  %v11012_v50 = vld [vmem:[#allocation23_spill] sm:$0xff]  ;;  %v11013_v56 = vld [vmem:[#allocation28_spill] sm:$0xff] }
 0x40d   :  { %3209 = vmatpush.msrb.mxu3 %v8124_v3  ;;  %v11002_v3 = vld [vmem:[#allocation13_spill] sm:$0xff] }
 0x40e   :  { %3154 = vmatpush.msra.mxu1 %v11002_v3  ;;  %3135 = vmatpush.msra.mxu0 %v11004_v35  ;;  %v11014_v35 = vld [vmem:[#allocation9_spill] sm:$0xff] }
 0x40f   :  { %3175 = vmatpush.msra.mxu2 %v11006_v48  ;;  %v11016_v48 = vld [vmem:[#allocation6_spill] sm:$0xff] }
 0x410   :  { %3155 = vmatpush.msra.mxu1 %v11005_v61  ;;  %3136 = vmatpush.msra.mxu0 %v11007_v0  ;;  %v11015_v61 = vld [vmem:[#allocation26_spill] sm:$0xff]  ;;  %v11017_v0 = vld [vmem:[#allocation27_spill] sm:$0xff] }
 0x411   :  { %3176 = vmatpush.msra.mxu2 %v11009_v33  ;;  %v11019_v33 = vld [vmem:[#allocation29_spill] sm:$0xff] }
 0x412   :  { %3156 = vmatpush.msra.mxu1 %v11008_v38  ;;  %3137 = vmatpush.msra.mxu0 %v11010_v46  ;;  %v11020_v46 = vld [vmem:[#allocation30_spill] sm:$0xff] }
 0x413   :  { %3177 = vmatpush.msra.mxu2 %v11012_v50  ;;  %v11022_v50 = vld [vmem:[#allocation112_spill] sm:$0xff] }
 0x414   :  { %3157 = vmatpush.msra.mxu1 %v11011_v45  ;;  %3138 = vmatpush.msra.mxu0 %v11013_v56  ;;  %v11021_v45 = vld [vmem:[#allocation32_spill] sm:$0xff]  ;;  %v11023_v56 = vld [vmem:[#allocation35_spill] sm:$0xff] }
 0x415   :  { %3178 = vmatpush.msra.mxu2 %v11016_v48  ;;  %v152_v7 = vadd.f32 %v11022_v50, %v11021_v45 }
 0x416   :  { %3158 = vmatpush.msra.mxu1 %v11015_v61  ;;  %3139 = vmatpush.msra.mxu0 %v11017_v0  ;;  %v11025_v61 = vld [vmem:[#allocation34_spill] sm:$0xff] }
 0x417   :  { %3179 = vmatpush.msra.mxu2 %v11019_v33  ;;  %v11026_v0 = vld [vmem:[#allocation38_spill] sm:$0xff] }
 0x418   :  { %3159 = vmatpush.msra.mxu1 %v11018_v1  ;;  %3140 = vmatpush.msra.mxu0 %v11020_v46  ;;  %v11028_v1 = vld [vmem:[#allocation37_spill] sm:$0xff] }
 0x419   :  { %v11029_v46 = vld [vmem:[#allocation41_spill] sm:$0xff] }
 0x41a   :  { %3160 = vmatpush.msra.mxu1 %v11023_v56  ;;  %3141 = vmatpush.msra.mxu0 %v11025_v61  ;;  %v11032_v56 = vld [vmem:[#allocation45_spill] sm:$0xff]  ;;  %v11034_v61 = vld [vmem:[#allocation44_spill] sm:$0xff] }
 0x41c   :  { %3161 = vmatpush.msra.mxu1 %v11026_v0  ;;  %3142 = vmatpush.msra.mxu0 %v11028_v1  ;;  %v11035_v0 = vld [vmem:[#allocation48_spill] sm:$0xff]  ;;  %v11037_v1 = vld [vmem:[#allocation47_spill] sm:$0xff] }
 0x41e   :  { %3162 = vmatpush.msra.mxu1 %v11029_v46 }
 0x420   :  { %3163 = vmatpush.msra.mxu1 %v11032_v56 }
 0x422   :  { %3164 = vmatpush.msra.mxu1 %v11035_v0  ;;  %v11043_v0 = vld [vmem:[#allocation53_spill] sm:$0xff] }
 0x427   :  { %v2401_v3 = vpop.f32.mrf.mxu1 }
 0x428   :  { %v2444_v12 = vadd.f32 %v2401_v3, %v11014_v35  ;;  %v11024_v3 = vld [vmem:[#allocation33_spill] sm:$0xff] }
 0x429   :  { %3180 = vmatpush.msra.mxu2 %v11024_v3  ;;  %v11033_v3 = vld [vmem:[#allocation43_spill] sm:$0xff] }
 0x42a   :  { %v4212_v38 = vmul.f32 -1.442695, %v2444_v12  ;;  %v11027_v12 = vld [vmem:[#allocation36_spill] sm:$0xff] }
 0x42b   :  { %3181 = vmatpush.msra.mxu2 %v11027_v12  ;;  %v11036_v12 = vld [vmem:[#allocation46_spill] sm:$0xff] }
 0x42c   :  { %4324 = vpow2.f32 %v4212_v38  ;;  %v11031_v38 = vld [vmem:[#allocation40_spill] sm:$0xff] }
 0x42d   :  { %v2421_v35 = vpop.f32.mrf.mxu2  ;;  %3182 = vmatpush.msra.mxu2 %v11030_v13  ;;  %3143 = vmatpush.msra.mxu0 %v11031_v38  ;;  %v11038_v13 = vld [vmem:[#allocation10_spill] sm:$0xff] }
 0x42e   :  { %v2445_v48 = vadd.f32 %v2421_v35, %v152_v7  ;;  %v2636_v35 = vpop.f32.mrf.mxu0  ;;  %v11039_v38 = vld [vmem:[#allocation50_spill] sm:$0xff] }
 0x42f   :  { %3183 = vmatpush.msra.mxu2 %v11033_v3  ;;  %3144 = vmatpush.msra.mxu0 %v11034_v61  ;;  %v2637_v46 = vadd.f32 %v2636_v35, %v11038_v13  ;;  %v11045_v35 = vld [vmem:[#allocation11_spill] sm:$0xff] }
 0x430   :  { %v4213_v33 = vmul.f32 -1.442695, %v2445_v48  ;;  %v2441_v48 = vpop.f32.mrf.mxu3  ;;  %3165 = vmatpush.msra.mxu1 %v11039_v38  ;;  %v11046_v38 = vld [vmem:[#allocation68_spill] sm:$0xff] }
 0x431   :  { %3184 = vmatpush.msra.mxu2 %v11036_v12  ;;  %3145 = vmatpush.msra.mxu0 %v11037_v1 }
 0x432   :  { %v4325_v50 = vpop.eup %4324  ;;  %4326 = vpow2.f32 %v4213_v33  ;;  %v11040_v33 = vld [vmem:[#allocation49_spill] sm:$0xff]  ;;  %3166 = vmatpush.msra.mxu1 %v11042_v16  ;;  %v11049_v16 = vld [vmem:[#allocation59_spill] sm:$0xff] }
 0x433   :  { %v2452_v7 = vadd.f32 1.0, %v4325_v50  ;;  %3185 = vmatpush.msra.mxu2 %v11040_v33  ;;  %v11041_v50 = vld [vmem:[#allocation64_spill] sm:$0xff]  ;;  %v11047_v33 = vld [vmem:[#allocation55_spill] sm:$0xff] }
 0x434   :  { %3146 = vmatpush.msra.mxu0 %v11041_v50  ;;  %3167 = vmatpush.msra.mxu1 %v11046_v38  ;;  %v11048_v50 = vld [vmem:[#allocation56_spill] sm:$0xff] }
 0x435   :  { %4328 = vrcp.f32 %v2452_v7  ;;  %3186 = vmatpush.msra.mxu2 %v11043_v0  ;;  %v11052_v0 = vld [vmem:[#allocation62_spill] sm:$0xff]  ;;  %v11053_v38 = vld [vmem:[#allocation60_spill] sm:$0xff]  ;;  %v2463_v60 = vand.u32 2147483647, %v2452_v7  ;;  %vm2459_vm10 = vweird.f32 %v2452_v7 }
 0x436   :  { %v2676_v3 = vpop.f32.mrf.mxu2  ;;  %3147 = vmatpush.msra.mxu0 %v11044_v34  ;;  %3168 = vmatpush.msra.mxu1 %v11049_v16  ;;  %v11051_v34 = vld [vmem:[#allocation58_spill] sm:$0xff] }
 0x437   :  { %v2656_v56 = vpop.f32.mrf.mxu1  ;;  %v2677_v13 = vadd.f32 %v2676_v3, %v11045_v35  ;;  %3187 = vmatpush.msra.mxu2 %v11047_v33  ;;  %v2465_v33 = vand.u32 2147483648, %v2452_v7  ;;  %vm2464_vm12 = vcmp.eq.f32.partialorder %v2463_v60, 8.507059e+37 }
 0x438   :  { %v4327_v45 = vpop.eup %4326  ;;  %v2657_v61 = vadd.f32 %v2656_v56, %v2637_v46  ;;  %3148 = vmatpush.msra.mxu0 %v11048_v50  ;;  %3169 = vmatpush.msra.mxu1 %v11052_v0 }
 0x439   :  { %v8820_v12 = vadd.f32 1.0, %v4327_v45  ;;  %v11050_v45 = vld [vmem:[#allocation57_spill] sm:$0xff] }
 0x43a   :  { %v4214_v1 = vmul.f32 -1.442695, %v2657_v61  ;;  %3188 = vmatpush.msra.mxu2 %v11050_v45  ;;  %3149 = vmatpush.msra.mxu0 %v11051_v34  ;;  %v2466_v45 = vor.u32 1.1754944e-38, %v2465_v33  ;;  %v11054_v34 = vld [vmem:[#allocation72_spill] sm:$0xff] }
 0x43b   :  { %v4329_v28 = vpop.eup %4328  ;;  %4330 = vrcp.f32 %v8820_v12  ;;  %v2484_v0 = vadd.f32 %v11054_v34, %v2441_v48  ;;  %vm2474_vm14 = vweird.f32 %v8820_v12 }
 0x43c   :  { %v2455_v46 = vmul.f32 %v4329_v28, %v2452_v7  ;;  %4332 = vpow2.f32 %v4214_v1  ;;  %3189 = vmatpush.msra.mxu2 %v11053_v38  ;;  %vm2460_vm9 = vweird.f32 %v4329_v28 }
 0x43d   :  { %v2696_v56 = vpop.f32.mrf.mxu3  ;;  %vm2461_vm11 = vmor %vm2459_vm10, %vm2460_vm9 }
 0x43e   :  { %v2456_v61 = vsub.f32 1.0, %v2455_v46  ;;  %v2697_v3 = vadd.f32 %v2696_v56, %v2677_v13 }
 0x440   :  { %v2457_v35 = vmul.f32 %v4329_v28, %v2456_v61  ;;  %v4215_v50 = vmul.f32 -1.442695, %v2697_v3  ;;  %v11055_v61 = vld [vmem:[#allocation51_spill] sm:$0xff] }
 0x441   :  { %v4331_v49 = vpop.eup %4330  ;;  %v193_v3 = vadd.f32 %v11056_v17, %v11055_v61 }
 0x442   :  { %v4333_v1 = vpop.eup %4332  ;;  %v2470_v16 = vmul.f32 %v4331_v49, %v8820_v12  ;;  %v2458_v22 = vadd.f32 %v4329_v28, %v2457_v35  ;;  %4334 = vpow2.f32 %v4215_v50  ;;  %vm2475_vm13 = vweird.f32 %v4331_v49 }
 0x443   :  { %v2785_v46 = vadd.f32 1.0, %v4333_v1  ;;  %vm8843_vm15 = vmor %vm2474_vm14, %vm2475_vm13 }
 0x444   :  { %v2471_v13 = vsub.f32 1.0, %v2470_v16  ;;  %v2462_v56 = vsel %vm2461_vm11, %v4329_v28, %v2458_v22  ;;  %v2480_v22 = vand.u32 2147483648, %v8820_v12  ;;  %v2478_v28 = vand.u32 2147483647, %v8820_v12  ;;  %v2716_v12 = vpop.f32.mrf.mxu0 }
 0x445   :  { %v2467_v38 = vsel %vm2464_vm12, %v2466_v45, %v2462_v56  ;;  %4336 = vrcp.f32 %v2785_v46  ;;  %v2796_v16 = vand.u32 2147483647, %v2785_v46  ;;  %v11059_v56 = vld [vmem:[#allocation14_spill] sm:$0xff]  ;;  %vm2792_vm2 = vweird.f32 %v2785_v46 }
 0x446   :  { %v2485_v59 = vmul.f32 %v2484_v0, %v2467_v38  ;;  %v2472_v21 = vmul.f32 %v4331_v49, %v2471_v13  ;;  %v2481_v48 = vor.u32 1.1754944e-38, %v2480_v22  ;;  %vm2479_vm1 = vcmp.eq.f32.partialorder %v2478_v28, 8.507059e+37 }
 0x447   :  { %vm2797_vm4 = vcmp.eq.f32.partialorder %v2796_v16, 8.507059e+37  ;;  %v11075_v16 = vld [vmem:[#allocation79_spill] sm:$0xff] }
 0x448   :  { %v4335_v9 = vpop.eup %4334  ;;  %v2486_v11 = vadd.f32 %v2485_v59, %v193_v3  ;;  %v2473_v33 = vadd.f32 %v4331_v49, %v2472_v21 }
 0x449   :  { %v8837_v35 = vadd.f32 1.0, %v4335_v9  ;;  %v2798_v9 = vand.u32 2147483648, %v2785_v46 }
 0x44a   :  { %4338 = vtanh.f32 %v2486_v11  ;;  %v2477_v11 = vsel %vm8843_vm15, %v4331_v49, %v2473_v33  ;;  %v2736_v33 = vpop.f32.mrf.mxu1 }
 0x44b   :  { %v4337_v7 = vpop.eup %4336  ;;  %4340 = vrcp.f32 %v8837_v35  ;;  %v2482_v0 = vsel %vm2479_vm1, %v2481_v48, %v2477_v11  ;;  %v2799_v17 = vor.u32 1.1754944e-38, %v2798_v9  ;;  %vm2807_vm6 = vweird.f32 %v8837_v35  ;;  %v11072_v9 = vld [vmem:[#allocation78_spill] sm:$0xff] }
 0x44c   :  { %v2788_v60 = vmul.f32 %v4337_v7, %v2785_v46  ;;  %vm2793_vm0 = vweird.f32 %v4337_v7 }
 0x44d   :  { %vm2794_vm3 = vmor %vm2792_vm2, %vm2793_vm0 }
 0x44e   :  { %v2789_v59 = vsub.f32 1.0, %v2788_v60 }
 0x450   :  { %v4339_v21 = vpop.eup %4338  ;;  %v2756_v50 = vpop.f32.mrf.mxu2  ;;  %v2790_v1 = vmul.f32 %v4337_v7, %v2789_v59  ;;  %v2717_v59 = vadd.f32 %v2716_v12, %v6083_v18  ;;  %v11078_v12 = vld [vmem:[#allocation83_spill] sm:$0xff] }
 0x451   :  { %v4341_v45 = vpop.eup %4340  ;;  %v2488_v13 = vsub.f32 %v8144_v44, %v4339_v21  ;;  %v2757_v34 = vadd.f32 %v2756_v50, %v11059_v56  ;;  %v2776_v3 = vpop.f32.mrf.mxu3 }
 0x452   :  { %v2803_v38 = vmul.f32 %v4341_v45, %v8837_v35  ;;  %v2791_v60 = vadd.f32 %v4337_v7, %v2790_v1  ;;  %v2737_v11 = vadd.f32 %v2736_v33, %v2717_v59  ;;  %vm2808_vm5 = vweird.f32 %v4341_v45  ;;  %v11074_v1 = vld [vmem:[#allocation77_spill] sm:$0xff]  ;;  %v11090_v33 = vld [vmem:[#allocation95_spill] sm:$0xff]  ;;  %v11097_v59 = vld [vmem:[#allocation106_spill] sm:$0xff] }
 0x453   :  { %v2489_v49 = vmul.f32 %v2488_v13, %v2482_v0  ;;  %v2777_v22 = vadd.f32 %v2776_v3, %v2757_v34  ;;  %vm2809_vm7 = vmor %vm2807_vm6, %vm2808_vm5  ;;  %v11077_v13 = vld [vmem:[#allocation85_spill] sm:$0xff]  ;;  %v11080_v34 = vld [vmem:[#allocation88_spill] sm:$0xff] }
 0x454   :  { %v2804_v28 = vsub.f32 1.0, %v2803_v38  ;;  %v2795_v61 = vsel %vm2794_vm3, %v4337_v7, %v2791_v60  ;;  %v2813_v7 = vand.u32 2147483648, %v8837_v35  ;;  %v11081_v0 = vld [vmem:[#allocation86_spill] sm:$0xff]  ;;  %v11082_v38 = vld [vmem:[#allocation87_spill] sm:$0xff] }
 0x455   :  { %v8854_v44 = vadd.f32 %v4339_v21, %v2489_v49  ;;  %v2800_v50 = vsel %vm2797_vm4, %v2799_v17, %v2795_v61  ;;  %v11073_v21 = vld [vmem:[#allocation75_spill] sm:$0xff]  ;;  %v11084_v3 = vld [vmem:[#allocation90_spill] sm:$0xff]  ;;  %v11087_v49 = vld [vmem:[#allocation93_spill] sm:$0xff] }
 0x456   :  { %v2817_v48 = vmul.f32 %v2800_v50, %v2777_v22  ;;  %v2805_v56 = vmul.f32 %v4341_v45, %v2804_v28  ;;  %v11085_v60 = vld [vmem:[#allocation91_spill] sm:$0xff]  ;;  %v11093_v22 = vld [vmem:[#allocation130_spill] sm:$0xff]  ;;  %v11096_v17 = vld [vmem:[#allocation105_spill] sm:$0xff] }
 0x457   :  { %2895 = vmatmul.f32.vlgmr.msrb.gmra.mxu0 %v8854_v44  ;;  %2915 = vmatmul.f32.vlgmr.msrb.gmra.mxu1 %v8854_v44  ;;  %v11098_v28 = vld [vmem:[#allocation108_spill] sm:$0xff]  ;;  %v11101_v50 = vld [vmem:[#allocation111_spill] sm:$0xff] }
 0x458   :  { %v2818_v46 = vadd.f32 %v2817_v48, %v2737_v11  ;;  %2935 = vmatmul.f32.vlgmr.msrb.gmra.mxu2 %v8854_v44  ;;  %3130 = vmatmul.f32.vlgmr.msra.gmra.mxu3 %v8854_v44  ;;  %v2806_v61 = vadd.f32 %v4341_v45, %v2805_v56  ;;  %v11079_v56 = vld [vmem:[#allocation84_spill] sm:$0xff]  ;;  %v11102_v11 = vld [vmem:[#allocation113_spill] sm:$0xff] }
 0x459   :  { %3214 = vmatpush.msrb.mxu0 %v8149_v27  ;;  %3234 = vmatpush.msrb.mxu1 %v8154_v41  ;;  %v2811_v27 = vand.u32 2147483647, %v8837_v35  ;;  %v11071_v35 = vld [vmem:[#allocation82_spill] sm:$0xff]  ;;  %v11105_v48 = vld [vmem:[#allocation116_spill] sm:$0xff] }
 0x45a   :  { %4342 = vtanh.f32 %v2818_v46  ;;  %3254 = vmatpush.msrb.mxu2 %v8162_v53  ;;  %3374 = vmatpush.msra.mxu3 %v8197_v51  ;;  %v2810_v41 = vsel %vm2809_vm7, %v4341_v45, %v2806_v61  ;;  %v11076_v45 = vld [vmem:[#allocation81_spill] sm:$0xff]  ;;  %v11107_v61 = vld [vmem:[#allocation118_spill] sm:$0xff] }
 0x45b   :  { %3215 = vmatpush.msrb.mxu0 %v8169_v37  ;;  %3235 = vmatpush.msrb.mxu1 %v8174_v63  ;;  %v2814_v37 = vor.u32 1.1754944e-38, %v2813_v7  ;;  %vm2812_vm8 = vcmp.eq.f32.partialorder %v2811_v27, 8.507059e+37  ;;  %v11106_v46 = vld [vmem:[#allocation117_spill] sm:$0xff]  ;;  %v11108_v7 = vld [vmem:[#allocation120_spill] sm:$0xff] }
 0x45c   :  { %3255 = vmatpush.msrb.mxu2 %v8181_v30  ;;  %3375 = vmatpush.msra.mxu3 %v8211_v19  ;;  %v11060_v30 = vld [vmem:[#allocation61_spill] sm:$0xff]  ;;  %v11063_v19 = vld [vmem:[#allocation70_spill] sm:$0xff] }
 0x45d   :  { %3216 = vmatpush.msrb.mxu0 %v8187_v52  ;;  %3236 = vmatpush.msrb.mxu1 %v8192_v4  ;;  %v2815_v52 = vsel %vm2812_vm8, %v2814_v37, %v2810_v41  ;;  %v11061_v4 = vld [vmem:[#allocation65_spill] sm:$0xff] }
 0x45e   :  { %3256 = vmatpush.msrb.mxu2 %v8206_v55  ;;  %3376 = vmatpush.msra.mxu3 %v8273_v20  ;;  %v11062_v55 = vld [vmem:[#allocation99_spill] sm:$0xff]  ;;  %v11069_v20 = vld [vmem:[#allocation80_spill] sm:$0xff]  ;;  %v11109_v27 = vld [vmem:[#allocation121_spill] sm:$0xff] }
 0x45f   :  { %3217 = vmatpush.msrb.mxu0 %v8218_v24  ;;  %3237 = vmatpush.msrb.mxu1 %v8223_v29  ;;  %v11064_v29 = vld [vmem:[#allocation76_spill] sm:$0xff]  ;;  %v11110_v41 = vld [vmem:[#allocation5_spill] sm:$0xff] }
 0x460   :  { %v4343_v53 = vpop.eup %4342  ;;  %3257 = vmatpush.msrb.mxu2 %v8233_v40  ;;  %3170 = vmatmul.f32.vlgmr.msra.gmra.mxu1 %v8854_v44  ;;  %v11065_v40 = vld [vmem:[#allocation73_spill] sm:$0xff] }
 0x461   :  { %v2820_v63 = vsub.f32 %v8314_v6, %v4343_v53  ;;  %3210 = vmatmul.f32.vlgmr.msrb.gmra.mxu3 %v8854_v44  ;;  %3218 = vmatpush.msrb.mxu0 %v11060_v30  ;;  %v11066_v6 = vld [vmem:[#allocation67_spill] sm:$0xff]  ;;  %v11112_v37 = vld [vmem:[#allocation97_spill] sm:$0xff] }
 0x462   :  { %3238 = vmatpush.msrb.mxu1 %v8256_v62  ;;  %3258 = vmatpush.msrb.mxu2 %v11061_v4  ;;  %v11067_v62 = vld [vmem:[#allocation69_spill] sm:$0xff]  ;;  %v11114_v30 = vld [vmem:[#allocation63_spill] sm:$0xff] }
 0x463   :  { %v2821_v51 = vmul.f32 %v2820_v63, %v2815_v52  ;;  %3219 = vmatpush.msrb.mxu0 %v8268_v36  ;;  %3377 = vmatpush.msra.mxu3 %v8298_v10  ;;  %v11068_v36 = vld [vmem:[#allocation74_spill] sm:$0xff]  ;;  %v11070_v10 = vld [vmem:[#allocation71_spill] sm:$0xff]  ;;  %v11115_v52 = vld [vmem:[#allocation124_spill] sm:$0xff] }
 0x464   :  { %3239 = vmatpush.msrb.mxu1 %v11062_v55  ;;  %3259 = vmatpush.msrb.mxu2 %v11063_v19  ;;  %v11113_v63 = vld [vmem:[#allocation66_spill] sm:$0xff]  ;;  %v11116_v4 = vld [vmem:[#allocation125_spill] sm:$0xff]  ;;  %v11118_v55 = vld [vmem:[#allocation128_spill] sm:$0xff] }
 0x465   :  { %v8888_v24 = vadd.f32 %v4343_v53, %v2821_v51  ;;  %3220 = vmatpush.msrb.mxu0 %v11064_v29  ;;  %3378 = vmatpush.msra.mxu3 %v11065_v40  ;;  %v11111_v53 = vld [vmem:[#allocation98_spill] sm:$0xff]  ;;  %v8998_v19 = vld [vmem:[%s10010_s5 + $0x180] sm:$0xff] }
 0x466   :  { %3240 = vmatpush.msrb.mxu1 %v11066_v6  ;;  %3260 = vmatpush.msrb.mxu2 %v11067_v62  ;;  %v11117_v51 = vld [vmem:[#allocation126_spill] sm:$0xff]  ;;  %v9004_v29 = vld [vmem:[%s10010_s5 + $0x160] sm:$0xff] }
 0x467   :  { %4216 = vst [vmem:[%s10013_s7 + $0x20] sm:$0xff] %v8888_v24  ;;  %3150 = vmatmul.f32.vlgmr.msra.gmra.mxu0 %v8888_v24  ;;  %3190 = vmatmul.f32.vlgmr.msra.gmra.mxu2 %v8888_v24  ;;  %v9010_v40 = vld [vmem:[%s10010_s5 + $0x140] sm:$0xff] }
 0x468   :  { %3221 = vmatpush.msrb.mxu0 %v11068_v36  ;;  %3241 = vmatpush.msrb.mxu1 %v11069_v20  ;;  %v9016_v6 = vld [vmem:[%s10010_s5 + $0x120] sm:$0xff] }
 0x469   :  { %3261 = vmatpush.msrb.mxu2 %v11070_v10  ;;  %3379 = vmatpush.msra.mxu3 %v11071_v35  ;;  %v9022_v62 = vld [vmem:[%s10010_s5 + $0x100] sm:$0xff] }
 0x46a   :  { %3222 = vmatpush.msrb.mxu0 %v11072_v9  ;;  %3242 = vmatpush.msrb.mxu1 %v11073_v21  ;;  %v9028_v36 = vld [vmem:[%s10010_s5 + $0xe0] sm:$0xff]  ;;  %v9057_v21 = vld [vmem:[%s10010_s5 + $0x1e8] sm:$0xff] }
 0x46b   :  { %3262 = vmatpush.msrb.mxu2 %v11074_v1  ;;  %3380 = vmatpush.msra.mxu3 %v8390_v2  ;;  %v11083_v2 = vld [vmem:[#allocation89_spill] sm:$0xff]  ;;  %v9034_v20 = vld [vmem:[%s10010_s5 + $0xc0] sm:$0xff] }
 0x46c   :  { %3223 = vmatpush.msrb.mxu0 %v11075_v16  ;;  %3243 = vmatpush.msrb.mxu1 %v11076_v45  ;;  %v9040_v10 = vld [vmem:[%s10010_s5 + $0xa0] sm:$0xff]  ;;  %v9062_v1 = vld [vmem:[%s10010_s5 + $0x3e8] sm:$0xff] }
 0x46d   :  { %3263 = vmatpush.msrb.mxu2 %v11077_v13  ;;  %3381 = vmatpush.msra.mxu3 %v8618_v26  ;;  %v11086_v26 = vld [vmem:[#allocation92_spill] sm:$0xff]  ;;  %v9081_v13 = vld [vmem:[%s10010_s5 + $0x1c8] sm:$0xff] }
 0x46e   :  { %3224 = vmatpush.msrb.mxu0 %v11078_v12  ;;  %3244 = vmatpush.msrb.mxu1 %v11079_v56  ;;  %v9046_v35 = vld [vmem:[%s10010_s5 + $0x80] sm:$0xff]  ;;  %v9086_v12 = vld [vmem:[%s10010_s5 + $0x3c8] sm:$0xff] }
 0x46f   :  { %3264 = vmatpush.msrb.mxu2 %v11080_v34  ;;  %3382 = vmatpush.msra.mxu3 %v8636_v15  ;;  %v11088_v15 = vld [vmem:[#allocation94_spill] sm:$0xff]  ;;  %v9052_v9 = vld [vmem:[%s10010_s5 + $0x3e0] sm:$0xff] }
 0x470   :  { %3225 = vmatpush.msrb.mxu0 %v11081_v0  ;;  %3245 = vmatpush.msrb.mxu1 %v11082_v38  ;;  %v9069_v16 = vld [vmem:[%s10010_s5 + $0x60] sm:$0xff]  ;;  %v9105_v0 = vld [vmem:[%s10010_s5 + $0x1a8] sm:$0xff] }
 0x471   :  { %3265 = vmatpush.msrb.mxu2 %v11083_v2  ;;  %3383 = vmatpush.msra.mxu3 %v8654_v57  ;;  %v11089_v57 = vld [vmem:[#allocation127_spill] sm:$0xff]  ;;  %v9076_v45 = vld [vmem:[%s10010_s5 + $0x3c0] sm:$0xff]  ;;  %v9110_v38 = vld [vmem:[%s10010_s5 + $0x3a8] sm:$0xff] }
 0x472   :  { %3226 = vmatpush.msrb.mxu0 %v11084_v3  ;;  %3246 = vmatpush.msrb.mxu1 %v11085_v60  ;;  %v9093_v56 = vld [vmem:[%s10010_s5 + $0x40] sm:$0xff]  ;;  %v9129_v60 = vld [vmem:[%s10010_s5 + $0x188] sm:$0xff] }
 0x473   :  { %3266 = vmatpush.msrb.mxu2 %v11086_v26  ;;  %3384 = vmatpush.msra.mxu3 %v8672_v8  ;;  %v11091_v8 = vld [vmem:[#allocation96_spill] sm:$0xff]  ;;  %v9134_v26 = vld [vmem:[%s10010_s5 + $0x388] sm:$0xff] }
 0x474   :  { %3227 = vmatpush.msrb.mxu0 %v8452_v43  ;;  %3247 = vmatpush.msrb.mxu1 %v11087_v49  ;;  %v3372_v43 = vld [vmem:[%s10006_s3 + $0x170] sm:$0xff]  ;;  %v9100_v34 = vld [vmem:[%s10010_s5 + $0x3a0] sm:$0xff] }
 0x475   :  { %3267 = vmatpush.msrb.mxu2 %v11088_v15  ;;  %3385 = vmatpush.msra.mxu3 %v8690_v47  ;;  %v8953_v47 = vld [vmem:[%s10010_s5 + $0x1c0] sm:$0xff] }
 0x476   :  { %3228 = vmatpush.msrb.mxu0 %v8470_v39  ;;  %3248 = vmatpush.msrb.mxu1 %v8475_v14  ;;  %v8942_v14 = vld [vmem:[%s10010_s5 + $0x1e0] sm:$0xff]  ;;  %v11092_v39 = vld [vmem:[#allocation103_spill] sm:$0xff] }
 0x477   :  { %3268 = vmatpush.msrb.mxu2 %v11089_v57  ;;  %3386 = vmatpush.msra.mxu3 %v8708_v25  ;;  %v8961_v25 = vld [vmem:[%s10010_s5 + $0x1a0] sm:$0xff]  ;;  %v11120_v57 = vld [vmem:[#allocation122_spill] sm:$0xff] }
 0x478   :  { %3229 = vmatpush.msrb.mxu0 %v8488_v54  ;;  %3249 = vmatpush.msrb.mxu1 %v11090_v33  ;;  %v3369_v54 = vld [vmem:[%s10006_s3 + $0x158] sm:$0xff]  ;;  %v9117_v2 = vld [vmem:[%s10010_s5 + $0x20] sm:$0xff] }
 0x479   :  { %3269 = vmatpush.msrb.mxu2 %v11091_v8  ;;  %3230 = vmatmul.f32.vlgmr.msrb.gmra.mxu0 %v8888_v24  ;;  %v9124_v3 = vld [vmem:[%s10010_s5 + $0x380] sm:$0xff]  ;;  %v9155_v8 = vld [vmem:[%s10010_s5 + $0x168] sm:$0xff] }
 0x47a   :  { %3250 = vmatmul.f32.vlgmr.msrb.gmra.mxu1 %v8854_v44  ;;  %3270 = vmatmul.f32.vlgmr.msrb.gmra.mxu2 %v8888_v24  ;;  %v9141_v49 = vld [vmem:[%s10010_s5] sm:$0xff] }
 0x47b   :  { %3394 = vmatpush.msra.mxu0 %v3372_v43  ;;  %3414 = vmatpush.msra.mxu1 %v11092_v39  ;;  %v11119_v15 = vld [vmem:[#allocation32_spill] sm:$0xff] }
 0x47c   :  { %3609 = vmatpush.msra.mxu2 %v8942_v14  ;;  %3387 = vmatpush.msra.mxu3 %v8726_v23  ;;  %v11095_v23 = vld [vmem:[#allocation133_spill] sm:$0xff]  ;;  %v155_v33 = vadd.f32 %v11120_v57, %v11119_v15  ;;  %v9150_v43 = vld [vmem:[%s10010_s5 + $0x360] sm:$0xff]  ;;  %v9288_v57 = vld [vmem:[%s10010_s5 + $0x150] sm:$0xff] }
 0x47d   :  { %3395 = vmatpush.msra.mxu0 %v3369_v54  ;;  %3415 = vmatpush.msra.mxu1 %v8517_v32  ;;  %v11094_v32 = vld [vmem:[#allocation104_spill] sm:$0xff]  ;;  %v9160_v54 = vld [vmem:[%s10010_s5 + $0x368] sm:$0xff]  ;;  %11138 = vst [vmem:[#allocation20_spill] sm:$0xff] %v9288_v57 }
 0x47e   :  { %3610 = vmatpush.msra.mxu2 %v8953_v47  ;;  %3388 = vmatpush.msra.mxu3 %v8744_v31  ;;  %v11099_v31 = vld [vmem:[#allocation109_spill] sm:$0xff] }
 0x47f   :  { %3396 = vmatpush.msra.mxu0 %v8524_v42  ;;  %3416 = vmatpush.msra.mxu1 %v11093_v22  ;;  %v11100_v42 = vld [vmem:[#allocation110_spill] sm:$0xff] }
 0x480   :  { %3611 = vmatpush.msra.mxu2 %v8961_v25  ;;  %3389 = vmatpush.msra.mxu3 %v8762_v58  ;;  %v11103_v58 = vld [vmem:[#allocation114_spill] sm:$0xff] }
 0x481   :  { %3397 = vmatpush.msra.mxu0 %v8537_v5  ;;  %3417 = vmatpush.msra.mxu1 %v11094_v32  ;;  %v11104_v5 = vld [vmem:[#allocation115_spill] sm:$0xff]  ;;  %v9167_v32 = vld [vmem:[%s10010_s5 + $0x1f0] sm:$0xff] }
 0x482   :  { %3612 = vmatpush.msra.mxu2 %v8998_v19  ;;  %3629 = vmatpush.msrb.mxu3 %v9052_v9 }
 0x483   :  { %3398 = vmatpush.msra.mxu0 %v11095_v23  ;;  %3418 = vmatpush.msra.mxu1 %v11096_v17  ;;  %v11121_v23 = vld [vmem:[#allocation15_spill] sm:$0xff] }
 0x484   :  { %3613 = vmatpush.msra.mxu2 %v9004_v29  ;;  %3630 = vmatpush.msrb.mxu3 %v9076_v45 }
 0x485   :  { %3399 = vmatpush.msra.mxu0 %v11097_v59  ;;  %3419 = vmatpush.msra.mxu1 %v11098_v28  ;;  %v9175_v28 = vld [vmem:[%s10010_s5 + $0x340] sm:$0xff] }
 0x486   :  { %3614 = vmatpush.msra.mxu2 %v9010_v40  ;;  %3631 = vmatpush.msrb.mxu3 %v9100_v34 }
 0x487   :  { %3400 = vmatpush.msra.mxu0 %v11099_v31  ;;  %3420 = vmatpush.msra.mxu1 %v11100_v42  ;;  %v9180_v31 = vld [vmem:[%s10010_s5 + $0x148] sm:$0xff] }
 0x488   :  { %3615 = vmatpush.msra.mxu2 %v9016_v6  ;;  %3632 = vmatpush.msrb.mxu3 %v9124_v3  ;;  %v9185_v42 = vld [vmem:[%s10010_s5 + $0x348] sm:$0xff] }
 0x489   :  { %3401 = vmatpush.msra.mxu0 %v11101_v50  ;;  %3421 = vmatpush.msra.mxu1 %v11102_v11  ;;  %11122 = vst [vmem:[#allocation129_spill] sm:$0xff] %v9185_v42  ;;  %v9192_v50 = vld [vmem:[%s10010_s5 + $0x1d0] sm:$0xff] }
 0x48a   :  { %3616 = vmatpush.msra.mxu2 %v9022_v62  ;;  %3633 = vmatpush.msrb.mxu3 %v9150_v43 }
 0x48b   :  { %3402 = vmatpush.msra.mxu0 %v11103_v58  ;;  %3422 = vmatpush.msra.mxu1 %v11104_v5  ;;  %v9199_v5 = vld [vmem:[%s10010_s5 + $0x320] sm:$0xff] }
 0x48c   :  { %3617 = vmatpush.msra.mxu2 %v9028_v36  ;;  %3634 = vmatpush.msrb.mxu3 %v9175_v28  ;;  %11123 = vst [vmem:[#allocation131_spill] sm:$0xff] %v9199_v5 }
 0x48d   :  { %3403 = vmatpush.msra.mxu0 %v11105_v48  ;;  %3423 = vmatpush.msra.mxu1 %v11106_v46  ;;  %v9204_v48 = vld [vmem:[%s10010_s5 + $0x128] sm:$0xff] }
 0x48e   :  { %3618 = vmatpush.msra.mxu2 %v9034_v20  ;;  %11124 = vst [vmem:[#allocation132_spill] sm:$0xff] %v9204_v48  ;;  %3635 = vmatpush.msrb.mxu3 %v9199_v5  ;;  %v9211_v46 = vld [vmem:[%s10010_s5 + $0x328] sm:$0xff] }
 0x48f   :  { %3404 = vmatpush.msra.mxu0 %v11107_v61  ;;  %3424 = vmatpush.msra.mxu1 %v11108_v7  ;;  %11125 = vst [vmem:[#allocation134_spill] sm:$0xff] %v9211_v46  ;;  %v9216_v61 = vld [vmem:[%s10010_s5 + $0x1b0] sm:$0xff]  ;;  %v9223_v7 = vld [vmem:[%s10010_s5 + $0x300] sm:$0xff] }
 0x490   :  { %3619 = vmatpush.msra.mxu2 %v9040_v10  ;;  %11126 = vst [vmem:[#allocation135_spill] sm:$0xff] %v9216_v61  ;;  %3636 = vmatpush.msrb.mxu3 %v9223_v7 }
 0x491   :  { %3405 = vmatpush.msra.mxu0 %v11109_v27  ;;  %3425 = vmatpush.msra.mxu1 %v11110_v41  ;;  %11127 = vst [vmem:[#allocation8_spill] sm:$0xff] %v9223_v7  ;;  %v9228_v27 = vld [vmem:[%s10010_s5 + $0x108] sm:$0xff] }
 0x492   :  { %3620 = vmatpush.msra.mxu2 %v9046_v35  ;;  %11128 = vst [vmem:[#allocation102_spill] sm:$0xff] %v9228_v27  ;;  %v9233_v41 = vld [vmem:[%s10010_s5 + $0x308] sm:$0xff] }
 0x493   :  { %3406 = vmatpush.msra.mxu0 %v11111_v53  ;;  %3426 = vmatpush.msra.mxu1 %v11112_v37  ;;  %11129 = vst [vmem:[#allocation101_spill] sm:$0xff] %v9233_v41  ;;  %v9240_v53 = vld [vmem:[%s10010_s5 + $0x190] sm:$0xff]  ;;  %v9247_v37 = vld [vmem:[%s10010_s5 + $0x2e0] sm:$0xff] }
 0x494   :  { %3621 = vmatpush.msra.mxu2 %v9069_v16  ;;  %11130 = vst [vmem:[#allocation4_spill] sm:$0xff] %v9240_v53  ;;  %3637 = vmatpush.msrb.mxu3 %v9247_v37 }
 0x495   :  { %3407 = vmatpush.msra.mxu0 %v11113_v63  ;;  %3427 = vmatpush.msra.mxu1 %v11114_v30  ;;  %11131 = vst [vmem:[#allocation13_spill] sm:$0xff] %v9247_v37  ;;  %v9252_v63 = vld [vmem:[%s10010_s5 + $0xe8] sm:$0xff] }
 0x496   :  { %3622 = vmatpush.msra.mxu2 %v9093_v56  ;;  %11132 = vst [vmem:[#allocation18_spill] sm:$0xff] %v9252_v63  ;;  %v9257_v30 = vld [vmem:[%s10010_s5 + $0x2e8] sm:$0xff] }
 0x497   :  { %3408 = vmatpush.msra.mxu0 %v11115_v52  ;;  %3428 = vmatpush.msra.mxu1 %v11116_v4  ;;  %11133 = vst [vmem:[#allocation16_spill] sm:$0xff] %v9257_v30  ;;  %v9264_v52 = vld [vmem:[%s10010_s5 + $0x170] sm:$0xff]  ;;  %v9271_v4 = vld [vmem:[%s10010_s5 + $0x2c0] sm:$0xff]  ;;  %v9438_v37 = vld [vmem:[%s10010_s5 + $0x208] sm:$0xff] }
 0x498   :  { %3623 = vmatpush.msra.mxu2 %v9117_v2  ;;  %11134 = vst [vmem:[#allocation100_spill] sm:$0xff] %v9264_v52  ;;  %3638 = vmatpush.msrb.mxu3 %v9271_v4 }
 0x499   :  { %3409 = vmatpush.msra.mxu0 %v11117_v51  ;;  %3429 = vmatpush.msra.mxu1 %v11118_v55  ;;  %11135 = vst [vmem:[#allocation17_spill] sm:$0xff] %v9271_v4  ;;  %v9276_v51 = vld [vmem:[%s10010_s5 + $0xc8] sm:$0xff]  ;;  %v9352_v4 = vld [vmem:[%s10010_s5 + $0x260] sm:$0xff] }
 0x49a   :  { %3624 = vmatpush.msra.mxu2 %v9141_v49  ;;  %11136 = vst [vmem:[#allocation21_spill] sm:$0xff] %v9276_v51  ;;  %v9281_v55 = vld [vmem:[%s10010_s5 + $0x2c8] sm:$0xff] }
 0x49b   :  { %3649 = vmatpush.msrb.mxu0 %v9057_v21  ;;  %3669 = vmatpush.msrb.mxu1 %v9062_v1  ;;  %11137 = vst [vmem:[#allocation19_spill] sm:$0xff] %v9281_v55 }
 0x49c   :  { %3689 = vmatpush.msrb.mxu2 %v9167_v32  ;;  %11148 = vst [vmem:[#allocation31_spill] sm:$0xff] %v9352_v4 }
 0x49d   :  { %3650 = vmatpush.msrb.mxu0 %v9081_v13  ;;  %3670 = vmatpush.msrb.mxu1 %v9086_v12  ;;  %11163 = vst [vmem:[#allocation43_spill] sm:$0xff] %v9438_v37 }
 0x49e   :  { %3690 = vmatpush.msrb.mxu2 %v9192_v50 }
 0x49f   :  { %3651 = vmatpush.msrb.mxu0 %v9105_v0  ;;  %3671 = vmatpush.msrb.mxu1 %v9110_v38 }
 0x4a0   :  { %3691 = vmatpush.msrb.mxu2 %v9216_v61 }
 0x4a1   :  { %3652 = vmatpush.msrb.mxu0 %v9129_v60  ;;  %3672 = vmatpush.msrb.mxu1 %v9134_v26 }
 0x4a2   :  { %3692 = vmatpush.msrb.mxu2 %v9240_v53 }
 0x4a3   :  { %3653 = vmatpush.msrb.mxu0 %v9155_v8  ;;  %3673 = vmatpush.msrb.mxu1 %v9160_v54 }
 0x4a4   :  { %3693 = vmatpush.msrb.mxu2 %v9264_v52 }
 0x4a5   :  { %3654 = vmatpush.msrb.mxu0 %v9180_v31  ;;  %3674 = vmatpush.msrb.mxu1 %v9185_v42 }
 0x4a6   :  { %3694 = vmatpush.msrb.mxu2 %v9288_v57  ;;  %v11160_v57 = vld [vmem:[#allocation11_spill] sm:$0xff] }
 0x4a7   :  { %3655 = vmatpush.msrb.mxu0 %v9204_v48  ;;  %3675 = vmatpush.msrb.mxu1 %v9211_v46 }
 0x4a9   :  { %3656 = vmatpush.msrb.mxu0 %v9228_v27  ;;  %3676 = vmatpush.msrb.mxu1 %v9233_v41 }
 0x4ab   :  { %3657 = vmatpush.msrb.mxu0 %v9252_v63  ;;  %3677 = vmatpush.msrb.mxu1 %v9257_v30 }
 0x4ad   :  { %3658 = vmatpush.msrb.mxu0 %v9276_v51  ;;  %3678 = vmatpush.msrb.mxu1 %v9281_v55 }
 0x4d4   :  { %v2896_v39 = vpop.f32.mrf.mxu0  ;;  %v2916_v22 = vpop.f32.mrf.mxu1 }
 0x4d5   :  { %v2939_v17 = vadd.f32 %v2896_v39, %v11121_v23  ;;  %v2940_v59 = vadd.f32 %v2916_v22, %v155_v33  ;;  %v9295_v39 = vld [vmem:[%s10010_s5 + $0x2a0] sm:$0xff]  ;;  %v9300_v22 = vld [vmem:[%s10010_s5 + $0xa8] sm:$0xff] }
 0x4d6   :  { %11139 = vst [vmem:[#allocation24_spill] sm:$0xff] %v9295_v39  ;;  %v9305_v23 = vld [vmem:[%s10010_s5 + $0x2a8] sm:$0xff]  ;;  %3639 = vmatpush.msrb.mxu3 %v9295_v39  ;;  %3659 = vmatpush.msrb.mxu0 %v9300_v22 }
 0x4d7   :  { %v4217_v11 = vmul.f32 -1.442695, %v2939_v17  ;;  %v4218_v58 = vmul.f32 -1.442695, %v2940_v59  ;;  %11140 = vst [vmem:[#allocation22_spill] sm:$0xff] %v9300_v22  ;;  %3679 = vmatpush.msrb.mxu1 %v9305_v23  ;;  %v9328_v39 = vld [vmem:[%s10010_s5 + $0x88] sm:$0xff] }
 0x4d8   :  { %11141 = vst [vmem:[#allocation23_spill] sm:$0xff] %v9305_v23  ;;  %v9333_v22 = vld [vmem:[%s10010_s5 + $0x288] sm:$0xff]  ;;  %3660 = vmatpush.msrb.mxu0 %v9328_v39  ;;  %v9343_v23 = vld [vmem:[%s10010_s5 + $0x110] sm:$0xff] }
 0x4d9   :  { %4344 = vpow2.f32 %v4217_v11  ;;  %11144 = vst [vmem:[#allocation26_spill] sm:$0xff] %v9328_v39  ;;  %3680 = vmatpush.msrb.mxu1 %v9333_v22  ;;  %v9362_v39 = vld [vmem:[%s10010_s5 + $0x268] sm:$0xff] }
 0x4da   :  { %4346 = vpow2.f32 %v4218_v58  ;;  %v9314_v58 = vld [vmem:[%s10010_s5 + $0x130] sm:$0xff]  ;;  %11145 = vst [vmem:[#allocation6_spill] sm:$0xff] %v9333_v22 }
 0x4db   :  { %v3131_v11 = vpop.f32.mrf.mxu3  ;;  %11142 = vst [vmem:[#allocation28_spill] sm:$0xff] %v9314_v58  ;;  %3695 = vmatpush.msrb.mxu2 %v9314_v58  ;;  %v11147_v58 = vld [vmem:[#allocation10_spill] sm:$0xff]  ;;  %3681 = vmatpush.msrb.mxu1 %v9362_v39 }
 0x4dc   :  { %11146 = vst [vmem:[#allocation27_spill] sm:$0xff] %v9343_v23  ;;  %v3132_v55 = vadd.f32 %v3131_v11, %v11147_v58  ;;  %v9369_v58 = vld [vmem:[%s10010_s5 + $0xf0] sm:$0xff] }
 0x4dd   :  { %3696 = vmatpush.msrb.mxu2 %v9343_v23  ;;  %11150 = vst [vmem:[#allocation30_spill] sm:$0xff] %v9362_v39  ;;  %v9376_v23 = vld [vmem:[%s10010_s5 + $0x240] sm:$0xff] }
 0x4de   :  { %11151 = vst [vmem:[#allocation112_spill] sm:$0xff] %v9369_v58 }
 0x4df   :  { %v4345_v33 = vpop.eup %4344  ;;  %3697 = vmatpush.msrb.mxu2 %v9369_v58  ;;  %11152 = vst [vmem:[#allocation35_spill] sm:$0xff] %v9376_v23  ;;  %v9400_v58 = vld [vmem:[%s10010_s5 + $0x220] sm:$0xff] }
 0x4e0   :  { %v4347_v17 = vpop.eup %4346  ;;  %v9307_v59 = vadd.f32 1.0, %v4345_v33  ;;  %v9323_v33 = vld [vmem:[%s10010_s5 + $0x280] sm:$0xff]  ;;  %11156 = vst [vmem:[#allocation36_spill] sm:$0xff] %v9400_v58 }
 0x4e1   :  { %v9316_v15 = vadd.f32 1.0, %v4347_v17  ;;  %11143 = vst [vmem:[#allocation9_spill] sm:$0xff] %v9323_v33  ;;  %v9336_v17 = vpop.f32.mrf.mxu2  ;;  %3640 = vmatpush.msrb.mxu3 %v9323_v33  ;;  %v9357_v33 = vld [vmem:[%s10010_s5 + $0x68] sm:$0xff] }
 0x4e2   :  { %4348 = vrcp.f32 %v9307_v59  ;;  %11149 = vst [vmem:[#allocation29_spill] sm:$0xff] %v9357_v33  ;;  %3661 = vmatpush.msrb.mxu0 %v9357_v33  ;;  %v9386_v33 = vld [vmem:[%s10010_s5 + $0x248] sm:$0xff]  ;;  %v2960_v63 = vand.u32 2147483648, %v9307_v59  ;;  %v2958_v52 = vand.u32 2147483647, %v9307_v59  ;;  %vm2954_vm10 = vweird.f32 %v9307_v59 }
 0x4e3   :  { %4350 = vrcp.f32 %v9316_v15  ;;  %3641 = vmatpush.msrb.mxu3 %v9352_v4  ;;  %v9381_v4 = vld [vmem:[%s10010_s5 + $0x48] sm:$0xff]  ;;  %11154 = vst [vmem:[#allocation34_spill] sm:$0xff] %v9386_v33  ;;  %3682 = vmatpush.msrb.mxu1 %v9386_v33  ;;  %v9417_v33 = vld [vmem:[%s10010_s5 + $0xb0] sm:$0xff]  ;;  %vm2969_vm14 = vweird.f32 %v9316_v15 }
 0x4e4   :  { %v3151_v11 = vpop.f32.mrf.mxu0  ;;  %11153 = vst [vmem:[#allocation33_spill] sm:$0xff] %v9381_v4  ;;  %3662 = vmatpush.msrb.mxu0 %v9381_v4  ;;  %v9410_v4 = vld [vmem:[%s10010_s5 + $0x228] sm:$0xff]  ;;  %vm2959_vm12 = vcmp.eq.f32.partialorder %v2958_v52, 8.507059e+37 }
 0x4e5   :  { %v3152_v22 = vadd.f32 %v3151_v11, %v3132_v55  ;;  %v3171_v55 = vpop.f32.mrf.mxu1  ;;  %3642 = vmatpush.msrb.mxu3 %v9376_v23  ;;  %v9393_v11 = vld [vmem:[%s10010_s5 + $0xd0] sm:$0xff]  ;;  %v9405_v23 = vld [vmem:[%s10010_s5 + $0x28] sm:$0xff]  ;;  %11158 = vst [vmem:[#allocation41_spill] sm:$0xff] %v9410_v4  ;;  %3683 = vmatpush.msrb.mxu1 %v9410_v4 }
 0x4e6   :  { %11155 = vst [vmem:[#allocation38_spill] sm:$0xff] %v9393_v11  ;;  %3698 = vmatpush.msrb.mxu2 %v9393_v11  ;;  %3663 = vmatpush.msrb.mxu0 %v9405_v23  ;;  %v3172_v30 = vadd.f32 %v3171_v55, %v11160_v57  ;;  %v9445_v55 = vld [vmem:[%s10010_s5 + $0x90] sm:$0xff] }
 0x4e7   :  { %v4219_v39 = vmul.f32 -1.442695, %v3152_v22  ;;  %11157 = vst [vmem:[#allocation37_spill] sm:$0xff] %v9405_v23  ;;  %3643 = vmatpush.msrb.mxu3 %v9400_v58  ;;  %v9428_v58 = vld [vmem:[%s10010_s5 + $0x200] sm:$0xff]  ;;  %v9433_v23 = vld [vmem:[%s10010_s5 + $0x8] sm:$0xff]  ;;  %3684 = vmatpush.msrb.mxu1 %v9438_v37 }
 0x4e8   :  { %v4349_v22 = vpop.eup %4348  ;;  %11159 = vst [vmem:[#allocation39_spill] sm:$0xff] %v9417_v33  ;;  %3699 = vmatpush.msrb.mxu2 %v9417_v33  ;;  %3664 = vmatpush.msrb.mxu0 %v9433_v23 }
 0x4e9   :  { %v9419_v11 = vpop.eup %4350  ;;  %v2950_v51 = vmul.f32 %v4349_v22, %v9307_v59  ;;  %4352 = vpow2.f32 %v4219_v39  ;;  %11161 = vst [vmem:[#allocation40_spill] sm:$0xff] %v9428_v58  ;;  %3644 = vmatpush.msrb.mxu3 %v9428_v58  ;;  %v9455_v58 = vld [vmem:[%s10010_s5 + $0x70] sm:$0xff]  ;;  %vm2955_vm9 = vweird.f32 %v4349_v22 }
 0x4ea   :  { %11162 = vst [vmem:[#allocation45_spill] sm:$0xff] %v9433_v23  ;;  %v3191_v39 = vpop.f32.mrf.mxu2  ;;  %3700 = vmatpush.msrb.mxu2 %v9445_v55  ;;  %v2965_v33 = vmul.f32 %v9419_v11, %v9316_v15  ;;  %vm2956_vm11 = vmor %vm2954_vm10, %vm2955_vm9  ;;  %vm2970_vm13 = vweird.f32 %v9419_v11 }
 0x4eb   :  { %11164 = vst [vmem:[#allocation44_spill] sm:$0xff] %v9445_v55  ;;  %v2951_v57 = vsub.f32 1.0, %v2950_v51  ;;  %v3192_v4 = vadd.f32 %v3191_v39, %v3172_v30  ;;  %v9462_v30 = vld [vmem:[%s10010_s5 + $0x50] sm:$0xff]  ;;  %vm9496_vm15 = vmor %vm2969_vm14, %vm2970_vm13 }
 0x4ec   :  { %11165 = vst [vmem:[#allocation48_spill] sm:$0xff] %v9455_v58  ;;  %3701 = vmatpush.msrb.mxu2 %v9455_v58  ;;  %v2961_v58 = vor.u32 1.1754944e-38, %v2960_v63  ;;  %v11170_v63 = vld [vmem:[#allocation51_spill] sm:$0xff] }
 0x4ed   :  { %v2952_v23 = vmul.f32 %v4349_v22, %v2951_v57  ;;  %v4220_v51 = vmul.f32 -1.442695, %v3192_v4  ;;  %11166 = vst [vmem:[#allocation46_spill] sm:$0xff] %v9462_v30  ;;  %v9469_v57 = vld [vmem:[%s10010_s5 + $0x30] sm:$0xff]  ;;  %v2966_v4 = vsub.f32 1.0, %v2965_v33 }
 0x4ee   :  { %3702 = vmatpush.msrb.mxu2 %v9462_v30  ;;  %11167 = vst [vmem:[#allocation47_spill] sm:$0xff] %v9469_v57 }
 0x4ef   :  { %v4353_v39 = vpop.eup %4352  ;;  %v2953_v37 = vadd.f32 %v4349_v22, %v2952_v23  ;;  %4354 = vpow2.f32 %v4220_v51  ;;  %v9474_v23 = vld [vmem:[%s10009_s4] ss:$0 sm:$0xff]  ;;  %v9482_v51 = vld [vmem:[%s10010_s5 + $0x10] sm:$0xff] }
 0x4f0   :  { %v3280_v55 = vadd.f32 1.0, %v4353_v39  ;;  %11168 = vst [vmem:[#allocation50_spill] sm:$0xff] %v9474_v23  ;;  %v2979_v59 = vadd.f32 %v9474_v23, %v9336_v17  ;;  %3703 = vmatpush.msrb.mxu2 %v9469_v57  ;;  %v2967_v39 = vmul.f32 %v9419_v11, %v2966_v4 }
 0x4f1   :  { %v2957_v41 = vsel %vm2956_vm11, %v4349_v22, %v2953_v37  ;;  %11169 = vst [vmem:[#allocation49_spill] sm:$0xff] %v9482_v51  ;;  %v11171_v37 = vld [vmem:[#allocation119_spill] sm:$0xff] }
 0x4f2   :  { %v2962_v33 = vsel %vm2959_vm12, %v2961_v58, %v2957_v41  ;;  %4356 = vrcp.f32 %v3280_v55  ;;  %v196_v52 = vadd.f32 %v11171_v37, %v11170_v63  ;;  %3704 = vmatpush.msrb.mxu2 %v9482_v51  ;;  %v2968_v57 = vadd.f32 %v9419_v11, %v2967_v39  ;;  %v3211_v39 = vpop.f32.mrf.mxu3 }
 0x4f3   :  { %v2980_v22 = vmul.f32 %v2979_v59, %v2962_v33  ;;  %v2975_v41 = vand.u32 2147483648, %v9316_v15  ;;  %v2973_v59 = vand.u32 2147483647, %v9316_v15  ;;  %v3293_v37 = vand.u32 2147483648, %v3280_v55 }
 0x4f4   :  { %v3291_v51 = vand.u32 2147483647, %v3280_v55  ;;  %vm3287_vm2 = vweird.f32 %v3280_v55 }
 0x4f5   :  { %v4355_v30 = vpop.eup %4354  ;;  %v2981_v7 = vadd.f32 %v2980_v22, %v196_v52  ;;  %v2976_v22 = vor.u32 1.1754944e-38, %v2975_v41  ;;  %vm2974_vm1 = vcmp.eq.f32.partialorder %v2973_v59, 8.507059e+37  ;;  %v3212_v41 = vadd.f32 %v3211_v39, %v6083_v18  ;;  %v9726_v18 = vld [vmem:[%s10010_s5 + $0x2b0] sm:$0xff] }
 0x4f6   :  { %v9488_v17 = vadd.f32 1.0, %v4355_v30  ;;  %v3294_v48 = vor.u32 1.1754944e-38, %v3293_v37  ;;  %vm3292_vm4 = vcmp.eq.f32.partialorder %v3291_v51, 8.507059e+37  ;;  %11180 = vst [vmem:[#allocation54_spill] sm:$0xff] %v9726_v18 }
 0x4f7   :  { %4358 = vtanh.f32 %v2981_v7  ;;  %v2972_v7 = vsel %vm9496_vm15, %v9419_v11, %v2968_v57  ;;  %v3251_v33 = vpop.f32.mrf.mxu1  ;;  %v11174_v11 = vld [vmem:[#allocation14_spill] sm:$0xff] }
 0x4f8   :  { %v4357_v23 = vpop.eup %4356  ;;  %4360 = vrcp.f32 %v9488_v17  ;;  %v3252_v57 = vadd.f32 %v3251_v33, %v11174_v11  ;;  %v9515_v33 = vld [vmem:[%s10010_s5 + $0x3f0] sm:$0xff]  ;;  %v3308_v39 = vand.u32 2147483648, %v9488_v17  ;;  %vm3302_vm6 = vweird.f32 %v9488_v17  ;;  %v9739_v11 = vld [vmem:[%s10010_s5 + $0x2b8] sm:$0xff] }
 0x4f9   :  { %v3283_v58 = vmul.f32 %v4357_v23, %v3280_v55  ;;  %vm3288_vm0 = vweird.f32 %v4357_v23  ;;  %11181 = vst [vmem:[#allocation68_spill] sm:$0xff] %v9739_v11 }
 0x4fa   :  { %vm3289_vm3 = vmor %vm3287_vm2, %vm3288_vm0 }
 0x4fb   :  { %v3284_v30 = vsub.f32 1.0, %v3283_v58  ;;  %v2977_v58 = vsel %vm2974_vm1, %v2976_v22, %v2972_v7 }
 0x4fd   :  { %v4359_v52 = vpop.eup %4358  ;;  %v3285_v63 = vmul.f32 %v4357_v23, %v3284_v30  ;;  %v3271_v53 = vpop.f32.mrf.mxu2 }
 0x4fe   :  { %v9503_v27 = vpop.eup %4360  ;;  %v2983_v15 = vsub.f32 %v8854_v44, %v4359_v52  ;;  %v3231_v30 = vpop.f32.mrf.mxu0  ;;  %v3272_v42 = vadd.f32 %v3271_v53, %v3252_v57  ;;  %v9553_v53 = vld [vmem:[%s10010_s5 + $0x3b0] sm:$0xff] }
 0x4ff   :  { %v3298_v4 = vmul.f32 %v9503_v27, %v9488_v17  ;;  %v3286_v46 = vadd.f32 %v4357_v23, %v3285_v63  ;;  %v3232_v7 = vadd.f32 %v3231_v30, %v3212_v41  ;;  %v9520_v63 = vld [vmem:[%s10010_s5 + $0x1f8] sm:$0xff]  ;;  %vm3303_vm5 = vweird.f32 %v9503_v27  ;;  %v9665_v57 = vld [vmem:[%s10010_s5 + $0x310] sm:$0xff] }
 0x500   :  { %v2984_v5 = vmul.f32 %v2983_v15, %v2977_v58  ;;  %v9580_v15 = vld [vmem:[%s10010_s5 + $0x198] sm:$0xff]  ;;  %v3306_v58 = vand.u32 2147483647, %v9488_v17  ;;  %vm9592_vm7 = vmor %vm3302_vm6, %vm3303_vm5 }
 0x501   :  { %v3299_v61 = vsub.f32 1.0, %v3298_v4  ;;  %v3290_v59 = vsel %vm3289_vm3, %v4357_v23, %v3286_v46  ;;  %v9540_v46 = vld [vmem:[%s10010_s5 + $0x1d8] sm:$0xff] }
 0x502   :  { %v9510_v44 = vadd.f32 %v4359_v52, %v2984_v5  ;;  %v3295_v55 = vsel %vm3292_vm4, %v3294_v48, %v3290_v59  ;;  %v9535_v48 = vld [vmem:[%s10010_s5 + $0x3d0] sm:$0xff]  ;;  %v9558_v23 = vld [vmem:[%s10010_s5 + $0x1b8] sm:$0xff]  ;;  %vm3307_vm8 = vcmp.eq.f32.partialorder %v3306_v58, 8.507059e+37 }
 0x503   :  { %v3312_v22 = vmul.f32 %v3295_v55, %v3272_v42  ;;  %v3300_v37 = vmul.f32 %v9503_v27, %v3299_v61  ;;  %v9528_v42 = vld [vmem:[%s10010_s5 + $0x3f8] sm:$0xff] }
 0x504   :  { %3390 = vmatmul.f32.vlgmr.msra.gmra.mxu3 %v9510_v44  ;;  %3410 = vmatmul.f32.vlgmr.msra.gmra.mxu0 %v9510_v44  ;;  %v9547_v61 = vld [vmem:[%s10010_s5 + $0x3d8] sm:$0xff] }
 0x505   :  { %v3313_v5 = vadd.f32 %v3312_v22, %v3232_v7  ;;  %3430 = vmatmul.f32.vlgmr.msra.gmra.mxu1 %v9510_v44  ;;  %3625 = vmatmul.f32.vlgmr.msra.gmra.mxu2 %v9510_v44  ;;  %v3301_v51 = vadd.f32 %v9503_v27, %v3300_v37  ;;  %v9568_v52 = vld [vmem:[%s10010_s5 + $0x3b8] sm:$0xff] }
 0x506   :  { %3709 = vmatpush.msra.mxu3 %v9515_v33  ;;  %3729 = vmatpush.msra.mxu0 %v9520_v63  ;;  %v9590_v4 = vld [vmem:[%s10010_s5 + $0x398] sm:$0xff] }
 0x507   :  { %4362 = vtanh.f32 %v3313_v5  ;;  %3749 = vmatpush.msra.mxu1 %v9528_v42  ;;  %3943 = vmatpush.msra.mxu2 %v8942_v14  ;;  %v9575_v14 = vld [vmem:[%s10010_s5 + $0x390] sm:$0xff]  ;;  %v3305_v17 = vsel %vm9592_vm7, %v9503_v27, %v3301_v51  ;;  %v9611_v41 = vld [vmem:[%s10010_s5 + $0x178] sm:$0xff] }
 0x508   :  { %3710 = vmatpush.msra.mxu3 %v9535_v48  ;;  %3730 = vmatpush.msra.mxu0 %v9540_v46  ;;  %v9616_v30 = vld [vmem:[%s10010_s5 + $0x378] sm:$0xff]  ;;  %v9623_v27 = vld [vmem:[%s10010_s5 + $0x350] sm:$0xff] }
 0x509   :  { %3750 = vmatpush.msra.mxu1 %v9547_v61  ;;  %3944 = vmatpush.msra.mxu2 %v8953_v47  ;;  %v9600_v47 = vld [vmem:[%s10010_s5 + $0x370] sm:$0xff]  ;;  %v9631_v7 = vld [vmem:[%s10010_s5 + $0x158] sm:$0xff] }
 0x50a   :  { %3711 = vmatpush.msra.mxu3 %v9553_v53  ;;  %3731 = vmatpush.msra.mxu0 %v9558_v23  ;;  %v9636_v22 = vld [vmem:[%s10010_s5 + $0x358] sm:$0xff] }
 0x50b   :  { %3751 = vmatpush.msra.mxu1 %v9568_v52  ;;  %3945 = vmatpush.msra.mxu2 %v8961_v25  ;;  %v3309_v25 = vor.u32 1.1754944e-38, %v3308_v39  ;;  %v9649_v51 = vld [vmem:[%s10010_s5 + $0x138] sm:$0xff] }
 0x50c   :  { %3712 = vmatpush.msra.mxu3 %v9575_v14  ;;  %3732 = vmatpush.msra.mxu0 %v9580_v15  ;;  %v9654_v39 = vld [vmem:[%s10010_s5 + $0x338] sm:$0xff] }
 0x50d   :  { %v4363_v59 = vpop.eup %4362  ;;  %3752 = vmatpush.msra.mxu1 %v9590_v4  ;;  %3665 = vmatmul.f32.vlgmr.msrb.gmra.mxu0 %v9510_v44  ;;  %v3310_v37 = vsel %vm3307_vm8, %v3309_v25, %v3305_v17  ;;  %v9670_v17 = vld [vmem:[%s10010_s5 + $0x118] sm:$0xff] }
 0x50e   :  { %v3315_v55 = vsub.f32 %v8888_v24, %v4363_v59  ;;  %3705 = vmatmul.f32.vlgmr.msrb.gmra.mxu2 %v9510_v44  ;;  %3713 = vmatpush.msra.mxu3 %v9600_v47  ;;  %v9643_v24 = vld [vmem:[%s10010_s5 + $0x330] sm:$0xff]  ;;  %v9701_v25 = vld [vmem:[%s10010_s5 + $0x2f8] sm:$0xff] }
 0x50f   :  { %3733 = vmatpush.msra.mxu0 %v9611_v41  ;;  %3753 = vmatpush.msra.mxu1 %v9616_v30  ;;  %11177 = vst [vmem:[#allocation64_spill] sm:$0xff] %v9701_v25 }
 0x510   :  { %v3316_v5 = vmul.f32 %v3315_v55, %v3310_v37  ;;  %3714 = vmatpush.msra.mxu3 %v9623_v27  ;;  %3946 = vmatpush.msra.mxu2 %v8998_v19  ;;  %v9678_v19 = vld [vmem:[%s10010_s5 + $0x318] sm:$0xff]  ;;  %v9707_v55 = vld [vmem:[%s10010_s5 + $0x2d0] sm:$0xff] }
 0x511   :  { %3734 = vmatpush.msra.mxu0 %v9631_v7  ;;  %3754 = vmatpush.msra.mxu1 %v9636_v22  ;;  %11178 = vst [vmem:[#allocation52_spill] sm:$0xff] %v9707_v55  ;;  %v9712_v37 = vld [vmem:[%s10010_s5 + $0xd8] sm:$0xff] }
 0x512   :  { %v9659_v58 = vadd.f32 %v4363_v59, %v3316_v5  ;;  %3715 = vmatpush.msra.mxu3 %v9643_v24  ;;  %3947 = vmatpush.msra.mxu2 %v9004_v29  ;;  %v9689_v29 = vld [vmem:[%s10010_s5 + $0x2f0] sm:$0xff]  ;;  %v9694_v59 = vld [vmem:[%s10010_s5 + $0xf8] sm:$0xff] }
 0x513   :  { %3735 = vmatpush.msra.mxu0 %v9649_v51  ;;  %3755 = vmatpush.msra.mxu1 %v9654_v39  ;;  %v9720_v5 = vld [vmem:[%s10010_s5 + $0x2d8] sm:$0xff] }
 0x514   :  { %4221 = vst [vmem:[%s10013_s7 + $0x28] sm:$0xff] %v9659_v58  ;;  %3645 = vmatmul.f32.vlgmr.msrb.gmra.mxu3 %v9659_v58  ;;  %3685 = vmatmul.f32.vlgmr.msrb.gmra.mxu1 %v9659_v58 }
 0x515   :  { %3716 = vmatpush.msra.mxu3 %v9665_v57  ;;  %3736 = vmatpush.msra.mxu0 %v9670_v17  ;;  %11179 = vst [vmem:[#allocation53_spill] sm:$0xff] %v9720_v5 }
 0x516   :  { %3756 = vmatpush.msra.mxu1 %v9678_v19  ;;  %3948 = vmatpush.msra.mxu2 %v9010_v40  ;;  %v9731_v40 = vld [vmem:[%s10010_s5 + $0xb8] sm:$0xff] }
 0x517   :  { %3717 = vmatpush.msra.mxu3 %v9689_v29  ;;  %3737 = vmatpush.msra.mxu0 %v9694_v59 }
 0x518   :  { %3757 = vmatpush.msra.mxu1 %v9701_v25  ;;  %3949 = vmatpush.msra.mxu2 %v9016_v6  ;;  %v9745_v25 = vld [vmem:[%s10010_s5 + $0x290] sm:$0xff]  ;;  %v9750_v6 = vld [vmem:[%s10010_s5 + $0x98] sm:$0xff] }
 0x519   :  { %3718 = vmatpush.msra.mxu3 %v9707_v55  ;;  %3738 = vmatpush.msra.mxu0 %v9712_v37  ;;  %11182 = vst [vmem:[#allocation55_spill] sm:$0xff] %v9745_v25  ;;  %v9764_v55 = vld [vmem:[%s10010_s5 + $0x270] sm:$0xff] }
 0x51a   :  { %3758 = vmatpush.msra.mxu1 %v9720_v5  ;;  %3950 = vmatpush.msra.mxu2 %v9022_v62  ;;  %v9758_v5 = vld [vmem:[%s10010_s5 + $0x298] sm:$0xff]  ;;  %11184 = vst [vmem:[#allocation59_spill] sm:$0xff] %v9764_v55 }
 0x51b   :  { %3719 = vmatpush.msra.mxu3 %v9726_v18  ;;  %3739 = vmatpush.msra.mxu0 %v9731_v40  ;;  %11183 = vst [vmem:[#allocation56_spill] sm:$0xff] %v9758_v5  ;;  %v9769_v62 = vld [vmem:[%s10010_s5 + $0x78] sm:$0xff]  ;;  %v9783_v18 = vld [vmem:[%s10010_s5 + $0x250] sm:$0xff] }
 0x51c   :  { %3759 = vmatpush.msra.mxu1 %v9739_v11  ;;  %3951 = vmatpush.msra.mxu2 %v9028_v36  ;;  %v9777_v11 = vld [vmem:[%s10010_s5 + $0x278] sm:$0xff] }
 0x51d   :  { %3720 = vmatpush.msra.mxu3 %v9745_v25  ;;  %3740 = vmatpush.msra.mxu0 %v9750_v6  ;;  %11185 = vst [vmem:[#allocation57_spill] sm:$0xff] %v9777_v11  ;;  %v9788_v36 = vld [vmem:[%s10010_s5 + $0x58] sm:$0xff]  ;;  %v9802_v25 = vld [vmem:[%s10010_s5 + $0x230] sm:$0xff] }
 0x51e   :  { %3760 = vmatpush.msra.mxu1 %v9758_v5  ;;  %3952 = vmatpush.msra.mxu2 %v9034_v20  ;;  %v9796_v5 = vld [vmem:[%s10010_s5 + $0x258] sm:$0xff] }
 0x51f   :  { %3721 = vmatpush.msra.mxu3 %v9764_v55  ;;  %3741 = vmatpush.msra.mxu0 %v9769_v62  ;;  %11186 = vst [vmem:[#allocation58_spill] sm:$0xff] %v9796_v5  ;;  %v9807_v20 = vld [vmem:[%s10010_s5 + $0x38] sm:$0xff]  ;;  %v9821_v55 = vld [vmem:[%s10010_s5 + $0x210] sm:$0xff] }
 0x520   :  { %3761 = vmatpush.msra.mxu1 %v9777_v11  ;;  %3953 = vmatpush.msra.mxu2 %v9040_v10  ;;  %v9815_v11 = vld [vmem:[%s10010_s5 + $0x238] sm:$0xff] }
 0x521   :  { %3722 = vmatpush.msra.mxu3 %v9783_v18  ;;  %3742 = vmatpush.msra.mxu0 %v9788_v36  ;;  %v9826_v10 = vld [vmem:[%s10010_s5 + $0x18] sm:$0xff] }
 0x522   :  { %3762 = vmatpush.msra.mxu1 %v9796_v5  ;;  %3954 = vmatpush.msra.mxu2 %v9046_v35  ;;  %v9834_v5 = vld [vmem:[%s10010_s5 + $0x218] sm:$0xff]  ;;  %v11187_v35 = vld [vmem:[#allocation129_spill] sm:$0xff] }
 0x523   :  { %3723 = vmatpush.msra.mxu3 %v9802_v25  ;;  %3743 = vmatpush.msra.mxu0 %v9807_v20 }
 0x524   :  { %3763 = vmatpush.msra.mxu1 %v9815_v11  ;;  %3955 = vmatpush.msra.mxu2 %v9069_v16  ;;  %v11191_v16 = vld [vmem:[#allocation134_spill] sm:$0xff] }
 0x525   :  { %3724 = vmatpush.msra.mxu3 %v9821_v55  ;;  %3744 = vmatpush.msra.mxu0 %v9826_v10 }
 0x526   :  { %3764 = vmatpush.msra.mxu1 %v9834_v5  ;;  %3725 = vmatmul.f32.vlgmr.msra.gmra.mxu3 %v9659_v58 }
 0x527   :  { %3745 = vmatmul.f32.vlgmr.msra.gmra.mxu0 %v9510_v44  ;;  %3765 = vmatmul.f32.vlgmr.msra.gmra.mxu1 %v9659_v58 }
 0x528   :  { %3983 = vmatpush.msrb.mxu0 %v9057_v21  ;;  %3963 = vmatpush.msrb.mxu3 %v9052_v9  ;;  %v11188_v9 = vld [vmem:[#allocation135_spill] sm:$0xff]  ;;  %v11189_v21 = vld [vmem:[#allocation132_spill] sm:$0xff] }
 0x529   :  { %4003 = vmatpush.msrb.mxu1 %v9062_v1  ;;  %3956 = vmatpush.msra.mxu2 %v9093_v56  ;;  %v11190_v1 = vld [vmem:[#allocation131_spill] sm:$0xff]  ;;  %v11195_v56 = vld [vmem:[#allocation101_spill] sm:$0xff] }
 0x52a   :  { %3984 = vmatpush.msrb.mxu0 %v9081_v13  ;;  %3964 = vmatpush.msrb.mxu3 %v9076_v45  ;;  %v11192_v45 = vld [vmem:[#allocation4_spill] sm:$0xff]  ;;  %v11193_v13 = vld [vmem:[#allocation102_spill] sm:$0xff] }
 0x52b   :  { %4004 = vmatpush.msrb.mxu1 %v9086_v12  ;;  %3957 = vmatpush.msra.mxu2 %v9117_v2  ;;  %v11194_v12 = vld [vmem:[#allocation8_spill] sm:$0xff] }
 0x52c   :  { %3985 = vmatpush.msrb.mxu0 %v9105_v0  ;;  %3965 = vmatpush.msrb.mxu3 %v9100_v34  ;;  %v11196_v34 = vld [vmem:[#allocation100_spill] sm:$0xff]  ;;  %v11197_v0 = vld [vmem:[#allocation18_spill] sm:$0xff] }
 0x52d   :  { %4005 = vmatpush.msrb.mxu1 %v9110_v38  ;;  %3958 = vmatpush.msra.mxu2 %v9141_v49  ;;  %v11198_v38 = vld [vmem:[#allocation13_spill] sm:$0xff]  ;;  %v11199_v2 = vld [vmem:[#allocation16_spill] sm:$0xff]  ;;  %v11203_v49 = vld [vmem:[#allocation19_spill] sm:$0xff] }
 0x52e   :  { %3986 = vmatpush.msrb.mxu0 %v9129_v60  ;;  %3966 = vmatpush.msrb.mxu3 %v9124_v3  ;;  %v11200_v3 = vld [vmem:[#allocation20_spill] sm:$0xff]  ;;  %v11201_v60 = vld [vmem:[#allocation21_spill] sm:$0xff] }
 0x52f   :  { %4006 = vmatpush.msrb.mxu1 %v9134_v26  ;;  %4023 = vmatpush.msrb.mxu2 %v9167_v32  ;;  %v11202_v26 = vld [vmem:[#allocation17_spill] sm:$0xff]  ;;  %v11207_v32 = vld [vmem:[#allocation23_spill] sm:$0xff] }
 0x530   :  { %3987 = vmatpush.msrb.mxu0 %v9155_v8  ;;  %3967 = vmatpush.msrb.mxu3 %v9150_v43  ;;  %v11204_v43 = vld [vmem:[#allocation28_spill] sm:$0xff]  ;;  %v11205_v8 = vld [vmem:[#allocation22_spill] sm:$0xff] }
 0x531   :  { %4007 = vmatpush.msrb.mxu1 %v9160_v54  ;;  %4024 = vmatpush.msrb.mxu2 %v9192_v50  ;;  %v11206_v54 = vld [vmem:[#allocation24_spill] sm:$0xff]  ;;  %v11210_v50 = vld [vmem:[#allocation9_spill] sm:$0xff] }
 0x532   :  { %3988 = vmatpush.msrb.mxu0 %v9180_v31  ;;  %3968 = vmatpush.msrb.mxu3 %v9175_v28  ;;  %v11208_v28 = vld [vmem:[#allocation27_spill] sm:$0xff]  ;;  %v11209_v31 = vld [vmem:[#allocation26_spill] sm:$0xff] }
 0x533   :  { %4008 = vmatpush.msrb.mxu1 %v11187_v35  ;;  %4025 = vmatpush.msrb.mxu2 %v11188_v9  ;;  %v11211_v35 = vld [vmem:[#allocation6_spill] sm:$0xff]  ;;  %v11212_v9 = vld [vmem:[#allocation112_spill] sm:$0xff] }
 0x534   :  { %3989 = vmatpush.msrb.mxu0 %v11189_v21  ;;  %3969 = vmatpush.msrb.mxu3 %v11190_v1  ;;  %v11213_v21 = vld [vmem:[#allocation29_spill] sm:$0xff]  ;;  %v11214_v1 = vld [vmem:[#allocation31_spill] sm:$0xff] }
 0x535   :  { %4009 = vmatpush.msrb.mxu1 %v11191_v16  ;;  %4026 = vmatpush.msrb.mxu2 %v11192_v45  ;;  %v11215_v16 = vld [vmem:[#allocation30_spill] sm:$0xff] }
 0x536   :  { %3990 = vmatpush.msrb.mxu0 %v11193_v13  ;;  %3970 = vmatpush.msrb.mxu3 %v11194_v12  ;;  %v11216_v45 = vld [vmem:[#allocation38_spill] sm:$0xff]  ;;  %v11217_v13 = vld [vmem:[#allocation33_spill] sm:$0xff]  ;;  %v11218_v12 = vld [vmem:[#allocation35_spill] sm:$0xff] }
 0x537   :  { %4010 = vmatpush.msrb.mxu1 %v11195_v56  ;;  %4027 = vmatpush.msrb.mxu2 %v11196_v34  ;;  %v11219_v56 = vld [vmem:[#allocation34_spill] sm:$0xff]  ;;  %v11220_v34 = vld [vmem:[#allocation39_spill] sm:$0xff] }
 0x538   :  { %3991 = vmatpush.msrb.mxu0 %v11197_v0  ;;  %3971 = vmatpush.msrb.mxu3 %v11198_v38  ;;  %v11221_v0 = vld [vmem:[#allocation37_spill] sm:$0xff]  ;;  %v11222_v38 = vld [vmem:[#allocation36_spill] sm:$0xff] }
 0x539   :  { %4011 = vmatpush.msrb.mxu1 %v11199_v2  ;;  %4028 = vmatpush.msrb.mxu2 %v11200_v3  ;;  %v11223_v2 = vld [vmem:[#allocation41_spill] sm:$0xff]  ;;  %v11224_v3 = vld [vmem:[#allocation44_spill] sm:$0xff] }
 0x53a   :  { %3992 = vmatpush.msrb.mxu0 %v11201_v60  ;;  %3972 = vmatpush.msrb.mxu3 %v11202_v26  ;;  %v11225_v60 = vld [vmem:[#allocation45_spill] sm:$0xff]  ;;  %v11226_v26 = vld [vmem:[#allocation40_spill] sm:$0xff] }
 0x53b   :  { %4012 = vmatpush.msrb.mxu1 %v11203_v49  ;;  %4029 = vmatpush.msrb.mxu2 %v11204_v43  ;;  %v11227_v49 = vld [vmem:[#allocation43_spill] sm:$0xff]  ;;  %v11228_v43 = vld [vmem:[#allocation48_spill] sm:$0xff] }
 0x53c   :  { %3993 = vmatpush.msrb.mxu0 %v11205_v8  ;;  %3973 = vmatpush.msrb.mxu3 %v11206_v54  ;;  %v11229_v8 = vld [vmem:[#allocation46_spill] sm:$0xff] }
 0x53d   :  { %4013 = vmatpush.msrb.mxu1 %v11207_v32  ;;  %4030 = vmatpush.msrb.mxu2 %v11208_v28 }
 0x53e   :  { %3994 = vmatpush.msrb.mxu0 %v11209_v31  ;;  %3974 = vmatpush.msrb.mxu3 %v11210_v50 }
 0x53f   :  { %4014 = vmatpush.msrb.mxu1 %v11211_v35  ;;  %4031 = vmatpush.msrb.mxu2 %v11212_v9 }
 0x540   :  { %3995 = vmatpush.msrb.mxu0 %v11213_v21  ;;  %3975 = vmatpush.msrb.mxu3 %v11214_v1 }
 0x541   :  { %4015 = vmatpush.msrb.mxu1 %v11215_v16  ;;  %4032 = vmatpush.msrb.mxu2 %v11216_v45 }
 0x542   :  { %3996 = vmatpush.msrb.mxu0 %v11217_v13  ;;  %3976 = vmatpush.msrb.mxu3 %v11218_v12 }
 0x543   :  { %4016 = vmatpush.msrb.mxu1 %v11219_v56  ;;  %4033 = vmatpush.msrb.mxu2 %v11220_v34 }
 0x544   :  { %3997 = vmatpush.msrb.mxu0 %v11221_v0  ;;  %3977 = vmatpush.msrb.mxu3 %v11222_v38 }
 0x545   :  { %4017 = vmatpush.msrb.mxu1 %v11223_v2  ;;  %4034 = vmatpush.msrb.mxu2 %v11224_v3  ;;  %v11248_v3 = vld [vmem:[#allocation50_spill] sm:$0xff] }
 0x546   :  { %3998 = vmatpush.msrb.mxu0 %v11225_v60  ;;  %3978 = vmatpush.msrb.mxu3 %v11226_v26 }
 0x547   :  { %4018 = vmatpush.msrb.mxu1 %v11227_v49  ;;  %4035 = vmatpush.msrb.mxu2 %v11228_v43  ;;  %v11249_v43 = vld [vmem:[#allocation51_spill] sm:$0xff] }
 0x548   :  { %4063 = vmatpush.msra.mxu0 %v9520_v63  ;;  %4043 = vmatpush.msra.mxu3 %v9515_v33  ;;  %v11230_v33 = vld [vmem:[#allocation47_spill] sm:$0xff]  ;;  %v11231_v63 = vld [vmem:[#allocation49_spill] sm:$0xff] }
 0x549   :  { %4083 = vmatpush.msra.mxu1 %v9528_v42  ;;  %4036 = vmatpush.msrb.mxu2 %v11229_v8  ;;  %v11232_v42 = vld [vmem:[#allocation64_spill] sm:$0xff]  ;;  %v11250_v8 = vld [vmem:[#allocation123_spill] sm:$0xff] }
 0x54a   :  { %4064 = vmatpush.msra.mxu0 %v9540_v46  ;;  %4044 = vmatpush.msra.mxu3 %v9535_v48  ;;  %v11233_v48 = vld [vmem:[#allocation52_spill] sm:$0xff]  ;;  %v11234_v46 = vld [vmem:[#allocation53_spill] sm:$0xff] }
 0x54b   :  { %4084 = vmatpush.msra.mxu1 %v9547_v61  ;;  %4037 = vmatpush.msrb.mxu2 %v11230_v33  ;;  %v11235_v61 = vld [vmem:[#allocation54_spill] sm:$0xff]  ;;  %v199_v33 = vadd.f32 %v11250_v8, %v11249_v43 }
 0x54c   :  { %4065 = vmatpush.msra.mxu0 %v9558_v23  ;;  %4045 = vmatpush.msra.mxu3 %v9553_v53  ;;  %v11236_v53 = vld [vmem:[#allocation68_spill] sm:$0xff]  ;;  %v11237_v23 = vld [vmem:[#allocation55_spill] sm:$0xff] }
 0x54d   :  { %4085 = vmatpush.msra.mxu1 %v9568_v52  ;;  %4038 = vmatpush.msrb.mxu2 %v11231_v63  ;;  %v11238_v52 = vld [vmem:[#allocation56_spill] sm:$0xff] }
 0x54e   :  { %4066 = vmatpush.msra.mxu0 %v9580_v15  ;;  %4046 = vmatpush.msra.mxu3 %v9575_v14  ;;  %v11239_v14 = vld [vmem:[#allocation59_spill] sm:$0xff]  ;;  %v11240_v15 = vld [vmem:[#allocation57_spill] sm:$0xff] }
 0x54f   :  { %4086 = vmatpush.msra.mxu1 %v9590_v4  ;;  %v11241_v4 = vld [vmem:[#allocation58_spill] sm:$0xff] }
 0x550   :  { %4067 = vmatpush.msra.mxu0 %v9611_v41  ;;  %4047 = vmatpush.msra.mxu3 %v9600_v47  ;;  %v11242_v47 = vld [vmem:[#allocation32_spill] sm:$0xff]  ;;  %v11243_v41 = vld [vmem:[#allocation42_spill] sm:$0xff] }
 0x551   :  { %4087 = vmatpush.msra.mxu1 %v9616_v30  ;;  %v158_v30 = vadd.f32 %v11243_v41, %v11242_v47 }
 0x552   :  { %4068 = vmatpush.msra.mxu0 %v9631_v7  ;;  %4048 = vmatpush.msra.mxu3 %v9623_v27 }
 0x553   :  { %4088 = vmatpush.msra.mxu1 %v9636_v22  ;;  %v11244_v22 = vld [vmem:[#allocation7_spill] sm:$0xff] }
 0x554   :  { %4069 = vmatpush.msra.mxu0 %v9649_v51  ;;  %4049 = vmatpush.msra.mxu3 %v9643_v24  ;;  %v11245_v24 = vld [vmem:[#allocation25_spill] sm:$0xff] }
 0x555   :  { %4089 = vmatpush.msra.mxu1 %v9654_v39  ;;  %v117_v51 = vadd.f32 %v11245_v24, %v11244_v22  ;;  %v11253_v22 = vld [vmem:[#allocation14_spill] sm:$0xff] }
 0x556   :  { %4070 = vmatpush.msra.mxu0 %v9670_v17  ;;  %4050 = vmatpush.msra.mxu3 %v9665_v57 }
 0x557   :  { %4090 = vmatpush.msra.mxu1 %v9678_v19 }
 0x558   :  { %4071 = vmatpush.msra.mxu0 %v9694_v59  ;;  %4051 = vmatpush.msra.mxu3 %v9689_v29  ;;  %v11246_v29 = vld [vmem:[#allocation11_spill] sm:$0xff] }
 0x559   :  { %4091 = vmatpush.msra.mxu1 %v11232_v42 }
 0x55a   :  { %4072 = vmatpush.msra.mxu0 %v9712_v37  ;;  %4052 = vmatpush.msra.mxu3 %v11233_v48 }
 0x55b   :  { %4092 = vmatpush.msra.mxu1 %v11234_v46 }
 0x55c   :  { %4073 = vmatpush.msra.mxu0 %v9731_v40  ;;  %4053 = vmatpush.msra.mxu3 %v11235_v61 }
 0x55d   :  { %4093 = vmatpush.msra.mxu1 %v11236_v53 }
 0x55e   :  { %4074 = vmatpush.msra.mxu0 %v9750_v6  ;;  %4054 = vmatpush.msra.mxu3 %v11237_v23 }
 0x55f   :  { %4094 = vmatpush.msra.mxu1 %v11238_v52 }
 0x560   :  { %4075 = vmatpush.msra.mxu0 %v9769_v62  ;;  %4055 = vmatpush.msra.mxu3 %v11239_v14 }
 0x561   :  { %4095 = vmatpush.msra.mxu1 %v11240_v15 }
 0x562   :  { %4076 = vmatpush.msra.mxu0 %v9788_v36  ;;  %4056 = vmatpush.msra.mxu3 %v9783_v18 }
 0x563   :  { %4096 = vmatpush.msra.mxu1 %v11241_v4 }
 0x564   :  { %4077 = vmatpush.msra.mxu0 %v9807_v20  ;;  %4057 = vmatpush.msra.mxu3 %v9802_v25  ;;  %v11247_v20 = vld [vmem:[#allocation10_spill] sm:$0xff] }
 0x565   :  { %4097 = vmatpush.msra.mxu1 %v9815_v11 }
 0x566   :  { %4078 = vmatpush.msra.mxu0 %v9826_v10  ;;  %4058 = vmatpush.msra.mxu3 %v9821_v55 }
 0x567   :  { %4098 = vmatpush.msra.mxu1 %v9834_v5 }
 0x581   :  { %v3411_v27 = vpop.f32.mrf.mxu0 }
 0x582   :  { %v3435_v7 = vadd.f32 %v3411_v27, %v158_v30  ;;  %v3431_v17 = vpop.f32.mrf.mxu1 }
 0x583   :  { %v3474_v60 = vadd.f32 %v11248_v3, %v3431_v17 }
 0x584   :  { %v4223_v18 = vmul.f32 -1.442695, %v3435_v7 }
 0x586   :  { %4364 = vpow2.f32 %v4223_v18 }
 0x587   :  { %v3391_v39 = vpop.f32.mrf.mxu3 }
 0x588   :  { %v3434_v57 = vadd.f32 %v3391_v39, %v117_v51  ;;  %v3626_v62 = vpop.f32.mrf.mxu2 }
 0x589   :  { %v3627_v10 = vadd.f32 %v3626_v62, %v11247_v20 }
 0x58a   :  { %v4222_v11 = vmul.f32 -1.442695, %v3434_v57  ;;  %v3666_v19 = vpop.f32.mrf.mxu0 }
 0x58b   :  { %v3667_v59 = vadd.f32 %v3666_v19, %v11246_v29 }
 0x58c   :  { %4366 = vpow2.f32 %v4222_v11  ;;  %v4365_v25 = vpop.eup %4364 }
 0x58d   :  { %v3443_v5 = vadd.f32 1.0, %v4365_v25 }
 0x58f   :  { %v3470_v53 = vand.u32 2147483648, %v3443_v5  ;;  %vm3464_vm14 = vweird.f32 %v3443_v5  ;;  %v3468_v14 = vand.u32 2147483647, %v3443_v5 }
 0x591   :  { %v3686_v55 = vpop.f32.mrf.mxu1  ;;  %v3471_v41 = vor.u32 1.1754944e-38, %v3470_v53  ;;  %vm3469_vm1 = vcmp.eq.f32.partialorder %v3468_v14, 8.507059e+37  ;;  %v3706_v57 = vpop.f32.mrf.mxu2 }
 0x592   :  { %v4367_v37 = vpop.eup %4366  ;;  %v3687_v40 = vadd.f32 %v3686_v55, %v3667_v59 }
 0x593   :  { %v3442_v6 = vadd.f32 1.0, %v4367_v37 }
 0x594   :  { %v4225_v36 = vmul.f32 -1.442695, %v3687_v40  ;;  %v11254_v40 = vld [vmem:[#allocation12_spill] sm:$0xff] }
 0x595   :  { %4368 = vrcp.f32 %v3442_v6  ;;  %v3455_v16 = vand.u32 2147483648, %v3442_v6  ;;  %v3453_v13 = vand.u32 2147483647, %v3442_v6  ;;  %vm3449_vm10 = vweird.f32 %v3442_v6 }
 0x596   :  { %4370 = vrcp.f32 %v3443_v5 }
 0x597   :  { %v3646_v54 = vpop.f32.mrf.mxu3  ;;  %4372 = vpow2.f32 %v4225_v36  ;;  %v3456_v38 = vor.u32 1.1754944e-38, %v3455_v16  ;;  %vm3454_vm12 = vcmp.eq.f32.partialorder %v3453_v13, 8.507059e+37 }
 0x598   :  { %v3647_v32 = vadd.f32 %v3646_v54, %v3627_v10 }
 0x59a   :  { %v4224_v28 = vmul.f32 -1.442695, %v3647_v32 }
 0x59b   :  { %v4369_v31 = vpop.eup %4368 }
 0x59c   :  { %v4371_v50 = vpop.eup %4370  ;;  %v3445_v35 = vmul.f32 %v4369_v31, %v3442_v6  ;;  %4374 = vpow2.f32 %v4224_v28  ;;  %vm3450_vm9 = vweird.f32 %v4369_v31  ;;  %v3707_v6 = vadd.f32 %v3706_v57, %v11254_v40 }
 0x59d   :  { %v4373_v21 = vpop.eup %4372  ;;  %v3460_v1 = vmul.f32 %v4371_v50, %v3443_v5  ;;  %vm3451_vm11 = vmor %vm3449_vm10, %vm3450_vm9  ;;  %vm3465_vm13 = vweird.f32 %v4371_v50 }
 0x59e   :  { %v3446_v9 = vsub.f32 1.0, %v3445_v35  ;;  %v9965_v34 = vadd.f32 1.0, %v4373_v21  ;;  %vm9971_vm15 = vmor %vm3464_vm14, %vm3465_vm13 }
 0x59f   :  { %v3461_v0 = vsub.f32 1.0, %v3460_v1 }
 0x5a0   :  { %v3447_v45 = vmul.f32 %v4369_v31, %v3446_v9  ;;  %v3803_v35 = vand.u32 2147483648, %v9965_v34  ;;  %vm3797_vm6 = vweird.f32 %v9965_v34  ;;  %v3801_v9 = vand.u32 2147483647, %v9965_v34 }
 0x5a1   :  { %v3462_v42 = vmul.f32 %v4371_v50, %v3461_v0 }
 0x5a2   :  { %v4375_v12 = vpop.eup %4374  ;;  %v3448_v56 = vadd.f32 %v4369_v31, %v3447_v45  ;;  %v3804_v16 = vor.u32 1.1754944e-38, %v3803_v35  ;;  %vm3802_vm8 = vcmp.eq.f32.partialorder %v3801_v9, 8.507059e+37 }
 0x5a3   :  { %v3775_v2 = vadd.f32 1.0, %v4375_v12  ;;  %v3463_v61 = vadd.f32 %v4371_v50, %v3462_v42 }
 0x5a4   :  { %v3452_v26 = vsel %vm3451_vm11, %v4369_v31, %v3448_v56  ;;  %v3746_v15 = vpop.f32.mrf.mxu0  ;;  %v3766_v25 = vpop.f32.mrf.mxu1 }
 0x5a5   :  { %v3457_v49 = vsel %vm3454_vm12, %v3456_v38, %v3452_v26  ;;  %4376 = vrcp.f32 %v3775_v2  ;;  %v3788_v27 = vand.u32 2147483648, %v3775_v2  ;;  %v3467_v7 = vsel %vm9971_vm15, %v4371_v50, %v3463_v61 }
 0x5a6   :  { %v3475_v63 = vmul.f32 %v3474_v60, %v3457_v49  ;;  %4378 = vrcp.f32 %v9965_v34  ;;  %v3747_v24 = vadd.f32 %v3746_v15, %v11253_v22  ;;  %v3786_v39 = vand.u32 2147483647, %v3775_v2 }
 0x5a7   :  { %vm3782_vm2 = vweird.f32 %v3775_v2  ;;  %v3472_v19 = vsel %vm3469_vm1, %v3471_v41, %v3467_v7  ;;  %v3789_v55 = vor.u32 1.1754944e-38, %v3788_v27 }
 0x5a8   :  { %v3476_v48 = vadd.f32 %v3475_v63, %v199_v33  ;;  %v3767_v62 = vadd.f32 %v3766_v25, %v3747_v24  ;;  %vm3787_vm4 = vcmp.eq.f32.partialorder %v3786_v39, 8.507059e+37 }
 0x5a9   :  { %v3726_v37 = vpop.f32.mrf.mxu3 }
 0x5aa   :  { %4380 = vtanh.f32 %v3476_v48  ;;  %v3727_v28 = vadd.f32 %v3726_v37, %v3707_v6 }
 0x5ab   :  { %v4377_v46 = vpop.eup %4376 }
 0x5ac   :  { %v4379_v23 = vpop.eup %4378  ;;  %v3778_v52 = vmul.f32 %v4377_v46, %v3775_v2  ;;  %vm3783_vm0 = vweird.f32 %v4377_v46 }
 0x5ad   :  { %v3793_v30 = vmul.f32 %v4379_v23, %v9965_v34  ;;  %vm3784_vm3 = vmor %vm3782_vm2, %vm3783_vm0  ;;  %vm3798_vm5 = vweird.f32 %v4379_v23 }
 0x5ae   :  { %v3779_v47 = vsub.f32 1.0, %v3778_v52  ;;  %vm3799_vm7 = vmor %vm3797_vm6, %vm3798_vm5 }
 0x5af   :  { %v3794_v59 = vsub.f32 1.0, %v3793_v30 }
 0x5b0   :  { %v4381_v18 = vpop.eup %4380  ;;  %v3780_v51 = vmul.f32 %v4377_v46, %v3779_v47 }
 0x5b1   :  { %v3478_v17 = vsub.f32 %v9510_v44, %v4381_v18  ;;  %v3795_v31 = vmul.f32 %v4379_v23, %v3794_v59 }
 0x5b2   :  { %v3781_v11 = vadd.f32 %v4377_v46, %v3780_v51 }
 0x5b3   :  { %v3479_v5 = vmul.f32 %v3478_v17, %v3472_v19  ;;  %v3796_v50 = vadd.f32 %v4379_v23, %v3795_v31 }
 0x5b4   :  { %v3785_v36 = vsel %vm3784_vm3, %v4377_v46, %v3781_v11 }
 0x5b5   :  { %v3790_v10 = vsel %vm3787_vm4, %v3789_v55, %v3785_v36  ;;  %v3480_v54 = vadd.f32 %v4381_v18, %v3479_v5  ;;  %v3800_v21 = vsel %vm3799_vm7, %v4379_v23, %v3796_v50 }
 0x5b6   :  { %v3807_v32 = vmul.f32 %v3790_v10, %v3767_v62  ;;  %v3805_v13 = vsel %vm3802_vm8, %v3804_v16, %v3800_v21 }
 0x5b7   :  { %3959 = vmatmul.f32.vlgmr.msra.gmra.mxu2 %v3480_v54  ;;  %4151 = vst [vmem:[%s10014_s8] sm:$0xff] %v3480_v54  ;;  %3999 = vmatmul.f32.vlgmr.msrb.gmra.mxu0 %v3480_v54 }
 0x5b8   :  { %v3808_v44 = vadd.f32 %v3807_v32, %v3727_v28 }
 0x5ba   :  { %4382 = vtanh.f32 %v3808_v44 }
 0x5bf   :  { %4039 = vmatmul.f32.vlgmr.msrb.gmra.mxu2 %v3480_v54  ;;  %4079 = vmatmul.f32.vlgmr.msra.gmra.mxu0 %v3480_v54 }
 0x5c0   :  { %v4383_v1 = vpop.eup %4382 }
 0x5c1   :  { %v3810_v45 = vsub.f32 %v9659_v58, %v4383_v1 }
 0x5c3   :  { %v3811_v12 = vmul.f32 %v3810_v45, %v3805_v13 }
 0x5c5   :  { %v9988_v56 = vadd.f32 %v4383_v1, %v3811_v12 }
 0x5c7   :  { %4226 = vst [vmem:[%s10013_s7 + $0x30] sm:$0xff] %v9988_v56  ;;  %3979 = vmatmul.f32.vlgmr.msrb.gmra.mxu3 %v9988_v56  ;;  %4019 = vmatmul.f32.vlgmr.msrb.gmra.mxu1 %v9988_v56 }
 0x5cf   :  { %4059 = vmatmul.f32.vlgmr.msra.gmra.mxu3 %v9988_v56  ;;  %4099 = vmatmul.f32.vlgmr.msra.gmra.mxu1 %v9988_v56 }
 0x634   :  { %v4000_v34 = vpop.f32.mrf.mxu0 }
 0x635   :  { %v4001_v58 = vadd.f32 %v4000_v34, %v11246_v29 }
 0x63a   :  { %v3960_v2 = vpop.f32.mrf.mxu2 }
 0x63b   :  { %v3961_v60 = vadd.f32 %v3960_v2, %v11247_v20 }
 0x63c   :  { %v4080_v53 = vpop.f32.mrf.mxu0 }
 0x63d   :  { %v4081_v47 = vadd.f32 %v4080_v53, %v11253_v22 }
 0x642   :  { %v4040_v15 = vpop.f32.mrf.mxu2 }
 0x643   :  { %v4041_v18 = vadd.f32 %v4040_v15, %v11254_v40 }
 0x644   :  { %v4020_v0 = vpop.f32.mrf.mxu1 }
 0x645   :  { %v4021_v38 = vadd.f32 %v4020_v0, %v4001_v58 }
 0x647   :  { %v4228_v3 = vmul.f32 -1.442695, %v4021_v38 }
 0x649   :  { %4384 = vpow2.f32 %v4228_v3 }
 0x64a   :  { %v3980_v26 = vpop.f32.mrf.mxu3 }
 0x64b   :  { %v3981_v49 = vadd.f32 %v3980_v26, %v3961_v60 }
 0x64c   :  { %v4100_v4 = vpop.f32.mrf.mxu1 }
 0x64d   :  { %v4227_v43 = vmul.f32 -1.442695, %v3981_v49  ;;  %v4101_v24 = vadd.f32 %v4100_v4, %v4081_v47 }
 0x64f   :  { %4386 = vpow2.f32 %v4227_v43  ;;  %v4385_v8 = vpop.eup %4384 }
 0x650   :  { %v4110_v63 = vadd.f32 1.0, %v4385_v8 }
 0x652   :  { %v4060_v7 = vpop.f32.mrf.mxu3  ;;  %v4137_v22 = vand.u32 2147483648, %v4110_v63  ;;  %vm4131_vm14 = vweird.f32 %v4110_v63  ;;  %v4135_v25 = vand.u32 2147483647, %v4110_v63 }
 0x653   :  { %v4061_v17 = vadd.f32 %v4060_v7, %v4041_v18 }
 0x654   :  { %v4138_v5 = vor.u32 1.1754944e-38, %v4137_v22  ;;  %vm4136_vm0 = vcmp.eq.f32.partialorder %v4135_v25, 8.507059e+37 }
 0x655   :  { %v4387_v33 = vpop.eup %4386 }
 0x656   :  { %v4109_v42 = vadd.f32 1.0, %v4387_v33 }
 0x658   :  { %4388 = vrcp.f32 %v4109_v42  ;;  %v4122_v52 = vand.u32 2147483648, %v4109_v42  ;;  %v4120_v20 = vand.u32 2147483647, %v4109_v42  ;;  %vm4116_vm10 = vweird.f32 %v4109_v42 }
 0x659   :  { %4390 = vrcp.f32 %v4110_v63 }
 0x65a   :  { %v4123_v27 = vor.u32 1.1754944e-38, %v4122_v52  ;;  %vm4121_vm12 = vcmp.eq.f32.partialorder %v4120_v20, 8.507059e+37 }
 0x65e   :  { %v4389_v48 = vpop.eup %4388 }
 0x65f   :  { %v4391_v46 = vpop.eup %4390  ;;  %v4112_v29 = vmul.f32 %v4389_v48, %v4109_v42  ;;  %vm4117_vm9 = vweird.f32 %v4389_v48 }
 0x660   :  { %v4127_v23 = vmul.f32 %v4391_v46, %v4110_v63  ;;  %vm4118_vm11 = vmor %vm4116_vm10, %vm4117_vm9  ;;  %vm4132_vm13 = vweird.f32 %v4391_v46 }
 0x661   :  { %v4113_v61 = vsub.f32 1.0, %v4112_v29  ;;  %vm4133_vm15 = vmor %vm4131_vm14, %vm4132_vm13 }
 0x662   :  { %v4128_v30 = vsub.f32 1.0, %v4127_v23 }
 0x663   :  { %v4114_v14 = vmul.f32 %v4389_v48, %v4113_v61 }
 0x664   :  { %v4129_v11 = vmul.f32 %v4391_v46, %v4128_v30 }
 0x665   :  { %v4115_v41 = vadd.f32 %v4389_v48, %v4114_v14 }
 0x666   :  { %v4130_v59 = vadd.f32 %v4391_v46, %v4129_v11 }
 0x667   :  { %v4119_v51 = vsel %vm4118_vm11, %v4389_v48, %v4115_v41 }
 0x668   :  { %v4124_v39 = vsel %vm4121_vm12, %v4123_v27, %v4119_v51  ;;  %v4134_v55 = vsel %vm4133_vm15, %v4391_v46, %v4130_v59 }
 0x669   :  { %v4141_v57 = vmul.f32 %v4124_v39, %v4101_v24  ;;  %v4139_v6 = vsel %vm4136_vm0, %v4138_v5, %v4134_v55 }
 0x66b   :  { %v4142_v19 = vadd.f32 %v4141_v57, %v4061_v17 }
 0x66d   :  { %4392 = vtanh.f32 %v4142_v19 }
 0x673   :  { %v4393_v37 = vpop.eup %4392 }
 0x674   :  { %v4144_v40 = vsub.f32 %v9988_v56, %v4393_v37 }
 0x676   :  { %v4145_v62 = vmul.f32 %v4144_v40, %v4139_v6 }
 0x678   :  { %v4146_v36 = vadd.f32 %v4393_v37, %v4145_v62 }
 0x67a   :  { %4229 = vst [vmem:[%s10013_s7 + $0x38] sm:$0xff] %v4146_v36 }

</bundles_post_ra>
